<compile_context>
chip_gen: v5e
topology: v5e:2x2
jax: 0.10.0
libtpu: 0.0.40
codegen_flags: <defaults>
</compile_context>

<pallas_src>
import numpy as np
import jax
import jax.numpy as jnp
from jax.experimental import pallas as pl
from jax.experimental.pallas import tpu as pltpu

_H = _W = 16
_HW = _H * _W
_IN_CH = 4
_IN_PAD = 8          # input channels zero-padded to 8 (sublane aligned)
_OUT_CH = 3

# ---- packed bias slab layout: every slot padded to a multiple of 8 rows ----------
_BIAS_SLOTS = (
    ("b1a", 8), ("b1b", 8), ("b2a", 16), ("b2b", 16), ("b3a", 32), ("b3b", 32),
    ("bu2x4", 128), ("bs2", 16), ("b2c", 16), ("bu1x4", 64),
    ("bs1", 8), ("b1c", 8), ("bff", 8),
)
_BIAS_OFF = {}
_off = 0
for _name, _rows in _BIAS_SLOTS:
    _BIAS_OFF[_name] = _off
    _off += _rows
_BIAS_ROWS = _off   # 360


# -----------------------------------------------------------------------------------
# One-hot phase matrices (exact scatter / selection via MXU matmuls).
#   S[t=2p+q, y*W+x, (2y+p)*2W+(2x+q)] = 1
# Used forward for ConvTranspose2d(k=2,s=2), transposed for 2x2 max-pool selection.
# NOTE: O((H*W)^2) bytes -- if resolution ever grows, replace with a strided
# interleave / tiled scatter and re-derive the VMEM budget (v7x has only 64 MiB).
# -----------------------------------------------------------------------------------
def _scatter_mats(H, W):
    HW = H * W
    S = np.zeros((4, HW, 4 * HW), np.float32)
    for p in range(2):
        for q in range(2):
            t = 2 * p + q
            for y in range(H):
                for x in range(W):
                    S[t, y * W + x, (2 * y + p) * (2 * W) + (2 * x + q)] = 1.0
    return S


_SU2_NP = _scatter_mats(4, 4)                                   # (4, 16, 64)  up 4x4->8x8
_SU1_NP = _scatter_mats(8, 8)                                   # (4, 64, 256) up 8x8->16x16
_PP1_NP = np.ascontiguousarray(np.transpose(_scatter_mats(8, 8), (0, 2, 1)))  # pool 16->8
_PP2_NP = np.ascontiguousarray(np.transpose(_scatter_mats(4, 4), (0, 2, 1)))  # pool 8->4


# -----------------------------------------------------------------------------------
# Fused UNet_2D forward kernel: one batch element per grid step.
# Activations are (C, H*W) f32 slabs (channels on sublanes, spatial on lanes).
# -----------------------------------------------------------------------------------
def _unet_kernel(x_ref,
                 w1a_ref, w1b_ref, w2a_ref, w2b_ref, w3a_ref, w3b_ref,
                 wu2_ref, ws2_ref, w2c_ref,
                 wu1_ref, ws1_ref, w1c_ref, wf_ref,
                 bias_ref, su2_ref, su1_ref, pp1_ref, pp2_ref,
                 o_ref):
    f32, bf16 = jnp.float32, jnp.bfloat16

    # ---- column masks, computed ONCE (hoisted out of the 11 conv calls) -----------
    def _col_masks(W, HW):
        col = jax.lax.broadcasted_iota(jnp.int32, (1, HW), 1) & (W - 1)  # W is pow2
        return ((col >= 1).astype(f32), (col <= W - 2).astype(f32))
    masks = {16: _col_masks(16, 256), 8: _col_masks(8, 64), 4: _col_masks(4, 16)}

    def bias_rows(name, n):
        off = _BIAS_OFF[name]
        return bias_ref[off:off + n, :]                        # (n, 1) f32

    def conv3x3(a, w_ref, bname, H, W, act):
        """3x3 SAME conv as ONE MXU dot: im2col of 9 lane-shifted slabs along K."""
        HW = H * W
        C = a.shape[0]
        cout = w_ref.shape[0]
        zpad = jnp.zeros((C, 2 * W), f32)
        apad = jnp.concatenate([zpad, a, zpad], axis=1)        # (C, HW + 4W)
        m0, m2 = masks[W]
        blocks = []
        for k in range(9):
            dy, dx = divmod(k, 3)
            start = (dy + 1) * W + dx - 1                      # static lane offset
            p = jax.lax.slice_in_dim(apad, start, start + HW, axis=1)
            if dx == 0:
                p = p * m0                                     # left-edge wrap masked
            elif dx == 2:
                p = p * m2                                     # right-edge wrap masked
            blocks.append(p)
        patch = jnp.concatenate(blocks, axis=0).astype(bf16)   # (9*C, HW), aligned
        out = jnp.dot(w_ref[...], patch, preferred_element_type=f32)  # (cout, HW)
        out = out + bias_rows(bname, cout)
        if act:                                                # ELU (EUP exp)
            out = jnp.where(out > 0, out, jnp.exp(jnp.minimum(out, 0.0)) - 1.0)
        return out

    def maxpool2x2(a, p_ref):
        """2x2/stride-2 max pool: 4 one-hot phase-selection dots + elementwise max."""
        a_bf = a.astype(bf16)
        r = jnp.dot(a_bf, p_ref[0], preferred_element_type=f32)
        for t in range(1, 4):
            r = jnp.maximum(r, jnp.dot(a_bf, p_ref[t], preferred_element_type=f32))
        return r

    def upconv2x2(a, wu_ref, bname, s_ref):
        """ConvTranspose2d(k=2,s=2): merged weight dot + exact one-hot scatter dots."""
        cout4 = wu_ref.shape[0]
        cout = cout4 // 4
        y = jnp.dot(wu_ref[...], a.astype(bf16), preferred_element_type=f32)  # (4Cout, HW)
        y = (y + bias_rows(bname, cout4)).astype(bf16)         # bias folded pre-scatter
        out = jnp.dot(y[0:cout], s_ref[0], preferred_element_type=f32)
        for t in range(1, 4):
            out = out + jnp.dot(y[t * cout:(t + 1) * cout], s_ref[t],
                                preferred_element_type=f32)
        return out                                             # (Cout, 4*HW) f32

    x8 = x_ref[0]                                              # (8, 256); ch 4..7 zero

    # ---- encoder (model_depth_seg = 2) + bottleneck --------------------------------
    e1a = conv3x3(x8, w1a_ref, "b1a", 16, 16, True)            # (8, 256)
    e1b = conv3x3(e1a, w1b_ref, "b1b", 16, 16, True)           # (8, 256)   skip1=[x,e1b]
    p1 = maxpool2x2(e1b, pp1_ref)                              # (8, 64)
    e2a = conv3x3(p1, w2a_ref, "b2a", 8, 8, True)              # (16, 64)
    e2b = conv3x3(e2a, w2b_ref, "b2b", 8, 8, True)             # (16, 64)   skip2=[p1,e2b]
    p2 = maxpool2x2(e2b, pp2_ref)                              # (16, 16)
    bna = conv3x3(p2, w3a_ref, "b3a", 4, 4, True)              # (32, 16)
    bnb = conv3x3(bna, w3b_ref, "b3b", 4, 4, True)             # (32, 16)

    # ---- decoder block, depth 2 -----------------------------------------------------
    u2 = upconv2x2(bnb, wu2_ref, "bu2x4", su2_ref)             # (32, 64)
    cat2 = jnp.concatenate([u2, p1, e2b], axis=0)              # (56, 64)  [up, i, o4]
    d2a = conv3x3(cat2, ws2_ref, "bs2", 8, 8, True)            # (16, 64)
    d2b = conv3x3(d2a, w2c_ref, "b2c", 8, 8, True)             # (16, 64)

    # ---- decoder block, depth 1 (final) ---------------------------------------------
    u1 = upconv2x2(d2b, wu1_ref, "bu1x4", su1_ref)             # (16, 256)
    cat1 = jnp.concatenate([u1, x8, e1b], axis=0)              # (32, 256) [up, i(pad), o4]
    d1a = conv3x3(cat1, ws1_ref, "bs1", 16, 16, True)          # (8, 256)
    d1b = conv3x3(d1a, w1c_ref, "b1c", 16, 16, True)           # (8, 256)
    # final_conv_1 (3x3) and final_conv_2 (1x1) fused algebraically in the wrapper.
    out = conv3x3(d1b, wf_ref, "bff", 16, 16, False)           # (3, 256)

    o_ref[...] = out.reshape(1, _OUT_CH, _HW)                  # lane-dense store


# -----------------------------------------------------------------------------------
# Wrapper-side weight packing.
# 3x3 conv params are (9, Cin, Cout) with k = 3*dy + dx; ConvTranspose params are
# (4, Cin, Cout) with t = 2*p + q.
# -----------------------------------------------------------------------------------
def _pack_conv(blocks):
    """blocks: list of (w9 (9,Cin,Cout), cin_pad). Returns (Cout, 9*sum(cin_pad)) bf16."""
    cout = blocks[0][0].shape[2]
    taps = []
    for k in range(9):
        cols = []
        for w9, cpad in blocks:
            wk = w9[k]
            cin = wk.shape[0]
            if cpad > cin:
                wk = jnp.concatenate(
                    [wk, jnp.zeros((cpad - cin, cout), wk.dtype)], axis=0)
            cols.append(wk)
        taps.append(jnp.concatenate(cols, axis=0))             # (Cin_tot_pad, Cout)
    return jnp.concatenate(taps, axis=0).T.astype(jnp.bfloat16)


def _pack_upconv(w4):
    """(4, Cin, Cout) -> (4*Cout, Cin) bf16 (phase-major rows)."""
    cin = w4.shape[1]
    return jnp.transpose(w4, (0, 2, 1)).reshape(-1, cin).astype(jnp.bfloat16)


def _prepare_kernel_args(P):
    # final_conv_1 (3x3, no act) + final_conv_2 (1x1, no act): exact algebraic fusion.
    wf9 = jnp.einsum("kio,oj->kij", P["wf1"], P["wf2"])        # (9, 8, 3)
    bff = P["bf1"] @ P["wf2"] + P["bf2"]                       # (3,)

    bias_vecs = {
        "b1a": P["b1a"], "b1b": P["b1b"], "b2a": P["b2a"], "b2b": P["b2b"],
        "b3a": P["b3a"], "b3b": P["b3b"],
        "bu2x4": jnp.tile(P["bu2"], 4), "bs2": P["bs2"], "b2c": P["b2c"],
        "bu1x4": jnp.tile(P["bu1"], 4),
        "bs1": P["bs1"], "b1c": P["b1c"], "bff": bff,
    }
    rows = []
    for name, pad in _BIAS_SLOTS:
        v = bias_vecs[name].astype(jnp.float32)
        rows.append(jnp.zeros((pad,), jnp.float32).at[: v.shape[0]].set(v))
    bias_pack = jnp.concatenate(rows).reshape(_BIAS_ROWS, 1)   # (360, 1)

    return [
        _pack_conv([(P["w1a"], 8)]),                           # (8, 72)
        _pack_conv([(P["w1b"], 8)]),                           # (8, 72)
        _pack_conv([(P["w2a"], 8)]),                           # (16, 72)
        _pack_conv([(P["w2b"], 16)]),                          # (16, 144)
        _pack_conv([(P["w3a"], 16)]),                          # (32, 144)
        _pack_conv([(P["w3b"], 32)]),                          # (32, 288)
        _pack_upconv(P["wu2"]),                                # (128, 32)
        _pack_conv([(P["ws2_up"], 32), (P["ws2_xi"], 8), (P["ws2_o4"], 16)]),  # (16, 504)
        _pack_conv([(P["w2c"], 16)]),                          # (16, 144)
        _pack_upconv(P["wu1"]),                                # (64, 16)
        _pack_conv([(P["ws1_up"], 16), (P["ws1_xi"], 8), (P["ws1_o4"], 8)]),   # (8, 288)
        _pack_conv([(P["w1c"], 8)]),                           # (8, 72)
        _pack_conv([(wf9, 8)]),                                # (3, 72)
        bias_pack,
        jnp.asarray(_SU2_NP, jnp.bfloat16),
        jnp.asarray(_SU1_NP, jnp.bfloat16),
        jnp.asarray(_PP1_NP, jnp.bfloat16),
        jnp.asarray(_PP2_NP, jnp.bfloat16),
    ]


def _const_spec(a):
    idx = (0,) * a.ndim
    return pl.BlockSpec(a.shape, lambda n, _idx=idx: _idx)     # resident, DMA'd once


def unet2d_forward(x_nchw, P):
    N = x_nchw.shape[0]
    # NCHW -> channels-first, lane-dense flat spatial (pure reshape, no transpose),
    # then zero-pad channels 4 -> 8 so every sublane concat in-kernel is aligned.
    x_cl = x_nchw.reshape(N, _IN_CH, _HW).astype(jnp.float32)
    x_cl = jnp.concatenate(
        [x_cl, jnp.zeros((N, _IN_PAD - _IN_CH, _HW), jnp.float32)], axis=1)

    args = _prepare_kernel_args(P)

    in_specs = [pl.BlockSpec((1, _IN_PAD, _HW), lambda n: (n, 0, 0))]
    in_specs += [_const_spec(a) for a in args]

    out = pl.pallas_call(
        _unet_kernel,
        out_shape=jax.ShapeDtypeStruct((N, _OUT_CH, _HW), jnp.float32),
        grid=(N,),
        in_specs=in_specs,
        out_specs=pl.BlockSpec((1, _OUT_CH, _HW), lambda n: (n, 0, 0)),
        compiler_params=pltpu.CompilerParams(
            dimension_semantics=("parallel",)),                # v7x: 1 batch elem / TC
    )(x_cl, *args)
    return out.reshape(N, _OUT_CH, _H, _W)                     # NCHW (pure reshape)


# -----------------------------------------------------------------------------------
# Pure-JAX reference (mirrors the PyTorch forward; bf16 operands, f32 accumulate).
# -----------------------------------------------------------------------------------
def _conv3_ref(x, w9, b):
    cin, cout = w9.shape[1], w9.shape[2]
    w_hwio = w9.reshape(3, 3, cin, cout).astype(jnp.bfloat16)
    y = jax.lax.conv_general_dilated(
        x.astype(jnp.bfloat16), w_hwio, (1, 1), "SAME",
        dimension_numbers=("NHWC", "HWIO", "NHWC"),
        preferred_element_type=jnp.float32)
    return y + b.reshape(1, 1, 1, -1)


def _upconv_ref(x, w4, b):
    N, H, W, _ = x.shape
    cout = w4.shape[-1]
    xb = x.astype(jnp.bfloat16)
    out = jnp.zeros((N, 2 * H, 2 * W, cout), jnp.float32)
    for p in range(2):
        for q in range(2):
            y = jnp.einsum("nhwc,co->nhwo", xb, w4[2 * p + q].astype(jnp.bfloat16),
                           preferred_element_type=jnp.float32)
            out = out.at[:, p::2, q::2, :].set(y)
    return out + b.reshape(1, 1, 1, -1)


def _pool_ref(x):
    return jax.lax.reduce_window(x, -jnp.inf, jax.lax.max,
                                 (1, 2, 2, 1), (1, 2, 2, 1), "VALID")


def unet2d_reference(x_nchw, P):
    elu = jax.nn.elu
    x = jnp.transpose(x_nchw, (0, 2, 3, 1))
    e1a = elu(_conv3_ref(x, P["w1a"], P["b1a"]))
    e1b = elu(_conv3_ref(e1a, P["w1b"], P["b1b"]))
    p1 = _pool_ref(e1b)
    e2a = elu(_conv3_ref(p1, P["w2a"], P["b2a"]))
    e2b = elu(_conv3_ref(e2a, P["w2b"], P["b2b"]))
    p2 = _pool_ref(e2b)
    bna = elu(_conv3_ref(p2, P["w3a"], P["b3a"]))
    bnb = elu(_conv3_ref(bna, P["w3b"], P["b3b"]))
    # decoder depth 2
    u2 = _upconv_ref(bnb, P["wu2"], P["bu2"])
    cat2 = jnp.concatenate([u2, p1, e2b], axis=-1)
    ws2 = jnp.concatenate([P["ws2_up"], P["ws2_xi"], P["ws2_o4"]], axis=1)
    d2a = elu(_conv3_ref(cat2, ws2, P["bs2"]))
    d2b = elu(_conv3_ref(d2a, P["w2c"], P["b2c"]))
    # decoder depth 1 (final)
    u1 = _upconv_ref(d2b, P["wu1"], P["bu1"])
    cat1 = jnp.concatenate([u1, x, e1b], axis=-1)
    ws1 = jnp.concatenate([P["ws1_up"], P["ws1_xi"], P["ws1_o4"]], axis=1)
    d1a = elu(_conv3_ref(cat1, ws1, P["bs1"]))
    d1b = elu(_conv3_ref(d1a, P["w1c"], P["b1c"]))
    f1 = _conv3_ref(d1b, P["wf1"], P["bf1"])                   # no activation
    f2 = jnp.einsum("nhwo,oj->nhwj", f1.astype(jnp.bfloat16),
                    P["wf2"].astype(jnp.bfloat16),
                    preferred_element_type=jnp.float32) + P["bf2"].reshape(1, 1, 1, -1)
    return jnp.transpose(f2, (0, 3, 1, 2))


# -----------------------------------------------------------------------------------
# Parameter init (3x3 conv: (9, Cin, Cout), k = 3*dy+dx; ConvTranspose2d(2,2):
# (4, Cin, Cout), t = 2*p+q; 1x1 conv: (Cin, Cout)).
# -----------------------------------------------------------------------------------
def init_params(key):
    ks = list(jax.random.split(key, 40))
    it = iter(ks)

    def conv3(cin, cout):
        w = jax.random.normal(next(it), (9, cin, cout), jnp.float32) / np.sqrt(9.0 * cin)
        b = 0.05 * jax.random.normal(next(it), (cout,), jnp.float32)
        return w, b

    def upw(cin, cout):
        w = jax.random.normal(next(it), (4, cin, cout), jnp.float32) / np.sqrt(4.0 * cin)
        b = 0.05 * jax.random.normal(next(it), (cout,), jnp.float32)
        return w, b

    P = {}
    P["w1a"], P["b1a"] = conv3(4, 8)
    P["w1b"], P["b1b"] = conv3(8, 8)
    P["w2a"], P["b2a"] = conv3(8, 16)
    P["w2b"], P["b2b"] = conv3(16, 16)
    P["w3a"], P["b3a"] = conv3(16, 32)
    P["w3b"], P["b3b"] = conv3(32, 32)
    # decoder depth 2: upconv 32->32, skip conv (32 + 8 + 16 -> 16), conv 16->16
    P["wu2"], P["bu2"] = upw(32, 32)
    P["ws2_up"], P["bs2"] = conv3(32, 16)
    P["ws2_xi"], _ = conv3(8, 16)
    P["ws2_o4"], _ = conv3(16, 16)
    P["w2c"], P["b2c"] = conv3(16, 16)
    # decoder depth 1: upconv 16->16, skip conv (16 + 4 + 8 -> 8), conv 8->8, final convs
    P["wu1"], P["bu1"] = upw(16, 16)
    P["ws1_up"], P["bs1"] = conv3(16, 8)
    P["ws1_xi"], _ = conv3(4, 8)
    P["ws1_o4"], _ = conv3(8, 8)
    P["w1c"], P["b1c"] = conv3(8, 8)
    P["wf1"], P["bf1"] = conv3(8, 3)
    P["wf2"] = jax.random.normal(next(it), (3, 3), jnp.float32) / np.sqrt(3.0)
    P["bf2"] = 0.05 * jax.random.normal(next(it), (3,), jnp.float32)
    return P


if __name__ == "__main__":
    key = jax.random.PRNGKey(0)
    kp, kx = jax.random.split(key)
    params = init_params(kp)
    x = jax.random.normal(kx, (2, _IN_CH, _H, _W), jnp.float32)   # NCHW

    fwd = jax.jit(unet2d_forward)
    out = jax.block_until_ready(fwd(x, params))
    assert out.shape == (2, _OUT_CH, _H, _W), out.shape

    ref = jax.block_until_ready(unet2d_reference(x, params))
    # Both paths use bf16 MXU operands with f32 accumulation; 5e-2 absorbs bf16
    # rounding-order differences while still catching any structural bug.
    np.testing.assert_allclose(np.asarray(out), np.asarray(ref), rtol=5e-2, atol=5e-2)
    print("KERNEL_OK")
</pallas_src>

<mosaic_0001>
module attributes {stable_mosaic.version = 11 : i64} {
  func.func @_unet_kernel(%arg0: i32, %arg1: memref<1x8x256xf32, #tpu.memory_space<vmem>>, %arg2: memref<8x72xbf16, #tpu.memory_space<vmem>>, %arg3: memref<8x72xbf16, #tpu.memory_space<vmem>>, %arg4: memref<16x72xbf16, #tpu.memory_space<vmem>>, %arg5: memref<16x144xbf16, #tpu.memory_space<vmem>>, %arg6: memref<32x144xbf16, #tpu.memory_space<vmem>>, %arg7: memref<32x288xbf16, #tpu.memory_space<vmem>>, %arg8: memref<128x32xbf16, #tpu.memory_space<vmem>>, %arg9: memref<16x504xbf16, #tpu.memory_space<vmem>>, %arg10: memref<16x144xbf16, #tpu.memory_space<vmem>>, %arg11: memref<64x16xbf16, #tpu.memory_space<vmem>>, %arg12: memref<8x288xbf16, #tpu.memory_space<vmem>>, %arg13: memref<8x72xbf16, #tpu.memory_space<vmem>>, %arg14: memref<3x72xbf16, #tpu.memory_space<vmem>>, %arg15: memref<360x1xf32, #tpu.memory_space<vmem>>, %arg16: memref<4x16x64xbf16, #tpu.memory_space<vmem>>, %arg17: memref<4x64x256xbf16, #tpu.memory_space<vmem>>, %arg18: memref<4x256x64xbf16, #tpu.memory_space<vmem>>, %arg19: memref<4x64x16xbf16, #tpu.memory_space<vmem>>, %arg20: memref<1x3x256xf32, #tpu.memory_space<vmem>>) attributes {dimension_semantics = [#tpu.dimension_semantics<parallel>], iteration_bounds = array<i64: 2>, scalar_prefetch = 0 : i64, scratch_operands = 0 : i64, tpu.core_type = #tpu.core_type<tc>, window_params = [{transform_indices = @transform_0, window_bounds = array<i64: 1, 8, 256>}, {pipeline_mode = #tpu.pipeline_mode<synchronous>, transform_indices = @transform_1, window_bounds = array<i64: 8, 72>}, {pipeline_mode = #tpu.pipeline_mode<synchronous>, transform_indices = @transform_2, window_bounds = array<i64: 8, 72>}, {pipeline_mode = #tpu.pipeline_mode<synchronous>, transform_indices = @transform_3, window_bounds = array<i64: 16, 72>}, {pipeline_mode = #tpu.pipeline_mode<synchronous>, transform_indices = @transform_4, window_bounds = array<i64: 16, 144>}, {pipeline_mode = #tpu.pipeline_mode<synchronous>, transform_indices = @transform_5, window_bounds = array<i64: 32, 144>}, {pipeline_mode = #tpu.pipeline_mode<synchronous>, transform_indices = @transform_6, window_bounds = array<i64: 32, 288>}, {pipeline_mode = #tpu.pipeline_mode<synchronous>, transform_indices = @transform_7, window_bounds = array<i64: 128, 32>}, {pipeline_mode = #tpu.pipeline_mode<synchronous>, transform_indices = @transform_8, window_bounds = array<i64: 16, 504>}, {pipeline_mode = #tpu.pipeline_mode<synchronous>, transform_indices = @transform_9, window_bounds = array<i64: 16, 144>}, {pipeline_mode = #tpu.pipeline_mode<synchronous>, transform_indices = @transform_10, window_bounds = array<i64: 64, 16>}, {pipeline_mode = #tpu.pipeline_mode<synchronous>, transform_indices = @transform_11, window_bounds = array<i64: 8, 288>}, {pipeline_mode = #tpu.pipeline_mode<synchronous>, transform_indices = @transform_12, window_bounds = array<i64: 8, 72>}, {pipeline_mode = #tpu.pipeline_mode<synchronous>, transform_indices = @transform_13, window_bounds = array<i64: 3, 72>}, {pipeline_mode = #tpu.pipeline_mode<synchronous>, transform_indices = @transform_14, window_bounds = array<i64: 360, 1>}, {pipeline_mode = #tpu.pipeline_mode<synchronous>, transform_indices = @transform_15, window_bounds = array<i64: 4, 16, 64>}, {pipeline_mode = #tpu.pipeline_mode<synchronous>, transform_indices = @transform_16, window_bounds = array<i64: 4, 64, 256>}, {pipeline_mode = #tpu.pipeline_mode<synchronous>, transform_indices = @transform_17, window_bounds = array<i64: 4, 256, 64>}, {pipeline_mode = #tpu.pipeline_mode<synchronous>, transform_indices = @transform_18, window_bounds = array<i64: 4, 64, 16>}, {transform_indices = @transform_19, window_bounds = array<i64: 1, 3, 256>}]} {
    %0 = tpu.iota {dimensions = array<i32: 1>} : vector<1x256xi32>
    %c15_i32 = arith.constant 15 : i32
    %1 = vector.broadcast %c15_i32 : i32 to vector<1x256xi32>
    %2 = arith.andi %0, %1 : vector<1x256xi32>
    %c1_i32 = arith.constant 1 : i32
    %3 = vector.broadcast %c1_i32 : i32 to vector<1x256xi32>
    %4 = arith.cmpi sge, %2, %3 : vector<1x256xi32>
    %5 = arith.extui %4 : vector<1x256xi1> to vector<1x256xi32>
    %6 = arith.sitofp %5 : vector<1x256xi32> to vector<1x256xf32>
    %c14_i32 = arith.constant 14 : i32
    %7 = vector.broadcast %c14_i32 : i32 to vector<1x256xi32>
    %8 = arith.cmpi sle, %2, %7 : vector<1x256xi32>
    %9 = arith.extui %8 : vector<1x256xi1> to vector<1x256xi32>
    %10 = arith.sitofp %9 : vector<1x256xi32> to vector<1x256xf32>
    %11 = tpu.iota {dimensions = array<i32: 1>} : vector<1x64xi32>
    %c7_i32 = arith.constant 7 : i32
    %12 = vector.broadcast %c7_i32 : i32 to vector<1x64xi32>
    %13 = arith.andi %11, %12 : vector<1x64xi32>
    %c1_i32_0 = arith.constant 1 : i32
    %14 = vector.broadcast %c1_i32_0 : i32 to vector<1x64xi32>
    %15 = arith.cmpi sge, %13, %14 : vector<1x64xi32>
    %16 = arith.extui %15 : vector<1x64xi1> to vector<1x64xi32>
    %17 = arith.sitofp %16 : vector<1x64xi32> to vector<1x64xf32>
    %c6_i32 = arith.constant 6 : i32
    %18 = vector.broadcast %c6_i32 : i32 to vector<1x64xi32>
    %19 = arith.cmpi sle, %13, %18 : vector<1x64xi32>
    %20 = arith.extui %19 : vector<1x64xi1> to vector<1x64xi32>
    %21 = arith.sitofp %20 : vector<1x64xi32> to vector<1x64xf32>
    %22 = tpu.iota {dimensions = array<i32: 1>} : vector<1x16xi32>
    %c3_i32 = arith.constant 3 : i32
    %23 = vector.broadcast %c3_i32 : i32 to vector<1x16xi32>
    %24 = arith.andi %22, %23 : vector<1x16xi32>
    %c1_i32_1 = arith.constant 1 : i32
    %25 = vector.broadcast %c1_i32_1 : i32 to vector<1x16xi32>
    %26 = arith.cmpi sge, %24, %25 : vector<1x16xi32>
    %27 = arith.extui %26 : vector<1x16xi1> to vector<1x16xi32>
    %28 = arith.sitofp %27 : vector<1x16xi32> to vector<1x16xf32>
    %c2_i32 = arith.constant 2 : i32
    %29 = vector.broadcast %c2_i32 : i32 to vector<1x16xi32>
    %30 = arith.cmpi sle, %24, %29 : vector<1x16xi32>
    %31 = arith.extui %30 : vector<1x16xi1> to vector<1x16xi32>
    %32 = arith.sitofp %31 : vector<1x16xi32> to vector<1x16xf32>
    %c0 = arith.constant 0 : index
    %c0_2 = arith.constant 0 : index
    %c0_3 = arith.constant 0 : index
    %33 = vector.load %arg1[%c0, %c0_2, %c0_3] : memref<1x8x256xf32, #tpu.memory_space<vmem>>, vector<1x8x256xf32>
    %34 = vector.shape_cast %33 : vector<1x8x256xf32> to vector<8x256xf32>
    %cst = arith.constant 0.000000e+00 : f32
    %35 = vector.broadcast %cst : f32 to vector<8x32xf32>
    %36 = tpu.concatenate %35, %34, %35 in 1 : vector<8x32xf32>, vector<8x256xf32>, vector<8x32xf32> -> vector<8x320xf32>
    %37 = vector.extract_strided_slice %36 {offsets = [0, 15], sizes = [8, 256], strides = [1, 1]} : vector<8x320xf32> to vector<8x256xf32>
    %38 = vector.broadcast %6 : vector<1x256xf32> to vector<8x256xf32>
    %39 = arith.mulf %37, %38 : vector<8x256xf32>
    %40 = vector.extract_strided_slice %36 {offsets = [0, 16], sizes = [8, 256], strides = [1, 1]} : vector<8x320xf32> to vector<8x256xf32>
    %41 = vector.extract_strided_slice %36 {offsets = [0, 17], sizes = [8, 256], strides = [1, 1]} : vector<8x320xf32> to vector<8x256xf32>
    %42 = vector.broadcast %10 : vector<1x256xf32> to vector<8x256xf32>
    %43 = arith.mulf %41, %42 : vector<8x256xf32>
    %44 = vector.extract_strided_slice %36 {offsets = [0, 31], sizes = [8, 256], strides = [1, 1]} : vector<8x320xf32> to vector<8x256xf32>
    %45 = vector.broadcast %6 : vector<1x256xf32> to vector<8x256xf32>
    %46 = arith.mulf %44, %45 : vector<8x256xf32>
    %47 = vector.extract_strided_slice %36 {offsets = [0, 32], sizes = [8, 256], strides = [1, 1]} : vector<8x320xf32> to vector<8x256xf32>
    %48 = vector.extract_strided_slice %36 {offsets = [0, 33], sizes = [8, 256], strides = [1, 1]} : vector<8x320xf32> to vector<8x256xf32>
    %49 = vector.broadcast %10 : vector<1x256xf32> to vector<8x256xf32>
    %50 = arith.mulf %48, %49 : vector<8x256xf32>
    %51 = vector.extract_strided_slice %36 {offsets = [0, 47], sizes = [8, 256], strides = [1, 1]} : vector<8x320xf32> to vector<8x256xf32>
    %52 = vector.broadcast %6 : vector<1x256xf32> to vector<8x256xf32>
    %53 = arith.mulf %51, %52 : vector<8x256xf32>
    %54 = vector.extract_strided_slice %36 {offsets = [0, 48], sizes = [8, 256], strides = [1, 1]} : vector<8x320xf32> to vector<8x256xf32>
    %55 = vector.extract_strided_slice %36 {offsets = [0, 49], sizes = [8, 256], strides = [1, 1]} : vector<8x320xf32> to vector<8x256xf32>
    %56 = vector.broadcast %10 : vector<1x256xf32> to vector<8x256xf32>
    %57 = arith.mulf %55, %56 : vector<8x256xf32>
    %58 = tpu.concatenate %39, %40, %43, %46, %47, %50, %53, %54, %57 in 0 : vector<8x256xf32>, vector<8x256xf32>, vector<8x256xf32>, vector<8x256xf32>, vector<8x256xf32>, vector<8x256xf32>, vector<8x256xf32>, vector<8x256xf32>, vector<8x256xf32> -> vector<72x256xf32>
    %59 = arith.truncf %58 : vector<72x256xf32> to vector<72x256xbf16>
    %c0_4 = arith.constant 0 : index
    %c0_5 = arith.constant 0 : index
    %60 = vector.load %arg2[%c0_4, %c0_5] : memref<8x72xbf16, #tpu.memory_space<vmem>>, vector<8x72xbf16>
    %cst_6 = arith.constant dense<0.000000e+00> : vector<8x256xf32>
    %61 = tpu.matmul %60, %59, %cst_6 {dimension_numbers = #tpu.dot_dimension_numbers<[1], [0], [0], [1], [0, 0, 1, 1], [], []>} : vector<8x72xbf16>, vector<72x256xbf16>, vector<8x256xf32> -> vector<8x256xf32>
    %c0_7 = arith.constant 0 : index
    %c0_8 = arith.constant 0 : index
    %62 = vector.load %arg15[%c0_7, %c0_8] : memref<360x1xf32, #tpu.memory_space<vmem>>, vector<8x1xf32>
    %63 = vector.broadcast %62 : vector<8x1xf32> to vector<8x256xf32>
    %64 = arith.addf %61, %63 : vector<8x256xf32>
    %cst_9 = arith.constant 0.000000e+00 : f32
    %65 = vector.broadcast %cst_9 : f32 to vector<8x256xf32>
    %66 = arith.cmpf ogt, %64, %65 : vector<8x256xf32>
    %cst_10 = arith.constant 0.000000e+00 : f32
    %67 = vector.broadcast %cst_10 : f32 to vector<8x256xf32>
    %68 = arith.minimumf %64, %67 : vector<8x256xf32>
    %69 = math.exp %68 : vector<8x256xf32>
    %cst_11 = arith.constant 1.000000e+00 : f32
    %70 = vector.broadcast %cst_11 : f32 to vector<8x256xf32>
    %71 = arith.subf %69, %70 : vector<8x256xf32>
    %72 = arith.select %66, %64, %71 : vector<8x256xi1>, vector<8x256xf32>
    %cst_12 = arith.constant 0.000000e+00 : f32
    %73 = vector.broadcast %cst_12 : f32 to vector<8x32xf32>
    %74 = tpu.concatenate %73, %72, %73 in 1 : vector<8x32xf32>, vector<8x256xf32>, vector<8x32xf32> -> vector<8x320xf32>
    %75 = vector.extract_strided_slice %74 {offsets = [0, 15], sizes = [8, 256], strides = [1, 1]} : vector<8x320xf32> to vector<8x256xf32>
    %76 = vector.broadcast %6 : vector<1x256xf32> to vector<8x256xf32>
    %77 = arith.mulf %75, %76 : vector<8x256xf32>
    %78 = vector.extract_strided_slice %74 {offsets = [0, 16], sizes = [8, 256], strides = [1, 1]} : vector<8x320xf32> to vector<8x256xf32>
    %79 = vector.extract_strided_slice %74 {offsets = [0, 17], sizes = [8, 256], strides = [1, 1]} : vector<8x320xf32> to vector<8x256xf32>
    %80 = vector.broadcast %10 : vector<1x256xf32> to vector<8x256xf32>
    %81 = arith.mulf %79, %80 : vector<8x256xf32>
    %82 = vector.extract_strided_slice %74 {offsets = [0, 31], sizes = [8, 256], strides = [1, 1]} : vector<8x320xf32> to vector<8x256xf32>
    %83 = vector.broadcast %6 : vector<1x256xf32> to vector<8x256xf32>
    %84 = arith.mulf %82, %83 : vector<8x256xf32>
    %85 = vector.extract_strided_slice %74 {offsets = [0, 32], sizes = [8, 256], strides = [1, 1]} : vector<8x320xf32> to vector<8x256xf32>
    %86 = vector.extract_strided_slice %74 {offsets = [0, 33], sizes = [8, 256], strides = [1, 1]} : vector<8x320xf32> to vector<8x256xf32>
    %87 = vector.broadcast %10 : vector<1x256xf32> to vector<8x256xf32>
    %88 = arith.mulf %86, %87 : vector<8x256xf32>
    %89 = vector.extract_strided_slice %74 {offsets = [0, 47], sizes = [8, 256], strides = [1, 1]} : vector<8x320xf32> to vector<8x256xf32>
    %90 = vector.broadcast %6 : vector<1x256xf32> to vector<8x256xf32>
    %91 = arith.mulf %89, %90 : vector<8x256xf32>
    %92 = vector.extract_strided_slice %74 {offsets = [0, 48], sizes = [8, 256], strides = [1, 1]} : vector<8x320xf32> to vector<8x256xf32>
    %93 = vector.extract_strided_slice %74 {offsets = [0, 49], sizes = [8, 256], strides = [1, 1]} : vector<8x320xf32> to vector<8x256xf32>
    %94 = vector.broadcast %10 : vector<1x256xf32> to vector<8x256xf32>
    %95 = arith.mulf %93, %94 : vector<8x256xf32>
    %96 = tpu.concatenate %77, %78, %81, %84, %85, %88, %91, %92, %95 in 0 : vector<8x256xf32>, vector<8x256xf32>, vector<8x256xf32>, vector<8x256xf32>, vector<8x256xf32>, vector<8x256xf32>, vector<8x256xf32>, vector<8x256xf32>, vector<8x256xf32> -> vector<72x256xf32>
    %97 = arith.truncf %96 : vector<72x256xf32> to vector<72x256xbf16>
    %c0_13 = arith.constant 0 : index
    %c0_14 = arith.constant 0 : index
    %98 = vector.load %arg3[%c0_13, %c0_14] : memref<8x72xbf16, #tpu.memory_space<vmem>>, vector<8x72xbf16>
    %cst_15 = arith.constant dense<0.000000e+00> : vector<8x256xf32>
    %99 = tpu.matmul %98, %97, %cst_15 {dimension_numbers = #tpu.dot_dimension_numbers<[1], [0], [0], [1], [0, 0, 1, 1], [], []>} : vector<8x72xbf16>, vector<72x256xbf16>, vector<8x256xf32> -> vector<8x256xf32>
    %c8 = arith.constant 8 : index
    %c0_16 = arith.constant 0 : index
    %100 = vector.load %arg15[%c8, %c0_16] : memref<360x1xf32, #tpu.memory_space<vmem>>, vector<8x1xf32>
    %101 = vector.broadcast %100 : vector<8x1xf32> to vector<8x256xf32>
    %102 = arith.addf %99, %101 : vector<8x256xf32>
    %cst_17 = arith.constant 0.000000e+00 : f32
    %103 = vector.broadcast %cst_17 : f32 to vector<8x256xf32>
    %104 = arith.cmpf ogt, %102, %103 : vector<8x256xf32>
    %cst_18 = arith.constant 0.000000e+00 : f32
    %105 = vector.broadcast %cst_18 : f32 to vector<8x256xf32>
    %106 = arith.minimumf %102, %105 : vector<8x256xf32>
    %107 = math.exp %106 : vector<8x256xf32>
    %cst_19 = arith.constant 1.000000e+00 : f32
    %108 = vector.broadcast %cst_19 : f32 to vector<8x256xf32>
    %109 = arith.subf %107, %108 : vector<8x256xf32>
    %110 = arith.select %104, %102, %109 : vector<8x256xi1>, vector<8x256xf32>
    %111 = arith.truncf %110 : vector<8x256xf32> to vector<8x256xbf16>
    %c0_20 = arith.constant 0 : index
    %c0_21 = arith.constant 0 : index
    %c0_22 = arith.constant 0 : index
    %112 = vector.load %arg18[%c0_20, %c0_21, %c0_22] : memref<4x256x64xbf16, #tpu.memory_space<vmem>>, vector<1x256x64xbf16>
    %113 = vector.shape_cast %112 : vector<1x256x64xbf16> to vector<256x64xbf16>
    %cst_23 = arith.constant dense<0.000000e+00> : vector<8x64xf32>
    %114 = tpu.matmul %111, %113, %cst_23 {dimension_numbers = #tpu.dot_dimension_numbers<[1], [0], [0], [1], [0, 0, 1, 1], [], []>} : vector<8x256xbf16>, vector<256x64xbf16>, vector<8x64xf32> -> vector<8x64xf32>
    %c1 = arith.constant 1 : index
    %c0_24 = arith.constant 0 : index
    %c0_25 = arith.constant 0 : index
    %115 = vector.load %arg18[%c1, %c0_24, %c0_25] : memref<4x256x64xbf16, #tpu.memory_space<vmem>>, vector<1x256x64xbf16>
    %116 = vector.shape_cast %115 : vector<1x256x64xbf16> to vector<256x64xbf16>
    %cst_26 = arith.constant dense<0.000000e+00> : vector<8x64xf32>
    %117 = tpu.matmul %111, %116, %cst_26 {dimension_numbers = #tpu.dot_dimension_numbers<[1], [0], [0], [1], [0, 0, 1, 1], [], []>} : vector<8x256xbf16>, vector<256x64xbf16>, vector<8x64xf32> -> vector<8x64xf32>
    %118 = arith.maximumf %114, %117 : vector<8x64xf32>
    %c2 = arith.constant 2 : index
    %c0_27 = arith.constant 0 : index
    %c0_28 = arith.constant 0 : index
    %119 = vector.load %arg18[%c2, %c0_27, %c0_28] : memref<4x256x64xbf16, #tpu.memory_space<vmem>>, vector<1x256x64xbf16>
    %120 = vector.shape_cast %119 : vector<1x256x64xbf16> to vector<256x64xbf16>
    %cst_29 = arith.constant dense<0.000000e+00> : vector<8x64xf32>
    %121 = tpu.matmul %111, %120, %cst_29 {dimension_numbers = #tpu.dot_dimension_numbers<[1], [0], [0], [1], [0, 0, 1, 1], [], []>} : vector<8x256xbf16>, vector<256x64xbf16>, vector<8x64xf32> -> vector<8x64xf32>
    %122 = arith.maximumf %118, %121 : vector<8x64xf32>
    %c3 = arith.constant 3 : index
    %c0_30 = arith.constant 0 : index
    %c0_31 = arith.constant 0 : index
    %123 = vector.load %arg18[%c3, %c0_30, %c0_31] : memref<4x256x64xbf16, #tpu.memory_space<vmem>>, vector<1x256x64xbf16>
    %124 = vector.shape_cast %123 : vector<1x256x64xbf16> to vector<256x64xbf16>
    %cst_32 = arith.constant dense<0.000000e+00> : vector<8x64xf32>
    %125 = tpu.matmul %111, %124, %cst_32 {dimension_numbers = #tpu.dot_dimension_numbers<[1], [0], [0], [1], [0, 0, 1, 1], [], []>} : vector<8x256xbf16>, vector<256x64xbf16>, vector<8x64xf32> -> vector<8x64xf32>
    %126 = arith.maximumf %122, %125 : vector<8x64xf32>
    %cst_33 = arith.constant 0.000000e+00 : f32
    %127 = vector.broadcast %cst_33 : f32 to vector<8x16xf32>
    %128 = tpu.concatenate %127, %126, %127 in 1 : vector<8x16xf32>, vector<8x64xf32>, vector<8x16xf32> -> vector<8x96xf32>
    %129 = vector.extract_strided_slice %128 {offsets = [0, 7], sizes = [8, 64], strides = [1, 1]} : vector<8x96xf32> to vector<8x64xf32>
    %130 = vector.broadcast %17 : vector<1x64xf32> to vector<8x64xf32>
    %131 = arith.mulf %129, %130 : vector<8x64xf32>
    %132 = vector.extract_strided_slice %128 {offsets = [0, 8], sizes = [8, 64], strides = [1, 1]} : vector<8x96xf32> to vector<8x64xf32>
    %133 = vector.extract_strided_slice %128 {offsets = [0, 9], sizes = [8, 64], strides = [1, 1]} : vector<8x96xf32> to vector<8x64xf32>
    %134 = vector.broadcast %21 : vector<1x64xf32> to vector<8x64xf32>
    %135 = arith.mulf %133, %134 : vector<8x64xf32>
    %136 = vector.extract_strided_slice %128 {offsets = [0, 15], sizes = [8, 64], strides = [1, 1]} : vector<8x96xf32> to vector<8x64xf32>
    %137 = vector.broadcast %17 : vector<1x64xf32> to vector<8x64xf32>
    %138 = arith.mulf %136, %137 : vector<8x64xf32>
    %139 = vector.extract_strided_slice %128 {offsets = [0, 16], sizes = [8, 64], strides = [1, 1]} : vector<8x96xf32> to vector<8x64xf32>
    %140 = vector.extract_strided_slice %128 {offsets = [0, 17], sizes = [8, 64], strides = [1, 1]} : vector<8x96xf32> to vector<8x64xf32>
    %141 = vector.broadcast %21 : vector<1x64xf32> to vector<8x64xf32>
    %142 = arith.mulf %140, %141 : vector<8x64xf32>
    %143 = vector.extract_strided_slice %128 {offsets = [0, 23], sizes = [8, 64], strides = [1, 1]} : vector<8x96xf32> to vector<8x64xf32>
    %144 = vector.broadcast %17 : vector<1x64xf32> to vector<8x64xf32>
    %145 = arith.mulf %143, %144 : vector<8x64xf32>
    %146 = vector.extract_strided_slice %128 {offsets = [0, 24], sizes = [8, 64], strides = [1, 1]} : vector<8x96xf32> to vector<8x64xf32>
    %147 = vector.extract_strided_slice %128 {offsets = [0, 25], sizes = [8, 64], strides = [1, 1]} : vector<8x96xf32> to vector<8x64xf32>
    %148 = vector.broadcast %21 : vector<1x64xf32> to vector<8x64xf32>
    %149 = arith.mulf %147, %148 : vector<8x64xf32>
    %150 = tpu.concatenate %131, %132, %135, %138, %139, %142, %145, %146, %149 in 0 : vector<8x64xf32>, vector<8x64xf32>, vector<8x64xf32>, vector<8x64xf32>, vector<8x64xf32>, vector<8x64xf32>, vector<8x64xf32>, vector<8x64xf32>, vector<8x64xf32> -> vector<72x64xf32>
    %151 = arith.truncf %150 : vector<72x64xf32> to vector<72x64xbf16>
    %c0_34 = arith.constant 0 : index
    %c0_35 = arith.constant 0 : index
    %152 = vector.load %arg4[%c0_34, %c0_35] : memref<16x72xbf16, #tpu.memory_space<vmem>>, vector<16x72xbf16>
    %cst_36 = arith.constant dense<0.000000e+00> : vector<16x64xf32>
    %153 = tpu.matmul %152, %151, %cst_36 {dimension_numbers = #tpu.dot_dimension_numbers<[1], [0], [0], [1], [0, 0, 1, 1], [], []>} : vector<16x72xbf16>, vector<72x64xbf16>, vector<16x64xf32> -> vector<16x64xf32>
    %c16 = arith.constant 16 : index
    %c0_37 = arith.constant 0 : index
    %154 = vector.load %arg15[%c16, %c0_37] : memref<360x1xf32, #tpu.memory_space<vmem>>, vector<16x1xf32>
    %155 = vector.broadcast %154 : vector<16x1xf32> to vector<16x64xf32>
    %156 = arith.addf %153, %155 : vector<16x64xf32>
    %cst_38 = arith.constant 0.000000e+00 : f32
    %157 = vector.broadcast %cst_38 : f32 to vector<16x64xf32>
    %158 = arith.cmpf ogt, %156, %157 : vector<16x64xf32>
    %cst_39 = arith.constant 0.000000e+00 : f32
    %159 = vector.broadcast %cst_39 : f32 to vector<16x64xf32>
    %160 = arith.minimumf %156, %159 : vector<16x64xf32>
    %161 = math.exp %160 : vector<16x64xf32>
    %cst_40 = arith.constant 1.000000e+00 : f32
    %162 = vector.broadcast %cst_40 : f32 to vector<16x64xf32>
    %163 = arith.subf %161, %162 : vector<16x64xf32>
    %164 = arith.select %158, %156, %163 : vector<16x64xi1>, vector<16x64xf32>
    %cst_41 = arith.constant 0.000000e+00 : f32
    %165 = vector.broadcast %cst_41 : f32 to vector<16x16xf32>
    %166 = tpu.concatenate %165, %164, %165 in 1 : vector<16x16xf32>, vector<16x64xf32>, vector<16x16xf32> -> vector<16x96xf32>
    %167 = vector.extract_strided_slice %166 {offsets = [0, 7], sizes = [16, 64], strides = [1, 1]} : vector<16x96xf32> to vector<16x64xf32>
    %168 = vector.broadcast %17 : vector<1x64xf32> to vector<16x64xf32>
    %169 = arith.mulf %167, %168 : vector<16x64xf32>
    %170 = vector.extract_strided_slice %166 {offsets = [0, 8], sizes = [16, 64], strides = [1, 1]} : vector<16x96xf32> to vector<16x64xf32>
    %171 = vector.extract_strided_slice %166 {offsets = [0, 9], sizes = [16, 64], strides = [1, 1]} : vector<16x96xf32> to vector<16x64xf32>
    %172 = vector.broadcast %21 : vector<1x64xf32> to vector<16x64xf32>
    %173 = arith.mulf %171, %172 : vector<16x64xf32>
    %174 = vector.extract_strided_slice %166 {offsets = [0, 15], sizes = [16, 64], strides = [1, 1]} : vector<16x96xf32> to vector<16x64xf32>
    %175 = vector.broadcast %17 : vector<1x64xf32> to vector<16x64xf32>
    %176 = arith.mulf %174, %175 : vector<16x64xf32>
    %177 = vector.extract_strided_slice %166 {offsets = [0, 16], sizes = [16, 64], strides = [1, 1]} : vector<16x96xf32> to vector<16x64xf32>
    %178 = vector.extract_strided_slice %166 {offsets = [0, 17], sizes = [16, 64], strides = [1, 1]} : vector<16x96xf32> to vector<16x64xf32>
    %179 = vector.broadcast %21 : vector<1x64xf32> to vector<16x64xf32>
    %180 = arith.mulf %178, %179 : vector<16x64xf32>
    %181 = vector.extract_strided_slice %166 {offsets = [0, 23], sizes = [16, 64], strides = [1, 1]} : vector<16x96xf32> to vector<16x64xf32>
    %182 = vector.broadcast %17 : vector<1x64xf32> to vector<16x64xf32>
    %183 = arith.mulf %181, %182 : vector<16x64xf32>
    %184 = vector.extract_strided_slice %166 {offsets = [0, 24], sizes = [16, 64], strides = [1, 1]} : vector<16x96xf32> to vector<16x64xf32>
    %185 = vector.extract_strided_slice %166 {offsets = [0, 25], sizes = [16, 64], strides = [1, 1]} : vector<16x96xf32> to vector<16x64xf32>
    %186 = vector.broadcast %21 : vector<1x64xf32> to vector<16x64xf32>
    %187 = arith.mulf %185, %186 : vector<16x64xf32>
    %188 = tpu.concatenate %169, %170, %173, %176, %177, %180, %183, %184, %187 in 0 : vector<16x64xf32>, vector<16x64xf32>, vector<16x64xf32>, vector<16x64xf32>, vector<16x64xf32>, vector<16x64xf32>, vector<16x64xf32>, vector<16x64xf32>, vector<16x64xf32> -> vector<144x64xf32>
    %189 = arith.truncf %188 : vector<144x64xf32> to vector<144x64xbf16>
    %c0_42 = arith.constant 0 : index
    %c0_43 = arith.constant 0 : index
    %190 = vector.load %arg5[%c0_42, %c0_43] : memref<16x144xbf16, #tpu.memory_space<vmem>>, vector<16x144xbf16>
    %cst_44 = arith.constant dense<0.000000e+00> : vector<16x64xf32>
    %191 = tpu.matmul %190, %189, %cst_44 {dimension_numbers = #tpu.dot_dimension_numbers<[1], [0], [0], [1], [0, 0, 1, 1], [], []>} : vector<16x144xbf16>, vector<144x64xbf16>, vector<16x64xf32> -> vector<16x64xf32>
    %c32 = arith.constant 32 : index
    %c0_45 = arith.constant 0 : index
    %192 = vector.load %arg15[%c32, %c0_45] : memref<360x1xf32, #tpu.memory_space<vmem>>, vector<16x1xf32>
    %193 = vector.broadcast %192 : vector<16x1xf32> to vector<16x64xf32>
    %194 = arith.addf %191, %193 : vector<16x64xf32>
    %cst_46 = arith.constant 0.000000e+00 : f32
    %195 = vector.broadcast %cst_46 : f32 to vector<16x64xf32>
    %196 = arith.cmpf ogt, %194, %195 : vector<16x64xf32>
    %cst_47 = arith.constant 0.000000e+00 : f32
    %197 = vector.broadcast %cst_47 : f32 to vector<16x64xf32>
    %198 = arith.minimumf %194, %197 : vector<16x64xf32>
    %199 = math.exp %198 : vector<16x64xf32>
    %cst_48 = arith.constant 1.000000e+00 : f32
    %200 = vector.broadcast %cst_48 : f32 to vector<16x64xf32>
    %201 = arith.subf %199, %200 : vector<16x64xf32>
    %202 = arith.select %196, %194, %201 : vector<16x64xi1>, vector<16x64xf32>
    %203 = arith.truncf %202 : vector<16x64xf32> to vector<16x64xbf16>
    %c0_49 = arith.constant 0 : index
    %c0_50 = arith.constant 0 : index
    %c0_51 = arith.constant 0 : index
    %204 = vector.load %arg19[%c0_49, %c0_50, %c0_51] : memref<4x64x16xbf16, #tpu.memory_space<vmem>>, vector<1x64x16xbf16>
    %205 = vector.shape_cast %204 : vector<1x64x16xbf16> to vector<64x16xbf16>
    %cst_52 = arith.constant dense<0.000000e+00> : vector<16x16xf32>
    %206 = tpu.matmul %203, %205, %cst_52 {dimension_numbers = #tpu.dot_dimension_numbers<[1], [0], [0], [1], [0, 0, 1, 1], [], []>} : vector<16x64xbf16>, vector<64x16xbf16>, vector<16x16xf32> -> vector<16x16xf32>
    %c1_53 = arith.constant 1 : index
    %c0_54 = arith.constant 0 : index
    %c0_55 = arith.constant 0 : index
    %207 = vector.load %arg19[%c1_53, %c0_54, %c0_55] : memref<4x64x16xbf16, #tpu.memory_space<vmem>>, vector<1x64x16xbf16>
    %208 = vector.shape_cast %207 : vector<1x64x16xbf16> to vector<64x16xbf16>
    %cst_56 = arith.constant dense<0.000000e+00> : vector<16x16xf32>
    %209 = tpu.matmul %203, %208, %cst_56 {dimension_numbers = #tpu.dot_dimension_numbers<[1], [0], [0], [1], [0, 0, 1, 1], [], []>} : vector<16x64xbf16>, vector<64x16xbf16>, vector<16x16xf32> -> vector<16x16xf32>
    %210 = arith.maximumf %206, %209 : vector<16x16xf32>
    %c2_57 = arith.constant 2 : index
    %c0_58 = arith.constant 0 : index
    %c0_59 = arith.constant 0 : index
    %211 = vector.load %arg19[%c2_57, %c0_58, %c0_59] : memref<4x64x16xbf16, #tpu.memory_space<vmem>>, vector<1x64x16xbf16>
    %212 = vector.shape_cast %211 : vector<1x64x16xbf16> to vector<64x16xbf16>
    %cst_60 = arith.constant dense<0.000000e+00> : vector<16x16xf32>
    %213 = tpu.matmul %203, %212, %cst_60 {dimension_numbers = #tpu.dot_dimension_numbers<[1], [0], [0], [1], [0, 0, 1, 1], [], []>} : vector<16x64xbf16>, vector<64x16xbf16>, vector<16x16xf32> -> vector<16x16xf32>
    %214 = arith.maximumf %210, %213 : vector<16x16xf32>
    %c3_61 = arith.constant 3 : index
    %c0_62 = arith.constant 0 : index
    %c0_63 = arith.constant 0 : index
    %215 = vector.load %arg19[%c3_61, %c0_62, %c0_63] : memref<4x64x16xbf16, #tpu.memory_space<vmem>>, vector<1x64x16xbf16>
    %216 = vector.shape_cast %215 : vector<1x64x16xbf16> to vector<64x16xbf16>
    %cst_64 = arith.constant dense<0.000000e+00> : vector<16x16xf32>
    %217 = tpu.matmul %203, %216, %cst_64 {dimension_numbers = #tpu.dot_dimension_numbers<[1], [0], [0], [1], [0, 0, 1, 1], [], []>} : vector<16x64xbf16>, vector<64x16xbf16>, vector<16x16xf32> -> vector<16x16xf32>
    %218 = arith.maximumf %214, %217 : vector<16x16xf32>
    %cst_65 = arith.constant 0.000000e+00 : f32
    %219 = vector.broadcast %cst_65 : f32 to vector<16x8xf32>
    %220 = tpu.concatenate %219, %218, %219 in 1 : vector<16x8xf32>, vector<16x16xf32>, vector<16x8xf32> -> vector<16x32xf32>
    %221 = vector.extract_strided_slice %220 {offsets = [0, 3], sizes = [16, 16], strides = [1, 1]} : vector<16x32xf32> to vector<16x16xf32>
    %222 = vector.broadcast %28 : vector<1x16xf32> to vector<16x16xf32>
    %223 = arith.mulf %221, %222 : vector<16x16xf32>
    %224 = vector.extract_strided_slice %220 {offsets = [0, 4], sizes = [16, 16], strides = [1, 1]} : vector<16x32xf32> to vector<16x16xf32>
    %225 = vector.extract_strided_slice %220 {offsets = [0, 5], sizes = [16, 16], strides = [1, 1]} : vector<16x32xf32> to vector<16x16xf32>
    %226 = vector.broadcast %32 : vector<1x16xf32> to vector<16x16xf32>
    %227 = arith.mulf %225, %226 : vector<16x16xf32>
    %228 = vector.extract_strided_slice %220 {offsets = [0, 7], sizes = [16, 16], strides = [1, 1]} : vector<16x32xf32> to vector<16x16xf32>
    %229 = vector.broadcast %28 : vector<1x16xf32> to vector<16x16xf32>
    %230 = arith.mulf %228, %229 : vector<16x16xf32>
    %231 = vector.extract_strided_slice %220 {offsets = [0, 8], sizes = [16, 16], strides = [1, 1]} : vector<16x32xf32> to vector<16x16xf32>
    %232 = vector.extract_strided_slice %220 {offsets = [0, 9], sizes = [16, 16], strides = [1, 1]} : vector<16x32xf32> to vector<16x16xf32>
    %233 = vector.broadcast %32 : vector<1x16xf32> to vector<16x16xf32>
    %234 = arith.mulf %232, %233 : vector<16x16xf32>
    %235 = vector.extract_strided_slice %220 {offsets = [0, 11], sizes = [16, 16], strides = [1, 1]} : vector<16x32xf32> to vector<16x16xf32>
    %236 = vector.broadcast %28 : vector<1x16xf32> to vector<16x16xf32>
    %237 = arith.mulf %235, %236 : vector<16x16xf32>
    %238 = vector.extract_strided_slice %220 {offsets = [0, 12], sizes = [16, 16], strides = [1, 1]} : vector<16x32xf32> to vector<16x16xf32>
    %239 = vector.extract_strided_slice %220 {offsets = [0, 13], sizes = [16, 16], strides = [1, 1]} : vector<16x32xf32> to vector<16x16xf32>
    %240 = vector.broadcast %32 : vector<1x16xf32> to vector<16x16xf32>
    %241 = arith.mulf %239, %240 : vector<16x16xf32>
    %242 = tpu.concatenate %223, %224, %227, %230, %231, %234, %237, %238, %241 in 0 : vector<16x16xf32>, vector<16x16xf32>, vector<16x16xf32>, vector<16x16xf32>, vector<16x16xf32>, vector<16x16xf32>, vector<16x16xf32>, vector<16x16xf32>, vector<16x16xf32> -> vector<144x16xf32>
    %243 = arith.truncf %242 : vector<144x16xf32> to vector<144x16xbf16>
    %c0_66 = arith.constant 0 : index
    %c0_67 = arith.constant 0 : index
    %244 = vector.load %arg6[%c0_66, %c0_67] : memref<32x144xbf16, #tpu.memory_space<vmem>>, vector<32x144xbf16>
    %cst_68 = arith.constant dense<0.000000e+00> : vector<32x16xf32>
    %245 = tpu.matmul %244, %243, %cst_68 {dimension_numbers = #tpu.dot_dimension_numbers<[1], [0], [0], [1], [0, 0, 1, 1], [], []>} : vector<32x144xbf16>, vector<144x16xbf16>, vector<32x16xf32> -> vector<32x16xf32>
    %c48 = arith.constant 48 : index
    %c0_69 = arith.constant 0 : index
    %246 = vector.load %arg15[%c48, %c0_69] : memref<360x1xf32, #tpu.memory_space<vmem>>, vector<32x1xf32>
    %247 = vector.broadcast %246 : vector<32x1xf32> to vector<32x16xf32>
    %248 = arith.addf %245, %247 : vector<32x16xf32>
    %cst_70 = arith.constant 0.000000e+00 : f32
    %249 = vector.broadcast %cst_70 : f32 to vector<32x16xf32>
    %250 = arith.cmpf ogt, %248, %249 : vector<32x16xf32>
    %cst_71 = arith.constant 0.000000e+00 : f32
    %251 = vector.broadcast %cst_71 : f32 to vector<32x16xf32>
    %252 = arith.minimumf %248, %251 : vector<32x16xf32>
    %253 = math.exp %252 : vector<32x16xf32>
    %cst_72 = arith.constant 1.000000e+00 : f32
    %254 = vector.broadcast %cst_72 : f32 to vector<32x16xf32>
    %255 = arith.subf %253, %254 : vector<32x16xf32>
    %256 = arith.select %250, %248, %255 : vector<32x16xi1>, vector<32x16xf32>
    %cst_73 = arith.constant 0.000000e+00 : f32
    %257 = vector.broadcast %cst_73 : f32 to vector<32x8xf32>
    %258 = tpu.concatenate %257, %256, %257 in 1 : vector<32x8xf32>, vector<32x16xf32>, vector<32x8xf32> -> vector<32x32xf32>
    %259 = vector.extract_strided_slice %258 {offsets = [0, 3], sizes = [32, 16], strides = [1, 1]} : vector<32x32xf32> to vector<32x16xf32>
    %260 = vector.broadcast %28 : vector<1x16xf32> to vector<32x16xf32>
    %261 = arith.mulf %259, %260 : vector<32x16xf32>
    %262 = vector.extract_strided_slice %258 {offsets = [0, 4], sizes = [32, 16], strides = [1, 1]} : vector<32x32xf32> to vector<32x16xf32>
    %263 = vector.extract_strided_slice %258 {offsets = [0, 5], sizes = [32, 16], strides = [1, 1]} : vector<32x32xf32> to vector<32x16xf32>
    %264 = vector.broadcast %32 : vector<1x16xf32> to vector<32x16xf32>
    %265 = arith.mulf %263, %264 : vector<32x16xf32>
    %266 = vector.extract_strided_slice %258 {offsets = [0, 7], sizes = [32, 16], strides = [1, 1]} : vector<32x32xf32> to vector<32x16xf32>
    %267 = vector.broadcast %28 : vector<1x16xf32> to vector<32x16xf32>
    %268 = arith.mulf %266, %267 : vector<32x16xf32>
    %269 = vector.extract_strided_slice %258 {offsets = [0, 8], sizes = [32, 16], strides = [1, 1]} : vector<32x32xf32> to vector<32x16xf32>
    %270 = vector.extract_strided_slice %258 {offsets = [0, 9], sizes = [32, 16], strides = [1, 1]} : vector<32x32xf32> to vector<32x16xf32>
    %271 = vector.broadcast %32 : vector<1x16xf32> to vector<32x16xf32>
    %272 = arith.mulf %270, %271 : vector<32x16xf32>
    %273 = vector.extract_strided_slice %258 {offsets = [0, 11], sizes = [32, 16], strides = [1, 1]} : vector<32x32xf32> to vector<32x16xf32>
    %274 = vector.broadcast %28 : vector<1x16xf32> to vector<32x16xf32>
    %275 = arith.mulf %273, %274 : vector<32x16xf32>
    %276 = vector.extract_strided_slice %258 {offsets = [0, 12], sizes = [32, 16], strides = [1, 1]} : vector<32x32xf32> to vector<32x16xf32>
    %277 = vector.extract_strided_slice %258 {offsets = [0, 13], sizes = [32, 16], strides = [1, 1]} : vector<32x32xf32> to vector<32x16xf32>
    %278 = vector.broadcast %32 : vector<1x16xf32> to vector<32x16xf32>
    %279 = arith.mulf %277, %278 : vector<32x16xf32>
    %280 = tpu.concatenate %261, %262, %265, %268, %269, %272, %275, %276, %279 in 0 : vector<32x16xf32>, vector<32x16xf32>, vector<32x16xf32>, vector<32x16xf32>, vector<32x16xf32>, vector<32x16xf32>, vector<32x16xf32>, vector<32x16xf32>, vector<32x16xf32> -> vector<288x16xf32>
    %281 = arith.truncf %280 : vector<288x16xf32> to vector<288x16xbf16>
    %c0_74 = arith.constant 0 : index
    %c0_75 = arith.constant 0 : index
    %282 = vector.load %arg7[%c0_74, %c0_75] : memref<32x288xbf16, #tpu.memory_space<vmem>>, vector<32x288xbf16>
    %cst_76 = arith.constant dense<0.000000e+00> : vector<32x16xf32>
    %283 = tpu.matmul %282, %281, %cst_76 {dimension_numbers = #tpu.dot_dimension_numbers<[1], [0], [0], [1], [0, 0, 1, 1], [], []>} : vector<32x288xbf16>, vector<288x16xbf16>, vector<32x16xf32> -> vector<32x16xf32>
    %c80 = arith.constant 80 : index
    %c0_77 = arith.constant 0 : index
    %284 = vector.load %arg15[%c80, %c0_77] : memref<360x1xf32, #tpu.memory_space<vmem>>, vector<32x1xf32>
    %285 = vector.broadcast %284 : vector<32x1xf32> to vector<32x16xf32>
    %286 = arith.addf %283, %285 : vector<32x16xf32>
    %cst_78 = arith.constant 0.000000e+00 : f32
    %287 = vector.broadcast %cst_78 : f32 to vector<32x16xf32>
    %288 = arith.cmpf ogt, %286, %287 : vector<32x16xf32>
    %cst_79 = arith.constant 0.000000e+00 : f32
    %289 = vector.broadcast %cst_79 : f32 to vector<32x16xf32>
    %290 = arith.minimumf %286, %289 : vector<32x16xf32>
    %291 = math.exp %290 : vector<32x16xf32>
    %cst_80 = arith.constant 1.000000e+00 : f32
    %292 = vector.broadcast %cst_80 : f32 to vector<32x16xf32>
    %293 = arith.subf %291, %292 : vector<32x16xf32>
    %294 = arith.select %288, %286, %293 : vector<32x16xi1>, vector<32x16xf32>
    %c0_81 = arith.constant 0 : index
    %c0_82 = arith.constant 0 : index
    %295 = vector.load %arg8[%c0_81, %c0_82] : memref<128x32xbf16, #tpu.memory_space<vmem>>, vector<128x32xbf16>
    %296 = arith.truncf %294 : vector<32x16xf32> to vector<32x16xbf16>
    %cst_83 = arith.constant dense<0.000000e+00> : vector<128x16xf32>
    %297 = tpu.matmul %295, %296, %cst_83 {dimension_numbers = #tpu.dot_dimension_numbers<[1], [0], [0], [1], [0, 0, 1, 1], [], []>} : vector<128x32xbf16>, vector<32x16xbf16>, vector<128x16xf32> -> vector<128x16xf32>
    %c112 = arith.constant 112 : index
    %c0_84 = arith.constant 0 : index
    %298 = vector.load %arg15[%c112, %c0_84] : memref<360x1xf32, #tpu.memory_space<vmem>>, vector<128x1xf32>
    %299 = vector.broadcast %298 : vector<128x1xf32> to vector<128x16xf32>
    %300 = arith.addf %297, %299 : vector<128x16xf32>
    %301 = arith.truncf %300 : vector<128x16xf32> to vector<128x16xbf16>
    %302 = vector.extract_strided_slice %301 {offsets = [0, 0], sizes = [32, 16], strides = [1, 1]} : vector<128x16xbf16> to vector<32x16xbf16>
    %c0_85 = arith.constant 0 : index
    %c0_86 = arith.constant 0 : index
    %c0_87 = arith.constant 0 : index
    %303 = vector.load %arg16[%c0_85, %c0_86, %c0_87] : memref<4x16x64xbf16, #tpu.memory_space<vmem>>, vector<1x16x64xbf16>
    %304 = vector.shape_cast %303 : vector<1x16x64xbf16> to vector<16x64xbf16>
    %cst_88 = arith.constant dense<0.000000e+00> : vector<32x64xf32>
    %305 = tpu.matmul %302, %304, %cst_88 {dimension_numbers = #tpu.dot_dimension_numbers<[1], [0], [0], [1], [0, 0, 1, 1], [], []>} : vector<32x16xbf16>, vector<16x64xbf16>, vector<32x64xf32> -> vector<32x64xf32>
    %306 = vector.extract_strided_slice %301 {offsets = [32, 0], sizes = [32, 16], strides = [1, 1]} : vector<128x16xbf16> to vector<32x16xbf16>
    %c1_89 = arith.constant 1 : index
    %c0_90 = arith.constant 0 : index
    %c0_91 = arith.constant 0 : index
    %307 = vector.load %arg16[%c1_89, %c0_90, %c0_91] : memref<4x16x64xbf16, #tpu.memory_space<vmem>>, vector<1x16x64xbf16>
    %308 = vector.shape_cast %307 : vector<1x16x64xbf16> to vector<16x64xbf16>
    %cst_92 = arith.constant dense<0.000000e+00> : vector<32x64xf32>
    %309 = tpu.matmul %306, %308, %cst_92 {dimension_numbers = #tpu.dot_dimension_numbers<[1], [0], [0], [1], [0, 0, 1, 1], [], []>} : vector<32x16xbf16>, vector<16x64xbf16>, vector<32x64xf32> -> vector<32x64xf32>
    %310 = arith.addf %305, %309 : vector<32x64xf32>
    %311 = vector.extract_strided_slice %301 {offsets = [64, 0], sizes = [32, 16], strides = [1, 1]} : vector<128x16xbf16> to vector<32x16xbf16>
    %c2_93 = arith.constant 2 : index
    %c0_94 = arith.constant 0 : index
    %c0_95 = arith.constant 0 : index
    %312 = vector.load %arg16[%c2_93, %c0_94, %c0_95] : memref<4x16x64xbf16, #tpu.memory_space<vmem>>, vector<1x16x64xbf16>
    %313 = vector.shape_cast %312 : vector<1x16x64xbf16> to vector<16x64xbf16>
    %cst_96 = arith.constant dense<0.000000e+00> : vector<32x64xf32>
    %314 = tpu.matmul %311, %313, %cst_96 {dimension_numbers = #tpu.dot_dimension_numbers<[1], [0], [0], [1], [0, 0, 1, 1], [], []>} : vector<32x16xbf16>, vector<16x64xbf16>, vector<32x64xf32> -> vector<32x64xf32>
    %315 = arith.addf %310, %314 : vector<32x64xf32>
    %316 = vector.extract_strided_slice %301 {offsets = [96, 0], sizes = [32, 16], strides = [1, 1]} : vector<128x16xbf16> to vector<32x16xbf16>
    %c3_97 = arith.constant 3 : index
    %c0_98 = arith.constant 0 : index
    %c0_99 = arith.constant 0 : index
    %317 = vector.load %arg16[%c3_97, %c0_98, %c0_99] : memref<4x16x64xbf16, #tpu.memory_space<vmem>>, vector<1x16x64xbf16>
    %318 = vector.shape_cast %317 : vector<1x16x64xbf16> to vector<16x64xbf16>
    %cst_100 = arith.constant dense<0.000000e+00> : vector<32x64xf32>
    %319 = tpu.matmul %316, %318, %cst_100 {dimension_numbers = #tpu.dot_dimension_numbers<[1], [0], [0], [1], [0, 0, 1, 1], [], []>} : vector<32x16xbf16>, vector<16x64xbf16>, vector<32x64xf32> -> vector<32x64xf32>
    %320 = arith.addf %315, %319 : vector<32x64xf32>
    %321 = tpu.concatenate %320, %126, %202 in 0 : vector<32x64xf32>, vector<8x64xf32>, vector<16x64xf32> -> vector<56x64xf32>
    %cst_101 = arith.constant 0.000000e+00 : f32
    %322 = vector.broadcast %cst_101 : f32 to vector<56x16xf32>
    %323 = tpu.concatenate %322, %321, %322 in 1 : vector<56x16xf32>, vector<56x64xf32>, vector<56x16xf32> -> vector<56x96xf32>
    %324 = vector.extract_strided_slice %323 {offsets = [0, 7], sizes = [56, 64], strides = [1, 1]} : vector<56x96xf32> to vector<56x64xf32>
    %325 = vector.broadcast %17 : vector<1x64xf32> to vector<56x64xf32>
    %326 = arith.mulf %324, %325 : vector<56x64xf32>
    %327 = vector.extract_strided_slice %323 {offsets = [0, 8], sizes = [56, 64], strides = [1, 1]} : vector<56x96xf32> to vector<56x64xf32>
    %328 = vector.extract_strided_slice %323 {offsets = [0, 9], sizes = [56, 64], strides = [1, 1]} : vector<56x96xf32> to vector<56x64xf32>
    %329 = vector.broadcast %21 : vector<1x64xf32> to vector<56x64xf32>
    %330 = arith.mulf %328, %329 : vector<56x64xf32>
    %331 = vector.extract_strided_slice %323 {offsets = [0, 15], sizes = [56, 64], strides = [1, 1]} : vector<56x96xf32> to vector<56x64xf32>
    %332 = vector.broadcast %17 : vector<1x64xf32> to vector<56x64xf32>
    %333 = arith.mulf %331, %332 : vector<56x64xf32>
    %334 = vector.extract_strided_slice %323 {offsets = [0, 16], sizes = [56, 64], strides = [1, 1]} : vector<56x96xf32> to vector<56x64xf32>
    %335 = vector.extract_strided_slice %323 {offsets = [0, 17], sizes = [56, 64], strides = [1, 1]} : vector<56x96xf32> to vector<56x64xf32>
    %336 = vector.broadcast %21 : vector<1x64xf32> to vector<56x64xf32>
    %337 = arith.mulf %335, %336 : vector<56x64xf32>
    %338 = vector.extract_strided_slice %323 {offsets = [0, 23], sizes = [56, 64], strides = [1, 1]} : vector<56x96xf32> to vector<56x64xf32>
    %339 = vector.broadcast %17 : vector<1x64xf32> to vector<56x64xf32>
    %340 = arith.mulf %338, %339 : vector<56x64xf32>
    %341 = vector.extract_strided_slice %323 {offsets = [0, 24], sizes = [56, 64], strides = [1, 1]} : vector<56x96xf32> to vector<56x64xf32>
    %342 = vector.extract_strided_slice %323 {offsets = [0, 25], sizes = [56, 64], strides = [1, 1]} : vector<56x96xf32> to vector<56x64xf32>
    %343 = vector.broadcast %21 : vector<1x64xf32> to vector<56x64xf32>
    %344 = arith.mulf %342, %343 : vector<56x64xf32>
    %345 = tpu.concatenate %326, %327, %330, %333, %334, %337, %340, %341, %344 in 0 : vector<56x64xf32>, vector<56x64xf32>, vector<56x64xf32>, vector<56x64xf32>, vector<56x64xf32>, vector<56x64xf32>, vector<56x64xf32>, vector<56x64xf32>, vector<56x64xf32> -> vector<504x64xf32>
    %346 = arith.truncf %345 : vector<504x64xf32> to vector<504x64xbf16>
    %c0_102 = arith.constant 0 : index
    %c0_103 = arith.constant 0 : index
    %347 = vector.load %arg9[%c0_102, %c0_103] : memref<16x504xbf16, #tpu.memory_space<vmem>>, vector<16x504xbf16>
    %cst_104 = arith.constant dense<0.000000e+00> : vector<16x64xf32>
    %348 = tpu.matmul %347, %346, %cst_104 {dimension_numbers = #tpu.dot_dimension_numbers<[1], [0], [0], [1], [0, 0, 1, 1], [], []>} : vector<16x504xbf16>, vector<504x64xbf16>, vector<16x64xf32> -> vector<16x64xf32>
    %c240 = arith.constant 240 : index
    %c0_105 = arith.constant 0 : index
    %349 = vector.load %arg15[%c240, %c0_105] : memref<360x1xf32, #tpu.memory_space<vmem>>, vector<16x1xf32>
    %350 = vector.broadcast %349 : vector<16x1xf32> to vector<16x64xf32>
    %351 = arith.addf %348, %350 : vector<16x64xf32>
    %cst_106 = arith.constant 0.000000e+00 : f32
    %352 = vector.broadcast %cst_106 : f32 to vector<16x64xf32>
    %353 = arith.cmpf ogt, %351, %352 : vector<16x64xf32>
    %cst_107 = arith.constant 0.000000e+00 : f32
    %354 = vector.broadcast %cst_107 : f32 to vector<16x64xf32>
    %355 = arith.minimumf %351, %354 : vector<16x64xf32>
    %356 = math.exp %355 : vector<16x64xf32>
    %cst_108 = arith.constant 1.000000e+00 : f32
    %357 = vector.broadcast %cst_108 : f32 to vector<16x64xf32>
    %358 = arith.subf %356, %357 : vector<16x64xf32>
    %359 = arith.select %353, %351, %358 : vector<16x64xi1>, vector<16x64xf32>
    %cst_109 = arith.constant 0.000000e+00 : f32
    %360 = vector.broadcast %cst_109 : f32 to vector<16x16xf32>
    %361 = tpu.concatenate %360, %359, %360 in 1 : vector<16x16xf32>, vector<16x64xf32>, vector<16x16xf32> -> vector<16x96xf32>
    %362 = vector.extract_strided_slice %361 {offsets = [0, 7], sizes = [16, 64], strides = [1, 1]} : vector<16x96xf32> to vector<16x64xf32>
    %363 = vector.broadcast %17 : vector<1x64xf32> to vector<16x64xf32>
    %364 = arith.mulf %362, %363 : vector<16x64xf32>
    %365 = vector.extract_strided_slice %361 {offsets = [0, 8], sizes = [16, 64], strides = [1, 1]} : vector<16x96xf32> to vector<16x64xf32>
    %366 = vector.extract_strided_slice %361 {offsets = [0, 9], sizes = [16, 64], strides = [1, 1]} : vector<16x96xf32> to vector<16x64xf32>
    %367 = vector.broadcast %21 : vector<1x64xf32> to vector<16x64xf32>
    %368 = arith.mulf %366, %367 : vector<16x64xf32>
    %369 = vector.extract_strided_slice %361 {offsets = [0, 15], sizes = [16, 64], strides = [1, 1]} : vector<16x96xf32> to vector<16x64xf32>
    %370 = vector.broadcast %17 : vector<1x64xf32> to vector<16x64xf32>
    %371 = arith.mulf %369, %370 : vector<16x64xf32>
    %372 = vector.extract_strided_slice %361 {offsets = [0, 16], sizes = [16, 64], strides = [1, 1]} : vector<16x96xf32> to vector<16x64xf32>
    %373 = vector.extract_strided_slice %361 {offsets = [0, 17], sizes = [16, 64], strides = [1, 1]} : vector<16x96xf32> to vector<16x64xf32>
    %374 = vector.broadcast %21 : vector<1x64xf32> to vector<16x64xf32>
    %375 = arith.mulf %373, %374 : vector<16x64xf32>
    %376 = vector.extract_strided_slice %361 {offsets = [0, 23], sizes = [16, 64], strides = [1, 1]} : vector<16x96xf32> to vector<16x64xf32>
    %377 = vector.broadcast %17 : vector<1x64xf32> to vector<16x64xf32>
    %378 = arith.mulf %376, %377 : vector<16x64xf32>
    %379 = vector.extract_strided_slice %361 {offsets = [0, 24], sizes = [16, 64], strides = [1, 1]} : vector<16x96xf32> to vector<16x64xf32>
    %380 = vector.extract_strided_slice %361 {offsets = [0, 25], sizes = [16, 64], strides = [1, 1]} : vector<16x96xf32> to vector<16x64xf32>
    %381 = vector.broadcast %21 : vector<1x64xf32> to vector<16x64xf32>
    %382 = arith.mulf %380, %381 : vector<16x64xf32>
    %383 = tpu.concatenate %364, %365, %368, %371, %372, %375, %378, %379, %382 in 0 : vector<16x64xf32>, vector<16x64xf32>, vector<16x64xf32>, vector<16x64xf32>, vector<16x64xf32>, vector<16x64xf32>, vector<16x64xf32>, vector<16x64xf32>, vector<16x64xf32> -> vector<144x64xf32>
    %384 = arith.truncf %383 : vector<144x64xf32> to vector<144x64xbf16>
    %c0_110 = arith.constant 0 : index
    %c0_111 = arith.constant 0 : index
    %385 = vector.load %arg10[%c0_110, %c0_111] : memref<16x144xbf16, #tpu.memory_space<vmem>>, vector<16x144xbf16>
    %cst_112 = arith.constant dense<0.000000e+00> : vector<16x64xf32>
    %386 = tpu.matmul %385, %384, %cst_112 {dimension_numbers = #tpu.dot_dimension_numbers<[1], [0], [0], [1], [0, 0, 1, 1], [], []>} : vector<16x144xbf16>, vector<144x64xbf16>, vector<16x64xf32> -> vector<16x64xf32>
    %c256 = arith.constant 256 : index
    %c0_113 = arith.constant 0 : index
    %387 = vector.load %arg15[%c256, %c0_113] : memref<360x1xf32, #tpu.memory_space<vmem>>, vector<16x1xf32>
    %388 = vector.broadcast %387 : vector<16x1xf32> to vector<16x64xf32>
    %389 = arith.addf %386, %388 : vector<16x64xf32>
    %cst_114 = arith.constant 0.000000e+00 : f32
    %390 = vector.broadcast %cst_114 : f32 to vector<16x64xf32>
    %391 = arith.cmpf ogt, %389, %390 : vector<16x64xf32>
    %cst_115 = arith.constant 0.000000e+00 : f32
    %392 = vector.broadcast %cst_115 : f32 to vector<16x64xf32>
    %393 = arith.minimumf %389, %392 : vector<16x64xf32>
    %394 = math.exp %393 : vector<16x64xf32>
    %cst_116 = arith.constant 1.000000e+00 : f32
    %395 = vector.broadcast %cst_116 : f32 to vector<16x64xf32>
    %396 = arith.subf %394, %395 : vector<16x64xf32>
    %397 = arith.select %391, %389, %396 : vector<16x64xi1>, vector<16x64xf32>
    %c0_117 = arith.constant 0 : index
    %c0_118 = arith.constant 0 : index
    %398 = vector.load %arg11[%c0_117, %c0_118] : memref<64x16xbf16, #tpu.memory_space<vmem>>, vector<64x16xbf16>
    %399 = arith.truncf %397 : vector<16x64xf32> to vector<16x64xbf16>
    %cst_119 = arith.constant dense<0.000000e+00> : vector<64x64xf32>
    %400 = tpu.matmul %398, %399, %cst_119 {dimension_numbers = #tpu.dot_dimension_numbers<[1], [0], [0], [1], [0, 0, 1, 1], [], []>} : vector<64x16xbf16>, vector<16x64xbf16>, vector<64x64xf32> -> vector<64x64xf32>
    %c272 = arith.constant 272 : index
    %c0_120 = arith.constant 0 : index
    %401 = vector.load %arg15[%c272, %c0_120] : memref<360x1xf32, #tpu.memory_space<vmem>>, vector<64x1xf32>
    %402 = vector.broadcast %401 : vector<64x1xf32> to vector<64x64xf32>
    %403 = arith.addf %400, %402 : vector<64x64xf32>
    %404 = arith.truncf %403 : vector<64x64xf32> to vector<64x64xbf16>
    %405 = vector.extract_strided_slice %404 {offsets = [0, 0], sizes = [16, 64], strides = [1, 1]} : vector<64x64xbf16> to vector<16x64xbf16>
    %c0_121 = arith.constant 0 : index
    %c0_122 = arith.constant 0 : index
    %c0_123 = arith.constant 0 : index
    %406 = vector.load %arg17[%c0_121, %c0_122, %c0_123] : memref<4x64x256xbf16, #tpu.memory_space<vmem>>, vector<1x64x256xbf16>
    %407 = vector.shape_cast %406 : vector<1x64x256xbf16> to vector<64x256xbf16>
    %cst_124 = arith.constant dense<0.000000e+00> : vector<16x256xf32>
    %408 = tpu.matmul %405, %407, %cst_124 {dimension_numbers = #tpu.dot_dimension_numbers<[1], [0], [0], [1], [0, 0, 1, 1], [], []>} : vector<16x64xbf16>, vector<64x256xbf16>, vector<16x256xf32> -> vector<16x256xf32>
    %409 = vector.extract_strided_slice %404 {offsets = [16, 0], sizes = [16, 64], strides = [1, 1]} : vector<64x64xbf16> to vector<16x64xbf16>
    %c1_125 = arith.constant 1 : index
    %c0_126 = arith.constant 0 : index
    %c0_127 = arith.constant 0 : index
    %410 = vector.load %arg17[%c1_125, %c0_126, %c0_127] : memref<4x64x256xbf16, #tpu.memory_space<vmem>>, vector<1x64x256xbf16>
    %411 = vector.shape_cast %410 : vector<1x64x256xbf16> to vector<64x256xbf16>
    %cst_128 = arith.constant dense<0.000000e+00> : vector<16x256xf32>
    %412 = tpu.matmul %409, %411, %cst_128 {dimension_numbers = #tpu.dot_dimension_numbers<[1], [0], [0], [1], [0, 0, 1, 1], [], []>} : vector<16x64xbf16>, vector<64x256xbf16>, vector<16x256xf32> -> vector<16x256xf32>
    %413 = arith.addf %408, %412 : vector<16x256xf32>
    %414 = vector.extract_strided_slice %404 {offsets = [32, 0], sizes = [16, 64], strides = [1, 1]} : vector<64x64xbf16> to vector<16x64xbf16>
    %c2_129 = arith.constant 2 : index
    %c0_130 = arith.constant 0 : index
    %c0_131 = arith.constant 0 : index
    %415 = vector.load %arg17[%c2_129, %c0_130, %c0_131] : memref<4x64x256xbf16, #tpu.memory_space<vmem>>, vector<1x64x256xbf16>
    %416 = vector.shape_cast %415 : vector<1x64x256xbf16> to vector<64x256xbf16>
    %cst_132 = arith.constant dense<0.000000e+00> : vector<16x256xf32>
    %417 = tpu.matmul %414, %416, %cst_132 {dimension_numbers = #tpu.dot_dimension_numbers<[1], [0], [0], [1], [0, 0, 1, 1], [], []>} : vector<16x64xbf16>, vector<64x256xbf16>, vector<16x256xf32> -> vector<16x256xf32>
    %418 = arith.addf %413, %417 : vector<16x256xf32>
    %419 = vector.extract_strided_slice %404 {offsets = [48, 0], sizes = [16, 64], strides = [1, 1]} : vector<64x64xbf16> to vector<16x64xbf16>
    %c3_133 = arith.constant 3 : index
    %c0_134 = arith.constant 0 : index
    %c0_135 = arith.constant 0 : index
    %420 = vector.load %arg17[%c3_133, %c0_134, %c0_135] : memref<4x64x256xbf16, #tpu.memory_space<vmem>>, vector<1x64x256xbf16>
    %421 = vector.shape_cast %420 : vector<1x64x256xbf16> to vector<64x256xbf16>
    %cst_136 = arith.constant dense<0.000000e+00> : vector<16x256xf32>
    %422 = tpu.matmul %419, %421, %cst_136 {dimension_numbers = #tpu.dot_dimension_numbers<[1], [0], [0], [1], [0, 0, 1, 1], [], []>} : vector<16x64xbf16>, vector<64x256xbf16>, vector<16x256xf32> -> vector<16x256xf32>
    %423 = arith.addf %418, %422 : vector<16x256xf32>
    %424 = tpu.concatenate %423, %34, %110 in 0 : vector<16x256xf32>, vector<8x256xf32>, vector<8x256xf32> -> vector<32x256xf32>
    %cst_137 = arith.constant 0.000000e+00 : f32
    %425 = vector.broadcast %cst_137 : f32 to vector<32x32xf32>
    %426 = tpu.concatenate %425, %424, %425 in 1 : vector<32x32xf32>, vector<32x256xf32>, vector<32x32xf32> -> vector<32x320xf32>
    %427 = vector.extract_strided_slice %426 {offsets = [0, 15], sizes = [32, 256], strides = [1, 1]} : vector<32x320xf32> to vector<32x256xf32>
    %428 = vector.broadcast %6 : vector<1x256xf32> to vector<32x256xf32>
    %429 = arith.mulf %427, %428 : vector<32x256xf32>
    %430 = vector.extract_strided_slice %426 {offsets = [0, 16], sizes = [32, 256], strides = [1, 1]} : vector<32x320xf32> to vector<32x256xf32>
    %431 = vector.extract_strided_slice %426 {offsets = [0, 17], sizes = [32, 256], strides = [1, 1]} : vector<32x320xf32> to vector<32x256xf32>
    %432 = vector.broadcast %10 : vector<1x256xf32> to vector<32x256xf32>
    %433 = arith.mulf %431, %432 : vector<32x256xf32>
    %434 = vector.extract_strided_slice %426 {offsets = [0, 31], sizes = [32, 256], strides = [1, 1]} : vector<32x320xf32> to vector<32x256xf32>
    %435 = vector.broadcast %6 : vector<1x256xf32> to vector<32x256xf32>
    %436 = arith.mulf %434, %435 : vector<32x256xf32>
    %437 = vector.extract_strided_slice %426 {offsets = [0, 32], sizes = [32, 256], strides = [1, 1]} : vector<32x320xf32> to vector<32x256xf32>
    %438 = vector.extract_strided_slice %426 {offsets = [0, 33], sizes = [32, 256], strides = [1, 1]} : vector<32x320xf32> to vector<32x256xf32>
    %439 = vector.broadcast %10 : vector<1x256xf32> to vector<32x256xf32>
    %440 = arith.mulf %438, %439 : vector<32x256xf32>
    %441 = vector.extract_strided_slice %426 {offsets = [0, 47], sizes = [32, 256], strides = [1, 1]} : vector<32x320xf32> to vector<32x256xf32>
    %442 = vector.broadcast %6 : vector<1x256xf32> to vector<32x256xf32>
    %443 = arith.mulf %441, %442 : vector<32x256xf32>
    %444 = vector.extract_strided_slice %426 {offsets = [0, 48], sizes = [32, 256], strides = [1, 1]} : vector<32x320xf32> to vector<32x256xf32>
    %445 = vector.extract_strided_slice %426 {offsets = [0, 49], sizes = [32, 256], strides = [1, 1]} : vector<32x320xf32> to vector<32x256xf32>
    %446 = vector.broadcast %10 : vector<1x256xf32> to vector<32x256xf32>
    %447 = arith.mulf %445, %446 : vector<32x256xf32>
    %448 = tpu.concatenate %429, %430, %433, %436, %437, %440, %443, %444, %447 in 0 : vector<32x256xf32>, vector<32x256xf32>, vector<32x256xf32>, vector<32x256xf32>, vector<32x256xf32>, vector<32x256xf32>, vector<32x256xf32>, vector<32x256xf32>, vector<32x256xf32> -> vector<288x256xf32>
    %449 = arith.truncf %448 : vector<288x256xf32> to vector<288x256xbf16>
    %c0_138 = arith.constant 0 : index
    %c0_139 = arith.constant 0 : index
    %450 = vector.load %arg12[%c0_138, %c0_139] : memref<8x288xbf16, #tpu.memory_space<vmem>>, vector<8x288xbf16>
    %cst_140 = arith.constant dense<0.000000e+00> : vector<8x256xf32>
    %451 = tpu.matmul %450, %449, %cst_140 {dimension_numbers = #tpu.dot_dimension_numbers<[1], [0], [0], [1], [0, 0, 1, 1], [], []>} : vector<8x288xbf16>, vector<288x256xbf16>, vector<8x256xf32> -> vector<8x256xf32>
    %c336 = arith.constant 336 : index
    %c0_141 = arith.constant 0 : index
    %452 = vector.load %arg15[%c336, %c0_141] : memref<360x1xf32, #tpu.memory_space<vmem>>, vector<8x1xf32>
    %453 = vector.broadcast %452 : vector<8x1xf32> to vector<8x256xf32>
    %454 = arith.addf %451, %453 : vector<8x256xf32>
    %cst_142 = arith.constant 0.000000e+00 : f32
    %455 = vector.broadcast %cst_142 : f32 to vector<8x256xf32>
    %456 = arith.cmpf ogt, %454, %455 : vector<8x256xf32>
    %cst_143 = arith.constant 0.000000e+00 : f32
    %457 = vector.broadcast %cst_143 : f32 to vector<8x256xf32>
    %458 = arith.minimumf %454, %457 : vector<8x256xf32>
    %459 = math.exp %458 : vector<8x256xf32>
    %cst_144 = arith.constant 1.000000e+00 : f32
    %460 = vector.broadcast %cst_144 : f32 to vector<8x256xf32>
    %461 = arith.subf %459, %460 : vector<8x256xf32>
    %462 = arith.select %456, %454, %461 : vector<8x256xi1>, vector<8x256xf32>
    %cst_145 = arith.constant 0.000000e+00 : f32
    %463 = vector.broadcast %cst_145 : f32 to vector<8x32xf32>
    %464 = tpu.concatenate %463, %462, %463 in 1 : vector<8x32xf32>, vector<8x256xf32>, vector<8x32xf32> -> vector<8x320xf32>
    %465 = vector.extract_strided_slice %464 {offsets = [0, 15], sizes = [8, 256], strides = [1, 1]} : vector<8x320xf32> to vector<8x256xf32>
    %466 = vector.broadcast %6 : vector<1x256xf32> to vector<8x256xf32>
    %467 = arith.mulf %465, %466 : vector<8x256xf32>
    %468 = vector.extract_strided_slice %464 {offsets = [0, 16], sizes = [8, 256], strides = [1, 1]} : vector<8x320xf32> to vector<8x256xf32>
    %469 = vector.extract_strided_slice %464 {offsets = [0, 17], sizes = [8, 256], strides = [1, 1]} : vector<8x320xf32> to vector<8x256xf32>
    %470 = vector.broadcast %10 : vector<1x256xf32> to vector<8x256xf32>
    %471 = arith.mulf %469, %470 : vector<8x256xf32>
    %472 = vector.extract_strided_slice %464 {offsets = [0, 31], sizes = [8, 256], strides = [1, 1]} : vector<8x320xf32> to vector<8x256xf32>
    %473 = vector.broadcast %6 : vector<1x256xf32> to vector<8x256xf32>
    %474 = arith.mulf %472, %473 : vector<8x256xf32>
    %475 = vector.extract_strided_slice %464 {offsets = [0, 32], sizes = [8, 256], strides = [1, 1]} : vector<8x320xf32> to vector<8x256xf32>
    %476 = vector.extract_strided_slice %464 {offsets = [0, 33], sizes = [8, 256], strides = [1, 1]} : vector<8x320xf32> to vector<8x256xf32>
    %477 = vector.broadcast %10 : vector<1x256xf32> to vector<8x256xf32>
    %478 = arith.mulf %476, %477 : vector<8x256xf32>
    %479 = vector.extract_strided_slice %464 {offsets = [0, 47], sizes = [8, 256], strides = [1, 1]} : vector<8x320xf32> to vector<8x256xf32>
    %480 = vector.broadcast %6 : vector<1x256xf32> to vector<8x256xf32>
    %481 = arith.mulf %479, %480 : vector<8x256xf32>
    %482 = vector.extract_strided_slice %464 {offsets = [0, 48], sizes = [8, 256], strides = [1, 1]} : vector<8x320xf32> to vector<8x256xf32>
    %483 = vector.extract_strided_slice %464 {offsets = [0, 49], sizes = [8, 256], strides = [1, 1]} : vector<8x320xf32> to vector<8x256xf32>
    %484 = vector.broadcast %10 : vector<1x256xf32> to vector<8x256xf32>
    %485 = arith.mulf %483, %484 : vector<8x256xf32>
    %486 = tpu.concatenate %467, %468, %471, %474, %475, %478, %481, %482, %485 in 0 : vector<8x256xf32>, vector<8x256xf32>, vector<8x256xf32>, vector<8x256xf32>, vector<8x256xf32>, vector<8x256xf32>, vector<8x256xf32>, vector<8x256xf32>, vector<8x256xf32> -> vector<72x256xf32>
    %487 = arith.truncf %486 : vector<72x256xf32> to vector<72x256xbf16>
    %c0_146 = arith.constant 0 : index
    %c0_147 = arith.constant 0 : index
    %488 = vector.load %arg13[%c0_146, %c0_147] : memref<8x72xbf16, #tpu.memory_space<vmem>>, vector<8x72xbf16>
    %cst_148 = arith.constant dense<0.000000e+00> : vector<8x256xf32>
    %489 = tpu.matmul %488, %487, %cst_148 {dimension_numbers = #tpu.dot_dimension_numbers<[1], [0], [0], [1], [0, 0, 1, 1], [], []>} : vector<8x72xbf16>, vector<72x256xbf16>, vector<8x256xf32> -> vector<8x256xf32>
    %c344 = arith.constant 344 : index
    %c0_149 = arith.constant 0 : index
    %490 = vector.load %arg15[%c344, %c0_149] : memref<360x1xf32, #tpu.memory_space<vmem>>, vector<8x1xf32>
    %491 = vector.broadcast %490 : vector<8x1xf32> to vector<8x256xf32>
    %492 = arith.addf %489, %491 : vector<8x256xf32>
    %cst_150 = arith.constant 0.000000e+00 : f32
    %493 = vector.broadcast %cst_150 : f32 to vector<8x256xf32>
    %494 = arith.cmpf ogt, %492, %493 : vector<8x256xf32>
    %cst_151 = arith.constant 0.000000e+00 : f32
    %495 = vector.broadcast %cst_151 : f32 to vector<8x256xf32>
    %496 = arith.minimumf %492, %495 : vector<8x256xf32>
    %497 = math.exp %496 : vector<8x256xf32>
    %cst_152 = arith.constant 1.000000e+00 : f32
    %498 = vector.broadcast %cst_152 : f32 to vector<8x256xf32>
    %499 = arith.subf %497, %498 : vector<8x256xf32>
    %500 = arith.select %494, %492, %499 : vector<8x256xi1>, vector<8x256xf32>
    %cst_153 = arith.constant 0.000000e+00 : f32
    %501 = vector.broadcast %cst_153 : f32 to vector<8x32xf32>
    %502 = tpu.concatenate %501, %500, %501 in 1 : vector<8x32xf32>, vector<8x256xf32>, vector<8x32xf32> -> vector<8x320xf32>
    %503 = vector.extract_strided_slice %502 {offsets = [0, 15], sizes = [8, 256], strides = [1, 1]} : vector<8x320xf32> to vector<8x256xf32>
    %504 = vector.broadcast %6 : vector<1x256xf32> to vector<8x256xf32>
    %505 = arith.mulf %503, %504 : vector<8x256xf32>
    %506 = vector.extract_strided_slice %502 {offsets = [0, 16], sizes = [8, 256], strides = [1, 1]} : vector<8x320xf32> to vector<8x256xf32>
    %507 = vector.extract_strided_slice %502 {offsets = [0, 17], sizes = [8, 256], strides = [1, 1]} : vector<8x320xf32> to vector<8x256xf32>
    %508 = vector.broadcast %10 : vector<1x256xf32> to vector<8x256xf32>
    %509 = arith.mulf %507, %508 : vector<8x256xf32>
    %510 = vector.extract_strided_slice %502 {offsets = [0, 31], sizes = [8, 256], strides = [1, 1]} : vector<8x320xf32> to vector<8x256xf32>
    %511 = vector.broadcast %6 : vector<1x256xf32> to vector<8x256xf32>
    %512 = arith.mulf %510, %511 : vector<8x256xf32>
    %513 = vector.extract_strided_slice %502 {offsets = [0, 32], sizes = [8, 256], strides = [1, 1]} : vector<8x320xf32> to vector<8x256xf32>
    %514 = vector.extract_strided_slice %502 {offsets = [0, 33], sizes = [8, 256], strides = [1, 1]} : vector<8x320xf32> to vector<8x256xf32>
    %515 = vector.broadcast %10 : vector<1x256xf32> to vector<8x256xf32>
    %516 = arith.mulf %514, %515 : vector<8x256xf32>
    %517 = vector.extract_strided_slice %502 {offsets = [0, 47], sizes = [8, 256], strides = [1, 1]} : vector<8x320xf32> to vector<8x256xf32>
    %518 = vector.broadcast %6 : vector<1x256xf32> to vector<8x256xf32>
    %519 = arith.mulf %517, %518 : vector<8x256xf32>
    %520 = vector.extract_strided_slice %502 {offsets = [0, 48], sizes = [8, 256], strides = [1, 1]} : vector<8x320xf32> to vector<8x256xf32>
    %521 = vector.extract_strided_slice %502 {offsets = [0, 49], sizes = [8, 256], strides = [1, 1]} : vector<8x320xf32> to vector<8x256xf32>
    %522 = vector.broadcast %10 : vector<1x256xf32> to vector<8x256xf32>
    %523 = arith.mulf %521, %522 : vector<8x256xf32>
    %524 = tpu.concatenate %505, %506, %509, %512, %513, %516, %519, %520, %523 in 0 : vector<8x256xf32>, vector<8x256xf32>, vector<8x256xf32>, vector<8x256xf32>, vector<8x256xf32>, vector<8x256xf32>, vector<8x256xf32>, vector<8x256xf32>, vector<8x256xf32> -> vector<72x256xf32>
    %525 = arith.truncf %524 : vector<72x256xf32> to vector<72x256xbf16>
    %c0_154 = arith.constant 0 : index
    %c0_155 = arith.constant 0 : index
    %526 = vector.load %arg14[%c0_154, %c0_155] : memref<3x72xbf16, #tpu.memory_space<vmem>>, vector<3x72xbf16>
    %cst_156 = arith.constant dense<0.000000e+00> : vector<3x256xf32>
    %527 = tpu.matmul %526, %525, %cst_156 {dimension_numbers = #tpu.dot_dimension_numbers<[1], [0], [0], [1], [0, 0, 1, 1], [], []>} : vector<3x72xbf16>, vector<72x256xbf16>, vector<3x256xf32> -> vector<3x256xf32>
    %c352 = arith.constant 352 : index
    %c0_157 = arith.constant 0 : index
    %528 = vector.load %arg15[%c352, %c0_157] : memref<360x1xf32, #tpu.memory_space<vmem>>, vector<3x1xf32>
    %529 = vector.broadcast %528 : vector<3x1xf32> to vector<3x256xf32>
    %530 = arith.addf %527, %529 : vector<3x256xf32>
    %531 = vector.shape_cast %530 : vector<3x256xf32> to vector<1x3x256xf32>
    %c0_158 = arith.constant 0 : index
    %c0_159 = arith.constant 0 : index
    %c0_160 = arith.constant 0 : index
    %532 = vector.load %arg20[%c0_158, %c0_159, %c0_160] : memref<1x3x256xf32, #tpu.memory_space<vmem>>, vector<1x3x256xf32>
    tpu.vector_store %arg20[%c0_158, %c0_159, %c0_160], %531 {strides = array<i32>} : memref<1x3x256xf32, #tpu.memory_space<vmem>>, vector<1x3x256xf32>,
    return
  }
  func.func @transform_0(%arg0: i32) -> (i32, i32, i32) {
    %c0_i32 = arith.constant 0 : i32
    %c0_i32_0 = arith.constant 0 : i32
    %c0_i32_1 = arith.constant 0 : i32
    return %arg0, %c0_i32, %c0_i32_0 : i32, i32, i32
  }
  func.func @transform_1(%arg0: i32) -> (i32, i32) {
    %c0_i32 = arith.constant 0 : i32
    %c0_i32_0 = arith.constant 0 : i32
    %c0_i32_1 = arith.constant 0 : i32
    return %c0_i32, %c0_i32_0 : i32, i32
  }
  func.func @transform_2(%arg0: i32) -> (i32, i32) {
    %c0_i32 = arith.constant 0 : i32
    %c0_i32_0 = arith.constant 0 : i32
    %c0_i32_1 = arith.constant 0 : i32
    return %c0_i32, %c0_i32_0 : i32, i32
  }
  func.func @transform_3(%arg0: i32) -> (i32, i32) {
    %c0_i32 = arith.constant 0 : i32
    %c0_i32_0 = arith.constant 0 : i32
    %c0_i32_1 = arith.constant 0 : i32
    return %c0_i32, %c0_i32_0 : i32, i32
  }
  func.func @transform_4(%arg0: i32) -> (i32, i32) {
    %c0_i32 = arith.constant 0 : i32
    %c0_i32_0 = arith.constant 0 : i32
    %c0_i32_1 = arith.constant 0 : i32
    return %c0_i32, %c0_i32_0 : i32, i32
  }
  func.func @transform_5(%arg0: i32) -> (i32, i32) {
    %c0_i32 = arith.constant 0 : i32
    %c0_i32_0 = arith.constant 0 : i32
    %c0_i32_1 = arith.constant 0 : i32
    return %c0_i32, %c0_i32_0 : i32, i32
  }
  func.func @transform_6(%arg0: i32) -> (i32, i32) {
    %c0_i32 = arith.constant 0 : i32
    %c0_i32_0 = arith.constant 0 : i32
    %c0_i32_1 = arith.constant 0 : i32
    return %c0_i32, %c0_i32_0 : i32, i32
  }
  func.func @transform_7(%arg0: i32) -> (i32, i32) {
    %c0_i32 = arith.constant 0 : i32
    %c0_i32_0 = arith.constant 0 : i32
    %c0_i32_1 = arith.constant 0 : i32
    return %c0_i32, %c0_i32_0 : i32, i32
  }
  func.func @transform_8(%arg0: i32) -> (i32, i32) {
    %c0_i32 = arith.constant 0 : i32
    %c0_i32_0 = arith.constant 0 : i32
    %c0_i32_1 = arith.constant 0 : i32
    return %c0_i32, %c0_i32_0 : i32, i32
  }
  func.func @transform_9(%arg0: i32) -> (i32, i32) {
    %c0_i32 = arith.constant 0 : i32
    %c0_i32_0 = arith.constant 0 : i32
    %c0_i32_1 = arith.constant 0 : i32
    return %c0_i32, %c0_i32_0 : i32, i32
  }
  func.func @transform_10(%arg0: i32) -> (i32, i32) {
    %c0_i32 = arith.constant 0 : i32
    %c0_i32_0 = arith.constant 0 : i32
    %c0_i32_1 = arith.constant 0 : i32
    return %c0_i32, %c0_i32_0 : i32, i32
  }
  func.func @transform_11(%arg0: i32) -> (i32, i32) {
    %c0_i32 = arith.constant 0 : i32
    %c0_i32_0 = arith.constant 0 : i32
    %c0_i32_1 = arith.constant 0 : i32
    return %c0_i32, %c0_i32_0 : i32, i32
  }
  func.func @transform_12(%arg0: i32) -> (i32, i32) {
    %c0_i32 = arith.constant 0 : i32
    %c0_i32_0 = arith.constant 0 : i32
    %c0_i32_1 = arith.constant 0 : i32
    return %c0_i32, %c0_i32_0 : i32, i32
  }
  func.func @transform_13(%arg0: i32) -> (i32, i32) {
    %c0_i32 = arith.constant 0 : i32
    %c0_i32_0 = arith.constant 0 : i32
    %c0_i32_1 = arith.constant 0 : i32
    return %c0_i32, %c0_i32_0 : i32, i32
  }
  func.func @transform_14(%arg0: i32) -> (i32, i32) {
    %c0_i32 = arith.constant 0 : i32
    %c0_i32_0 = arith.constant 0 : i32
    %c0_i32_1 = arith.constant 0 : i32
    return %c0_i32, %c0_i32_0 : i32, i32
  }
  func.func @transform_15(%arg0: i32) -> (i32, i32, i32) {
    %c0_i32 = arith.constant 0 : i32
    %c0_i32_0 = arith.constant 0 : i32
    %c0_i32_1 = arith.constant 0 : i32
    %c0_i32_2 = arith.constant 0 : i32
    return %c0_i32, %c0_i32_0, %c0_i32_1 : i32, i32, i32
  }
  func.func @transform_16(%arg0: i32) -> (i32, i32, i32) {
    %c0_i32 = arith.constant 0 : i32
    %c0_i32_0 = arith.constant 0 : i32
    %c0_i32_1 = arith.constant 0 : i32
    %c0_i32_2 = arith.constant 0 : i32
    return %c0_i32, %c0_i32_0, %c0_i32_1 : i32, i32, i32
  }
  func.func @transform_17(%arg0: i32) -> (i32, i32, i32) {
    %c0_i32 = arith.constant 0 : i32
    %c0_i32_0 = arith.constant 0 : i32
    %c0_i32_1 = arith.constant 0 : i32
    %c0_i32_2 = arith.constant 0 : i32
    return %c0_i32, %c0_i32_0, %c0_i32_1 : i32, i32, i32
  }
  func.func @transform_18(%arg0: i32) -> (i32, i32, i32) {
    %c0_i32 = arith.constant 0 : i32
    %c0_i32_0 = arith.constant 0 : i32
    %c0_i32_1 = arith.constant 0 : i32
    %c0_i32_2 = arith.constant 0 : i32
    return %c0_i32, %c0_i32_0, %c0_i32_1 : i32, i32, i32
  }
  func.func @transform_19(%arg0: i32) -> (i32, i32, i32) {
    %c0_i32 = arith.constant 0 : i32
    %c0_i32_0 = arith.constant 0 : i32
    %c0_i32_1 = arith.constant 0 : i32
    return %arg0, %c0_i32, %c0_i32_0 : i32, i32, i32
  }
}

</mosaic_0001>

<bundles_post_ra>
// kernel: tile.18
= control target key start
LH: loop header
LB: loop body
LE: loop exit
PB: predicated region body
PF: predicated region fallthrough
CT: control target
= control target key end

     0   :  { %s22_s0 = inlined_call_operand.vmem [shape: f32[16], index: 0, kind: input, shape index: {}]   ;;  %s23_s1 = inlined_call_operand.vmem [shape: f32[4,16], index: 1, kind: output, shape index: {}]  }
   0x1   :  { %v4_v0 = vld [vmem:[%s22_s0] ss:$0 sm:$0xff] }
   0x2   :  { %5 = vst [vmem:[%s23_s1] sm:$0xf] %v4_v0 }

// kernel: tile.13
= control target key start
LH: loop header
LB: loop body
LE: loop exit
PB: predicated region body
PF: predicated region fallthrough
CT: control target
= control target key end

     0   :  { %s22_s0 = inlined_call_operand.vmem [shape: f32[32], index: 0, kind: input, shape index: {}]   ;;  %s23_s1 = inlined_call_operand.vmem [shape: f32[4,32], index: 1, kind: output, shape index: {}]  }
   0x1   :  { %v4_v0 = vld [vmem:[%s22_s0] ss:$0 sm:$0xff] }
   0x2   :  { %5 = vst [vmem:[%s23_s1] sm:$0xf] %v4_v0 }

// kernel: unet2d_forward.1
= control target key start
LH: loop header
LB: loop body
LE: loop exit
PB: predicated region body
PF: predicated region fallthrough
CT: control target
= control target key end

     0   :  { %s10677_s0 = inlined_call_operand.vmem [shape: f32[2,8,256], index: 0, kind: input, shape index: {}]   ;;  %s10678_s1 = inlined_call_operand.vmem [shape: bf16[8,72], index: 1, kind: input, shape index: {}]   ;;  %s10679_s2 = inlined_call_operand.vmem [shape: bf16[8,72], index: 2, kind: input, shape index: {}]   ;;  %s10680_s3 = inlined_call_operand.vmem [shape: bf16[16,72], index: 3, kind: input, shape index: {}]   ;;  %s10681_s4 = inlined_call_operand.vmem [shape: bf16[16,144], index: 4, kind: input, shape index: {}]   ;;  %s10682_s5 = inlined_call_operand.vmem [shape: bf16[32,144], index: 5, kind: input, shape index: {}]   ;;  %s10683_s6 = inlined_call_operand.vmem [shape: bf16[32,288], index: 6, kind: input, shape index: {}]   ;;  %s10684_s7 = inlined_call_operand.vmem [shape: bf16[128,32], index: 7, kind: input, shape index: {}]   ;;  %s10685_s8 = inlined_call_operand.vmem [shape: bf16[16,504], index: 8, kind: input, shape index: {}]   ;;  %s10686_s9 = inlined_call_operand.vmem [shape: bf16[16,144], index: 9, kind: input, shape index: {}]   ;;  %s10687_s10 = inlined_call_operand.vmem [shape: bf16[64,16], index: 10, kind: input, shape index: {}]   ;;  %s10688_s11 = inlined_call_operand.vmem [shape: bf16[8,288], index: 11, kind: input, shape index: {}]   ;;  %s10689_s12 = inlined_call_operand.vmem [shape: bf16[8,72], index: 12, kind: input, shape index: {}]   ;;  %s10690_s13 = inlined_call_operand.vmem [shape: bf16[3,72], index: 13, kind: input, shape index: {}]   ;;  %s10691_s14 = inlined_call_operand.vmem [shape: f32[360,1], index: 14, kind: input, shape index: {}]   ;;  %s10692_s15 = inlined_call_operand.vmem [shape: bf16[4,16,64], index: 15, kind: input, shape index: {}]   ;;  %s10693_s16 = inlined_call_operand.vmem [shape: bf16[4,64,256], index: 16, kind: input, shape index: {}]   ;;  %s10694_s17 = inlined_call_operand.vmem [shape: bf16[4,256,64], index: 17, kind: input, shape index: {}]   ;;  %s10695_s18 = inlined_call_operand.vmem [shape: bf16[4,64,16], index: 18, kind: input, shape index: {}]   ;;  %s10696_s19 = inlined_call_operand.vmem [shape: f32[2,3,256], index: 19, kind: output, shape index: {}]  }
   0x1   :  { %10830 = sst [smem:[#allocation48_spill]] %s10677_s0  ;;  %s7960_s0 = smov 0  }
   0x2   :  { %10831 = sst [smem:[#allocation49_spill]] %s10678_s1 }
   0x3   :  { %10832 = sst [smem:[#allocation50_spill]] %s10679_s2 }
   0x4   :  { %10833 = sst [smem:[#allocation51_spill]] %s10680_s3 }
   0x5   :  { %10834 = sst [smem:[#allocation52_spill]] %s10681_s4 }
   0x6   :  { %10835 = sst [smem:[#allocation53_spill]] %s10682_s5 }
   0x7   :  { %10836 = sst [smem:[#allocation54_spill]] %s10683_s6 }
   0x8   :  { %10837 = sst [smem:[#allocation55_spill]] %s10684_s7 }
   0x9   :  { %10838 = sst [smem:[#allocation56_spill]] %s10685_s8 }
   0xa   :  { %10839 = sst [smem:[#allocation57_spill]] %s10694_s17 }
   0xb   :  { %10840 = sst [smem:[#allocation58_spill]] %s10696_s19 }
   0xc LB: > { %10841 = sst [smem:[#allocation2_spill]] %s7822_s0  ;;  %s6071_s30 = sadd.s32 4294967295, %s7822_s0   ;;  %s7822_s0 = sphi %s7960_s0, %s29_s0  }
   0xd   : > { %p6075_p0 = scmp.ge.s32.totalorder %s7822_s0, 1  ;;  %p537_p1 = scmp.lt.s32.totalorder %s7822_s0, 3 }
   0xf   : > { %p538_p2 = pnand %p6075_p0, %p537_p1 }
  0x11   : > { %541 = sbr.rel (%p538_p2) target bundleno = 7586 (0x1da2), region = 96 }
  0x16   : > { %p593_p3 = scmp.lt.s32.totalorder %s6071_s30, 1  ;;  %v604_v0 = vlaneseq  ;;  %s10842_s22 = sld [smem:[#allocation48_spill]]  ;;  %v10699_v6 = vmov 0.0   ;;  %vm643_vm4 = vcmask 261120   ;;  %vm706_vm5 = vcmask 384000  }
  0x17   : > { %s10716_s23 = smov 32   ;;  %s7826_s24 = smov 49   ;;  %vm718_vm6 = vcmask 400384   ;;  %vm694_vm7 = vcmask 269312   ;;  %vm670_vm8 = vcmask 138240   ;;  %vm682_vm9 = vcmask 252928  }
  0x18   : > { %s11083_s30 = smov (!%p593_p3, %s6071_s30), 1  ;;  %v7970_v1 = vand.u32 127, %v604_v0  ;;  %s7827_s25 = smov 33   ;;  %vm833_vm10 = vcmask 769024   ;;  %vm806_vm11 = vcmask 785408   ;;  %vm818_vm12 = vcmask 777216  }
  0x19   : > { %s6902_s20 = sshll.u32 %s11083_s30, 4  ;;  %s7828_s3 = smov 47   ;;  %vm10774_vm13 = vcmask 900096   ;;  %vm10753_vm14 = vcmask 908288   ;;  %vm764_vm15 = vcmask 916480  }
  0x1a   : > { %v606_v2 = vadd.s32 128, %v7970_v1  ;;  %v607_v3 = vand.u32 15, %v7970_v1  ;;  %s10697_s26 = smov 17   ;;  %s7830_s27 = smov 31  }
  0x1b   : > { %s10714_s28 = smov 95   ;;  %s10743_s29 = smov 111  }
  0x1c   : > { %s597_s2 = scalar_lea.vmem %s10842_s22, %s6902_s20  ;;  %v608_v5 = vand.u32 15, %v606_v2  ;;  %vm615_vm0 = vcmp.le.s32.totalorder %v607_v3, 14  ;;  %vm609_vm2 = vcmp.ge.s32.totalorder %v607_v3, 1  ;;  %s10720_s20 = smov 126  }
  0x1d   : > { %v635_v4 = vld [vmem:[%s597_s2] sm:$0xff]  ;;  %v6082_v7 = vsel %vm615_vm0, 1.0, %v10699_v6  ;;  %v636_v10 = vld [vmem:[%s597_s2 + $0x8] sm:$0xff]  ;;  %v6080_v11 = vsel %vm609_vm2, 1.0, %v10699_v6  ;;  %s10710_s21 = smov 96   ;;  %s10712_s1 = smov 94  }
  0x1e   : > { %639 = vrot.lane.b32.xlu0 %v635_v4, %s10716_s23  ;;  %vm616_vm1 = vcmp.le.s32.totalorder %v608_v5, 14  ;;  %vm610_vm3 = vcmp.ge.s32.totalorder %v608_v5, 1  ;;  %s10724_s22 = smov 110   ;;  %s10722_s2 = smov 112   ;;  %vm749_vm0 = vcmask 1031168   ;;  %vm734_vm2 = vcmask 1039360  }
  0x1f   : > { %v6083_v8 = vsel %vm616_vm1, 1.0, %v10699_v6  ;;  %v6081_v12 = vsel %vm610_vm3, 1.0, %v10699_v6  ;;  %vm656_vm1 = vcmask 121856   ;;  %vm10775_vm3 = vcmask 924672   ;;  %s10889_s17 = sld [smem:[#allocation57_spill]]  ;;  %s7852_s19 = smov 5  }
  0x20   : > { %v7095_v9 = vpack.i.bf16 %v6083_v8, %v6082_v7  ;;  %v7984_v13 = vpack.i.bf16 %v6081_v12, %v6080_v11  ;;  %s10901_s4 = sld [smem:[#allocation52_spill]]  ;;  %s7853_s0 = smov 8  }
  0x21   : > { %s10905_s5 = sld [smem:[#allocation53_spill]] }
  0x22   : > { %7096 = vrot.lane.b32.xlu1 %v7095_v9, %s7826_s24  ;;  %7106 = vrot.lane.b32.xlu2 %v7095_v9, %s7827_s25  ;;  %s10698_s24 = smov 15   ;;  %s10718_s25 = smov 127  }
  0x23   : > { %s10911_s6 = sld [smem:[#allocation54_spill]] }
  0x24   : > { %s10914_s7 = sld [smem:[#allocation55_spill]] }
  0x25   : > { %s10915_s8 = sld [smem:[#allocation56_spill]] }
  0x26   : > { %641 = vrot.lane.b32.xlu0 %v636_v10, %s10716_s23 }
  0x2a   : > { %7101 = vrot.lane.b32.xlu1 %v7984_v13, %s7828_s3  ;;  %7111 = vrot.lane.b32.xlu2 %v7095_v9, %s10697_s26  ;;  %s10708_s3 = smov 113   ;;  %s10732_s26 = smov 119  }
  0x2e   : > { %7116 = vrot.lane.b32.xlu0 %v7984_v13, %s7830_s27  ;;  %s10749_s27 = smov 118  }
  0x7c   : > { %v7107_v15 = vpop.permute.xlu2 %7106 }
  0x7d   : > { %v8038_v35 = vunpack.i.h.bf16 %v7107_v15  ;;  %v8042_v37 = vunpack.i.l.bf16 %v7107_v15 }
  0x7f   : > { %10850 = vst [vmem:[#allocation10_spill] sm:$0xff] %v8038_v35  ;;  %v8048_v40 = vsel %vm694_vm7, %v8042_v37, %v8038_v35 }
  0x80   : > { %10851 = vst [vmem:[#allocation11_spill] sm:$0xff] %v8042_v37 }
  0x81   : > { %10852 = vst [vmem:[#allocation12_spill] sm:$0xff] %v8048_v40 }
  0x84   : > { %v7112_v22 = vpop.permute.xlu2 %7111 }
  0x85   : > { %v8004_v23 = vunpack.i.h.bf16 %v7112_v22  ;;  %v8063_v49 = vunpack.i.l.bf16 %v7112_v22 }
  0x87   : > { %10843 = vst [vmem:[#allocation3_spill] sm:$0xff] %v8004_v23  ;;  %v8072_v52 = vsel %vm670_vm8, %v8063_v49, %v8004_v23 }
  0x88   : > { %10855 = vst [vmem:[#allocation15_spill] sm:$0xff] %v8063_v49 }
  0x89   : > { %10856 = vst [vmem:[#allocation16_spill] sm:$0xff] %v8072_v52 }
  0x90   : > { %v640_v14 = vpop.permute.xlu0 %639 }
  0x91   : > { %v7990_v18 = vsel %vm643_vm4, 0.0, %v640_v14 }
  0x92   : > { %v699_v46 = vmul.f32 %v8042_v37, %v7990_v18  ;;  %v675_v57 = vmul.f32 %v8063_v49, %v7990_v18 }
  0x94   : > { %v7097_v16 = vpop.permute.xlu1 %7096 }
  0x95   : > { %v8014_v27 = vunpack.i.h.bf16 %v7097_v16  ;;  %v8016_v28 = vunpack.i.l.bf16 %v7097_v16 }
  0x97   : > { %10846 = vst [vmem:[#allocation6_spill] sm:$0xff] %v8014_v27  ;;  %v8029_v32 = vsel %vm718_vm6, %v8016_v28, %v8014_v27  ;;  %v723_v39 = vmul.f32 %v8016_v28, %v7990_v18  ;;  %vm10752_vm6 = vcmask 588800  }
  0x98   : > { %v642_v17 = vpop.permute.xlu0 %641  ;;  %10847 = vst [vmem:[#allocation7_spill] sm:$0xff] %v8016_v28 }
  0x99   : > { %v7993_v19 = vsel %vm643_vm4, %v640_v14, %v642_v17  ;;  %v7996_v20 = vsel %vm643_vm4, %v642_v17, 0.0  ;;  %10849 = vst [vmem:[#allocation9_spill] sm:$0xff] %v8029_v32 }
  0x9a   : > { %816 = vrot.lane.b32.xlu0 %v7996_v20, %s10714_s28  ;;  %v8002_v21 = vpack.i.bf16 %v7993_v19, %v7990_v18  ;;  %v677_v29 = vmul.f32 %v8004_v23, %v7996_v20  ;;  %v724_v36 = vmul.f32 %v8029_v32, %v7993_v19  ;;  %v725_v41 = vmul.f32 %v8014_v27, %v7996_v20 }
  0x9b   : > { %v700_v44 = vmul.f32 %v8048_v40, %v7993_v19  ;;  %v701_v50 = vmul.f32 %v8038_v35, %v7996_v20  ;;  %v676_v54 = vmul.f32 %v8072_v52, %v7993_v19 }
  0x9c   : > { %7126 = vrot.lane.b32.xlu1 %v8002_v21, %s10743_s29  ;;  %7121 = vrot.lane.b32.xlu2 %v8002_v21, %s10714_s28  ;;  %v7102_v24 = vpop.permute.xlu1 %7101  ;;  %v7130_v42 = vpack.i.bf16 %v724_v36, %v723_v39 }
  0x9d   : > { %v8010_v25 = vunpack.i.h.bf16 %v7102_v24  ;;  %v8012_v26 = vunpack.i.l.bf16 %v7102_v24  ;;  %v7140_v48 = vpack.i.bf16 %v700_v44, %v699_v46  ;;  %v7150_v58 = vpack.i.bf16 %v676_v54, %v675_v57 }
  0x9f   : > { %10844 = vst [vmem:[#allocation4_spill] sm:$0xff] %v8010_v25  ;;  %v8022_v30 = vsel %vm706_vm5, %v8012_v26, %v8010_v25  ;;  %v713_v31 = vmul.f32 %v8010_v25, %v7996_v20  ;;  %v711_v33 = vmul.f32 %v8012_v26, %v7990_v18  ;;  %vm929_vm5 = vcmask 1043456  }
  0xa0   : > { %10845 = vst [vmem:[#allocation5_spill] sm:$0xff] %v8012_v26  ;;  %v712_v34 = vmul.f32 %v8022_v30, %v7993_v19  ;;  %v7117_v43 = vpop.permute.xlu0 %7116 }
  0xa1   : > { %10848 = vst [vmem:[#allocation8_spill] sm:$0xff] %v8022_v30  ;;  %v8057_v45 = vunpack.i.h.bf16 %v7117_v43  ;;  %v8061_v47 = vunpack.i.l.bf16 %v7117_v43 }
  0xa2   : > { %747 = vrot.lane.b32.xlu0 %v677_v29, %s10720_s20  ;;  %v7135_v38 = vpack.i.bf16 %v712_v34, %v711_v33 }
  0xa3   : > { %10853 = vst [vmem:[#allocation13_spill] sm:$0xff] %v8057_v45  ;;  %v689_v51 = vmul.f32 %v8057_v45, %v7996_v20  ;;  %v8076_v53 = vsel %vm682_vm9, %v8061_v47, %v8057_v45  ;;  %v687_v55 = vmul.f32 %v8061_v47, %v7990_v18 }
  0xa4   : > { %804 = vrot.lane.b32.xlu1 %v713_v31, %s10710_s21  ;;  %774 = vrot.lane.b32.xlu2 %v7996_v20, %s10743_s29  ;;  %10854 = vst [vmem:[#allocation14_spill] sm:$0xff] %v8061_v47  ;;  %v688_v56 = vmul.f32 %v8076_v53, %v7993_v19 }
  0xa5   : > { %10857 = vst [vmem:[#allocation17_spill] sm:$0xff] %v8076_v53 }
  0xa6   : > { %v7155_v59 = vpack.i.bf16 %v688_v56, %v687_v55 }
  0xaa   : > { %7136 = vrot.lane.b32.xlu0 %v7135_v38, %s10710_s21 }
  0xac   : > { %831 = vrot.lane.b32.xlu2 %v725_v41, %s10712_s1  ;;  %7131 = vrot.lane.b32.xlu1 %v7130_v42, %s10712_s1 }
  0xb2   : > { %7141 = vrot.lane.b32.xlu0 %v7140_v48, %s10724_s22 }
  0xb4   : > { %789 = vrot.lane.b32.xlu1 %v701_v50, %s10724_s22  ;;  %762 = vrot.lane.b32.xlu2 %v689_v51, %s10722_s2 }
  0xba   : > { %7146 = vrot.lane.b32.xlu0 %v7984_v13, %s10698_s24  ;;  %s10888_s24 = sld [smem:[#allocation49_spill]] }
  0xbc   : > { %7151 = vrot.lane.b32.xlu2 %v7150_v58, %s10720_s20  ;;  %7156 = vrot.lane.b32.xlu1 %v7155_v59, %s10722_s2 }
  0xc4   : > { %732 = vrot.lane.b32.xlu2 %v7996_v20, %s10718_s25  ;;  %7161 = vrot.lane.b32.xlu1 %v8002_v21, %s10718_s25 }
  0xf6   : > { %v7122_v60 = vpop.permute.xlu2 %7121 }
  0xf7   : > { %v7124_v22 = vunpack.i.h.bf16 %v7122_v60  ;;  %v7123_v24 = vunpack.i.l.bf16 %v7122_v60 }
  0xf9   : > { %v8140_v36 = vsel %vm818_vm12, %v7123_v24, %v7124_v22 }
  0xfa   : > { %10869 = vst [vmem:[#allocation29_spill] sm:$0xff] %v8140_v36 }
  0xfe   : > { %v8096_v61 = vpop.permute.xlu2 %774 }
  0xff   : > { %10858 = vst [vmem:[#allocation18_spill] sm:$0xff] %v8096_v61 }
 0x106   : > { %v8098_v62 = vpop.permute.xlu2 %831 }
 0x107   : > { %10859 = vst [vmem:[#allocation19_spill] sm:$0xff] %v8098_v62  ;;  %v853_v63 = vpack.c.bf16 %v8098_v62, %v8098_v62 }
 0x109   : > { %904 = vrot.lane.b32.xlu2 %v853_v63, %s10708_s3 }
 0x10c   : > { %v8103_v0 = vpop.permute.xlu0 %816 }
 0x10d   : > { %10860 = vst [vmem:[#allocation20_spill] sm:$0xff] %v8103_v0  ;;  %v8144_v38 = vsel %vm818_vm12, %v7124_v22, %v8103_v0 }
 0x10e   : > { %v7127_v2 = vpop.permute.xlu1 %7126  ;;  %v8119_v13 = vpop.permute.xlu2 %762  ;;  %10870 = vst [vmem:[#allocation30_spill] sm:$0xff] %v8144_v38 }
 0x10f   : > { %10865 = vst [vmem:[#allocation25_spill] sm:$0xff] %v8119_v13  ;;  %v7129_v48 = vunpack.i.h.bf16 %v7127_v2  ;;  %v7128_v50 = vunpack.i.l.bf16 %v7127_v2 }
 0x111   : > { %v8165_v58 = vsel %vm10753_vm14, %v7128_v50, %v7129_v48  ;;  %v8169_v59 = vsel %vm10753_vm14, %v7129_v48, %v8096_v61 }
 0x112   : > { %10874 = vst [vmem:[#allocation34_spill] sm:$0xff] %v8165_v58 }
 0x113   : > { %10875 = vst [vmem:[#allocation35_spill] sm:$0xff] %v8169_v59 }
 0x114   : > { %v8105_v3 = vpop.permute.xlu0 %747 }
 0x115   : > { %10861 = vst [vmem:[#allocation21_spill] sm:$0xff] %v8105_v3  ;;  %v844_v55 = vpack.c.bf16 %v8119_v13, %v8105_v3 }
 0x116   : > { %v8107_v4 = vpop.permute.xlu1 %804  ;;  %v7152_v44 = vpop.permute.xlu2 %7151 }
 0x117   : > { %10862 = vst [vmem:[#allocation22_spill] sm:$0xff] %v8107_v4  ;;  %v850_v5 = vpack.c.bf16 %v8103_v0, %v8107_v4 }
 0x119   : > { %898 = vrot.lane.b32.xlu2 %v850_v5, %s10708_s3 }
 0x11c   : > { %v7137_v7 = vpop.permute.xlu0 %7136 }
 0x11d   : > { %v7139_v16 = vunpack.i.h.bf16 %v7137_v7  ;;  %v7138_v17 = vunpack.i.l.bf16 %v7137_v7 }
 0x11e   : > { %v7132_v8 = vpop.permute.xlu1 %7131 }
 0x11f   : > { %v7134_v9 = vunpack.i.h.bf16 %v7132_v8  ;;  %v7133_v10 = vunpack.i.l.bf16 %v7132_v8  ;;  %v8132_v33 = vsel %vm806_vm11, %v7138_v17, %v7139_v16  ;;  %v8136_v34 = vsel %vm806_vm11, %v7139_v16, %v8107_v4 }
 0x120   : > { %10867 = vst [vmem:[#allocation27_spill] sm:$0xff] %v8132_v33  ;;  %v848_v39 = vpack.c.bf16 %v8140_v36, %v8132_v33  ;;  %v849_v41 = vpack.c.bf16 %v8144_v38, %v8136_v34  ;;  %v7154_v8 = vunpack.i.h.bf16 %v7152_v44 }
 0x121   : > { %v8113_v11 = vsel %vm833_vm10, %v7133_v10, %v7134_v9  ;;  %v8117_v12 = vsel %vm833_vm10, %v7134_v9, %v8098_v62  ;;  %10868 = vst [vmem:[#allocation28_spill] sm:$0xff] %v8136_v34  ;;  %v7153_v9 = vunpack.i.l.bf16 %v7152_v44  ;;  %v8181_v10 = vpop.permute.xlu2 %732 }
 0x122   : > { %10863 = vst [vmem:[#allocation23_spill] sm:$0xff] %v8113_v11  ;;  %v851_v14 = vpack.c.bf16 %v8113_v11, %v8113_v11  ;;  %v852_v15 = vpack.c.bf16 %v8117_v12, %v8117_v12 }
 0x123   : > { %10864 = vst [vmem:[#allocation24_spill] sm:$0xff] %v8117_v12  ;;  %v8200_v22 = vsel %vm749_vm0, %v7153_v9, %v7154_v8  ;;  %v855_v9 = vld [vmem:[%s10691_s14] sm:$0xff] }
 0x124   : > { %900 = vrot.lane.b32.xlu0 %v851_v14, %s10708_s3  ;;  %v7142_v21 = vpop.permute.xlu0 %7141  ;;  %902 = vrot.lane.b32.xlu1 %v852_v15, %s10708_s3  ;;  %10877 = vst [vmem:[#allocation37_spill] sm:$0xff] %v8181_v10 }
 0x125   : > { %v7144_v42 = vunpack.i.h.bf16 %v7142_v21  ;;  %v7143_v43 = vunpack.i.l.bf16 %v7142_v21  ;;  %v8197_v21 = vsel %vm749_vm0, %v7154_v8, %v8105_v3  ;;  %10882 = vst [vmem:[#allocation42_spill] sm:$0xff] %v8200_v22 }
 0x126   : > { %v8127_v29 = vpop.permute.xlu1 %789  ;;  %10881 = vst [vmem:[#allocation41_spill] sm:$0xff] %v8197_v21 }
 0x127   : > { %10866 = vst [vmem:[#allocation26_spill] sm:$0xff] %v8127_v29  ;;  %v847_v31 = vpack.c.bf16 %v8127_v29, %v8096_v61  ;;  %v8157_v56 = vsel %vm10774_vm13, %v7143_v43, %v7144_v42  ;;  %v8161_v57 = vsel %vm10774_vm13, %v7144_v42, %v8127_v29 }
 0x128   : > { %10872 = vst [vmem:[#allocation32_spill] sm:$0xff] %v8157_v56  ;;  %v845_v60 = vpack.c.bf16 %v8157_v56, %v8165_v58  ;;  %v846_v63 = vpack.c.bf16 %v8161_v57, %v8169_v59 }
 0x129   : > { %892 = vrot.lane.b32.xlu2 %v847_v31, %s10708_s3  ;;  %10873 = vst [vmem:[#allocation33_spill] sm:$0xff] %v8161_v57 }
 0x12c   : > { %v7147_v46 = vpop.permute.xlu0 %7146  ;;  %894 = vrot.lane.b32.xlu0 %v848_v39, %s10708_s3  ;;  %896 = vrot.lane.b32.xlu1 %v849_v41, %s10708_s3 }
 0x12d   : > { %v8152_v54 = vunpack.i.h.bf16 %v7147_v46  ;;  %v8192_v17 = vunpack.i.l.bf16 %v7147_v46 }
 0x12e   : > { %v7157_v51 = vpop.permute.xlu1 %7156 }
 0x12f   : > { %10871 = vst [vmem:[#allocation31_spill] sm:$0xff] %v8152_v54  ;;  %v7159_v2 = vunpack.i.h.bf16 %v7157_v51  ;;  %v7158_v5 = vunpack.i.l.bf16 %v7157_v51  ;;  %v8177_v7 = vmul.f32 %v8152_v54, %v7996_v20  ;;  %v8210_v42 = vsel %vm656_vm1, %v8192_v17, %v8152_v54 }
 0x130   : > { %10880 = vst [vmem:[#allocation40_spill] sm:$0xff] %v8192_v17  ;;  %v8221_v46 = vmul.f32 %v8210_v42, %v7993_v19  ;;  %v8225_v48 = vmul.f32 %v8192_v17, %v7990_v18 }
 0x131   : > { %886 = vrot.lane.b32.xlu2 %v844_v55, %s10708_s3  ;;  %10876 = vst [vmem:[#allocation36_spill] sm:$0xff] %v8177_v7  ;;  %v841_v14 = vpack.c.bf16 %v8181_v10, %v8177_v7  ;;  %v8187_v15 = vsel %vm764_vm15, %v7159_v2, %v8119_v13  ;;  %v8190_v20 = vsel %vm764_vm15, %v7158_v5, %v7159_v2 }
 0x132   : > { %10878 = vst [vmem:[#allocation38_spill] sm:$0xff] %v8187_v15  ;;  %v843_v24 = vpack.c.bf16 %v8187_v15, %v8197_v21  ;;  %v842_v31 = vpack.c.bf16 %v8190_v20, %v8200_v22 }
 0x133   : > { %10879 = vst [vmem:[#allocation39_spill] sm:$0xff] %v8190_v20 }
 0x134   : > { %888 = vrot.lane.b32.xlu0 %v845_v60, %s10708_s3  ;;  %890 = vrot.lane.b32.xlu1 %v846_v63, %s10708_s3  ;;  %10883 = vst [vmem:[#allocation43_spill] sm:$0xff] %v8210_v42 }
 0x135   : > { %10886 = vst [vmem:[#allocation46_spill] sm:$0xff] %v8221_v46 }
 0x136   : > { %v7162_v16 = vpop.permute.xlu1 %7161  ;;  %10887 = vst [vmem:[#allocation47_spill] sm:$0xff] %v8225_v48 }
 0x137   : > { %v7164_v39 = vunpack.i.h.bf16 %v7162_v16  ;;  %v7163_v41 = vunpack.i.l.bf16 %v7162_v16 }
 0x139   : > { %880 = vrot.lane.b32.xlu2 %v841_v14, %s10708_s3  ;;  %v8214_v43 = vsel %vm734_vm2, %v7164_v39, %v8181_v10  ;;  %v8217_v44 = vsel %vm734_vm2, %v7163_v41, %v7164_v39  ;;  %v7841_v14 = vmov 0  }
 0x13a   : > { %10884 = vst [vmem:[#allocation44_spill] sm:$0xff] %v8214_v43  ;;  %v840_v50 = vpack.c.bf16 %v8214_v43, %v8221_v46  ;;  %v839_v51 = vpack.c.bf16 %v8217_v44, %v8225_v48  ;;  %7165 = vset.pattern.permute.xlu0 %v7841_v14  ;;  %7206 = vset.pattern.permute.xlu2 %v7841_v14 }
 0x13b   : > { %10885 = vst [vmem:[#allocation45_spill] sm:$0xff] %v8217_v44  ;;  %7287 = vset.pattern.permute.xlu1 %v7841_v14 }
 0x13c   : > { %884 = vrot.lane.b32.xlu1 %v843_v24, %s10708_s3  ;;  %882 = vrot.lane.b32.xlu0 %v842_v31, %s10708_s3 }
 0x144   : > { %878 = vrot.lane.b32.xlu1 %v840_v50, %s10708_s3  ;;  %876 = vrot.lane.b32.xlu0 %v839_v51, %s10708_s3 }
 0x14c   : > { %858 = vperm.xlu0 %7165, %v855_v9  }
 0x163   : > { %v905_v55 = vpop.permute.xlu2 %904 }
 0x173   : > { %v899_v8 = vpop.permute.xlu2 %898 }
 0x183   : > { %v893_v41 = vpop.permute.xlu2 %892 }
 0x196   : > { %v901_v60 = vpop.permute.xlu0 %900  ;;  %v903_v19 = vpop.permute.xlu1 %902 }
 0x197   : > { %v915_v63 = vsel %vm10775_vm3, %v901_v60, %v903_v19  ;;  %v916_v18 = vsel %vm10775_vm3, %v903_v19, %v905_v55  ;;  %v887_v19 = vpop.permute.xlu2 %886 }
 0x198   : > { %v931_v2 = vsel %vm929_vm5, %v915_v63, 0  ;;  %v934_v5 = vsel %vm929_vm5, %v916_v18, 0 }
 0x199   : > { %939 = vmatpush.bf16.msra.mxu0 %v931_v2  ;;  %952 = vmatpush.bf16.msra.mxu1 %v934_v5 }
 0x19e   : > { %v895_v16 = vpop.permute.xlu0 %894  ;;  %v897_v24 = vpop.permute.xlu1 %896 }
 0x19f   : > { %v913_v31 = vsel %vm10775_vm3, %v895_v16, %v897_v24  ;;  %v914_v39 = vsel %vm10775_vm3, %v897_v24, %v899_v8  ;;  %v881_v8 = vpop.permute.xlu2 %880 }
 0x1a0   : > { %940 = vmatpush.bf16.msra.mxu0 %v913_v31  ;;  %953 = vmatpush.bf16.msra.mxu1 %v914_v39  ;;  %v854_v31 = vld [vmem:[%s10888_s24] sm:$0xf]  ;;  %s10896_s24 = smov 126  }
 0x1a6   : > { %v889_v50 = vpop.permute.xlu0 %888  ;;  %v891_v51 = vpop.permute.xlu1 %890 }
 0x1a7   : > { %v911_v55 = vsel %vm10775_vm3, %v889_v50, %v891_v51  ;;  %v912_v60 = vsel %vm10775_vm3, %v891_v51, %v893_v41 }
 0x1a8   : > { %941 = vmatpush.bf16.msra.mxu0 %v911_v55  ;;  %954 = vmatpush.bf16.msra.mxu1 %v912_v60 }
 0x1ae   : > { %v885_v63 = vpop.permute.xlu1 %884  ;;  %v883_v18 = vpop.permute.xlu0 %882 }
 0x1af   : > { %v909_v2 = vsel %vm10775_vm3, %v883_v18, %v885_v63  ;;  %v910_v5 = vsel %vm10775_vm3, %v885_v63, %v887_v19 }
 0x1b0   : > { %942 = vmatpush.bf16.msra.mxu0 %v909_v2  ;;  %955 = vmatpush.bf16.msra.mxu1 %v910_v5 }
 0x1b6   : > { %v879_v9 = vpop.permute.xlu1 %878  ;;  %v877_v14 = vpop.permute.xlu0 %876 }
 0x1b7   : > { %v907_v16 = vsel %vm10775_vm3, %v877_v14, %v879_v9  ;;  %v908_v24 = vsel %vm10775_vm3, %v879_v9, %v881_v8 }
 0x1b8   : > { %943 = vmatpush.bf16.msra.mxu0 %v907_v16  ;;  %956 = vmatpush.bf16.msra.mxu1 %v908_v24 }
 0x1bb   : > { %6088 = vmatmul.msk.bf16.vlgmr.msra.gmra.mxu0 %vm10752_vm6, %v854_v31  ;;  %6089 = vmatmul.msk.bf16.vlgmr.msra.gmra.mxu1 %vm10752_vm6, %v854_v31 }
 0x1be   : > { %v859_v39 = vpop.permute.xlu0 %858 }
 0x238   : > { %v945_v41 = vpop.f32.mrf.mxu0  ;;  %v958_v50 = vpop.f32.mrf.mxu1 }
 0x239   : > { %v946_v51 = vadd.f32 %v945_v41, %v859_v39  ;;  %v959_v55 = vadd.f32 %v958_v50, %v859_v39 }
 0x23b   : > { %v964_v60 = vmin.f32 %v946_v51, 0.0  ;;  %v965_v19 = vmin.f32 %v959_v55, 0.0  ;;  %vm963_vm7 = vcmp.gt.f32.partialorder %v959_v55, 0.0  ;;  %vm962_vm8 = vcmp.gt.f32.partialorder %v946_v51, 0.0 }
 0x23d   : > { %v968_v63 = vmul.f32 1.442695, %v965_v19  ;;  %v966_v18 = vmul.f32 1.442695, %v964_v60 }
 0x23f   : > { %7768 = vpow2.f32 %v968_v63 }
 0x240   : > { %v947_v2 = vpop.f32.mrf.mxu0  ;;  %7770 = vpow2.f32 %v966_v18  ;;  %v960_v5 = vpop.f32.mrf.mxu1 }
 0x245   : > { %v7769_v8 = vpop.eup %7768 }
 0x246   : > { %v7771_v9 = vpop.eup %7770  ;;  %v6091_v14 = vadd.f32 -1.0, %v7769_v8 }
 0x247   : > { %v6090_v16 = vadd.f32 -1.0, %v7771_v9 }
 0x248   : > { %v973_v24 = vsel %vm963_vm7, %v959_v55, %v6091_v14 }
 0x249   : > { %978 = vrot.lane.b32.xlu2 %v973_v24, %s10716_s23  ;;  %v972_v31 = vsel %vm962_vm8, %v946_v51, %v6090_v16 }
 0x24a   : > { %976 = vrot.lane.b32.xlu1 %v972_v31, %s10716_s23  ;;  %s10729_s23 = smov 9  }
 0x2a3   : > { %v979_v39 = vpop.permute.xlu2 %978 }
 0x2a4   : > { %v8256_v41 = vsel %vm643_vm4, %v979_v39, 0.0 }
 0x2a5   : > { %1088 = vrot.lane.b32.xlu0 %v8256_v41, %s10714_s28  ;;  %v1003_v24 = vmul.f32 %v8014_v27, %v8256_v41  ;;  %v1000_v31 = vmul.f32 %v8010_v25, %v8256_v41 }
 0x2bc   : > { %v977_v50 = vpop.permute.xlu1 %976 }
 0x2bd   : > { %v8261_v60 = vsel %vm643_vm4, %v977_v50, %v979_v39  ;;  %v8264_v19 = vsel %vm643_vm4, 0.0, %v977_v50  ;;  %v991_v39 = vmul.f32 %v8004_v23, %v8256_v41 }
 0x2be   : > { %v7171_v55 = vpack.i.bf16 %v8261_v60, %v8264_v19  ;;  %v998_v51 = vmul.f32 %v8012_v26, %v8264_v19  ;;  %v999_v63 = vmul.f32 %v8261_v60, %v8022_v30  ;;  %v1001_v2 = vmul.f32 %v8016_v28, %v8264_v19 }
 0x2bf   : > { %v1002_v5 = vmul.f32 %v8261_v60, %v8029_v32  ;;  %v995_v8 = vmul.f32 %v8042_v37, %v8264_v19  ;;  %v996_v9 = vmul.f32 %v8261_v60, %v8048_v40  ;;  %v989_v50 = vmul.f32 %v8063_v49, %v8264_v19 }
 0x2c0   : > { %7172 = vrot.lane.b32.xlu1 %v7171_v55, %s10743_s29  ;;  %7167 = vrot.lane.b32.xlu2 %v7171_v55, %s10714_s28  ;;  %v7181_v18 = vpack.i.bf16 %v999_v63, %v998_v51  ;;  %v990_v51 = vmul.f32 %v8261_v60, %v8072_v52  ;;  %v997_v63 = vmul.f32 %v8038_v35, %v8256_v41  ;;  %s7844_s28 = smov 23  }
 0x2c1   : > { %v7176_v14 = vpack.i.bf16 %v1002_v5, %v1001_v2  ;;  %v7186_v16 = vpack.i.bf16 %v996_v9, %v995_v8  ;;  %v992_v2 = vmul.f32 %v8061_v47, %v8264_v19  ;;  %v993_v5 = vmul.f32 %v8261_v60, %v8076_v53 }
 0x2c2   : > { %7182 = vrot.lane.b32.xlu0 %v7181_v18, %s10710_s21  ;;  %v7191_v18 = vpack.i.bf16 %v990_v51, %v989_v50  ;;  %v994_v9 = vmul.f32 %v8057_v45, %v8256_v41 }
 0x2c3   : > { %v7196_v8 = vpack.i.bf16 %v993_v5, %v992_v2 }
 0x2c8   : > { %1049 = vrot.lane.b32.xlu2 %v8256_v41, %s10743_s29  ;;  %7177 = vrot.lane.b32.xlu1 %v7176_v14, %s10712_s1 }
 0x2ca   : > { %7187 = vrot.lane.b32.xlu0 %v7186_v16, %s10724_s22 }
 0x2d0   : > { %1102 = vrot.lane.b32.xlu2 %v1003_v24, %s10712_s1  ;;  %1077 = vrot.lane.b32.xlu1 %v1000_v31, %s10710_s21  ;;  %s7842_s1 = smov 25   ;;  %s10897_s21 = smov 127  }
 0x2d2   : > { %1024 = vrot.lane.b32.xlu0 %v991_v39, %s10720_s20 }
 0x2d8   : > { %1063 = vrot.lane.b32.xlu1 %v997_v63, %s10724_s22  ;;  %7192 = vrot.lane.b32.xlu2 %v7191_v18, %s10720_s20  ;;  %s10892_s20 = smov 15   ;;  %s10894_s22 = smov 110  }
 0x2da   : > { %7202 = vrot.lane.b32.xlu0 %v7171_v55, %s10718_s25 }
 0x2e0   : > { %7197 = vrot.lane.b32.xlu1 %v7196_v8, %s10722_s2  ;;  %1038 = vrot.lane.b32.xlu2 %v994_v9, %s10722_s2  ;;  %s10895_s2 = smov 112  }
 0x2e8   : > { %1010 = vrot.lane.b32.xlu1 %v8256_v41, %s10718_s25  ;;  %s10747_s25 = smov 16  }
 0x317   : > { %v1089_v31 = vpop.permute.xlu0 %1088 }
 0x31a   : > { %v7168_v14 = vpop.permute.xlu2 %7167 }
 0x31b   : > { %v7169_v7 = vunpack.i.l.bf16 %v7168_v14 }
 0x322   : > { %v1050_v16 = vpop.permute.xlu2 %1049 }
 0x32a   : > { %v1103_v55 = vpop.permute.xlu2 %1102 }
 0x32b   : > { %v1123_v24 = vpack.c.bf16 %v1103_v55, %v1103_v55 }
 0x32d   : > { %1174 = vrot.lane.b32.xlu1 %v1123_v24, %s10708_s3  ;;  %v7170_v24 = vunpack.i.h.bf16 %v7168_v14 }
 0x332   : > { %v7173_v39 = vpop.permute.xlu1 %7172 }
 0x333   : > { %v7175_v14 = vunpack.i.h.bf16 %v7173_v39 }
 0x334   : > { %v7183_v50 = vpop.permute.xlu0 %7182 }
 0x335   : > { %v7185_v6 = vunpack.i.h.bf16 %v7183_v50  ;;  %v7184_v59 = vunpack.i.l.bf16 %v7183_v50 }
 0x33a   : > { %v7178_v51 = vpop.permute.xlu1 %7177 }
 0x33b   : > { %v7180_v63 = vunpack.i.h.bf16 %v7178_v51  ;;  %v7179_v18 = vunpack.i.l.bf16 %v7178_v51  ;;  %v1079_v51 = vsel %vm806_vm11, %v7184_v59, %v7185_v6 }
 0x33c   : > { %v7188_v62 = vpop.permute.xlu0 %7187 }
 0x33d   : > { %v1105_v2 = vsel %vm833_vm10, %v7180_v63, %v1103_v55  ;;  %v1104_v5 = vsel %vm833_vm10, %v7179_v18, %v7180_v63  ;;  %v1091_v55 = vsel %vm818_vm12, %v7170_v24, %v1089_v31  ;;  %v1090_v63 = vsel %vm818_vm12, %v7169_v7, %v7170_v24 }
 0x33e   : > { %v1122_v8 = vpack.c.bf16 %v1105_v2, %v1105_v2  ;;  %v1121_v9 = vpack.c.bf16 %v1104_v5, %v1104_v5  ;;  %v1118_v18 = vpack.c.bf16 %v1090_v63, %v1079_v51  ;;  %v7190_v2 = vunpack.i.h.bf16 %v7188_v62 }
 0x33f   : > { %v7189_v5 = vunpack.i.l.bf16 %v7188_v62 }
 0x340   : > { %1172 = vrot.lane.b32.xlu0 %v1122_v8, %s10708_s3  ;;  %1170 = vrot.lane.b32.xlu2 %v1121_v9, %s10708_s3  ;;  %v7193_v8 = vpop.permute.xlu2 %7192  ;;  %v7174_v9 = vunpack.i.l.bf16 %v7173_v39 }
 0x341   : > { %v7195_v39 = vunpack.i.h.bf16 %v7193_v8  ;;  %v7194_v24 = vunpack.i.l.bf16 %v7193_v8 }
 0x342   : > { %v1078_v61 = vpop.permute.xlu1 %1077  ;;  %v1051_v62 = vsel %vm10753_vm14, %v7174_v9, %v7175_v14 }
 0x343   : > { %v1080_v56 = vsel %vm806_vm11, %v7185_v6, %v1078_v61  ;;  %v1120_v48 = vpack.c.bf16 %v1089_v31, %v1078_v61 }
 0x344   : > { %v1119_v50 = vpack.c.bf16 %v1091_v55, %v1080_v56  ;;  %v1025_v61 = vpop.permute.xlu0 %1024  ;;  %v1052_v56 = vsel %vm10753_vm14, %v7175_v14, %v1050_v16 }
 0x345   : > { %1168 = vrot.lane.b32.xlu1 %v1120_v48, %s10708_s3  ;;  %v1065_v48 = vsel %vm10774_vm13, %v7189_v5, %v7190_v2  ;;  %v1026_v5 = vsel %vm749_vm0, %v7194_v24, %v7195_v39 }
 0x346   : > { %v1115_v31 = vpack.c.bf16 %v1065_v48, %v1051_v62  ;;  %v988_v48 = vmul.f32 %v8152_v54, %v8256_v41 }
 0x348   : > { %1166 = vrot.lane.b32.xlu0 %v1119_v50, %s10708_s3  ;;  %1164 = vrot.lane.b32.xlu2 %v1118_v18, %s10708_s3  ;;  %v1039_v51 = vpop.permute.xlu2 %1038 }
 0x349   : > { %v1114_v63 = vpack.c.bf16 %v1039_v51, %v1025_v61 }
 0x34a   : > { %v1064_v3 = vpop.permute.xlu1 %1063 }
 0x34b   : > { %v1066_v6 = vsel %vm10774_vm13, %v7190_v2, %v1064_v3  ;;  %v1117_v59 = vpack.c.bf16 %v1064_v3, %v1050_v16  ;;  %v1027_v2 = vsel %vm749_vm0, %v7195_v39, %v1025_v61  ;;  %v987_v39 = vmul.f32 %v8261_v60, %v8210_v42 }
 0x34c   : > { %v1116_v7 = vpack.c.bf16 %v1066_v6, %v1052_v56  ;;  %v7203_v18 = vpop.permute.xlu0 %7202 }
 0x34d   : > { %1162 = vrot.lane.b32.xlu1 %v1117_v59, %s10708_s3  ;;  %v7205_v59 = vunpack.i.h.bf16 %v7203_v18  ;;  %v7204_v8 = vunpack.i.l.bf16 %v7203_v18 }
 0x350   : > { %1160 = vrot.lane.b32.xlu0 %v1116_v7, %s10708_s3  ;;  %1158 = vrot.lane.b32.xlu2 %v1115_v31, %s10708_s3  ;;  %v1012_v7 = vsel %vm734_vm2, %v7204_v8, %v7205_v59  ;;  %v986_v31 = vmul.f32 %v8192_v17, %v8264_v19 }
 0x352   : > { %v7198_v55 = vpop.permute.xlu1 %7197  ;;  %v1109_v24 = vpack.c.bf16 %v1012_v7, %v986_v31  ;;  %v6908_v31 = vld [vmem:[%s10889_s17 + $0x20] sm:$0xff] }
 0x353   : > { %v7200_v3 = vunpack.i.h.bf16 %v7198_v55  ;;  %v7199_v50 = vunpack.i.l.bf16 %v7198_v55 }
 0x355   : > { %1156 = vrot.lane.b32.xlu1 %v1114_v63, %s10708_s3  ;;  %v1041_v16 = vsel %vm764_vm15, %v7200_v3, %v1039_v51  ;;  %v1040_v14 = vsel %vm764_vm15, %v7199_v50, %v7200_v3 }
 0x356   : > { %v1113_v9 = vpack.c.bf16 %v1041_v16, %v1027_v2  ;;  %v1112_v6 = vpack.c.bf16 %v1040_v14, %v1026_v5  ;;  %v1125_v16 = vld [vmem:[%s10691_s14 + $0x8] sm:$0xff]  ;;  %v6911_v5 = vld [vmem:[%s10889_s17 + $0x38] sm:$0xff] }
 0x357   : > { %v6919_v14 = vld [vmem:[%s10889_s17 + $0x78] sm:$0xff]  ;;  %1371 = vmatpush.bf16.msrb.mxu0 %v6911_v5  ;;  %v6905_v5 = vld [vmem:[%s10889_s17 + $0x8] sm:$0xff] }
 0x358   : > { %1154 = vrot.lane.b32.xlu0 %v1113_v9, %s10708_s3  ;;  %1152 = vrot.lane.b32.xlu2 %v1112_v6, %s10708_s3  ;;  %v6910_v9 = vld [vmem:[%s10889_s17 + $0x30] sm:$0xff] }
 0x359   : > { %1384 = vmatpush.bf16.msrb.mxu1 %v6919_v14  ;;  %v6918_v6 = vld [vmem:[%s10889_s17 + $0x70] sm:$0xff]  ;;  %v6913_v14 = vld [vmem:[%s10889_s17 + $0x48] sm:$0xff] }
 0x35a   : > { %v1011_v61 = vpop.permute.xlu1 %1010 }
 0x35b   : > { %v1013_v56 = vsel %vm734_vm2, %v7205_v59, %v1011_v61  ;;  %v1111_v62 = vpack.c.bf16 %v1011_v61, %v988_v48  ;;  %1372 = vmatpush.bf16.msrb.mxu0 %v6910_v9 }
 0x35c   : > { %v1110_v51 = vpack.c.bf16 %v1013_v56, %v987_v39  ;;  %v6909_v56 = vld [vmem:[%s10889_s17 + $0x28] sm:$0xff]  ;;  %v6916_v39 = vld [vmem:[%s10889_s17 + $0x60] sm:$0xff] }
 0x35d   : > { %1150 = vrot.lane.b32.xlu1 %v1111_v62, %s10708_s3  ;;  %1385 = vmatpush.bf16.msrb.mxu1 %v6918_v6  ;;  %v6917_v62 = vld [vmem:[%s10889_s17 + $0x68] sm:$0xff]  ;;  %v6927_v6 = vld [vmem:[%s10889_s17 + $0xb8] sm:$0xff] }
 0x35f   : > { %1373 = vmatpush.bf16.msrb.mxu0 %v6909_v56 }
 0x360   : > { %1146 = vrot.lane.b32.xlu2 %v1109_v24, %s10708_s3  ;;  %1148 = vrot.lane.b32.xlu0 %v1110_v51, %s10708_s3  ;;  %s10890_s3 = sld [smem:[#allocation50_spill]] }
 0x361   : > { %1386 = vmatpush.bf16.msrb.mxu1 %v6917_v62 }
 0x363   : > { %1374 = vmatpush.bf16.msrb.mxu0 %v6908_v31  ;;  %v6934_v31 = vld [vmem:[%s10889_s17 + $0xf0] sm:$0xff] }
 0x365   : > { %1387 = vmatpush.bf16.msrb.mxu1 %v6916_v39  ;;  %v6925_v39 = vld [vmem:[%s10889_s17 + $0xa8] sm:$0xff] }
 0x366   : > { %v1124_v62 = vld [vmem:[%s10890_s3] sm:$0xf]  ;;  %s10893_s3 = smov 17  }
 0x368   : > { %1128 = vperm.xlu2 %7206, %v1125_v16  }
 0x39a   : > { %v1171_v41 = vpop.permute.xlu2 %1170 }
 0x39f   : > { %v1175_v55 = vpop.permute.xlu1 %1174 }
 0x3a2   : > { %v1165_v3 = vpop.permute.xlu2 %1164 }
 0x3aa   : > { %v1159_v61 = vpop.permute.xlu2 %1158 }
 0x3b2   : > { %v1173_v63 = vpop.permute.xlu0 %1172 }
 0x3b3   : > { %v1184_v50 = vsel %vm10775_vm3, %v1171_v41, %v1173_v63  ;;  %v1185_v18 = vsel %vm10775_vm3, %v1173_v63, %v1175_v55  ;;  %v6907_v55 = vld [vmem:[%s10889_s17 + $0x18] sm:$0xff] }
 0x3b4   : > { %v1198_v19 = vsel %vm929_vm5, %v1184_v50, 0  ;;  %v1201_v60 = vsel %vm929_vm5, %v1185_v18, 0  ;;  %v6915_v63 = vld [vmem:[%s10889_s17 + $0x58] sm:$0xff]  ;;  %1375 = vmatpush.bf16.msrb.mxu0 %v6907_v55  ;;  %v6906_v18 = vld [vmem:[%s10889_s17 + $0x10] sm:$0xff] }
 0x3b5   : > { %1206 = vmatpush.bf16.msra.mxu2 %v1198_v19  ;;  %1219 = vmatpush.bf16.msra.mxu3 %v1201_v60  ;;  %v6914_v19 = vld [vmem:[%s10889_s17 + $0x50] sm:$0xff]  ;;  %v6923_v55 = vld [vmem:[%s10889_s17 + $0x98] sm:$0xff] }
 0x3b6   : > { %1388 = vmatpush.bf16.msrb.mxu1 %v6915_v63  ;;  %v6931_v63 = vld [vmem:[%s10889_s17 + $0xd8] sm:$0xff] }
 0x3b7   : > { %v1169_v2 = vpop.permute.xlu1 %1168 }
 0x3b8   : > { %1376 = vmatpush.bf16.msrb.mxu0 %v6906_v18  ;;  %v6921_v18 = vld [vmem:[%s10889_s17 + $0x88] sm:$0xff] }
 0x3ba   : > { %v1167_v59 = vpop.permute.xlu0 %1166  ;;  %1389 = vmatpush.bf16.msrb.mxu1 %v6914_v19  ;;  %v6929_v19 = vld [vmem:[%s10889_s17 + $0xc8] sm:$0xff] }
 0x3bb   : > { %v1182_v8 = vsel %vm10775_vm3, %v1165_v3, %v1167_v59  ;;  %v1183_v48 = vsel %vm10775_vm3, %v1167_v59, %v1169_v2  ;;  %v1153_v3 = vpop.permute.xlu2 %1152  ;;  %v6935_v59 = vld [vmem:[%s10889_s17 + $0xf8] sm:$0xff] }
 0x3bc   : > { %1207 = vmatpush.bf16.msra.mxu2 %v1182_v8  ;;  %1220 = vmatpush.bf16.msra.mxu3 %v1183_v48 }
 0x3bd   : > { %1377 = vmatpush.bf16.msrb.mxu0 %v6905_v5  ;;  %v6928_v5 = vld [vmem:[%s10889_s17 + $0xc0] sm:$0xff] }
 0x3be   : > { %1390 = vmatpush.bf16.msrb.mxu1 %v6913_v14  ;;  %v6943_v14 = vld [vmem:[%s10889_s17 + $0x138] sm:$0xff] }
 0x3bf   : > { %v1163_v7 = vpop.permute.xlu1 %1162 }
 0x3c2   : > { %v1161_v24 = vpop.permute.xlu0 %1160 }
 0x3c3   : > { %v1180_v51 = vsel %vm10775_vm3, %v1159_v61, %v1161_v24  ;;  %v1181_v41 = vsel %vm10775_vm3, %v1161_v24, %v1163_v7  ;;  %v1147_v9 = vpop.permute.xlu2 %1146  ;;  %v6926_v7 = vld [vmem:[%s10889_s17 + $0xb0] sm:$0xff]  ;;  %v6933_v24 = vld [vmem:[%s10889_s17 + $0xe8] sm:$0xff] }
 0x3c4   : > { %1208 = vmatpush.bf16.msra.mxu2 %v1180_v51  ;;  %1221 = vmatpush.bf16.msra.mxu3 %v1181_v41  ;;  %v6924_v51 = vld [vmem:[%s10889_s17 + $0xa0] sm:$0xff] }
 0x3c5   : > { %v6932_v41 = vld [vmem:[%s10889_s17 + $0xe0] sm:$0xff] }
 0x3c7   : > { %v1157_v50 = vpop.permute.xlu1 %1156 }
 0x3ca   : > { %v1155_v60 = vpop.permute.xlu0 %1154 }
 0x3cb   : > { %v1178_v2 = vsel %vm10775_vm3, %v1153_v3, %v1155_v60  ;;  %v1179_v16 = vsel %vm10775_vm3, %v1155_v60, %v1157_v50  ;;  %v6922_v3 = vld [vmem:[%s10889_s17 + $0x90] sm:$0xff]  ;;  %v6904_v60 = vld [vmem:[%s10889_s17] sm:$0xff] }
 0x3cc   : > { %1209 = vmatpush.bf16.msra.mxu2 %v1178_v2  ;;  %1222 = vmatpush.bf16.msra.mxu3 %v1179_v16  ;;  %v6930_v50 = vld [vmem:[%s10889_s17 + $0xd0] sm:$0xff]  ;;  %v6912_v2 = vld [vmem:[%s10889_s17 + $0x40] sm:$0xff] }
 0x3cd   : > { %v6920_v16 = vld [vmem:[%s10889_s17 + $0x80] sm:$0xff]  ;;  %1378 = vmatpush.bf16.msrb.mxu0 %v6904_v60  ;;  %1391 = vmatpush.bf16.msrb.mxu1 %v6912_v2  ;;  %v6946_v60 = vld [vmem:[%s10889_s17 + $0x150] sm:$0xff] }
 0x3ce   : > { %v6954_v2 = vld [vmem:[%s10889_s17 + $0x190] sm:$0xff] }
 0x3cf   : > { %v1151_v8 = vpop.permute.xlu1 %1150 }
 0x3d1   : > { %1682 = vmatpush.bf16.msra.mxu0 %v6943_v14  ;;  %v6945_v14 = vld [vmem:[%s10889_s17 + $0x148] sm:$0xff] }
 0x3d2   : > { %v1149_v48 = vpop.permute.xlu0 %1148 }
 0x3d3   : > { %v1176_v61 = vsel %vm10775_vm3, %v1147_v9, %v1149_v48  ;;  %v1177_v56 = vsel %vm10775_vm3, %v1149_v48, %v1151_v8  ;;  %v6951_v9 = vld [vmem:[%s10889_s17 + $0x178] sm:$0xff]  ;;  %v6942_v8 = vld [vmem:[%s10889_s17 + $0x130] sm:$0xff] }
 0x3d4   : > { %1210 = vmatpush.bf16.msra.mxu2 %v1176_v61  ;;  %1223 = vmatpush.bf16.msra.mxu3 %v1177_v56  ;;  %v6950_v48 = vld [vmem:[%s10889_s17 + $0x170] sm:$0xff] }
 0x3d5   : > { %1695 = vmatpush.bf16.msra.mxu1 %v6951_v9  ;;  %v6958_v61 = vld [vmem:[%s10889_s17 + $0x1b0] sm:$0xff]  ;;  %1683 = vmatpush.bf16.msra.mxu0 %v6942_v8  ;;  %v1129_v9 = vpop.permute.xlu2 %1128 }
 0x3d6   : > { %v6966_v56 = vld [vmem:[%s10889_s17 + $0x1f0] sm:$0xff] }
 0x3d7   : > { %6092 = vmatmul.msk.bf16.vlgmr.msra.gmra.mxu2 %vm10752_vm6, %v1124_v62  ;;  %6093 = vmatmul.msk.bf16.vlgmr.msra.gmra.mxu3 %vm10752_vm6, %v1124_v62  ;;  %v6941_v62 = vld [vmem:[%s10889_s17 + $0x128] sm:$0xff] }
 0x3d8   : > { %1526 = vmatpush.bf16.msrb.mxu2 %v6927_v6  ;;  %1539 = vmatpush.bf16.msrb.mxu3 %v6935_v59  ;;  %v6959_v6 = vld [vmem:[%s10889_s17 + $0x1b8] sm:$0xff] }
 0x3d9   : > { %v6967_v59 = vld [vmem:[%s10889_s17 + $0x1f8] sm:$0xff]  ;;  %1696 = vmatpush.bf16.msra.mxu1 %v6950_v48  ;;  %1684 = vmatpush.bf16.msra.mxu0 %v6941_v62  ;;  %v6936_v62 = vld [vmem:[%s10889_s17 + $0x100] sm:$0xff] }
 0x3dc   : > { %1527 = vmatpush.bf16.msrb.mxu2 %v6926_v7  ;;  %1540 = vmatpush.bf16.msrb.mxu3 %v6934_v31  ;;  %v6949_v7 = vld [vmem:[%s10889_s17 + $0x168] sm:$0xff] }
 0x3dd   : > { %v6957_v31 = vld [vmem:[%s10889_s17 + $0x1a8] sm:$0xff]  ;;  %1697 = vmatpush.bf16.msra.mxu1 %v6949_v7  ;;  %v6944_v7 = vld [vmem:[%s10889_s17 + $0x140] sm:$0xff] }
 0x3e0   : > { %1528 = vmatpush.bf16.msrb.mxu2 %v6925_v39  ;;  %1541 = vmatpush.bf16.msrb.mxu3 %v6933_v24  ;;  %v6965_v39 = vld [vmem:[%s10889_s17 + $0x1e8] sm:$0xff]  ;;  %v6940_v24 = vld [vmem:[%s10889_s17 + $0x120] sm:$0xff] }
 0x3e1   : > { %1685 = vmatpush.bf16.msra.mxu0 %v6940_v24 }
 0x3e4   : > { %1529 = vmatpush.bf16.msrb.mxu2 %v6924_v51  ;;  %1542 = vmatpush.bf16.msrb.mxu3 %v6932_v41  ;;  %v6948_v51 = vld [vmem:[%s10889_s17 + $0x160] sm:$0xff] }
 0x3e5   : > { %v6956_v41 = vld [vmem:[%s10889_s17 + $0x1a0] sm:$0xff]  ;;  %1698 = vmatpush.bf16.msra.mxu1 %v6948_v51 }
 0x3e8   : > { %1530 = vmatpush.bf16.msrb.mxu2 %v6923_v55  ;;  %1543 = vmatpush.bf16.msrb.mxu3 %v6931_v63  ;;  %v6964_v55 = vld [vmem:[%s10889_s17 + $0x1e0] sm:$0xff]  ;;  %v6939_v63 = vld [vmem:[%s10889_s17 + $0x118] sm:$0xff] }
 0x3e9   : > { %1686 = vmatpush.bf16.msra.mxu0 %v6939_v63 }
 0x3ec   : > { %1531 = vmatpush.bf16.msrb.mxu2 %v6922_v3  ;;  %1544 = vmatpush.bf16.msrb.mxu3 %v6930_v50  ;;  %v6947_v3 = vld [vmem:[%s10889_s17 + $0x158] sm:$0xff] }
 0x3ed   : > { %v6955_v50 = vld [vmem:[%s10889_s17 + $0x198] sm:$0xff]  ;;  %1699 = vmatpush.bf16.msra.mxu1 %v6947_v3 }
 0x3f0   : > { %1532 = vmatpush.bf16.msrb.mxu2 %v6921_v18  ;;  %1545 = vmatpush.bf16.msrb.mxu3 %v6929_v19  ;;  %v6963_v18 = vld [vmem:[%s10889_s17 + $0x1d8] sm:$0xff]  ;;  %v6938_v19 = vld [vmem:[%s10889_s17 + $0x110] sm:$0xff] }
 0x3f1   : > { %1687 = vmatpush.bf16.msra.mxu0 %v6938_v19  ;;  %1700 = vmatpush.bf16.msra.mxu1 %v6946_v60 }
 0x3f4   : > { %1533 = vmatpush.bf16.msrb.mxu2 %v6920_v16  ;;  %1546 = vmatpush.bf16.msrb.mxu3 %v6928_v5  ;;  %v6962_v16 = vld [vmem:[%s10889_s17 + $0x1d0] sm:$0xff]  ;;  %v6937_v5 = vld [vmem:[%s10889_s17 + $0x108] sm:$0xff] }
 0x3f5   : > { %1688 = vmatpush.bf16.msra.mxu0 %v6937_v5  ;;  %1701 = vmatpush.bf16.msra.mxu1 %v6945_v14 }
 0x3f8   : > { %1838 = vmatpush.bf16.msra.mxu2 %v6959_v6  ;;  %1851 = vmatpush.bf16.msra.mxu3 %v6967_v59  ;;  %v6953_v6 = vld [vmem:[%s10889_s17 + $0x188] sm:$0xff] }
 0x3f9   : > { %v6961_v59 = vld [vmem:[%s10889_s17 + $0x1c8] sm:$0xff]  ;;  %1689 = vmatpush.bf16.msra.mxu0 %v6936_v62  ;;  %1702 = vmatpush.bf16.msra.mxu1 %v6944_v7 }
 0x3fc   : > { %1839 = vmatpush.bf16.msra.mxu2 %v6958_v61  ;;  %1852 = vmatpush.bf16.msra.mxu3 %v6966_v56 }
 0x400   : > { %1840 = vmatpush.bf16.msra.mxu2 %v6957_v31  ;;  %1853 = vmatpush.bf16.msra.mxu3 %v6965_v39  ;;  %v6952_v31 = vld [vmem:[%s10889_s17 + $0x180] sm:$0xff] }
 0x401   : > { %v6960_v39 = vld [vmem:[%s10889_s17 + $0x1c0] sm:$0xff]  ;;  %s7851_s17 = smov 11  }
 0x404   : > { %1841 = vmatpush.bf16.msra.mxu2 %v6956_v41  ;;  %1854 = vmatpush.bf16.msra.mxu3 %v6964_v55 }
 0x408   : > { %1842 = vmatpush.bf16.msra.mxu2 %v6955_v50  ;;  %1855 = vmatpush.bf16.msra.mxu3 %v6963_v18 }
 0x40c   : > { %1843 = vmatpush.bf16.msra.mxu2 %v6954_v2  ;;  %1856 = vmatpush.bf16.msra.mxu3 %v6962_v16 }
 0x410   : > { %1844 = vmatpush.bf16.msra.mxu2 %v6953_v6  ;;  %1857 = vmatpush.bf16.msra.mxu3 %v6961_v59  ;;  %v10891_v6 = vmov 0.0  }
 0x414   : > { %1845 = vmatpush.bf16.msra.mxu2 %v6952_v31  ;;  %1858 = vmatpush.bf16.msra.mxu3 %v6960_v39 }
 0x45a   : > { %v1212_v8 = vpop.f32.mrf.mxu2  ;;  %v1225_v48 = vpop.f32.mrf.mxu3 }
 0x45b   : > { %v1213_v61 = vadd.f32 %v1212_v8, %v1129_v9  ;;  %v1226_v56 = vadd.f32 %v1225_v48, %v1129_v9  ;;  %v621_v9 = vand.u32 7, %v7970_v1 }
 0x45d   : > { %v1231_v24 = vmin.f32 %v1213_v61, 0.0  ;;  %v1232_v51 = vmin.f32 %v1226_v56, 0.0  ;;  %vm1229_vm9 = vcmp.gt.f32.partialorder %v1213_v61, 0.0  ;;  %vm1230_vm1 = vcmp.gt.f32.partialorder %v1226_v56, 0.0 }
 0x45e   : > { %vm625_vm7 = vcmp.le.s32.totalorder %v621_v9, 6  ;;  %vm622_vm8 = vcmp.ge.s32.totalorder %v621_v9, 1 }
 0x45f   : > { %v1233_v41 = vmul.f32 1.442695, %v1231_v24  ;;  %v1235_v55 = vmul.f32 1.442695, %v1232_v51  ;;  %v6085_v59 = vsel %vm625_vm7, 1.0, %v10891_v6 }
 0x460   : > { %1895 = vrot.lane.b32.xlu1 %v6085_v59, %s7842_s1  ;;  %s10730_s1 = smov 120  }
 0x461   : > { %7772 = vpow2.f32 %v1233_v41 }
 0x462   : > { %7774 = vpow2.f32 %v1235_v55  ;;  %v1214_v63 = vpop.f32.mrf.mxu2  ;;  %v1227_v3 = vpop.f32.mrf.mxu3 }
 0x467   : > { %v7773_v50 = vpop.eup %7772 }
 0x468   : > { %v7775_v18 = vpop.eup %7774  ;;  %v6094_v19 = vadd.f32 -1.0, %v7773_v50  ;;  %1879 = vrot.lane.b32.xlu1 %v6085_v59, %s10729_s23  ;;  %s10899_s23 = smov 119  }
 0x469   : > { %v6095_v60 = vadd.f32 -1.0, %v7775_v18 }
 0x46a   : > { %v8564_v2 = vsel %vm1229_vm9, %v1213_v61, %v6094_v19  ;;  %v6084_v61 = vsel %vm622_vm8, 1.0, %v10891_v6  ;;  %vm1869_vm9 = vcmask 130048  }
 0x46b   : > { %v1241_v16 = vpack.c.bf16 %v8564_v2, %v8564_v2  ;;  %v8568_v5 = vsel %vm1230_vm1, %v1226_v56, %v6095_v60  ;;  %1891 = vrot.lane.b32.xlu2 %v6084_v61, %s7844_s28  ;;  %vm1871_vm1 = vcmask 654336   ;;  %s10728_s28 = smov 7  }
 0x46c   : > { %v1242_v14 = vpack.c.bf16 %v8568_v5, %v8568_v5 }
 0x46d   : > { %1379 = vmatmul.bf16.vlgmr.msrb.gmra.mxu0 %v1241_v16  ;;  %1534 = vmatmul.bf16.vlgmr.msrb.gmra.mxu2 %v1241_v16 }
 0x46e   : > { %1392 = vmatmul.bf16.vlgmr.msrb.gmra.mxu1 %v1242_v14  ;;  %1547 = vmatmul.bf16.vlgmr.msrb.gmra.mxu3 %v1242_v14 }
 0x473   : > { %1883 = vrot.lane.b32.xlu2 %v6084_v61, %s10892_s20  ;;  %s10745_s20 = smov 121  }
 0x47d   : > { %1690 = vmatmul.bf16.vlgmr.msra.gmra.mxu0 %v1241_v16  ;;  %1846 = vmatmul.bf16.vlgmr.msra.gmra.mxu2 %v1241_v16 }
 0x47e   : > { %1703 = vmatmul.bf16.vlgmr.msra.gmra.mxu1 %v1242_v14  ;;  %1859 = vmatmul.bf16.vlgmr.msra.gmra.mxu3 %v1242_v14 }
 0x4ea   : > { %v1380_v8 = vpop.f32.mrf.mxu0 }
 0x4eb   : > { %v1393_v48 = vpop.f32.mrf.mxu1 }
 0x4ec   : > { %v1394_v63 = vadd.f32 %v1393_v48, %v1380_v8 }
 0x4f0   : > { %v1535_v56 = vpop.f32.mrf.mxu2 }
 0x4f1   : > { %v1548_v62 = vpop.f32.mrf.mxu3 }
 0x4f2   : > { %v1382_v7 = vpop.f32.mrf.mxu0  ;;  %v1549_v55 = vadd.f32 %v1548_v62, %v1535_v56  ;;  %v8582_v56 = vpop.permute.xlu2 %1891 }
 0x4f3   : > { %v1395_v31 = vpop.f32.mrf.mxu1 }
 0x4f4   : > { %v1552_v50 = vmax.f32 %v1394_v63, %v1549_v55 }
 0x4f8   : > { %v1537_v39 = vpop.f32.mrf.mxu2 }
 0x4f9   : > { %v1550_v24 = vpop.f32.mrf.mxu3  ;;  %v8579_v39 = vpop.permute.xlu1 %1895 }
 0x4fa   : > { %v1691_v51 = vpop.f32.mrf.mxu0  ;;  %v8599_v63 = vpop.permute.xlu2 %1883 }
 0x4fb   : > { %v1704_v41 = vpop.f32.mrf.mxu1 }
 0x4fc   : > { %v1705_v3 = vadd.f32 %v1704_v41, %v1691_v51 }
 0x4fe   : > { %v1708_v60 = vmax.f32 %v1552_v50, %v1705_v3 }
 0x500   : > { %v1847_v18 = vpop.f32.mrf.mxu2 }
 0x501   : > { %v1860_v19 = vpop.f32.mrf.mxu3 }
 0x502   : > { %v1861_v16 = vadd.f32 %v1860_v19, %v1847_v18  ;;  %v1693_v14 = vpop.f32.mrf.mxu0 }
 0x503   : > { %v1706_v9 = vpop.f32.mrf.mxu1 }
 0x504   : > { %v1864_v54 = vmax.f32 %v1708_v60, %v1861_v16 }
 0x506   : > { %1866 = vrot.lane.b32.xlu0 %v1864_v54, %s10747_s25 }
 0x508   : > { %v1849_v7 = vpop.f32.mrf.mxu2 }
 0x509   : > { %v1862_v31 = vpop.f32.mrf.mxu3 }
 0x50e   : > { %1887 = vrot.lane.b32.xlu0 %v6085_v59, %s10893_s3  ;;  %v8590_v59 = vpop.permute.xlu1 %1879  ;;  %s10760_s3 = smov 123  }
 0x578   : > { %v1867_v8 = vpop.permute.xlu0 %1866 }
 0x579   : > { %v1870_v48 = vsel %vm1869_vm9, 0.0, %v1867_v8 }
 0x57a   : > { %v1872_v62 = vsel %vm1871_vm1, %v1870_v48, 0.0  ;;  %v1936_v48 = vld [vmem:[%s10691_s14 + $0x10] sm:$0xff] }
 0x57b   : > { %1922 = vrot.lane.b32.xlu2 %v1872_v62, %s10743_s29  ;;  %v1898_v24 = vmul.f32 %v8579_v39, %v1872_v62  ;;  %v1894_v54 = vmul.f32 %v8582_v56, %v1872_v62  ;;  %v1882_v41 = vmul.f32 %v8590_v59, %v1872_v62  ;;  %v1886_v3 = vmul.f32 %v8599_v63, %v1872_v62 }
 0x57d   : > { %1926 = vrot.lane.b32.xlu0 %v1898_v24, %s10894_s22  ;;  %1919 = vrot.lane.b32.xlu1 %v1894_v54, %s10895_s2 }
 0x580   : > { %v8592_v51 = vpop.permute.xlu0 %1887 }
 0x581   : > { %v1890_v55 = vmul.f32 %v8592_v51, %v1872_v62 }
 0x583   : > { %1904 = vrot.lane.b32.xlu2 %v1882_v41, %s10896_s24 }
 0x585   : > { %1911 = vrot.lane.b32.xlu0 %v1872_v62, %s10732_s26  ;;  %1915 = vrot.lane.b32.xlu1 %v1890_v55, %s10749_s27  ;;  %s10898_s26 = sld [smem:[#allocation51_spill]] }
 0x58b   : > { %1900 = vrot.lane.b32.xlu2 %v1872_v62, %s10897_s21 }
 0x58d   : > { %1908 = vrot.lane.b32.xlu0 %v1886_v3, %s10730_s1  ;;  %1874 = vrot.lane.b32.xlu1 %v6084_v61, %s10728_s28  ;;  %v1937_v3 = vld [vmem:[%s10691_s14 + $0x18] sm:$0xff]  ;;  %s10902_s28 = smov 9   ;;  %s10904_s1 = smov 118  }
 0x5d5   : > { %v8605_v50 = vpop.permute.xlu2 %1922 }
 0x5dd   : > { %v8617_v14 = vpop.permute.xlu2 %1904 }
 0x5e5   : > { %v8638_v41 = vpop.permute.xlu2 %1900 }
 0x5ef   : > { %v8607_v18 = vpop.permute.xlu1 %1919  ;;  %v8609_v19 = vpop.permute.xlu0 %1926 }
 0x5f0   : > { %v1932_v60 = vpack.c.bf16 %v8605_v50, %v8607_v18  ;;  %v1933_v16 = vpack.c.bf16 %v8609_v19, %v8609_v19 }
 0x5f2   : > { %1964 = vrot.lane.b32.xlu1 %v1932_v60, %s10745_s20  ;;  %1966 = vrot.lane.b32.xlu0 %v1933_v16, %s10745_s20 }
 0x5f7   : > { %v8619_v61 = vpop.permute.xlu1 %1915  ;;  %v8621_v9 = vpop.permute.xlu0 %1911 }
 0x5f8   : > { %v1931_v7 = vpack.c.bf16 %v8619_v61, %v8621_v9 }
 0x5fa   : > { %1962 = vrot.lane.b32.xlu2 %v1931_v7, %s10745_s20 }
 0x5ff   : > { %v8626_v31 = vpop.permute.xlu1 %1874  ;;  %v8628_v8 = vpop.permute.xlu0 %1908 }
 0x600   : > { %v1930_v24 = vpack.c.bf16 %v8628_v8, %v8617_v14  ;;  %v8636_v54 = vmul.f32 %v8626_v31, %v1872_v62 }
 0x602   : > { %1940 = vperm.xlu2 %7206, %v1936_v48   ;;  %1960 = vrot.lane.b32.xlu0 %v1930_v24, %s10745_s20  ;;  %v1929_v55 = vpack.c.bf16 %v8638_v41, %v8636_v54 }
 0x604   : > { %1958 = vrot.lane.b32.xlu1 %v1929_v55, %s10745_s20  ;;  %v6968_v55 = vld [vmem:[%s10898_s26] sm:$0xff]  ;;  %s10900_s26 = smov 120  }
 0x60a   : > { %1945 = vperm.xlu0 %7165, %v1937_v3  }
 0x654   : > { %v1963_v7 = vpop.permute.xlu2 %1962 }
 0x65c   : > { %v1941_v12 = vpop.permute.xlu2 %1940 }
 0x664   : > { %v1967_v60 = vpop.permute.xlu0 %1966  ;;  %v1965_v62 = vpop.permute.xlu1 %1964 }
 0x665   : > { %v1976_v16 = vsel %vm929_vm5, %v1967_v60, 0 }
 0x666   : > { %1981 = vmatpush.bf16.msrb.mxu0 %v1976_v16 }
 0x66a   : > { %1982 = vmatpush.bf16.msrb.mxu0 %v1965_v62 }
 0x66e   : > { %1983 = vmatpush.bf16.msrb.mxu0 %v1963_v7 }
 0x674   : > { %v1961_v48 = vpop.permute.xlu0 %1960 }
 0x675   : > { %1984 = vmatpush.bf16.msrb.mxu0 %v1961_v48 }
 0x676   : > { %v1959_v24 = vpop.permute.xlu1 %1958 }
 0x679   : > { %1985 = vmatpush.bf16.msrb.mxu0 %v1959_v24 }
 0x67c   : > { %6452 = vmatmul.msk.bf16.vlgmr.msrb.gmra.mxu0 %vm10752_vm6, %v6968_v55  ;;  %v1946_v16 = vpop.permute.xlu0 %1945  ;;  %vm2232_vm6 = vcmask 523264  }
 0x6f9   : > { %v1987_v3 = vpop.f32.mrf.mxu0 }
 0x6fa   : > { %v1988_v58 = vadd.f32 %v1987_v3, %v1941_v12 }
 0x6fc   : > { %v1994_v57 = vmin.f32 %v1988_v58, 0.0  ;;  %vm1992_vm7 = vcmp.gt.f32.partialorder %v1988_v58, 0.0 }
 0x6fe   : > { %v1996_v60 = vmul.f32 1.442695, %v1994_v57 }
 0x700   : > { %7776 = vpow2.f32 %v1996_v60 }
 0x701   : > { %v1989_v62 = vpop.f32.mrf.mxu0 }
 0x702   : > { %v1990_v46 = vadd.f32 %v1989_v62, %v1946_v16 }
 0x704   : > { %v1995_v7 = vmin.f32 %v1990_v46, 0.0  ;;  %vm1993_vm8 = vcmp.gt.f32.partialorder %v1990_v46, 0.0 }
 0x706   : > { %v7777_v34 = vpop.eup %7776  ;;  %v1998_v48 = vmul.f32 1.442695, %v1995_v7 }
 0x707   : > { %v6453_v4 = vadd.f32 -1.0, %v7777_v34 }
 0x708   : > { %7778 = vpow2.f32 %v1998_v48 }
 0x709   : > { %v2002_v10 = vsel %vm1992_vm7, %v1988_v58, %v6453_v4 }
 0x70a   : > { %2006 = vrot.lane.b32.xlu1 %v2002_v10, %s10747_s25 }
 0x70e   : > { %v7779_v24 = vpop.eup %7778 }
 0x70f   : > { %v6454_v55 = vadd.f32 -1.0, %v7779_v24 }
 0x711   : > { %v2003_v13 = vsel %vm1993_vm8, %v1990_v46, %v6454_v55 }
 0x712   : > { %2008 = vrot.lane.b32.xlu2 %v2003_v13, %s10747_s25  ;;  %s10764_s25 = smov 122  }
 0x76c   : > { %v2009_v12 = vpop.permute.xlu2 %2008 }
 0x76d   : > { %v2013_v57 = vsel %vm1869_vm9, 0.0, %v2009_v12 }
 0x76e   : > { %v2015_v3 = vsel %vm1871_vm1, %v2013_v57, 0.0 }
 0x76f   : > { %v2025_v4 = vmul.f32 %v2015_v3, %v8582_v56  ;;  %v2023_v46 = vmul.f32 %v2015_v3, %v8592_v51  ;;  %v2017_v24 = vmul.f32 %v2015_v3, %v8626_v31 }
 0x77c   : > { %v2007_v60 = vpop.permute.xlu1 %2006 }
 0x77d   : > { %v2012_v16 = vsel %vm1869_vm9, 0.0, %v2007_v60  ;;  %v2021_v60 = vmul.f32 %v2015_v3, %v8599_v63 }
 0x77e   : > { %v2014_v34 = vsel %vm1871_vm1, %v2012_v16, 0.0  ;;  %v2019_v16 = vmul.f32 %v2015_v3, %v8590_v59 }
 0x77f   : > { %v7207_v58 = vpack.i.bf16 %v2015_v3, %v2014_v34  ;;  %v2024_v10 = vmul.f32 %v2014_v34, %v8582_v56  ;;  %v2022_v62 = vmul.f32 %v2014_v34, %v8592_v51  ;;  %v2016_v48 = vmul.f32 %v2014_v34, %v8626_v31 }
 0x780   : > { %v2020_v12 = vmul.f32 %v2014_v34, %v8599_v63  ;;  %v2018_v57 = vmul.f32 %v2014_v34, %v8590_v59 }
 0x781   : > { %7208 = vrot.lane.b32.xlu0 %v7207_v58, %s10743_s29  ;;  %v7212_v13 = vpack.i.bf16 %v2025_v4, %v2024_v10  ;;  %v7217_v7 = vpack.i.bf16 %v2023_v46, %v2022_v62  ;;  %v2088_v55 = vpack.c.bf16 %v2017_v24, %v2016_v48  ;;  %v2026_v62 = vmul.f32 %v2014_v34, %v8579_v39  ;;  %s10903_s29 = smov 7  }
 0x782   : > { %v7227_v4 = vpack.i.bf16 %v2021_v60, %v2020_v12  ;;  %v7232_v10 = vpack.i.bf16 %v2019_v16, %v2018_v57  ;;  %v2027_v46 = vmul.f32 %v2015_v3, %v8579_v39 }
 0x783   : > { %7213 = vrot.lane.b32.xlu1 %v7212_v13, %s10895_s2  ;;  %7218 = vrot.lane.b32.xlu2 %v7217_v7, %s10749_s27  ;;  %s7854_s27 = smov 13  }
 0x784   : > { %v7242_v13 = vpack.i.bf16 %v2027_v46, %v2026_v62 }
 0x789   : > { %7223 = vrot.lane.b32.xlu0 %v7207_v58, %s10899_s23 }
 0x78b   : > { %7228 = vrot.lane.b32.xlu1 %v7227_v4, %s10900_s26  ;;  %7233 = vrot.lane.b32.xlu2 %v7232_v10, %s10896_s24 }
 0x791   : > { %7238 = vrot.lane.b32.xlu0 %v7207_v58, %s10897_s21 }
 0x793   : > { %7243 = vrot.lane.b32.xlu1 %v7242_v13, %s10894_s22 }
 0x7dd   : > { %v7219_v7 = vpop.permute.xlu2 %7218 }
 0x7de   : > { %v7221_v48 = vunpack.i.h.bf16 %v7219_v7  ;;  %v7220_v24 = vunpack.i.l.bf16 %v7219_v7 }
 0x7e0   : > { %v2093_v29 = vpack.c.bf16 %v7221_v48, %v7220_v24 }
 0x7e2   : > { %2139 = vrot.lane.b32.xlu1 %v2093_v29, %s10745_s20 }
 0x7e5   : > { %v7234_v12 = vpop.permute.xlu2 %7233 }
 0x7e6   : > { %v7236_v57 = vunpack.i.h.bf16 %v7234_v12  ;;  %v7235_v60 = vunpack.i.l.bf16 %v7234_v12 }
 0x7e8   : > { %v2090_v16 = vpack.c.bf16 %v7236_v57, %v7235_v60 }
 0x7ea   : > { %2133 = vrot.lane.b32.xlu1 %v2090_v16, %s10745_s20 }
 0x7f2   : > { %2129 = vrot.lane.b32.xlu1 %v2088_v55, %s10745_s20 }
 0x7f3   : > { %v7209_v3 = vpop.permute.xlu0 %7208 }
 0x7f4   : > { %v7211_v34 = vunpack.i.h.bf16 %v7209_v3  ;;  %v7210_v58 = vunpack.i.l.bf16 %v7209_v3 }
 0x7f5   : > { %v7214_v4 = vpop.permute.xlu1 %7213 }
 0x7f6   : > { %v7216_v10 = vunpack.i.h.bf16 %v7214_v4  ;;  %v7215_v62 = vunpack.i.l.bf16 %v7214_v4  ;;  %v2095_v46 = vpack.c.bf16 %v7211_v34, %v7210_v58 }
 0x7f8   : > { %2143 = vrot.lane.b32.xlu2 %v2095_v46, %s10745_s20  ;;  %v2094_v13 = vpack.c.bf16 %v7216_v10, %v7215_v62 }
 0x7fa   : > { %2141 = vrot.lane.b32.xlu0 %v2094_v13, %s10745_s20  ;;  %v2099_v13 = vld [vmem:[%s10691_s14 + $0x20] sm:$0xff] }
 0x7fb   : > { %v7224_v29 = vpop.permute.xlu0 %7223 }
 0x7fc   : > { %v7226_v7 = vunpack.i.h.bf16 %v7224_v29  ;;  %v7225_v48 = vunpack.i.l.bf16 %v7224_v29  ;;  %v2100_v29 = vld [vmem:[%s10691_s14 + $0x28] sm:$0xff] }
 0x7fd   : > { %v7229_v24 = vpop.permute.xlu1 %7228 }
 0x7fe   : > { %v7231_v12 = vunpack.i.h.bf16 %v7229_v24  ;;  %v7230_v57 = vunpack.i.l.bf16 %v7229_v24  ;;  %v2092_v60 = vpack.c.bf16 %v7226_v7, %v7225_v48 }
 0x800   : > { %2137 = vrot.lane.b32.xlu2 %v2092_v60, %s10745_s20  ;;  %v2091_v55 = vpack.c.bf16 %v7231_v12, %v7230_v57  ;;  %v6969_v60 = vld [vmem:[%s10901_s4 + $0x4] sm:$0xf] }
 0x802   : > { %2135 = vrot.lane.b32.xlu0 %v2091_v55, %s10745_s20  ;;  %v6459_v55 = vld [vmem:[%s10901_s4 + $0x8] sm:$0xf0] }
 0x803   : > { %v7239_v16 = vpop.permute.xlu0 %7238 }
 0x804   : > { %v7241_v3 = vunpack.i.h.bf16 %v7239_v16  ;;  %v7240_v34 = vunpack.i.l.bf16 %v7239_v16 }
 0x805   : > { %v7244_v58 = vpop.permute.xlu1 %7243 }
 0x806   : > { %v7246_v4 = vunpack.i.h.bf16 %v7244_v58  ;;  %v7245_v10 = vunpack.i.l.bf16 %v7244_v58  ;;  %v2089_v62 = vpack.c.bf16 %v7241_v3, %v7240_v34  ;;  %v6462_v34 = vor.u32 %v6969_v60, %v6459_v55  ;;  %v6976_v60 = vld [vmem:[%s10695_s18 + $0x28] sm:$0xff] }
 0x807   : > { %v6984_v55 = vld [vmem:[%s10695_s18 + $0x68] sm:$0xff] }
 0x808   : > { %2131 = vrot.lane.b32.xlu2 %v2089_v62, %s10745_s20  ;;  %v2096_v46 = vpack.c.bf16 %v7246_v4, %v7245_v10  ;;  %v6457_v4 = vld [vmem:[%s10901_s4] sm:$0xf]  ;;  %v6970_v10 = vld [vmem:[%s10901_s4 + $0x4] sm:$0xf0]  ;;  %s10910_s4 = smov 16  }
 0x80a   : > { %2145 = vrot.lane.b32.xlu0 %v2096_v46, %s10745_s20  ;;  %v6458_v46 = vor.u32 %v6970_v10, %v6457_v4  ;;  %s10766_s20 = smov 124  }
 0x810   : > { %2103 = vperm.xlu2 %7206, %v2099_v13   ;;  %v6974_v13 = vld [vmem:[%s10695_s18 + $0x18] sm:$0xff] }
 0x811   : > { %2240 = vmatpush.bf16.msrb.mxu3 %v6974_v13 }
 0x812   : > { %2108 = vperm.xlu0 %7165, %v2100_v29   ;;  %v6978_v29 = vld [vmem:[%s10695_s18 + $0x38] sm:$0xff] }
 0x852   : > { %v2144_v7 = vpop.permute.xlu2 %2143 }
 0x853   : > { %2159 = vmatpush.bf16.msrb.mxu1 %v2144_v7  ;;  %v6986_v7 = vld [vmem:[%s10695_s18 + $0x78] sm:$0xff] }
 0x854   : > { %v2140_v24 = vpop.permute.xlu1 %2139  ;;  %2385 = vmatpush.bf16.msra.mxu0 %v6986_v7  ;;  %v6980_v7 = vld [vmem:[%s10695_s18 + $0x48] sm:$0xff] }
 0x85a   : > { %v2138_v12 = vpop.permute.xlu2 %2137 }
 0x85c   : > { %v2134_v16 = vpop.permute.xlu1 %2133 }
 0x862   : > { %v2132_v58 = vpop.permute.xlu2 %2131 }
 0x864   : > { %v2130_v62 = vpop.permute.xlu1 %2129 }
 0x86a   : > { %v2104_v4 = vpop.permute.xlu2 %2103 }
 0x86c   : > { %v2142_v48 = vpop.permute.xlu0 %2141 }
 0x86d   : > { %2160 = vmatpush.bf16.msrb.mxu1 %v2142_v48  ;;  %v6973_v48 = vld [vmem:[%s10695_s18 + $0x10] sm:$0xff] }
 0x86e   : > { %2241 = vmatpush.bf16.msrb.mxu3 %v6973_v48 }
 0x871   : > { %2161 = vmatpush.bf16.msrb.mxu1 %v2140_v24  ;;  %v6977_v24 = vld [vmem:[%s10695_s18 + $0x30] sm:$0xff] }
 0x874   : > { %v2136_v57 = vpop.permute.xlu0 %2135 }
 0x875   : > { %2162 = vmatpush.bf16.msrb.mxu1 %v2138_v12  ;;  %v6985_v12 = vld [vmem:[%s10695_s18 + $0x70] sm:$0xff] }
 0x876   : > { %2386 = vmatpush.bf16.msra.mxu0 %v6985_v12 }
 0x879   : > { %2163 = vmatpush.bf16.msrb.mxu1 %v2136_v57  ;;  %v6972_v57 = vld [vmem:[%s10695_s18 + $0x8] sm:$0xff] }
 0x87a   : > { %2242 = vmatpush.bf16.msrb.mxu3 %v6972_v57  ;;  %2387 = vmatpush.bf16.msra.mxu0 %v6984_v55  ;;  %v6979_v57 = vld [vmem:[%s10695_s18 + $0x40] sm:$0xff] }
 0x87c   : > { %v2146_v3 = vpop.permute.xlu0 %2145 }
 0x87d   : > { %2164 = vmatpush.bf16.msrb.mxu1 %v2134_v16  ;;  %2180 = vmatpush.bf16.msrb.mxu2 %v2146_v3  ;;  %v6971_v16 = vld [vmem:[%s10695_s18] sm:$0xff] }
 0x87e   : > { %v6975_v3 = vld [vmem:[%s10695_s18 + $0x20] sm:$0xff]  ;;  %2243 = vmatpush.bf16.msrb.mxu3 %v6971_v16 }
 0x880   : > { %6463 = vmatmul.msk.bf16.vlgmr.msrb.gmra.mxu2 %vm1869_vm9, %v6462_v34  ;;  %v6983_v34 = vld [vmem:[%s10695_s18 + $0x60] sm:$0xff] }
 0x881   : > { %2165 = vmatpush.bf16.msrb.mxu1 %v2132_v58  ;;  %2287 = vmatpush.bf16.msra.mxu2 %v6978_v29  ;;  %v6982_v58 = vld [vmem:[%s10695_s18 + $0x58] sm:$0xff] }
 0x882   : > { %2388 = vmatpush.bf16.msra.mxu0 %v6983_v34  ;;  %2336 = vmatpush.bf16.msra.mxu3 %v6982_v58 }
 0x885   : > { %2166 = vmatpush.bf16.msrb.mxu1 %v2130_v62  ;;  %2288 = vmatpush.bf16.msra.mxu2 %v6977_v24  ;;  %v2109_v24 = vpop.permute.xlu0 %2108 }
 0x888   : > { %2167 = vmatmul.bf16.vlgmr.msrb.gmra.mxu1 %v6458_v46  ;;  %v6981_v46 = vld [vmem:[%s10695_s18 + $0x50] sm:$0xff] }
 0x889   : > { %2289 = vmatpush.bf16.msra.mxu2 %v6976_v60  ;;  %2337 = vmatpush.bf16.msra.mxu3 %v6981_v46 }
 0x88d   : > { %2290 = vmatpush.bf16.msra.mxu2 %v6975_v3  ;;  %2338 = vmatpush.bf16.msra.mxu3 %v6980_v7 }
 0x891   : > { %2339 = vmatpush.bf16.msra.mxu3 %v6979_v57 }
 0x903   : > { %v2182_v10 = vpop.f32.mrf.mxu2 }
 0x905   : > { %v2168_v62 = vpop.f32.mrf.mxu1 }
 0x906   : > { %v2169_v13 = vadd.f32 %v2168_v62, %v2104_v4 }
 0x908   : > { %v2183_v29 = vadd.f32 %v2182_v10, %v2169_v13 }
 0x90a   : > { %v2189_v48 = vmin.f32 %v2183_v29, 0.0  ;;  %vm2187_vm7 = vcmp.gt.f32.partialorder %v2183_v29, 0.0 }
 0x90b   : > { %v2184_v16 = vpop.f32.mrf.mxu2 }
 0x90c   : > { %v2191_v60 = vmul.f32 1.442695, %v2189_v48 }
 0x90d   : > { %v2170_v12 = vpop.f32.mrf.mxu1 }
 0x90e   : > { %v2171_v55 = vadd.f32 %v2170_v12, %v2109_v24  ;;  %7780 = vpow2.f32 %v2191_v60  ;;  %v628_v24 = vand.u32 3, %v7970_v1 }
 0x910   : > { %v2185_v3 = vadd.f32 %v2184_v16, %v2171_v55  ;;  %vm629_vm14 = vcmp.ge.s32.totalorder %v628_v24, 1 }
 0x912   : > { %v2190_v34 = vmin.f32 %v2185_v3, 0.0  ;;  %vm2188_vm8 = vcmp.gt.f32.partialorder %v2185_v3, 0.0 }
 0x914   : > { %v2193_v58 = vmul.f32 1.442695, %v2190_v34  ;;  %v7781_v4 = vpop.eup %7780 }
 0x915   : > { %v6464_v10 = vadd.f32 -1.0, %v7781_v4 }
 0x916   : > { %7782 = vpow2.f32 %v2193_v58 }
 0x917   : > { %v8754_v13 = vsel %vm2187_vm7, %v2183_v29, %v6464_v10  ;;  %v8766_v29 = vsel %vm629_vm14, 1.0, %v10891_v6  ;;  %vm632_vm7 = vcmp.le.s32.totalorder %v628_v24, 2  ;;  %vm2405_vm14 = vcmask 64512  }
 0x918   : > { %2433 = vrot.lane.b32.xlu0 %v8766_v29, %s7851_s17  ;;  %v6087_v12 = vsel %vm632_vm7, 1.0, %v10891_v6  ;;  %s7858_s17 = smov 3  }
 0x91c   : > { %v7783_v62 = vpop.eup %7782 }
 0x91d   : > { %v6465_v46 = vadd.f32 -1.0, %v7783_v62 }
 0x91f   : > { %v8756_v7 = vsel %vm2188_vm8, %v2185_v3, %v6465_v46  ;;  %vm2408_vm8 = vcmask 195584  }
 0x920   : > { %v2199_v48 = vpack.c.bf16 %v8756_v7, %v8754_v13  ;;  %2418 = vrot.lane.b32.xlu0 %v6087_v12, %s7852_s19  ;;  %s10762_s19 = smov 125  }
 0x922   : > { %6482 = vmatmul.msk.bf16.vlgmr.msrb.gmra.mxu3 %vm2232_vm6, %v2199_v48  ;;  %6507 = vmatmul.msk.bf16.vlgmr.msra.gmra.mxu2 %vm2232_vm6, %v2199_v48 }
 0x923   : > { %6557 = vmatmul.msk.bf16.vlgmr.msra.gmra.mxu0 %vm2232_vm6, %v2199_v48 }
 0x932   : > { %6532 = vmatmul.msk.bf16.vlgmr.msra.gmra.mxu3 %vm2232_vm6, %v2199_v48 }
 0x9a0   : > { %v2390_v3 = vpop.f32.mrf.mxu0 }
 0x9a5   : > { %v2245_v57 = vpop.f32.mrf.mxu3  ;;  %v2292_v55 = vpop.f32.mrf.mxu2 }
 0x9a6   : > { %v2297_v16 = vmax.f32 %v2245_v57, %v2292_v55 }
 0x9a8   : > { %v2392_v48 = vpop.f32.mrf.mxu0 }
 0x9ad   : > { %v2247_v60 = vpop.f32.mrf.mxu3  ;;  %v2294_v4 = vpop.f32.mrf.mxu2 }
 0x9ae   : > { %v2298_v10 = vmax.f32 %v2247_v60, %v2294_v4 }
 0x9b5   : > { %v2341_v34 = vpop.f32.mrf.mxu3 }
 0x9b6   : > { %v2346_v58 = vmax.f32 %v2297_v16, %v2341_v34 }
 0x9b8   : > { %v2395_v1 = vmax.f32 %v2346_v58, %v2390_v3  ;;  %v8780_v3 = vpop.permute.xlu0 %2433 }
 0x9ba   : > { %2399 = vrot.lane.b32.xlu1 %v2395_v1, %s7853_s0 }
 0x9bd   : > { %v2343_v62 = vpop.f32.mrf.mxu3 }
 0x9be   : > { %v2347_v46 = vmax.f32 %v2298_v10, %v2343_v62 }
 0x9c0   : > { %v2396_v24 = vmax.f32 %v2347_v46, %v2392_v48 }
 0x9c2   : > { %2428 = vrot.lane.b32.xlu1 %v6087_v12, %s10902_s28  ;;  %2401 = vrot.lane.b32.xlu2 %v2396_v24, %s7853_s0  ;;  %s10920_s28 = smov 95  }
 0x9ca   : > { %2438 = vrot.lane.b32.xlu1 %v6087_v12, %s7854_s27  ;;  %2423 = vrot.lane.b32.xlu2 %v8766_v29, %s10903_s29  ;;  %s10913_s27 = smov 121  }
 0xa1c   : > { %v2402_v6 = vpop.permute.xlu2 %2401 }
 0xa1d   : > { %v2407_v57 = vsel %vm2405_vm14, 0.0, %v2402_v6 }
 0xa1e   : > { %v8777_v60 = vsel %vm2408_vm8, %v2407_v57, 0.0 }
 0xa1f   : > { %v2437_v1 = vmul.f32 %v8780_v3, %v8777_v60 }
 0xa24   : > { %v8793_v10 = vpop.permute.xlu2 %2423 }
 0xa25   : > { %v2427_v57 = vmul.f32 %v8793_v10, %v8777_v60 }
 0xa2c   : > { %v2400_v55 = vpop.permute.xlu1 %2399 }
 0xa2d   : > { %v2406_v16 = vsel %vm2405_vm14, 0.0, %v2400_v55 }
 0xa2e   : > { %v8783_v34 = vsel %vm2408_vm8, %v2406_v16, 0.0  ;;  %v8807_v16 = vpop.permute.xlu0 %2418 }
 0xa2f   : > { %v7247_v12 = vpack.i.bf16 %v8777_v60, %v8783_v34  ;;  %v2436_v58 = vmul.f32 %v8780_v3, %v8783_v34  ;;  %v2426_v24 = vmul.f32 %v8793_v10, %v8783_v34 }
 0xa31   : > { %7248 = vrot.lane.b32.xlu2 %v7247_v12, %s10899_s23  ;;  %v7252_v4 = vpack.i.bf16 %v2437_v1, %v2436_v58  ;;  %v7272_v55 = vpack.i.bf16 %v2427_v57, %v2426_v24  ;;  %v2421_v58 = vmul.f32 %v8807_v16, %v8783_v34 }
 0xa33   : > { %7253 = vrot.lane.b32.xlu0 %v7252_v4, %s10900_s26  ;;  %v2422_v4 = vmul.f32 %v8807_v16, %v8777_v60 }
 0xa34   : > { %v8795_v62 = vpop.permute.xlu1 %2428 }
 0xa35   : > { %v2431_v46 = vmul.f32 %v8795_v62, %v8783_v34  ;;  %v2432_v48 = vmul.f32 %v8795_v62, %v8777_v60  ;;  %v7277_v24 = vpack.i.bf16 %v2422_v4, %v2421_v58 }
 0xa37   : > { %v7257_v6 = vpack.i.bf16 %v2432_v48, %v2431_v46 }
 0xa39   : > { %7263 = vrot.lane.b32.xlu2 %v7247_v12, %s10760_s3  ;;  %7258 = vrot.lane.b32.xlu1 %v7257_v6, %s10764_s25  ;;  %s10907_s25 = smov 122  }
 0xa3b   : > { %7273 = vrot.lane.b32.xlu0 %v7272_v55, %s10766_s20  ;;  %s10908_s20 = smov 123  }
 0xa3c   : > { %v8812_v1 = vpop.permute.xlu1 %2438 }
 0xa3d   : > { %v2441_v46 = vmul.f32 %v8812_v1, %v8783_v34  ;;  %v2442_v48 = vmul.f32 %v8812_v1, %v8777_v60 }
 0xa3f   : > { %v7282_v6 = vpack.i.bf16 %v2442_v48, %v2441_v46 }
 0xa41   : > { %7268 = vrot.lane.b32.xlu2 %v7247_v12, %s10897_s21  ;;  %7278 = vrot.lane.b32.xlu1 %v7277_v24, %s10896_s24 }
 0xa43   : > { %7283 = vrot.lane.b32.xlu0 %v7282_v6, %s10904_s1 }
 0xa49   : > { %2412 = vrot.lane.b32.xlu1 %v8766_v29, %s7858_s17  ;;  %s10916_s17 = smov 32  }
 0xa8b   : > { %v7249_v57 = vpop.permute.xlu2 %7248 }
 0xa8c   : > { %v7251_v55 = vunpack.i.h.bf16 %v7249_v57  ;;  %v7250_v0 = vunpack.i.l.bf16 %v7249_v57 }
 0xa8e   : > { %v2510_v43 = vpack.c.bf16 %v7251_v55, %v7250_v0  ;;  %v2518_v0 = vld [vmem:[%s10691_s14 + $0x40] sm:$0xff] }
 0xa90   : > { %2581 = vrot.lane.b32.xlu2 %v2510_v43, %s10762_s19 }
 0xa93   : > { %v7264_v21 = vpop.permute.xlu2 %7263 }
 0xa94   : > { %v7266_v38 = vunpack.i.h.bf16 %v7264_v21  ;;  %v7265_v58 = vunpack.i.l.bf16 %v7264_v21 }
 0xa96   : > { %v2507_v4 = vpack.c.bf16 %v7266_v38, %v7265_v58 }
 0xa98   : > { %2575 = vrot.lane.b32.xlu2 %v2507_v4, %s10762_s19  ;;  %v2517_v4 = vld [vmem:[%s10691_s14 + $0x38] sm:$0xff] }
 0xa9b   : > { %v7269_v12 = vpop.permute.xlu2 %7268 }
 0xa9c   : > { %v7271_v46 = vunpack.i.h.bf16 %v7269_v12  ;;  %v7270_v48 = vunpack.i.l.bf16 %v7269_v12 }
 0xa9e   : > { %v2504_v24 = vpack.c.bf16 %v7271_v46, %v7270_v48 }
 0xaa0   : > { %2569 = vrot.lane.b32.xlu2 %v2504_v24, %s10762_s19 }
 0xaa5   : > { %v7254_v29 = vpop.permute.xlu0 %7253 }
 0xaa6   : > { %v7256_v6 = vunpack.i.h.bf16 %v7254_v29  ;;  %v7255_v57 = vunpack.i.l.bf16 %v7254_v29 }
 0xaa8   : > { %2532 = vperm.xlu2 %7206, %v2518_v0   ;;  %v2509_v43 = vpack.c.bf16 %v7256_v6, %v7255_v57 }
 0xaaa   : > { %2579 = vrot.lane.b32.xlu0 %v2509_v43, %s10762_s19 }
 0xaab   : > { %v7259_v38 = vpop.permute.xlu1 %7258 }
 0xaac   : > { %v7261_v21 = vunpack.i.h.bf16 %v7259_v38  ;;  %v7260_v55 = vunpack.i.l.bf16 %v7259_v38 }
 0xaad   : > { %v7274_v58 = vpop.permute.xlu0 %7273 }
 0xaae   : > { %v7276_v12 = vunpack.i.h.bf16 %v7274_v58  ;;  %v7275_v46 = vunpack.i.l.bf16 %v7274_v58  ;;  %v2508_v48 = vpack.c.bf16 %v7261_v21, %v7260_v55 }
 0xab0   : > { %2577 = vrot.lane.b32.xlu1 %v2508_v48, %s10762_s19  ;;  %2527 = vperm.xlu2 %7206, %v2517_v4   ;;  %v2506_v24 = vpack.c.bf16 %v7276_v12, %v7275_v46  ;;  %v2519_v12 = vld [vmem:[%s10691_s14 + $0x48] sm:$0xff] }
 0xab2   : > { %2573 = vrot.lane.b32.xlu0 %v2506_v24, %s10762_s19  ;;  %v6987_v24 = vld [vmem:[%s10905_s5 + $0x4] sm:$0xf] }
 0xab3   : > { %v7279_v29 = vpop.permute.xlu1 %7278 }
 0xab4   : > { %v7281_v0 = vunpack.i.h.bf16 %v7279_v29  ;;  %v7280_v6 = vunpack.i.l.bf16 %v7279_v29  ;;  %v6562_v29 = vld [vmem:[%s10905_s5 + $0x8] sm:$0xf0] }
 0xab5   : > { %v7284_v57 = vpop.permute.xlu0 %7283 }
 0xab6   : > { %v7286_v43 = vunpack.i.h.bf16 %v7284_v57  ;;  %v7285_v38 = vunpack.i.l.bf16 %v7284_v57  ;;  %v2505_v22 = vpack.c.bf16 %v7281_v0, %v7280_v6  ;;  %v6565_v57 = vor.u32 %v6987_v24, %v6562_v29 }
 0xab8   : > { %2571 = vrot.lane.b32.xlu1 %v2505_v22, %s10762_s19  ;;  %v2511_v15 = vpack.c.bf16 %v7286_v43, %v7285_v38  ;;  %v6560_v38 = vld [vmem:[%s10905_s5] sm:$0xf] }
 0xaba   : > { %2583 = vrot.lane.b32.xlu0 %v2511_v15, %s10762_s19  ;;  %v2516_v15 = vld [vmem:[%s10691_s14 + $0x30] sm:$0xff] }
 0xabb   : > { %v8838_v58 = vpop.permute.xlu1 %2412 }
 0xabc   : > { %v2415_v21 = vmul.f32 %v8838_v58, %v8783_v34  ;;  %v2416_v55 = vmul.f32 %v8838_v58, %v8777_v60 }
 0xabe   : > { %v2503_v4 = vpack.c.bf16 %v2416_v55, %v2415_v21  ;;  %v6988_v21 = vld [vmem:[%s10905_s5 + $0x4] sm:$0xf0] }
 0xac0   : > { %2567 = vrot.lane.b32.xlu1 %v2503_v4, %s10762_s19  ;;  %v6561_v4 = vor.u32 %v6988_v21, %v6560_v38  ;;  %s10909_s19 = smov 125  }
 0xac2   : > { %2537 = vperm.xlu0 %7165, %v2519_v12   ;;  %v6989_v12 = vld [vmem:[%s10905_s5 + $0x14] sm:$0xf] }
 0xac8   : > { %2522 = vperm.xlu1 %7287, %v2516_v15   ;;  %v6568_v15 = vld [vmem:[%s10905_s5 + $0x10] sm:$0xf] }
 0xaea   : > { %v2582_v22 = vpop.permute.xlu2 %2581 }
 0xaeb   : > { %2600 = vmatpush.bf16.msra.mxu1 %v2582_v22  ;;  %v6570_v22 = vld [vmem:[%s10905_s5 + $0x18] sm:$0xf0] }
 0xaf2   : > { %v2576_v48 = vpop.permute.xlu2 %2575 }
 0xafa   : > { %v2570_v43 = vpop.permute.xlu2 %2569 }
 0xb1c   : > { %v2580_v46 = vpop.permute.xlu0 %2579 }
 0xb1d   : > { %2601 = vmatpush.bf16.msra.mxu1 %v2580_v46  ;;  %v6573_v46 = vor.u32 %v6989_v12, %v6570_v22 }
 0xb22   : > { %v2578_v34 = vpop.permute.xlu1 %2577 }
 0xb23   : > { %2602 = vmatpush.bf16.msra.mxu1 %v2578_v34  ;;  %v6990_v34 = vld [vmem:[%s10905_s5 + $0x14] sm:$0xf0]  ;;  %s10926_s5 = smov 96  }
 0xb24   : > { %v2574_v60 = vpop.permute.xlu0 %2573 }
 0xb27   : > { %2603 = vmatpush.bf16.msra.mxu1 %v2576_v48 }
 0xb2a   : > { %v2572_v0 = vpop.permute.xlu1 %2571 }
 0xb2b   : > { %2604 = vmatpush.bf16.msra.mxu1 %v2574_v60  ;;  %v6569_v60 = vor.u32 %v6990_v34, %v6568_v15 }
 0xb2c   : > { %v2584_v6 = vpop.permute.xlu0 %2583 }
 0xb2d   : > { %2626 = vmatpush.bf16.msrb.mxu2 %v2584_v6  ;;  %v2533_v6 = vpop.permute.xlu2 %2532 }
 0xb2f   : > { %2605 = vmatpush.bf16.msra.mxu1 %v2572_v0 }
 0xb30   : > { %6574 = vmatmul.msk.bf16.vlgmr.msrb.gmra.mxu2 %vm1869_vm9, %v6565_v57 }
 0xb32   : > { %v2568_v55 = vpop.permute.xlu1 %2567 }
 0xb33   : > { %2606 = vmatpush.bf16.msra.mxu1 %v2570_v43 }
 0xb37   : > { %2607 = vmatpush.bf16.msra.mxu1 %v2568_v55 }
 0xb3a   : > { %2608 = vmatmul.bf16.vlgmr.msra.gmra.mxu1 %v6561_v4  ;;  %v2523_v24 = vpop.permute.xlu1 %2522  ;;  %v2528_v4 = vpop.permute.xlu2 %2527 }
 0xb40   : > { %6575 = vmatmul.msk.bf16.gmra.mxu2 %vm1869_vm9, %v6573_v46 }
 0xb4a   : > { %2613 = vmatmul.bf16.gmra.mxu1 %v6569_v60 }
 0xbb3   : > { %v2628_v48 = vpop.f32.mrf.mxu2 }
 0xbb7   : > { %v2609_v29 = vpop.f32.mrf.mxu1 }
 0xbb8   : > { %v2610_v0 = vadd.f32 %v2609_v29, %v2523_v24 }
 0xbba   : > { %v2629_v57 = vadd.f32 %v2628_v48, %v2610_v0  ;;  %v2538_v0 = vpop.permute.xlu0 %2537 }
 0xbbb   : > { %v2630_v38 = vpop.f32.mrf.mxu2 }
 0xbbc   : > { %v2642_v43 = vmin.f32 %v2629_v57, 0.0  ;;  %vm2638_vm7 = vcmp.gt.f32.partialorder %v2629_v57, 0.0 }
 0xbbe   : > { %v2646_v21 = vmul.f32 1.442695, %v2642_v43 }
 0xbbf   : > { %v2611_v55 = vpop.f32.mrf.mxu1 }
 0xbc0   : > { %7784 = vpow2.f32 %v2646_v21  ;;  %v2612_v12 = vadd.f32 %v2611_v55, %v2528_v4 }
 0xbc2   : > { %v2631_v44 = vadd.f32 %v2630_v38, %v2612_v12 }
 0xbc3   : > { %v2633_v46 = vpop.f32.mrf.mxu2 }
 0xbc4   : > { %v2643_v24 = vmin.f32 %v2631_v44, 0.0  ;;  %vm2639_vm3 = vcmp.gt.f32.partialorder %v2631_v44, 0.0 }
 0xbc6   : > { %v7785_v22 = vpop.eup %7784  ;;  %v2648_v36 = vmul.f32 1.442695, %v2643_v24 }
 0xbc7   : > { %v2614_v11 = vpop.f32.mrf.mxu1  ;;  %v6576_v33 = vadd.f32 -1.0, %v7785_v22 }
 0xbc8   : > { %v2615_v15 = vadd.f32 %v2614_v11, %v2533_v6 }
 0xbc9   : > { %v2658_v34 = vsel %vm2638_vm7, %v2629_v57, %v6576_v33 }
 0xbca   : > { %v2634_v60 = vadd.f32 %v2633_v46, %v2615_v15  ;;  %2666 = vrot.lane.b32.xlu2 %v2658_v34, %s7853_s0 }
 0xbcb   : > { %v2635_v55 = vpop.f32.mrf.mxu2 }
 0xbcc   : > { %v2644_v48 = vmin.f32 %v2634_v60, 0.0  ;;  %vm2640_vm7 = vcmp.gt.f32.partialorder %v2634_v60, 0.0 }
 0xbce   : > { %v2650_v29 = vmul.f32 1.442695, %v2644_v48 }
 0xbcf   : > { %v2616_v43 = vpop.f32.mrf.mxu1 }
 0xbd0   : > { %v2617_v21 = vadd.f32 %v2616_v43, %v2538_v0  ;;  %7786 = vpow2.f32 %v2650_v29 }
 0xbd1   : > { %7788 = vpow2.f32 %v2648_v36 }
 0xbd2   : > { %v2636_v4 = vadd.f32 %v2635_v55, %v2617_v21 }
 0xbd4   : > { %v2645_v17 = vmin.f32 %v2636_v4, 0.0  ;;  %vm2641_vm13 = vcmp.gt.f32.partialorder %v2636_v4, 0.0 }
 0xbd6   : > { %v7787_v22 = vpop.eup %7786  ;;  %v2652_v38 = vmul.f32 1.442695, %v2645_v17 }
 0xbd7   : > { %v6578_v11 = vadd.f32 -1.0, %v7787_v22  ;;  %v7789_v6 = vpop.eup %7788 }
 0xbd8   : > { %7790 = vpow2.f32 %v2652_v38  ;;  %v6577_v57 = vadd.f32 -1.0, %v7789_v6 }
 0xbd9   : > { %v2660_v33 = vsel %vm2640_vm7, %v2634_v60, %v6578_v11  ;;  %vm3941_vm7 = vcmask 982016  }
 0xbda   : > { %2670 = vrot.lane.b32.xlu0 %v2660_v33, %s7853_s0  ;;  %v2659_v34 = vsel %vm2639_vm3, %v2631_v44, %v6577_v57 }
 0xbde   : > { %v7791_v12 = vpop.eup %7790 }
 0xbdf   : > { %v6579_v46 = vadd.f32 -1.0, %v7791_v12 }
 0xbe1   : > { %v2661_v15 = vsel %vm2641_vm13, %v2636_v4, %v6579_v46 }
 0xbe2   : > { %2672 = vrot.lane.b32.xlu1 %v2661_v15, %s7853_s0  ;;  %2668 = vrot.lane.b32.xlu0 %v2659_v34, %s7853_s0  ;;  %s10906_s0 = smov 124  }
 0xc24   : > { %v2667_v17 = vpop.permute.xlu2 %2666 }
 0xc25   : > { %v2678_v24 = vsel %vm2405_vm14, 0.0, %v2667_v17 }
 0xc26   : > { %v2682_v48 = vsel %vm2408_vm8, %v2678_v24, 0.0 }
 0xc27   : > { %v2694_v11 = vmul.f32 %v2682_v48, %v8793_v10  ;;  %v8902_v24 = vmul.f32 %v2682_v48, %v8838_v58 }
 0xc4c   : > { %v2671_v36 = vpop.permute.xlu0 %2670 }
 0xc4d   : > { %v2680_v60 = vsel %vm2405_vm14, 0.0, %v2671_v36 }
 0xc4e   : > { %v2684_v44 = vsel %vm2408_vm8, %v2680_v60, 0.0 }
 0xc4f   : > { %v2696_v46 = vmul.f32 %v2684_v44, %v8793_v10  ;;  %v2692_v15 = vmul.f32 %v2684_v44, %v8807_v16  ;;  %v2688_v36 = vmul.f32 %v2684_v44, %v8838_v58 }
 0xc54   : > { %v2673_v29 = vpop.permute.xlu1 %2672  ;;  %v2669_v0 = vpop.permute.xlu0 %2668 }
 0xc55   : > { %v2681_v43 = vsel %vm2405_vm14, 0.0, %v2673_v29  ;;  %v2679_v21 = vsel %vm2405_vm14, 0.0, %v2669_v0 }
 0xc56   : > { %v2685_v55 = vsel %vm2408_vm8, %v2681_v43, 0.0  ;;  %v2683_v4 = vsel %vm2408_vm8, %v2679_v21, 0.0  ;;  %v2690_v43 = vmul.f32 %v2682_v48, %v8807_v16 }
 0xc57   : > { %v7303_v22 = vpack.i.bf16 %v2685_v55, %v2684_v44  ;;  %v7288_v38 = vpack.i.bf16 %v2683_v4, %v2682_v48  ;;  %v2695_v33 = vmul.f32 %v2683_v4, %v8793_v10  ;;  %v2697_v57 = vmul.f32 %v2685_v55, %v8793_v10 }
 0xc58   : > { %v2693_v12 = vmul.f32 %v2685_v55, %v8807_v16  ;;  %v2691_v34 = vmul.f32 %v2683_v4, %v8807_v16  ;;  %v2689_v17 = vmul.f32 %v2685_v55, %v8838_v58  ;;  %v8905_v60 = vmul.f32 %v2683_v4, %v8838_v58 }
 0xc59   : > { %7304 = vrot.lane.b32.xlu1 %v7303_v22, %s10899_s23  ;;  %7289 = vrot.lane.b32.xlu0 %v7288_v38, %s10899_s23  ;;  %v7293_v6 = vpack.i.bf16 %v2695_v33, %v2694_v11  ;;  %v7308_v29 = vpack.i.bf16 %v2697_v57, %v2696_v46  ;;  %v2705_v33 = vmul.f32 %v2685_v55, %v8780_v3 }
 0xc5a   : > { %v7318_v0 = vpack.i.bf16 %v2693_v12, %v2692_v15  ;;  %v2831_v21 = vpack.c.bf16 %v2689_v17, %v2688_v36  ;;  %v2830_v10 = vpack.c.bf16 %v8905_v60, %v8902_v24  ;;  %v7298_v11 = vpack.i.bf16 %v2691_v34, %v2690_v43  ;;  %v2856_v24 = vld [vmem:[%s10691_s14 + $0x50] sm:$0xff]  ;;  %v2858_v60 = vld [vmem:[%s10691_s14 + $0x60] sm:$0xff] }
 0xc5b   : > { %7294 = vrot.lane.b32.xlu2 %v7293_v6, %s10906_s0  ;;  %v2704_v58 = vmul.f32 %v2684_v44, %v8780_v3  ;;  %v2703_v6 = vmul.f32 %v2683_v4, %v8780_v3  ;;  %v2699_v57 = vmul.f32 %v2683_v4, %v8795_v62  ;;  %v2702_v12 = vmul.f32 %v2682_v48, %v8780_v3 }
 0xc5c   : > { %v2698_v46 = vmul.f32 %v2682_v48, %v8795_v62  ;;  %v2701_v15 = vmul.f32 %v2685_v55, %v8795_v62  ;;  %v2700_v17 = vmul.f32 %v2684_v44, %v8795_v62  ;;  %v2707_v43 = vmul.f32 %v2683_v4, %v8812_v1 }
 0xc5d   : > { %v7338_v16 = vpack.i.bf16 %v2705_v33, %v2704_v58  ;;  %v7328_v34 = vpack.i.bf16 %v2703_v6, %v2702_v12  ;;  %v2708_v3 = vmul.f32 %v2684_v44, %v8812_v1 }
 0xc5e   : > { %v7333_v36 = vpack.i.bf16 %v2699_v57, %v2698_v46 }
 0xc61   : > { %7309 = vrot.lane.b32.xlu1 %v7308_v29, %s10906_s0  ;;  %7319 = vrot.lane.b32.xlu0 %v7318_v0, %s10896_s24  ;;  %v7343_v29 = vpack.i.bf16 %v2701_v15, %v2700_v17  ;;  %v2709_v0 = vmul.f32 %v2685_v55, %v8812_v1  ;;  %s10925_s0 = smov 94  }
 0xc63   : > { %7299 = vrot.lane.b32.xlu2 %v7298_v11, %s10896_s24  ;;  %v2706_v11 = vmul.f32 %v2682_v48, %v8812_v1  ;;  %v7358_v33 = vpack.i.bf16 %v2709_v0, %v2708_v3 }
 0xc65   : > { %v7353_v58 = vpack.i.bf16 %v2707_v43, %v2706_v11 }
 0xc69   : > { %7314 = vrot.lane.b32.xlu1 %v7303_v22, %s10897_s21  ;;  %7324 = vrot.lane.b32.xlu0 %v7288_v38, %s10897_s21 }
 0xc6b   : > { %7339 = vrot.lane.b32.xlu2 %v7338_v16, %s10900_s26 }
 0xc71   : > { %7329 = vrot.lane.b32.xlu1 %v7328_v34, %s10900_s26  ;;  %7334 = vrot.lane.b32.xlu0 %v7333_v36, %s10907_s25 }
 0xc73   : > { %7344 = vrot.lane.b32.xlu2 %v7343_v29, %s10907_s25  ;;  %s10930_s25 = smov 113  }
 0xc79   : > { %7359 = vrot.lane.b32.xlu1 %v7358_v33, %s10904_s1  ;;  %7354 = vrot.lane.b32.xlu0 %v7353_v58, %s10904_s1 }
 0xc7b   : > { %7349 = vrot.lane.b32.xlu2 %v7303_v22, %s10908_s20 }
 0xc81   : > { %7364 = vrot.lane.b32.xlu1 %v7288_v38, %s10908_s20  ;;  %s10912_s20 = smov 111  }
 0xcb5   : > { %v7295_v62 = vpop.permute.xlu2 %7294 }
 0xcb6   : > { %v7297_v16 = vunpack.i.h.bf16 %v7295_v62  ;;  %v7296_v6 = vunpack.i.l.bf16 %v7295_v62 }
 0xcb8   : > { %v2836_v55 = vpack.c.bf16 %v7297_v16, %v7296_v6 }
 0xcba   : > { %2940 = vrot.lane.b32.xlu0 %v2836_v55, %s10909_s19 }
 0xcbd   : > { %v7300_v4 = vpop.permute.xlu2 %7299 }
 0xcbe   : > { %v7302_v44 = vunpack.i.h.bf16 %v7300_v4  ;;  %v7301_v57 = vunpack.i.l.bf16 %v7300_v4 }
 0xcc0   : > { %v2834_v1 = vpack.c.bf16 %v7302_v44, %v7301_v57 }
 0xcc2   : > { %2936 = vrot.lane.b32.xlu0 %v2834_v1, %s10909_s19 }
 0xcc5   : > { %v7340_v48 = vpop.permute.xlu2 %7339 }
 0xcc6   : > { %v7342_v12 = vunpack.i.h.bf16 %v7340_v48  ;;  %v7341_v46 = vunpack.i.l.bf16 %v7340_v48 }
 0xcc8   : > { %v2843_v43 = vpack.c.bf16 %v7342_v12, %v7341_v46 }
 0xcca   : > { %2930 = vrot.lane.b32.xlu0 %v2831_v21, %s10909_s19 }
 0xccb   : > { %v7305_v22 = vpop.permute.xlu1 %7304  ;;  %v7290_v15 = vpop.permute.xlu0 %7289 }
 0xccc   : > { %v7307_v38 = vunpack.i.h.bf16 %v7305_v22  ;;  %v7306_v34 = vunpack.i.l.bf16 %v7305_v22  ;;  %v7292_v36 = vunpack.i.h.bf16 %v7290_v15  ;;  %v7291_v17 = vunpack.i.l.bf16 %v7290_v15 }
 0xccd   : > { %v7345_v22 = vpop.permute.xlu2 %7344 }
 0xcce   : > { %v2845_v29 = vpack.c.bf16 %v7307_v38, %v7306_v34  ;;  %v2844_v0 = vpack.c.bf16 %v7292_v36, %v7291_v17  ;;  %v7347_v15 = vunpack.i.h.bf16 %v7345_v22  ;;  %v7346_v38 = vunpack.i.l.bf16 %v7345_v22 }
 0xcd0   : > { %2956 = vrot.lane.b32.xlu1 %v2844_v0, %s10909_s19  ;;  %2958 = vrot.lane.b32.xlu2 %v2845_v29, %s10909_s19 }
 0xcd2   : > { %2954 = vrot.lane.b32.xlu0 %v2843_v43, %s10909_s19 }
 0xcd3   : > { %v7310_v3 = vpop.permute.xlu1 %7309  ;;  %v7320_v11 = vpop.permute.xlu0 %7319 }
 0xcd4   : > { %v7312_v21 = vunpack.i.h.bf16 %v7310_v3  ;;  %v7311_v33 = vunpack.i.l.bf16 %v7310_v3  ;;  %v7322_v58 = vunpack.i.h.bf16 %v7320_v11  ;;  %v7321_v62 = vunpack.i.l.bf16 %v7320_v11 }
 0xcd5   : > { %v2841_v3 = vpack.c.bf16 %v7347_v15, %v7346_v38 }
 0xcd6   : > { %v2837_v16 = vpack.c.bf16 %v7312_v21, %v7311_v33  ;;  %v2835_v6 = vpack.c.bf16 %v7322_v58, %v7321_v62 }
 0xcd8   : > { %2938 = vrot.lane.b32.xlu1 %v2835_v6, %s10909_s19  ;;  %2942 = vrot.lane.b32.xlu2 %v2837_v16, %s10909_s19 }
 0xcdb   : > { %v7315_v55 = vpop.permute.xlu1 %7314  ;;  %v7325_v4 = vpop.permute.xlu0 %7324 }
 0xcdc   : > { %v7317_v44 = vunpack.i.h.bf16 %v7315_v55  ;;  %v7316_v57 = vunpack.i.l.bf16 %v7315_v55  ;;  %v7327_v1 = vunpack.i.h.bf16 %v7325_v4  ;;  %v7326_v48 = vunpack.i.l.bf16 %v7325_v4 }
 0xcde   : > { %v2833_v12 = vpack.c.bf16 %v7317_v44, %v7316_v57  ;;  %v2832_v46 = vpack.c.bf16 %v7327_v1, %v7326_v48  ;;  %v7350_v57 = vpop.permute.xlu2 %7349 }
 0xcdf   : > { %v7352_v1 = vunpack.i.h.bf16 %v7350_v57  ;;  %v7351_v48 = vunpack.i.l.bf16 %v7350_v57 }
 0xce0   : > { %2932 = vrot.lane.b32.xlu1 %v2832_v46, %s10909_s19  ;;  %2934 = vrot.lane.b32.xlu2 %v2833_v12, %s10909_s19 }
 0xce1   : > { %v2839_v15 = vpack.c.bf16 %v7352_v1, %v7351_v48  ;;  %v3089_v1 = vld [vmem:[%s10691_s14 + $0x80] sm:$0xff] }
 0xce3   : > { %v7330_v34 = vpop.permute.xlu1 %7329  ;;  %v7335_v36 = vpop.permute.xlu0 %7334 }
 0xce4   : > { %v7332_v17 = vunpack.i.h.bf16 %v7330_v34  ;;  %v7331_v29 = vunpack.i.l.bf16 %v7330_v34  ;;  %v7337_v0 = vunpack.i.h.bf16 %v7335_v36  ;;  %v7336_v43 = vunpack.i.l.bf16 %v7335_v36  ;;  %v2859_v34 = vld [vmem:[%s10691_s14 + $0x68] sm:$0xff]  ;;  %v3092_v36 = vld [vmem:[%s10691_s14 + $0x98] sm:$0xff] }
 0xce6   : > { %v2842_v11 = vpack.c.bf16 %v7332_v17, %v7331_v29  ;;  %v2840_v21 = vpack.c.bf16 %v7337_v0, %v7336_v43  ;;  %v2857_v17 = vld [vmem:[%s10691_s14 + $0x58] sm:$0xff]  ;;  %v3094_v29 = vld [vmem:[%s10691_s14 + $0xa8] sm:$0xff]  ;;  %v3095_v0 = vld [vmem:[%s10691_s14 + $0xb0] sm:$0xff] }
 0xce7   : > { %v3093_v43 = vld [vmem:[%s10691_s14 + $0xa0] sm:$0xff] }
 0xce8   : > { %2952 = vrot.lane.b32.xlu2 %v2842_v11, %s10909_s19  ;;  %2950 = vrot.lane.b32.xlu1 %v2841_v3, %s10909_s19  ;;  %v3099_v3 = vld [vmem:[%s10691_s14 + $0xd0] sm:$0xff]  ;;  %v3100_v11 = vld [vmem:[%s10691_s14 + $0xd8] sm:$0xff] }
 0xce9   : > { %2948 = vrot.lane.b32.xlu0 %v2840_v21, %s10909_s19  ;;  %v3096_v21 = vld [vmem:[%s10691_s14 + $0xb8] sm:$0xff] }
 0xceb   : > { %v7360_v33 = vpop.permute.xlu1 %7359  ;;  %v7355_v58 = vpop.permute.xlu0 %7354 }
 0xcec   : > { %v7362_v62 = vunpack.i.h.bf16 %v7360_v33  ;;  %v7361_v16 = vunpack.i.l.bf16 %v7360_v33  ;;  %v7357_v6 = vunpack.i.h.bf16 %v7355_v58  ;;  %v7356_v55 = vunpack.i.l.bf16 %v7355_v58  ;;  %v3088_v33 = vld [vmem:[%s10691_s14 + $0x78] sm:$0xff]  ;;  %v3097_v58 = vld [vmem:[%s10691_s14 + $0xc0] sm:$0xff] }
 0xcee   : > { %v2847_v4 = vpack.c.bf16 %v7362_v62, %v7361_v16  ;;  %v2846_v44 = vpack.c.bf16 %v7357_v6, %v7356_v55  ;;  %v3087_v62 = vld [vmem:[%s10691_s14 + $0x70] sm:$0xff]  ;;  %v3101_v16 = vld [vmem:[%s10691_s14 + $0xe0] sm:$0xff]  ;;  %v3102_v6 = vld [vmem:[%s10691_s14 + $0xe8] sm:$0xff] }
 0xcef   : > { %v3098_v55 = vld [vmem:[%s10691_s14 + $0xc8] sm:$0xff] }
 0xcf0   : > { %2962 = vrot.lane.b32.xlu1 %v2847_v4, %s10909_s19  ;;  %2928 = vrot.lane.b32.xlu2 %v2830_v10, %s10909_s19  ;;  %v3091_v10 = vld [vmem:[%s10691_s14 + $0x90] sm:$0xff]  ;;  %v3090_v4 = vld [vmem:[%s10691_s14 + $0x88] sm:$0xff] }
 0xcf1   : > { %2960 = vrot.lane.b32.xlu0 %v2846_v44, %s10909_s19 }
 0xcf3   : > { %v7365_v12 = vpop.permute.xlu1 %7364 }
 0xcf4   : > { %v7367_v46 = vunpack.i.h.bf16 %v7365_v12  ;;  %v7366_v22 = vunpack.i.l.bf16 %v7365_v12 }
 0xcf6   : > { %v2838_v38 = vpack.c.bf16 %v7367_v46, %v7366_v22 }
 0xcf8   : > { %2944 = vrot.lane.b32.xlu1 %v2838_v38, %s10909_s19  ;;  %2946 = vrot.lane.b32.xlu2 %v2839_v15, %s10909_s19 }
 0xcf9   : > { %2877 = vperm.xlu0 %7165, %v2859_v34  }
 0xd00   : > { %2862 = vperm.xlu1 %7287, %v2856_v24   ;;  %2872 = vperm.xlu2 %7206, %v2858_v60  }
 0xd01   : > { %3125 = vperm.xlu0 %7165, %v3091_v10  }
 0xd08   : > { %3130 = vperm.xlu1 %7287, %v3092_v36   ;;  %2867 = vperm.xlu2 %7206, %v2857_v17   ;;  %v6582_v36 = vld [vmem:[%s10911_s6] sm:$0xf]  ;;  %v6992_v17 = vld [vmem:[%s10911_s6 + $0x8] sm:$0xf0] }
 0xd09   : > { %3140 = vperm.xlu0 %7165, %v3094_v29   ;;  %v6583_v29 = vor.u32 %v6992_v17, %v6582_v36 }
 0xd10   : > { %3145 = vperm.xlu1 %7287, %v3095_v0   ;;  %3135 = vperm.xlu2 %7206, %v3093_v43  }
 0xd11   : > { %3165 = vperm.xlu0 %7165, %v3099_v3  }
 0xd18   : > { %3170 = vperm.xlu1 %7287, %v3100_v11   ;;  %3150 = vperm.xlu2 %7206, %v3096_v21   ;;  %v6590_v11 = vld [vmem:[%s10911_s6 + $0x8] sm:$0xf]  ;;  %v6993_v21 = vld [vmem:[%s10911_s6 + $0x10] sm:$0xf0] }
 0xd19   : > { %3110 = vperm.xlu0 %7165, %v3088_v33   ;;  %v6591_v33 = vor.u32 %v6993_v21, %v6590_v11 }
 0xd20   : > { %3155 = vperm.xlu1 %7287, %v3097_v58   ;;  %3105 = vperm.xlu2 %7206, %v3087_v62   ;;  %v6991_v58 = vld [vmem:[%s10911_s6 + $0x4] sm:$0xf]  ;;  %v6584_v62 = vld [vmem:[%s10911_s6 + $0xc] sm:$0xf0] }
 0xd21   : > { %3175 = vperm.xlu0 %7165, %v3101_v16  }
 0xd28   : > { %3180 = vperm.xlu1 %7287, %v3102_v6   ;;  %3160 = vperm.xlu2 %7206, %v3098_v55   ;;  %v6587_v6 = vor.u32 %v6991_v58, %v6584_v62 }
 0xd29   : > { %3120 = vperm.xlu0 %7165, %v3090_v4   ;;  %v6594_v4 = vld [vmem:[%s10911_s6 + $0x18] sm:$0xf] }
 0xd2a   : > { %v2959_v44 = vpop.permute.xlu2 %2958 }
 0xd2b   : > { %3007 = vmatpush.bf16.msrb.mxu0 %v2959_v44  ;;  %v6995_v44 = vld [vmem:[%s10911_s6 + $0x20] sm:$0xf0] }
 0xd2c   : > { %v2941_v57 = vpop.permute.xlu0 %2940 }
 0xd30   : > { %3511 = vrot.lane.b32.xlu1 %v8756_v7, %s10910_s4  ;;  %3115 = vperm.xlu2 %7206, %v3089_v1  }
 0xd31   : > { %3509 = vrot.lane.b32.xlu0 %v8754_v13, %s10910_s4 }
 0xd32   : > { %v2943_v48 = vpop.permute.xlu2 %2942 }
 0xd33   : > { %2988 = vmatpush.bf16.msrb.mxu3 %v2943_v48 }
 0xd34   : > { %v2937_v12 = vpop.permute.xlu0 %2936 }
 0xd37   : > { %2989 = vmatpush.bf16.msrb.mxu3 %v2941_v57  ;;  %v6595_v57 = vor.u32 %v6995_v44, %v6594_v4 }
 0xd3a   : > { %v2935_v22 = vpop.permute.xlu2 %2934 }
 0xd3c   : > { %v2931_v46 = vpop.permute.xlu0 %2930 }
 0xd42   : > { %v2957_v15 = vpop.permute.xlu1 %2956  ;;  %v2953_v34 = vpop.permute.xlu2 %2952 }
 0xd43   : > { %3008 = vmatpush.bf16.msrb.mxu0 %v2957_v15  ;;  %v6994_v15 = vld [vmem:[%s10911_s6 + $0x1c] sm:$0xf] }
 0xd44   : > { %v2955_v38 = vpop.permute.xlu0 %2954 }
 0xd47   : > { %3009 = vmatpush.bf16.msrb.mxu0 %v2955_v38  ;;  %v6596_v38 = vld [vmem:[%s10911_s6 + $0x24] sm:$0xf0] }
 0xd4a   : > { %v2939_v24 = vpop.permute.xlu1 %2938  ;;  %v2929_v60 = vpop.permute.xlu2 %2928 }
 0xd4b   : > { %2990 = vmatpush.bf16.msrb.mxu3 %v2939_v24  ;;  %3010 = vmatpush.bf16.msrb.mxu0 %v2953_v34  ;;  %v6599_v24 = vor.u32 %v6994_v15, %v6596_v38 }
 0xd4f   : > { %2991 = vmatpush.bf16.msrb.mxu3 %v2937_v12  ;;  %v6602_v12 = vld [vmem:[%s10911_s6 + $0x20] sm:$0xf] }
 0xd52   : > { %v2933_v7 = vpop.permute.xlu1 %2932  ;;  %v2947_v0 = vpop.permute.xlu2 %2946 }
 0xd53   : > { %2992 = vmatpush.bf16.msrb.mxu3 %v2935_v22 }
 0xd57   : > { %2993 = vmatpush.bf16.msrb.mxu3 %v2933_v7 }
 0xd5a   : > { %v2951_v13 = vpop.permute.xlu1 %2950 }
 0xd5b   : > { %v2949_v10 = vpop.permute.xlu0 %2948  ;;  %2994 = vmatpush.bf16.msrb.mxu3 %v2931_v46  ;;  %3011 = vmatpush.bf16.msrb.mxu0 %v2951_v13  ;;  %v6996_v46 = vld [vmem:[%s10911_s6 + $0x28] sm:$0xf0] }
 0xd5c   : > { %v6603_v22 = vor.u32 %v6996_v46, %v6602_v12 }
 0xd5f   : > { %2995 = vmatpush.bf16.msrb.mxu3 %v2929_v60  ;;  %3012 = vmatpush.bf16.msrb.mxu0 %v2949_v10 }
 0xd62   : > { %v2963_v43 = vpop.permute.xlu1 %2962  ;;  %2996 = vmatmul.bf16.vlgmr.msrb.gmra.mxu3 %v6583_v29 }
 0xd63   : > { %v2961_v3 = vpop.permute.xlu0 %2960  ;;  %3013 = vmatpush.bf16.msrb.mxu0 %v2947_v0  ;;  %3032 = vmatpush.bf16.msra.mxu2 %v2963_v43 }
 0xd67   : > { %3033 = vmatpush.bf16.msra.mxu2 %v2961_v3 }
 0xd6a   : > { %v2945_v16 = vpop.permute.xlu1 %2944  ;;  %6604 = vmatmul.msk.bf16.vlgmr.msra.gmra.mxu2 %vm643_vm4, %v6591_v33 }
 0xd6b   : > { %v9039_v55 = vpop.permute.xlu0 %2877  ;;  %3014 = vmatpush.bf16.msrb.mxu0 %v2945_v16 }
 0xd6e   : > { %3015 = vmatmul.bf16.vlgmr.msrb.gmra.mxu0 %v6587_v6 }
 0xd72   : > { %v2863_v1 = vpop.permute.xlu1 %2862  ;;  %3001 = vmatmul.bf16.gmra.mxu3 %v6595_v57 }
 0xd73   : > { %v9047_v48 = vpop.permute.xlu0 %3125 }
 0xd7a   : > { %v9061_v34 = vpop.permute.xlu1 %3130  ;;  %6605 = vmatmul.msk.bf16.gmra.mxu2 %vm643_vm4, %v6603_v22 }
 0xd7b   : > { %v9064_v7 = vpop.permute.xlu0 %3140 }
 0xd7e   : > { %3020 = vmatmul.bf16.gmra.mxu0 %v6599_v24 }
 0xd82   : > { %v9066_v60 = vpop.permute.xlu1 %3145 }
 0xd83   : > { %v9068_v13 = vpop.permute.xlu0 %3165 }
 0xd8a   : > { %v9070_v10 = vpop.permute.xlu1 %3170 }
 0xd8b   : > { %v9072_v36 = vpop.permute.xlu0 %3110 }
 0xd92   : > { %v9074_v17 = vpop.permute.xlu1 %3155 }
 0xd93   : > { %v9076_v29 = vpop.permute.xlu0 %3175 }
 0xd9a   : > { %v9078_v0 = vpop.permute.xlu1 %3180 }
 0xd9b   : > { %v9080_v43 = vpop.permute.xlu0 %3120 }
 0xda2   : > { %v3512_v3 = vpop.permute.xlu1 %3511 }
 0xda3   : > { %v3524_v11 = vsel %vm1869_vm9, 0.0, %v3512_v3  ;;  %v3510_v21 = vpop.permute.xlu0 %3509 }
 0xda4   : > { %v9084_v33 = vsel %vm1871_vm1, %v3524_v11, 0.0  ;;  %v3523_v58 = vsel %vm1869_vm9, 0.0, %v3510_v21 }
 0xda5   : > { %v9088_v62 = vsel %vm1871_vm1, %v3523_v58, 0.0  ;;  %v3566_v16 = vmul.f32 %v9084_v33, %v8579_v39  ;;  %v3548_v6 = vmul.f32 %v9084_v33, %v8599_v63  ;;  %v3542_v15 = vmul.f32 %v9084_v33, %v8590_v59  ;;  %v2873_v58 = vpop.permute.xlu2 %2872 }
 0xda6   : > { %v7368_v4 = vpack.i.bf16 %v9084_v33, %v9088_v62  ;;  %v3565_v44 = vmul.f32 %v9088_v62, %v8579_v39  ;;  %v3547_v57 = vmul.f32 %v9088_v62, %v8599_v63  ;;  %v3541_v22 = vmul.f32 %v9088_v62, %v8590_v59 }
 0xda7   : > { %v3553_v38 = vmul.f32 %v9088_v62, %v8592_v51  ;;  %v3554_v24 = vmul.f32 %v9084_v33, %v8592_v51  ;;  %v7393_v21 = vpack.i.bf16 %v9088_v62, %v9084_v33 }
 0xda8   : > { %7369 = vrot.lane.b32.xlu2 %v7368_v4, %s10897_s21  ;;  %v7378_v12 = vpack.i.bf16 %v3565_v44, %v3566_v16  ;;  %v7373_v46 = vpack.i.bf16 %v3548_v6, %v3547_v57  ;;  %v7388_v3 = vpack.i.bf16 %v3541_v22, %v3542_v15 }
 0xda9   : > { %v7383_v11 = vpack.i.bf16 %v3554_v24, %v3553_v38 }
 0xdaa   : > { %7379 = vrot.lane.b32.xlu1 %v7378_v12, %s10894_s22  ;;  %7374 = vrot.lane.b32.xlu0 %v7373_v46, %s10900_s26 }
 0xdad   : > { %v2868_v16 = vpop.permute.xlu2 %2867 }
 0xdb0   : > { %7389 = vrot.lane.b32.xlu2 %v7388_v3, %s10896_s24 }
 0xdb2   : > { %7384 = vrot.lane.b32.xlu1 %v7383_v11, %s10904_s1  ;;  %7399 = vrot.lane.b32.xlu0 %v7368_v4, %s10912_s20 }
 0xdb5   : > { %v9117_v6 = vpop.permute.xlu2 %3135 }
 0xdb8   : > { %7394 = vrot.lane.b32.xlu2 %v7393_v21, %s10899_s23 }
 0xdbd   : > { %v9119_v44 = vpop.permute.xlu2 %3150 }
 0xdc5   : > { %v9121_v12 = vpop.permute.xlu2 %3105 }
 0xdcd   : > { %v9123_v38 = vpop.permute.xlu2 %3160 }
 0xdd5   : > { %v9125_v21 = vpop.permute.xlu2 %3115 }
 0xde5   : > { %v2997_v57 = vpop.f32.mrf.mxu3 }
 0xde6   : > { %v2998_v42 = vadd.f32 %v2997_v57, %v2863_v1 }
 0xdeb   : > { %v3016_v46 = vpop.f32.mrf.mxu0 }
 0xdec   : > { %v3017_v25 = vadd.f32 %v3016_v46, %v2998_v42 }
 0xded   : > { %v2999_v22 = vpop.f32.mrf.mxu3  ;;  %v3035_v15 = vpop.f32.mrf.mxu2 }
 0xdee   : > { %v3000_v11 = vadd.f32 %v2999_v22, %v2868_v16  ;;  %v3036_v30 = vadd.f32 %v3035_v15, %v3017_v25 }
 0xdf0   : > { %v3049_v53 = vmin.f32 %v3036_v30, 0.0  ;;  %vm3045_vm8 = vcmp.gt.f32.partialorder %v3036_v30, 0.0 }
 0xdf3   : > { %v3018_v4 = vpop.f32.mrf.mxu0 }
 0xdf4   : > { %v3019_v35 = vadd.f32 %v3018_v4, %v3000_v11 }
 0xdf5   : > { %v3002_v24 = vpop.f32.mrf.mxu3  ;;  %v3037_v3 = vpop.f32.mrf.mxu2 }
 0xdf6   : > { %v3003_v27 = vadd.f32 %v3002_v24, %v2873_v58  ;;  %v3038_v40 = vadd.f32 %v3037_v3, %v3019_v35 }
 0xdf8   : > { %v3050_v28 = vmin.f32 %v3038_v40, 0.0  ;;  %vm3046_vm14 = vcmp.gt.f32.partialorder %v3038_v40, 0.0 }
 0xdfa   : > { %v3055_v46 = vmul.f32 1.442695, %v3050_v28 }
 0xdfb   : > { %v3021_v45 = vpop.f32.mrf.mxu0 }
 0xdfc   : > { %v3022_v23 = vadd.f32 %v3021_v45, %v3003_v27  ;;  %v3053_v45 = vmul.f32 1.442695, %v3049_v53 }
 0xdfd   : > { %v3040_v20 = vpop.f32.mrf.mxu2  ;;  %v3004_v26 = vpop.f32.mrf.mxu3 }
 0xdfe   : > { %v3041_v37 = vadd.f32 %v3040_v20, %v3022_v23  ;;  %v3005_v52 = vadd.f32 %v3004_v26, %v9039_v55 }
 0xe00   : > { %v3051_v32 = vmin.f32 %v3041_v37, 0.0  ;;  %vm3047_vm13 = vcmp.gt.f32.partialorder %v3041_v37, 0.0 }
 0xe02   : > { %v7370_v49 = vpop.permute.xlu2 %7369  ;;  %v3057_v22 = vmul.f32 1.442695, %v3051_v32 }
 0xe03   : > { %v7372_v16 = vunpack.i.h.bf16 %v7370_v49  ;;  %v7371_v1 = vunpack.i.l.bf16 %v7370_v49  ;;  %v3023_v57 = vpop.f32.mrf.mxu0 }
 0xe04   : > { %v3024_v4 = vadd.f32 %v3023_v57, %v3005_v52  ;;  %7792 = vpow2.f32 %v3057_v22  ;;  %v6998_v57 = vld [vmem:[%s10914_s7 + $0x8] sm:$0xff] }
 0xe05   : > { %v3753_v58 = vpack.c.bf16 %v7372_v16, %v7371_v1  ;;  %v3042_v42 = vpop.f32.mrf.mxu2  ;;  %7794 = vpow2.f32 %v3055_v46  ;;  %v6997_v1 = vld [vmem:[%s10914_s7] sm:$0xff]  ;;  %v7002_v22 = vld [vmem:[%s10914_s7 + $0x28] sm:$0xff] }
 0xe06   : > { %v3043_v27 = vadd.f32 %v3042_v42, %v3024_v4  ;;  %7796 = vpow2.f32 %v3053_v45  ;;  %v7003_v4 = vld [vmem:[%s10914_s7 + $0x30] sm:$0xff]  ;;  %v7005_v42 = vld [vmem:[%s10692_s15] sm:$0xff] }
 0xe07   : > { %3858 = vrot.lane.b32.xlu2 %v3753_v58, %s10913_s27  ;;  %v7004_v58 = vld [vmem:[%s10914_s7 + $0x38] sm:$0xff]  ;;  %3387 = vmatpush.bf16.msra.mxu0 %v7005_v42 }
 0xe08   : > { %v3052_v23 = vmin.f32 %v3043_v27, 0.0  ;;  %vm3048_vm3 = vcmp.gt.f32.partialorder %v3043_v27, 0.0 }
 0xe0a   : > { %v3059_v25 = vmul.f32 1.442695, %v3052_v23  ;;  %v7793_v26 = vpop.eup %7792 }
 0xe0b   : > { %v7795_v35 = vpop.eup %7794  ;;  %v6608_v49 = vadd.f32 -1.0, %v7793_v26 }
 0xe0c   : > { %7798 = vpow2.f32 %v3059_v25  ;;  %v7797_v20 = vpop.eup %7796  ;;  %v6607_v32 = vadd.f32 -1.0, %v7795_v35 }
 0xe0d   : > { %v6606_v28 = vadd.f32 -1.0, %v7797_v20  ;;  %v3067_v15 = vsel %vm3047_vm13, %v3041_v37, %v6608_v49  ;;  %v6999_v37 = vld [vmem:[%s10914_s7 + $0x10] sm:$0xff] }
 0xe0e   : > { %v3066_v3 = vsel %vm3046_vm14, %v3038_v40, %v6607_v32  ;;  %v7001_v40 = vld [vmem:[%s10914_s7 + $0x20] sm:$0xff] }
 0xe0f   : > { %v3065_v11 = vsel %vm3045_vm8, %v3036_v30, %v6606_v28  ;;  %v7000_v30 = vld [vmem:[%s10914_s7 + $0x18] sm:$0xff] }
 0xe10   : > { %v3085_v16 = vpack.c.bf16 %v3066_v3, %v3065_v11 }
 0xe12   : > { %v7799_v55 = vpop.eup %7798 }
 0xe13   : > { %v6609_v52 = vadd.f32 -1.0, %v7799_v55  ;;  %v7006_v55 = vld [vmem:[%s10692_s15 + $0x8] sm:$0xff] }
 0xe14   : > { %3346 = vmatpush.bf16.msra.mxu3 %v7006_v55 }
 0xe15   : > { %v3068_v53 = vsel %vm3048_vm3, %v3043_v27, %v6609_v52 }
 0xe16   : > { %v3086_v24 = vpack.c.bf16 %v3068_v53, %v3067_v15 }
 0xe18   : > { %3253 = vmatpush.bf16.msrb.mxu1 %v3086_v24 }
 0xe1c   : > { %3254 = vmatpush.bf16.msrb.mxu1 %v3085_v16 }
 0xe1f   : > { %6642 = vmatmul.msk.bf16.vlgmr.msrb.gmra.mxu1 %vm643_vm4, %v6997_v1 }
 0xe2f   : > { %6643 = vmatmul.msk.bf16.gmra.mxu1 %vm643_vm4, %v6998_v57 }
 0xe3f   : > { %6644 = vmatmul.msk.bf16.gmra.mxu1 %vm643_vm4, %v6999_v37 }
 0xe4f   : > { %6645 = vmatmul.msk.bf16.gmra.mxu1 %vm643_vm4, %v7000_v30 }
 0xe5f   : > { %6646 = vmatmul.msk.bf16.gmra.mxu1 %vm643_vm4, %v7001_v40 }
 0xe6f   : > { %6647 = vmatmul.msk.bf16.gmra.mxu1 %vm643_vm4, %v7002_v22 }
 0xe7f   : > { %6648 = vmatmul.msk.bf16.gmra.mxu1 %vm643_vm4, %v7003_v4 }
 0xe8f   : > { %6649 = vmatmul.msk.bf16.gmra.mxu1 %vm643_vm4, %v7004_v58 }
 0xe9c   : > { %v3256_v46 = vpop.f32.mrf.mxu1 }
 0xe9d   : > { %v3257_v27 = vadd.f32 %v3256_v46, %v9121_v12 }
 0xe9f   : > { %v3296_v23 = vpack.c.bf16 %v3257_v27, %v3257_v27 }
 0xea1   : > { %v3362_v35 = vunpack.c.l.b16 %v3296_v23 }
 0xea4   : > { %v3258_v45 = vpop.f32.mrf.mxu1 }
 0xea5   : > { %v3259_v25 = vadd.f32 %v3258_v45, %v9072_v36 }
 0xea7   : > { %v3297_v26 = vpack.c.bf16 %v3259_v25, %v3259_v25 }
 0xea9   : > { %v3363_v20 = vunpack.c.l.b16 %v3297_v26 }
 0xeab   : > { %v3366_v49 = vpack.c.b16 %v3363_v20, %v3362_v35 }
 0xeac   : > { %v3261_v32 = vpop.f32.mrf.mxu1 }
 0xead   : > { %6662 = vmatmul.msk.bf16.vlgmr.msra.gmra.mxu0 %vm1869_vm9, %v3366_v49  ;;  %v3262_v52 = vadd.f32 %v3261_v32, %v9125_v21 }
 0xeaf   : > { %v3298_v12 = vpack.c.bf16 %v3262_v52, %v3262_v52 }
 0xeb1   : > { %v3364_v36 = vunpack.c.l.b16 %v3298_v12 }
 0xeb4   : > { %v3263_v28 = vpop.f32.mrf.mxu1 }
 0xeb5   : > { %v3264_v15 = vadd.f32 %v3263_v28, %v9080_v43  ;;  %v7007_v43 = vld [vmem:[%s10692_s15 + $0x10] sm:$0xff] }
 0xeb6   : > { %3431 = vmatpush.bf16.msrb.mxu2 %v7007_v43 }
 0xeb7   : > { %v3299_v53 = vpack.c.bf16 %v3264_v15, %v3264_v15 }
 0xeb9   : > { %v3365_v24 = vunpack.c.l.b16 %v3299_v53 }
 0xebb   : > { %v3367_v3 = vpack.c.b16 %v3365_v24, %v3364_v36 }
 0xebc   : > { %v3266_v11 = vpop.f32.mrf.mxu1 }
 0xebd   : > { %6663 = vmatmul.msk.bf16.gmra.mxu0 %vm1869_vm9, %v3367_v3  ;;  %v3267_v16 = vadd.f32 %v3266_v11, %v9047_v48 }
 0xebf   : > { %v3300_v57 = vpack.c.bf16 %v3267_v16, %v3267_v16 }
 0xec1   : > { %v3321_v40 = vunpack.c.l.b16 %v3300_v57 }
 0xec4   : > { %v3268_v1 = vpop.f32.mrf.mxu1 }
 0xec5   : > { %v3269_v37 = vadd.f32 %v3268_v1, %v9061_v34 }
 0xec7   : > { %v3301_v30 = vpack.c.bf16 %v3269_v37, %v3269_v37 }
 0xec9   : > { %v3322_v21 = vunpack.c.l.b16 %v3301_v30 }
 0xecb   : > { %v3325_v22 = vpack.c.b16 %v3322_v21, %v3321_v40 }
 0xecc   : > { %v3271_v4 = vpop.f32.mrf.mxu1 }
 0xecd   : > { %6656 = vmatmul.msk.bf16.vlgmr.msra.gmra.mxu3 %vm1869_vm9, %v3325_v22  ;;  %v3272_v58 = vadd.f32 %v3271_v4, %v9117_v6 }
 0xecf   : > { %v3302_v48 = vpack.c.bf16 %v3272_v58, %v3272_v58 }
 0xed1   : > { %v3323_v34 = vunpack.c.l.b16 %v3302_v48 }
 0xed4   : > { %v3273_v42 = vpop.f32.mrf.mxu1 }
 0xed5   : > { %v3274_v46 = vadd.f32 %v3273_v42, %v9064_v7  ;;  %v7008_v7 = vld [vmem:[%s10692_s15 + $0x18] sm:$0xff] }
 0xed6   : > { %3479 = vmatpush.bf16.msrb.mxu3 %v7008_v7 }
 0xed7   : > { %v3303_v27 = vpack.c.bf16 %v3274_v46, %v3274_v46 }
 0xed9   : > { %v3324_v45 = vunpack.c.l.b16 %v3303_v27 }
 0xedb   : > { %v3326_v23 = vpack.c.b16 %v3324_v45, %v3323_v34 }
 0xedc   : > { %v3276_v25 = vpop.f32.mrf.mxu1 }
 0xedd   : > { %6657 = vmatmul.msk.bf16.gmra.mxu3 %vm1869_vm9, %v3326_v23  ;;  %v3277_v26 = vadd.f32 %v3276_v25, %v9066_v60 }
 0xedf   : > { %v3304_v20 = vpack.c.bf16 %v3277_v26, %v3277_v26 }
 0xee1   : > { %v3406_v32 = vunpack.c.l.b16 %v3304_v20 }
 0xee4   : > { %v3278_v35 = vpop.f32.mrf.mxu1 }
 0xee5   : > { %v3279_v49 = vadd.f32 %v3278_v35, %v9119_v44 }
 0xee7   : > { %v3305_v55 = vpack.c.bf16 %v3279_v49, %v3279_v49 }
 0xee9   : > { %v3407_v6 = vunpack.c.l.b16 %v3305_v55 }
 0xeeb   : > { %v3410_v52 = vpack.c.b16 %v3407_v6, %v3406_v32 }
 0xeec   : > { %v3281_v28 = vpop.f32.mrf.mxu1 }
 0xeed   : > { %6670 = vmatmul.msk.bf16.vlgmr.msrb.gmra.mxu2 %vm1869_vm9, %v3410_v52  ;;  %v3282_v12 = vadd.f32 %v3281_v28, %v9074_v17 }
 0xeef   : > { %v3306_v60 = vpack.c.bf16 %v3282_v12, %v3282_v12 }
 0xef1   : > { %v3408_v44 = vunpack.c.l.b16 %v3306_v60 }
 0xef4   : > { %v3283_v15 = vpop.f32.mrf.mxu1 }
 0xef5   : > { %v3284_v53 = vadd.f32 %v3283_v15, %v9123_v38 }
 0xef7   : > { %v3307_v36 = vpack.c.bf16 %v3284_v53, %v3284_v53 }
 0xef9   : > { %v3409_v24 = vunpack.c.l.b16 %v3307_v36 }
 0xefb   : > { %v3411_v3 = vpack.c.b16 %v3409_v24, %v3408_v44 }
 0xefc   : > { %v3286_v11 = vpop.f32.mrf.mxu1 }
 0xefd   : > { %6671 = vmatmul.msk.bf16.gmra.mxu2 %vm1869_vm9, %v3411_v3  ;;  %v3287_v16 = vadd.f32 %v3286_v11, %v9068_v13 }
 0xeff   : > { %v3308_v57 = vpack.c.bf16 %v3287_v16, %v3287_v16 }
 0xf01   : > { %v3454_v40 = vunpack.c.l.b16 %v3308_v57 }
 0xf04   : > { %v3288_v1 = vpop.f32.mrf.mxu1 }
 0xf05   : > { %v3289_v37 = vadd.f32 %v3288_v1, %v9070_v10  ;;  %v9201_v1 = vpop.permute.xlu2 %7389 }
 0xf07   : > { %v3309_v30 = vpack.c.bf16 %v3289_v37, %v3289_v37 }
 0xf09   : > { %v3455_v17 = vunpack.c.l.b16 %v3309_v30  ;;  %v9207_v30 = vpop.permute.xlu1 %7379 }
 0xf0b   : > { %v3458_v21 = vpack.c.b16 %v3455_v17, %v3454_v40 }
 0xf0c   : > { %v3291_v22 = vpop.f32.mrf.mxu1 }
 0xf0d   : > { %6678 = vmatmul.msk.bf16.vlgmr.msrb.gmra.mxu3 %vm1869_vm9, %v3458_v21  ;;  %v3292_v38 = vadd.f32 %v3291_v22, %v9076_v29  ;;  %v9203_v57 = vpop.permute.xlu2 %7394 }
 0xf0f   : > { %v3310_v4 = vpack.c.bf16 %v3292_v38, %v3292_v38  ;;  %v3560_v38 = vmul.f32 %v9084_v33, %v8582_v56 }
 0xf11   : > { %v3456_v48 = vunpack.c.l.b16 %v3310_v4  ;;  %v7385_v4 = vpop.permute.xlu1 %7384 }
 0xf14   : > { %v3293_v43 = vpop.f32.mrf.mxu1 }
 0xf15   : > { %v3294_v58 = vadd.f32 %v3293_v43, %v9078_v0  ;;  %v9205_v37 = vpop.permute.xlu2 %3858 }
 0xf17   : > { %v3311_v42 = vpack.c.bf16 %v3294_v58, %v3294_v58 }
 0xf19   : > { %v3457_v13 = vunpack.c.l.b16 %v3311_v42 }
 0xf1b   : > { %v3459_v46 = vpack.c.b16 %v3457_v13, %v3456_v48 }
 0xf1d   : > { %6679 = vmatmul.msk.bf16.gmra.mxu3 %vm1869_vm9, %v3459_v46  ;;  %v3559_v46 = vmul.f32 %v9088_v62, %v8582_v56 }
 0xf2a   : > { %v3389_v45 = vpop.f32.mrf.mxu0 }
 0xf32   : > { %v3391_v35 = vpop.f32.mrf.mxu0 }
 0xf3a   : > { %v3394_v7 = vpop.f32.mrf.mxu0 }
 0xf42   : > { %v3396_v36 = vpop.f32.mrf.mxu0 }
 0xf50   : > { %v3348_v10 = vpop.f32.mrf.mxu3 }
 0xf51   : > { %v3390_v26 = vadd.f32 %v3389_v45, %v3348_v10 }
 0xf58   : > { %v3350_v27 = vpop.f32.mrf.mxu3 }
 0xf59   : > { %v3392_v0 = vadd.f32 %v3391_v35, %v3350_v27 }
 0xf60   : > { %v3353_v34 = vpop.f32.mrf.mxu3 }
 0xf61   : > { %v3395_v12 = vadd.f32 %v3394_v7, %v3353_v34 }
 0xf68   : > { %v3355_v25 = vpop.f32.mrf.mxu3 }
 0xf69   : > { %v3397_v24 = vadd.f32 %v3396_v36, %v3355_v25 }
 0xf70   : > { %v3433_v23 = vpop.f32.mrf.mxu2 }
 0xf71   : > { %v3443_v20 = vadd.f32 %v3433_v23, %v3390_v26 }
 0xf78   : > { %v3435_v29 = vpop.f32.mrf.mxu2 }
 0xf79   : > { %v3444_v32 = vadd.f32 %v3435_v29, %v3392_v0 }
 0xf80   : > { %v3438_v28 = vpop.f32.mrf.mxu2 }
 0xf81   : > { %v3445_v15 = vadd.f32 %v3438_v28, %v3395_v12 }
 0xf88   : > { %v3440_v44 = vpop.f32.mrf.mxu2 }
 0xf89   : > { %v3446_v3 = vadd.f32 %v3440_v44, %v3397_v24 }
 0xf90   : > { %v3481_v49 = vpop.f32.mrf.mxu3 }
 0xf91   : > { %v3491_v55 = vadd.f32 %v3481_v49, %v3443_v20 }
 0xf93   : > { %3501 = vrot.lane.b32.xlu1 %v3491_v55, %s10910_s4 }
 0xf98   : > { %v3483_v6 = vpop.f32.mrf.mxu3 }
 0xf99   : > { %v3492_v52 = vadd.f32 %v3483_v6, %v3444_v32  ;;  %v7375_v32 = vpop.permute.xlu0 %7374 }
 0xf9b   : > { %3503 = vrot.lane.b32.xlu2 %v3492_v52, %s10910_s4 }
 0xfa0   : > { %v3486_v60 = vpop.f32.mrf.mxu3 }
 0xfa1   : > { %v3493_v53 = vadd.f32 %v3486_v60, %v3445_v15  ;;  %v9255_v60 = vpop.permute.xlu0 %7399 }
 0xfa3   : > { %3505 = vrot.lane.b32.xlu2 %v3493_v53, %s10910_s4 }
 0xfa8   : > { %v3488_v11 = vpop.f32.mrf.mxu3 }
 0xfa9   : > { %v3494_v16 = vadd.f32 %v3488_v11, %v3446_v3 }
 0xfab   : > { %3507 = vrot.lane.b32.xlu0 %v3494_v16, %s10910_s4 }
 0xff5   : > { %v3504_v40 = vpop.permute.xlu2 %3503 }
 0xff6   : > { %v3520_v17 = vsel %vm1869_vm9, 0.0, %v3504_v40  ;;  %v7377_v40 = vunpack.i.h.bf16 %v7375_v32 }
 0xff7   : > { %v9211_v21 = vsel %vm1871_vm1, %v3520_v17, 0.0  ;;  %v7376_v17 = vunpack.i.l.bf16 %v7375_v32 }
 0xff8   : > { %v3556_v22 = vmul.f32 %v9211_v21, %v8582_v56  ;;  %v3538_v23 = vmul.f32 %v9211_v21, %v8590_v59  ;;  %v9242_v0 = vmul.f32 %v9211_v21, %v8626_v31  ;;  %v3562_v28 = vmul.f32 %v9211_v21, %v8579_v39 }
 0xffa   : > { %v7413_v43 = vpack.i.bf16 %v3560_v38, %v3556_v22  ;;  %v7381_v38 = vunpack.i.l.bf16 %v9207_v30 }
 0xffc   : > { %7414 = vrot.lane.b32.xlu2 %v7413_v43, %s10895_s2 }
 0xffd   : > { %v3506_v58 = vpop.permute.xlu2 %3505 }
 0xffe   : > { %v3521_v42 = vsel %vm1869_vm9, 0.0, %v3506_v58  ;;  %v3760_v58 = vpack.c.bf16 %v7377_v40, %v7376_v17 }
 0xfff   : > { %v9220_v48 = vsel %vm1871_vm1, %v3521_v42, 0.0 }
0x1000   : > { %v3557_v13 = vmul.f32 %v9220_v48, %v8582_v56  ;;  %v3545_v20 = vmul.f32 %v9220_v48, %v8599_v63  ;;  %v3551_v53 = vmul.f32 %v9220_v48, %v8592_v51  ;;  %v3539_v32 = vmul.f32 %v9220_v48, %v8590_v59 }
0x1002   : > { %v7433_v10 = vpack.i.bf16 %v3557_v13, %v3559_v46  ;;  %v3778_v13 = vpack.c.bf16 %v7381_v38, %v7381_v38  ;;  %v7387_v46 = vunpack.i.h.bf16 %v7385_v4 }
0x1004   : > { %7434 = vrot.lane.b32.xlu2 %v7433_v10, %s10895_s2  ;;  %v7386_v10 = vunpack.i.l.bf16 %v7385_v4  ;;  %v3563_v4 = vmul.f32 %v9220_v48, %v8579_v39 }
0x1005   : > { %v3502_v27 = vpop.permute.xlu1 %3501 }
0x1006   : > { %v3519_v34 = vsel %vm1869_vm9, 0.0, %v3502_v27  ;;  %v7382_v27 = vunpack.i.h.bf16 %v9207_v30 }
0x1007   : > { %v3525_v45 = vsel %vm1871_vm1, %v3519_v34, 0.0  ;;  %v3767_v34 = vpack.c.bf16 %v7387_v46, %v7386_v10 }
0x1008   : > { %v7403_v25 = vpack.i.bf16 %v9211_v21, %v3525_v45  ;;  %v3537_v26 = vmul.f32 %v3525_v45, %v8590_v59  ;;  %v3543_v35 = vmul.f32 %v3525_v45, %v8599_v63  ;;  %v9238_v55 = vmul.f32 %v3525_v45, %v8626_v31 }
0x1009   : > { %v3561_v52 = vmul.f32 %v3525_v45, %v8579_v39  ;;  %v7428_v7 = vpack.i.bf16 %v3525_v45, %v9220_v48  ;;  %v3549_v15 = vmul.f32 %v3525_v45, %v8592_v51  ;;  %v3555_v43 = vmul.f32 %v3525_v45, %v8582_v56 }
0x100a   : > { %7404 = vrot.lane.b32.xlu0 %v7403_v25, %s10899_s23  ;;  %v7408_v29 = vpack.i.bf16 %v3538_v23, %v3537_v26  ;;  %v7438_v49 = vpack.i.bf16 %v3543_v35, %v3545_v20  ;;  %v3747_v6 = vpack.c.bf16 %v9242_v0, %v9238_v55  ;;  %v3777_v23 = vpack.c.bf16 %v7382_v27, %v8609_v19 }
0x100b   : > { %v7418_v12 = vpack.i.bf16 %v3562_v28, %v3561_v52  ;;  %v7443_v36 = vpack.i.bf16 %v3549_v15, %v3551_v53  ;;  %v3544_v25 = vmul.f32 %v9211_v21, %v8599_v63  ;;  %v3550_v20 = vmul.f32 %v9211_v21, %v8592_v51 }
0x100c   : > { %7409 = vrot.lane.b32.xlu1 %v7408_v29, %s10896_s24  ;;  %7439 = vrot.lane.b32.xlu2 %v7438_v49, %s10900_s26  ;;  %v3533_v28 = vmul.f32 %v9220_v48, %v8626_v31 }
0x1012   : > { %7429 = vrot.lane.b32.xlu0 %v7428_v7, %s10912_s20 }
0x1014   : > { %7419 = vrot.lane.b32.xlu1 %v7418_v12, %s10894_s22 }
0x101a   : > { %7444 = vrot.lane.b32.xlu0 %v7443_v36, %s10904_s1 }
0x101c   : > { %7424 = vrot.lane.b32.xlu1 %v7428_v7, %s10897_s21 }
0x101d   : > { %v3508_v44 = vpop.permute.xlu0 %3507 }
0x101e   : > { %v3522_v24 = vsel %vm1869_vm9, 0.0, %v3508_v44  ;;  %v3535_v44 = vmul.f32 %v9088_v62, %v8626_v31 }
0x101f   : > { %v3528_v3 = vsel %vm1871_vm1, %v3522_v24, 0.0 }
0x1020   : > { %v7448_v11 = vpack.i.bf16 %v3528_v3, %v9220_v48  ;;  %v7458_v16 = vpack.i.bf16 %v9211_v21, %v3528_v3  ;;  %v3558_v22 = vmul.f32 %v3528_v3, %v8582_v56  ;;  %v3546_v45 = vmul.f32 %v3528_v3, %v8599_v63 }
0x1021   : > { %v3564_v26 = vmul.f32 %v3528_v3, %v8579_v39  ;;  %v3552_v19 = vmul.f32 %v3528_v3, %v8592_v51  ;;  %v3540_v29 = vmul.f32 %v3528_v3, %v8590_v59  ;;  %v3534_v7 = vmul.f32 %v3528_v3, %v8626_v31 }
0x1022   : > { %7449 = vrot.lane.b32.xlu0 %v7448_v11, %s10899_s23  ;;  %7459 = vrot.lane.b32.xlu2 %v7458_v16, %s10912_s20  ;;  %v7463_v42 = vpack.i.bf16 %v3555_v43, %v3558_v22  ;;  %v7468_v35 = vpack.i.bf16 %v3544_v25, %v3546_v45  ;;  %v3749_v24 = vpack.c.bf16 %v3535_v44, %v8636_v54 }
0x1023   : > { %v7478_v30 = vpack.i.bf16 %v3564_v26, %v3563_v4  ;;  %v7473_v49 = vpack.i.bf16 %v3550_v20, %v3552_v19  ;;  %v7483_v52 = vpack.i.bf16 %v3540_v29, %v3539_v32  ;;  %v3748_v12 = vpack.c.bf16 %v3534_v7, %v3533_v28 }
0x1024   : > { %7454 = vrot.lane.b32.xlu1 %v7458_v16, %s10897_s21 }
0x102a   : > { %3872 = vrot.lane.b32.xlu0 %v3760_v58, %s10913_s27  ;;  %7464 = vrot.lane.b32.xlu2 %v7463_v42, %s10895_s2 }
0x102c   : > { %3908 = vrot.lane.b32.xlu1 %v3778_v13, %s10913_s27 }
0x1032   : > { %3886 = vrot.lane.b32.xlu0 %v3767_v34, %s10913_s27  ;;  %v3536_v34 = vmul.f32 %v9084_v33, %v8626_v31  ;;  %v7391_v33 = vunpack.i.l.bf16 %v9201_v1 }
0x1034   : > { %3906 = vrot.lane.b32.xlu1 %v3777_v23, %s10913_s27 }
0x103a   : > { %7469 = vrot.lane.b32.xlu0 %v7468_v35, %s10900_s26 }
0x103c   : > { %7479 = vrot.lane.b32.xlu1 %v7478_v30, %s10894_s22 }
0x1042   : > { %7474 = vrot.lane.b32.xlu0 %v7473_v49, %s10904_s1 }
0x1044   : > { %7484 = vrot.lane.b32.xlu1 %v7483_v52, %s10896_s24 }
0x104a   : > { %3848 = vrot.lane.b32.xlu0 %v3748_v12, %s10913_s27 }
0x1056   : > { %v9298_v21 = vpop.permute.xlu2 %7414 }
0x1057   : > { %v7416_v58 = vunpack.i.l.bf16 %v9298_v21 }
0x105e   : > { %v9300_v15 = vpop.permute.xlu2 %7434 }
0x105f   : > { %v7436_v53 = vunpack.i.l.bf16 %v9300_v15 }
0x1061   : > { %v3770_v36 = vpack.c.bf16 %v7436_v53, %v8607_v18 }
0x1063   : > { %3892 = vrot.lane.b32.xlu2 %v3770_v36, %s10913_s27  ;;  %v7392_v36 = vunpack.i.h.bf16 %v9201_v1 }
0x1066   : > { %v7440_v48 = vpop.permute.xlu2 %7439 }
0x1067   : > { %v7442_v49 = vunpack.i.h.bf16 %v7440_v48  ;;  %v7441_v55 = vunpack.i.l.bf16 %v7440_v48 }
0x1069   : > { %v3757_v52 = vpack.c.bf16 %v7442_v49, %v7391_v33 }
0x106b   : > { %3850 = vrot.lane.b32.xlu2 %v3749_v24, %s10913_s27  ;;  %v3756_v24 = vpack.c.bf16 %v7392_v36, %v8617_v14 }
0x107c   : > { %v7405_v3 = vpop.permute.xlu0 %7404  ;;  %v9309_v11 = vpop.permute.xlu2 %7459 }
0x107d   : > { %v7407_v16 = vunpack.i.h.bf16 %v7405_v3  ;;  %v7406_v40 = vunpack.i.l.bf16 %v7405_v3  ;;  %v7402_v3 = vunpack.i.h.bf16 %v9255_v60  ;;  %v7461_v14 = vunpack.i.l.bf16 %v9309_v11 }
0x107e   : > { %v7410_v17 = vpop.permute.xlu1 %7409 }
0x107f   : > { %v3761_v22 = vpack.c.bf16 %v7407_v16, %v7406_v40  ;;  %v7412_v38 = vunpack.i.h.bf16 %v7410_v17  ;;  %v7411_v43 = vunpack.i.l.bf16 %v7410_v17  ;;  %v7401_v16 = vunpack.i.l.bf16 %v9255_v60 }
0x1081   : > { %v3754_v18 = vpack.c.bf16 %v7412_v38, %v7411_v43  ;;  %3874 = vrot.lane.b32.xlu0 %v3761_v22, %s10913_s27  ;;  %v3774_v22 = vpack.c.bf16 %v7402_v3, %v7401_v16 }
0x1083   : > { %3860 = vrot.lane.b32.xlu1 %v3754_v18, %s10913_s27 }
0x1084   : > { %v9313_v62 = vpop.permute.xlu0 %7429  ;;  %v9315_v54 = vpop.permute.xlu2 %7464 }
0x1085   : > { %v7467_v42 = vunpack.i.h.bf16 %v9315_v54 }
0x1086   : > { %v7420_v13 = vpop.permute.xlu1 %7419 }
0x1087   : > { %v3768_v46 = vpack.c.bf16 %v7416_v58, %v7467_v42  ;;  %v7422_v7 = vunpack.i.h.bf16 %v7420_v13  ;;  %v7421_v28 = vunpack.i.l.bf16 %v7420_v13  ;;  %v3773_v58 = vpack.c.bf16 %v8605_v50, %v7461_v14  ;;  %v3783_v50 = vld [vmem:[%s10691_s14 + $0xf0] sm:$0xff] }
0x1089   : > { %3888 = vrot.lane.b32.xlu0 %v3768_v46, %s10913_s27  ;;  %v3775_v44 = vpack.c.bf16 %v7422_v7, %v7421_v28  ;;  %v7432_v28 = vunpack.i.h.bf16 %v9313_v62 }
0x108c   : > { %v9320_v10 = vpop.permute.xlu0 %7444 }
0x108d   : > { %v7446_v43 = vunpack.i.l.bf16 %v9320_v10 }
0x108e   : > { %v7425_v27 = vpop.permute.xlu1 %7424 }
0x108f   : > { %v7427_v23 = vunpack.i.h.bf16 %v7425_v27  ;;  %v7426_v30 = vunpack.i.l.bf16 %v7425_v27  ;;  %v7437_v27 = vunpack.i.h.bf16 %v9300_v15 }
0x1091   : > { %v3750_v45 = vpack.c.bf16 %v7427_v23, %v3536_v34 }
0x1093   : > { %3852 = vrot.lane.b32.xlu2 %v3750_v45, %s10913_s27 }
0x1094   : > { %v7450_v25 = vpop.permute.xlu0 %7449 }
0x1095   : > { %v7452_v26 = vunpack.i.h.bf16 %v7450_v25  ;;  %v7451_v35 = vunpack.i.l.bf16 %v7450_v25 }
0x1096   : > { %v7455_v4 = vpop.permute.xlu1 %7454 }
0x1097   : > { %v3762_v19 = vpack.c.bf16 %v7452_v26, %v7451_v35  ;;  %v7457_v20 = vunpack.i.h.bf16 %v7455_v4  ;;  %v7456_v0 = vunpack.i.l.bf16 %v7455_v4 }
0x1099   : > { %v3751_v29 = vpack.c.bf16 %v7426_v30, %v7457_v20  ;;  %3876 = vrot.lane.b32.xlu0 %v3762_v19, %s10913_s27  ;;  %v3752_v1 = vpack.c.bf16 %v8638_v41, %v7456_v0  ;;  %v7466_v41 = vunpack.i.l.bf16 %v9315_v54  ;;  %v7447_v19 = vunpack.i.h.bf16 %v9320_v10  ;;  %v3784_v10 = vld [vmem:[%s10691_s14 + $0xf8] sm:$0xff] }
0x109a   : > { %v7431_v20 = vunpack.i.l.bf16 %v9313_v62 }
0x109b   : > { %3854 = vrot.lane.b32.xlu1 %v3751_v29, %s10913_s27  ;;  %v3769_v45 = vpack.c.bf16 %v7466_v41, %v7437_v27  ;;  %v7462_v29 = vunpack.i.h.bf16 %v9309_v11  ;;  %v7417_v11 = vunpack.i.h.bf16 %v9298_v21  ;;  %v7012_v27 = vld [vmem:[%s10915_s8 + $0x14] sm:$0xf0] }
0x109c   : > { %v9327_v32 = vpop.permute.xlu0 %3872 }
0x109d   : > { %v3772_v33 = vpack.c.bf16 %v7431_v20, %v7462_v29  ;;  %v3771_v36 = vpack.c.bf16 %v7432_v28, %v7417_v11 }
0x109e   : > { %v9335_v12 = vpop.permute.xlu1 %3908 }
0x10a1   : > { %3866 = vrot.lane.b32.xlu0 %v3757_v52, %s10913_s27  ;;  %v7397_v52 = vunpack.i.h.bf16 %v9203_v57 }
0x10a3   : > { %3846 = vrot.lane.b32.xlu1 %v3747_v6, %s10913_s27  ;;  %v3763_v7 = vpack.c.bf16 %v7397_v52, %v8621_v9 }
0x10a4   : > { %v9337_v53 = vpop.permute.xlu0 %3886 }
0x10a6   : > { %v9345_v17 = vpop.permute.xlu1 %3906 }
0x10a9   : > { %3902 = vrot.lane.b32.xlu0 %v3775_v44, %s10913_s27 }
0x10ab   : > { %3864 = vrot.lane.b32.xlu1 %v3756_v24, %s10913_s27 }
0x10ac   : > { %v7470_v40 = vpop.permute.xlu0 %7469 }
0x10ad   : > { %v7472_v6 = vunpack.i.h.bf16 %v7470_v40  ;;  %v7471_v48 = vunpack.i.l.bf16 %v7470_v40 }
0x10ae   : > { %v7480_v13 = vpop.permute.xlu1 %7479 }
0x10af   : > { %v3758_v38 = vpack.c.bf16 %v7441_v55, %v7472_v6  ;;  %v3759_v46 = vpack.c.bf16 %v8628_v8, %v7471_v48  ;;  %v7482_v26 = vunpack.i.h.bf16 %v7480_v13  ;;  %v7481_v54 = vunpack.i.l.bf16 %v7480_v13  ;;  %v6684_v13 = vld [vmem:[%s10915_s8 + $0x10] sm:$0xf0] }
0x10b1   : > { %3868 = vrot.lane.b32.xlu2 %v3758_v38, %s10913_s27  ;;  %3900 = vrot.lane.b32.xlu0 %v3774_v22, %s10913_s27  ;;  %v3776_v4 = vpack.c.bf16 %v7482_v26, %v7481_v54 }
0x10b3   : > { %3856 = vrot.lane.b32.xlu1 %v3752_v1, %s10913_s27 }
0x10b4   : > { %v7475_v60 = vpop.permute.xlu0 %7474 }
0x10b5   : > { %v7477_v18 = vunpack.i.h.bf16 %v7475_v60  ;;  %v7476_v34 = vunpack.i.l.bf16 %v7475_v60 }
0x10b6   : > { %v7485_v25 = vpop.permute.xlu1 %7484 }
0x10b7   : > { %v3765_v42 = vpack.c.bf16 %v7446_v43, %v7477_v18  ;;  %v3766_v8 = vpack.c.bf16 %v8619_v61, %v7476_v34  ;;  %v7487_v35 = vunpack.i.h.bf16 %v7485_v25  ;;  %v7486_v15 = vunpack.i.l.bf16 %v7485_v25  ;;  %v6692_v25 = vld [vmem:[%s10915_s8 + $0x18] sm:$0xf0] }
0x10b8   : > { %v7396_v61 = vunpack.i.l.bf16 %v9203_v57  ;;  %v3946_v18 = vsel %vm929_vm5, %v9335_v12, 0  ;;  %v6690_v12 = vld [vmem:[%s10915_s8 + $0x8] sm:$0xf] }
0x10b9   : > { %3882 = vrot.lane.b32.xlu2 %v3765_v42, %s10913_s27  ;;  %3898 = vrot.lane.b32.xlu0 %v3773_v58, %s10913_s27  ;;  %v3755_v30 = vpack.c.bf16 %v7487_v35, %v7486_v15  ;;  %v7009_v42 = vld [vmem:[%s10915_s8 + $0x4] sm:$0xf] }
0x10ba   : > { %v3764_v49 = vpack.c.bf16 %v7447_v19, %v7396_v61  ;;  %v6687_v41 = vor.u32 %v7009_v42, %v6684_v13 }
0x10bb   : > { %3870 = vrot.lane.b32.xlu1 %v3759_v46, %s10913_s27 }
0x10bc   : > { %v3849_v44 = vpop.permute.xlu0 %3848 }
0x10bd   : > { %v3893_v23 = vpop.permute.xlu2 %3892 }
0x10be   : > { %3976 = vmatpush.bf16.msra.mxu3 %v3893_v23  ;;  %v6691_v23 = vor.u32 %v7012_v27, %v6690_v12 }
0x10c1   : > { %3890 = vrot.lane.b32.xlu2 %v3769_v45, %s10913_s27  ;;  %3787 = vperm.xlu0 %7165, %v3783_v50  }
0x10c3   : > { %3884 = vrot.lane.b32.xlu1 %v3766_v8, %s10913_s27  ;;  %v7010_v8 = vld [vmem:[%s10915_s8 + $0xc] sm:$0xf] }
0x10c4   : > { %v6695_v54 = vor.u32 %v7010_v8, %v6692_v25 }
0x10c5   : > { %v3851_v9 = vpop.permute.xlu2 %3850 }
0x10c9   : > { %3904 = vrot.lane.b32.xlu2 %v3776_v4, %s10913_s27 }
0x10cb   : > { %3862 = vrot.lane.b32.xlu1 %v3755_v30, %s10913_s27 }
0x10d1   : > { %3880 = vrot.lane.b32.xlu2 %v3764_v49, %s10913_s27 }
0x10d3   : > { %3896 = vrot.lane.b32.xlu1 %v3772_v33, %s10913_s27 }
0x10d9   : > { %3878 = vrot.lane.b32.xlu2 %v3763_v7, %s10913_s27 }
0x10db   : > { %3792 = vperm.xlu1 %7287, %v3784_v10  }
0x10e1   : > { %3894 = vrot.lane.b32.xlu2 %v3771_v36, %s10913_s27 }
0x10ed   : > { %v3853_v3 = vpop.permute.xlu2 %3852 }
0x10f3   : > { %v3875_v24 = vpop.permute.xlu0 %3874 }
0x10f5   : > { %v3861_v57 = vpop.permute.xlu1 %3860 }
0x10f6   : > { %3948 = vmatpush.bf16.msrb.mxu0 %v3861_v57 }
0x10fa   : > { %3949 = vmatpush.bf16.msrb.mxu0 %v9205_v37 }
0x10fb   : > { %v3889_v16 = vpop.permute.xlu0 %3888 }
0x110b   : > { %v3869_v40 = vpop.permute.xlu2 %3868  ;;  %v3877_v55 = vpop.permute.xlu0 %3876 }
0x110c   : > { %3962 = vmatpush.bf16.msra.mxu2 %v3877_v55 }
0x110d   : > { %v3855_v0 = vpop.permute.xlu1 %3854 }
0x1110   : > { %3963 = vmatpush.bf16.msra.mxu2 %v3875_v24 }
0x1113   : > { %v3883_v62 = vpop.permute.xlu2 %3882  ;;  %v3867_v14 = vpop.permute.xlu0 %3866 }
0x1114   : > { %3964 = vmatpush.bf16.msra.mxu2 %v9327_v32  ;;  %v6682_v32 = vld [vmem:[%s10915_s8] sm:$0xf] }
0x1115   : > { %v3847_v21 = vpop.permute.xlu1 %3846 }
0x111b   : > { %v3891_v6 = vpop.permute.xlu2 %3890  ;;  %v3903_v58 = vpop.permute.xlu0 %3902 }
0x111c   : > { %3977 = vmatpush.bf16.msra.mxu3 %v3891_v6 }
0x111d   : > { %v3865_v22 = vpop.permute.xlu1 %3864 }
0x1120   : > { %3978 = vmatpush.bf16.msra.mxu3 %v3889_v16 }
0x1123   : > { %v3905_v1 = vpop.permute.xlu2 %3904  ;;  %v3901_v50 = vpop.permute.xlu0 %3900 }
0x1124   : > { %3979 = vmatpush.bf16.msra.mxu3 %v9337_v53  ;;  %v7011_v53 = vld [vmem:[%s10915_s8 + $0xc] sm:$0xf0] }
0x1125   : > { %v3857_v38 = vpop.permute.xlu1 %3856  ;;  %v6683_v48 = vor.u32 %v7011_v53, %v6682_v32 }
0x1126   : > { %3950 = vmatpush.bf16.msrb.mxu0 %v3857_v38 }
0x112a   : > { %3951 = vmatpush.bf16.msrb.mxu0 %v3855_v0 }
0x112b   : > { %v3881_v43 = vpop.permute.xlu2 %3880  ;;  %v3899_v45 = vpop.permute.xlu0 %3898 }
0x112d   : > { %v3871_v37 = vpop.permute.xlu1 %3870 }
0x112e   : > { %3952 = vmatpush.bf16.msrb.mxu0 %v3853_v3  ;;  %3965 = vmatpush.bf16.msra.mxu2 %v3871_v37 }
0x1132   : > { %3953 = vmatpush.bf16.msrb.mxu0 %v3851_v9  ;;  %3966 = vmatpush.bf16.msra.mxu2 %v3869_v40 }
0x1133   : > { %v3879_v34 = vpop.permute.xlu2 %3878  ;;  %v3788_v30 = vpop.permute.xlu0 %3787 }
0x1135   : > { %v3885_v60 = vpop.permute.xlu1 %3884 }
0x1136   : > { %3954 = vmatpush.bf16.msrb.mxu0 %v3849_v44  ;;  %3967 = vmatpush.bf16.msra.mxu2 %v3867_v14 }
0x1137   : > { %3980 = vmatpush.bf16.msra.mxu3 %v3885_v60 }
0x113a   : > { %3955 = vmatpush.bf16.msrb.mxu0 %v3847_v21  ;;  %3968 = vmatpush.bf16.msra.mxu2 %v3865_v22 }
0x113b   : > { %3981 = vmatpush.bf16.msra.mxu3 %v3883_v62  ;;  %v3895_v26 = vpop.permute.xlu2 %3894 }
0x113d   : > { %v3863_v46 = vpop.permute.xlu1 %3862  ;;  %3956 = vmatmul.bf16.vlgmr.msrb.gmra.mxu0 %v6683_v48 }
0x113e   : > { %3990 = vmatpush.bf16.msra.mxu0 %v3946_v18  ;;  %3969 = vmatpush.bf16.msra.mxu2 %v3863_v46 }
0x113f   : > { %3982 = vmatpush.bf16.msra.mxu3 %v3881_v43 }
0x1141   : > { %3970 = vmatmul.bf16.vlgmr.msra.gmra.mxu2 %v6687_v41 }
0x1142   : > { %3991 = vmatpush.bf16.msra.mxu0 %v9345_v17 }
0x1143   : > { %3983 = vmatpush.bf16.msra.mxu3 %v3879_v34 }
0x1145   : > { %v3897_v17 = vpop.permute.xlu1 %3896 }
0x1146   : > { %3992 = vmatpush.bf16.msra.mxu0 %v3905_v1  ;;  %3984 = vmatmul.bf16.vlgmr.msra.gmra.mxu3 %v6691_v23 }
0x114a   : > { %3993 = vmatpush.bf16.msra.mxu0 %v3903_v58 }
0x114d   : > { %v3793_v52 = vpop.permute.xlu1 %3792 }
0x114e   : > { %3994 = vmatpush.bf16.msra.mxu0 %v3901_v50 }
0x1152   : > { %3995 = vmatpush.bf16.msra.mxu0 %v3899_v45 }
0x1156   : > { %3996 = vmatpush.bf16.msra.mxu0 %v3897_v17 }
0x115a   : > { %3997 = vmatpush.bf16.msra.mxu0 %v3895_v26 }
0x115d   : > { %6696 = vmatmul.msk.bf16.vlgmr.msra.gmra.mxu0 %vm3941_vm7, %v6695_v54 }
0x11ba   : > { %v3957_v35 = vpop.f32.mrf.mxu0 }
0x11bb   : > { %v3958_v61 = vadd.f32 %v3957_v35, %v3788_v30 }
0x11c2   : > { %v3959_v15 = vpop.f32.mrf.mxu0 }
0x11c3   : > { %v3960_v10 = vadd.f32 %v3959_v15, %v3793_v52 }
0x11c4   : > { %v3971_v4 = vpop.f32.mrf.mxu2 }
0x11c5   : > { %v3972_v20 = vadd.f32 %v3971_v4, %v3958_v61 }
0x11c9   : > { %v3985_v19 = vpop.f32.mrf.mxu3 }
0x11ca   : > { %v3986_v29 = vadd.f32 %v3985_v19, %v3972_v20 }
0x11cc   : > { %v3973_v7 = vpop.f32.mrf.mxu2 }
0x11cd   : > { %v3974_v36 = vadd.f32 %v3973_v7, %v3960_v10 }
0x11d1   : > { %v3987_v11 = vpop.f32.mrf.mxu3 }
0x11d2   : > { %v3988_v57 = vadd.f32 %v3987_v11, %v3974_v36 }
0x11da   : > { %v3999_v49 = vpop.f32.mrf.mxu0 }
0x11db   : > { %v4000_v33 = vadd.f32 %v3999_v49, %v3986_v29  ;;  %v4112_v29 = vld [vmem:[%s10691_s14 + $0x108] sm:$0xff] }
0x11dd   : > { %v4006_v28 = vmin.f32 %v4000_v33, 0.0  ;;  %vm4004_vm13 = vcmp.gt.f32.partialorder %v4000_v33, 0.0 }
0x11df   : > { %v4008_v44 = vmul.f32 1.442695, %v4006_v28 }
0x11e1   : > { %7800 = vpow2.f32 %v4008_v44  ;;  %v4220_v44 = vld [vmem:[%s10691_s14 + $0x110] sm:$0xff] }
0x11e2   : > { %v4001_v24 = vpop.f32.mrf.mxu0 }
0x11e3   : > { %v4002_v9 = vadd.f32 %v4001_v24, %v3988_v57 }
0x11e5   : > { %v4007_v3 = vmin.f32 %v4002_v9, 0.0  ;;  %vm4005_vm3 = vcmp.gt.f32.partialorder %v4002_v9, 0.0 }
0x11e7   : > { %v7801_v16 = vpop.eup %7800  ;;  %v4010_v40 = vmul.f32 1.442695, %v4007_v3 }
0x11e8   : > { %v6697_v55 = vadd.f32 -1.0, %v7801_v16 }
0x11e9   : > { %7802 = vpow2.f32 %v4010_v40 }
0x11ea   : > { %v4014_v0 = vsel %vm4004_vm13, %v4000_v33, %v6697_v55  ;;  %vm10969_vm13 = vcmask 900096  }
0x11eb   : > { %4018 = vrot.lane.b32.xlu2 %v4014_v0, %s10910_s4 }
0x11ef   : > { %v7803_v62 = vpop.eup %7802 }
0x11f0   : > { %v6698_v21 = vadd.f32 -1.0, %v7803_v62  ;;  %v4225_v62 = vld [vmem:[%s10691_s14 + $0x138] sm:$0xff] }
0x11f2   : > { %v4015_v6 = vsel %vm4005_vm3, %v4002_v9, %v6698_v21  ;;  %vm10971_vm3 = vcmask 908288  }
0x11f3   : > { %4020 = vrot.lane.b32.xlu0 %v4015_v6, %s10910_s4  ;;  %v4111_v6 = vld [vmem:[%s10691_s14 + $0x100] sm:$0xff] }
0x1245   : > { %v4019_v22 = vpop.permute.xlu2 %4018 }
0x1246   : > { %v4024_v38 = vsel %vm1869_vm9, 0.0, %v4019_v22  ;;  %v4222_v22 = vld [vmem:[%s10691_s14 + $0x120] sm:$0xff] }
0x1247   : > { %v4026_v37 = vsel %vm1871_vm1, %v4024_v38, 0.0  ;;  %v4223_v38 = vld [vmem:[%s10691_s14 + $0x128] sm:$0xff] }
0x1248   : > { %v4036_v32 = vmul.f32 %v4026_v37, %v8582_v56  ;;  %v4034_v48 = vmul.f32 %v4026_v37, %v8592_v51  ;;  %v4028_v13 = vmul.f32 %v4026_v37, %v8626_v31  ;;  %v4032_v27 = vmul.f32 %v4026_v37, %v8599_v63 }
0x1249   : > { %v4038_v50 = vmul.f32 %v4026_v37, %v8579_v39 }
0x1265   : > { %v4021_v1 = vpop.permute.xlu0 %4020 }
0x1266   : > { %v4025_v14 = vsel %vm1869_vm9, 0.0, %v4021_v1  ;;  %v4224_v1 = vld [vmem:[%s10691_s14 + $0x130] sm:$0xff] }
0x1267   : > { %v4027_v60 = vsel %vm1871_vm1, %v4025_v14, 0.0  ;;  %v4226_v14 = vld [vmem:[%s10691_s14 + $0x140] sm:$0xff] }
0x1268   : > { %v7488_v53 = vpack.i.bf16 %v4027_v60, %v4026_v37  ;;  %v4037_v43 = vmul.f32 %v4027_v60, %v8582_v56  ;;  %v4035_v18 = vmul.f32 %v4027_v60, %v8592_v51  ;;  %v4029_v46 = vmul.f32 %v4027_v60, %v8626_v31 }
0x1269   : > { %v4033_v12 = vmul.f32 %v4027_v60, %v8599_v63  ;;  %v4031_v56 = vmul.f32 %v4027_v60, %v8590_v59  ;;  %v4030_v51 = vmul.f32 %v4026_v37, %v8590_v59  ;;  %v4039_v31 = vmul.f32 %v4027_v60, %v8579_v39  ;;  %v4221_v37 = vld [vmem:[%s10691_s14 + $0x118] sm:$0xff] }
0x126a   : > { %7489 = vrot.lane.b32.xlu1 %v7488_v53, %s10912_s20  ;;  %v7493_v58 = vpack.i.bf16 %v4037_v43, %v4036_v32  ;;  %v7498_v42 = vpack.i.bf16 %v4035_v18, %v4034_v48  ;;  %v4100_v41 = vpack.c.bf16 %v4029_v46, %v4028_v13  ;;  %v7013_v48 = vld [vmem:[%s10686_s9 + $0x4] sm:$0xf]  ;;  %v6703_v18 = vld [vmem:[%s10686_s9 + $0x8] sm:$0xf0] }
0x126b   : > { %v7508_v34 = vpack.i.bf16 %v4033_v12, %v4032_v27  ;;  %v7513_v23 = vpack.i.bf16 %v4031_v56, %v4030_v51  ;;  %v7523_v45 = vpack.i.bf16 %v4039_v31, %v4038_v50  ;;  %v6706_v13 = vor.u32 %v7013_v48, %v6703_v18  ;;  %v6701_v31 = vld [vmem:[%s10686_s9] sm:$0xf]  ;;  %v7014_v50 = vld [vmem:[%s10686_s9 + $0x4] sm:$0xf0] }
0x126c   : > { %7494 = vrot.lane.b32.xlu2 %v7493_v58, %s10895_s2  ;;  %7499 = vrot.lane.b32.xlu0 %v7498_v42, %s10904_s1 }
0x1272   : > { %7504 = vrot.lane.b32.xlu1 %v7488_v53, %s10899_s23 }
0x1274   : > { %7509 = vrot.lane.b32.xlu2 %v7508_v34, %s10900_s26  ;;  %7514 = vrot.lane.b32.xlu0 %v7513_v23, %s10896_s24 }
0x127a   : > { %7519 = vrot.lane.b32.xlu1 %v7488_v53, %s10897_s21 }
0x127c   : > { %7524 = vrot.lane.b32.xlu2 %v7523_v45, %s10894_s22 }
0x12c6   : > { %v7495_v63 = vpop.permute.xlu2 %7494 }
0x12c7   : > { %v7497_v17 = vunpack.i.h.bf16 %v7495_v63  ;;  %v7496_v59 = vunpack.i.l.bf16 %v7495_v63 }
0x12c9   : > { %v4106_v8 = vpack.c.bf16 %v7497_v17, %v7496_v59 }
0x12cb   : > { %4153 = vrot.lane.b32.xlu1 %v4106_v8, %s10913_s27  ;;  %v6702_v8 = vor.u32 %v7014_v50, %v6701_v31  ;;  %v7015_v50 = vld [vmem:[%s10687_s10] sm:$0xff] }
0x12ce   : > { %v7510_v25 = vpop.permute.xlu2 %7509 }
0x12cf   : > { %v7512_v26 = vunpack.i.h.bf16 %v7510_v25  ;;  %v7511_v54 = vunpack.i.l.bf16 %v7510_v25 }
0x12d1   : > { %v4103_v35 = vpack.c.bf16 %v7512_v26, %v7511_v54  ;;  %v10917_v54 = vld [vmem:[#allocation17_spill] sm:$0xff] }
0x12d3   : > { %4147 = vrot.lane.b32.xlu1 %v4103_v35, %s10913_s27 }
0x12d6   : > { %v7525_v24 = vpop.permute.xlu2 %7524 }
0x12d7   : > { %v7527_v3 = vunpack.i.h.bf16 %v7525_v24  ;;  %v7526_v16 = vunpack.i.l.bf16 %v7525_v24  ;;  %v10928_v24 = vld [vmem:[#allocation12_spill] sm:$0xff] }
0x12d9   : > { %v4108_v21 = vpack.c.bf16 %v7527_v3, %v7526_v16 }
0x12db   : > { %4141 = vrot.lane.b32.xlu1 %v4100_v41, %s10913_s27 }
0x12dc   : > { %v7490_v39 = vpop.permute.xlu1 %7489 }
0x12dd   : > { %v7492_v15 = vunpack.i.h.bf16 %v7490_v39  ;;  %v7491_v4 = vunpack.i.l.bf16 %v7490_v39  ;;  %v10918_v39 = vld [vmem:[#allocation15_spill] sm:$0xff] }
0x12de   : > { %v7500_v30 = vpop.permute.xlu0 %7499 }
0x12df   : > { %v4107_v19 = vpack.c.bf16 %v7492_v15, %v7491_v4  ;;  %v7502_v61 = vunpack.i.h.bf16 %v7500_v30  ;;  %v7501_v20 = vunpack.i.l.bf16 %v7500_v30  ;;  %v10919_v4 = vld [vmem:[#allocation16_spill] sm:$0xff] }
0x12e1   : > { %v4105_v49 = vpack.c.bf16 %v7502_v61, %v7501_v20  ;;  %4155 = vrot.lane.b32.xlu0 %v4107_v19, %s10913_s27  ;;  %v10921_v20 = vld [vmem:[#allocation7_spill] sm:$0xff] }
0x12e3   : > { %4151 = vrot.lane.b32.xlu2 %v4105_v49, %s10913_s27  ;;  %4120 = vperm.xlu1 %7287, %v4112_v29   ;;  %v10922_v49 = vld [vmem:[#allocation9_spill] sm:$0xff] }
0x12e4   : > { %v7505_v33 = vpop.permute.xlu1 %7504 }
0x12e5   : > { %v7507_v52 = vunpack.i.h.bf16 %v7505_v33  ;;  %v7506_v7 = vunpack.i.l.bf16 %v7505_v33 }
0x12e6   : > { %v7515_v10 = vpop.permute.xlu0 %7514 }
0x12e7   : > { %v4104_v28 = vpack.c.bf16 %v7507_v52, %v7506_v7  ;;  %v7517_v11 = vunpack.i.h.bf16 %v7515_v10  ;;  %v7516_v36 = vunpack.i.l.bf16 %v7515_v10  ;;  %v10923_v52 = vld [vmem:[#allocation5_spill] sm:$0xff]  ;;  %v10924_v10 = vld [vmem:[#allocation8_spill] sm:$0xff] }
0x12e9   : > { %v4102_v57 = vpack.c.bf16 %v7517_v11, %v7516_v36  ;;  %4149 = vrot.lane.b32.xlu0 %v4104_v28, %s10913_s27 }
0x12eb   : > { %4145 = vrot.lane.b32.xlu2 %v4102_v57, %s10913_s27  ;;  %4230 = vperm.xlu1 %7287, %v4220_v44   ;;  %v10927_v44 = vld [vmem:[#allocation11_spill] sm:$0xff] }
0x12ec   : > { %v7520_v9 = vpop.permute.xlu1 %7519 }
0x12ed   : > { %v7522_v40 = vunpack.i.h.bf16 %v7520_v9  ;;  %v7521_v55 = vunpack.i.l.bf16 %v7520_v9 }
0x12ef   : > { %v4101_v0 = vpack.c.bf16 %v7522_v40, %v7521_v55 }
0x12f1   : > { %4143 = vrot.lane.b32.xlu0 %v4101_v0, %s10913_s27 }
0x12f3   : > { %4157 = vrot.lane.b32.xlu2 %v4108_v21, %s10913_s27  ;;  %4255 = vperm.xlu1 %7287, %v4225_v62   ;;  %v10929_v62 = vld [vmem:[#allocation39_spill] sm:$0xff] }
0x12f9   : > { %4115 = vperm.xlu0 %7165, %v4111_v6  }
0x12fb   : > { %4240 = vperm.xlu2 %7206, %v4222_v22   ;;  %4698 = vrot.lane.b32.xlu1 %v8564_v2, %s10916_s17  ;;  %v4227_v2 = vld [vmem:[%s10691_s14 + $0x148] sm:$0xff] }
0x1301   : > { %4245 = vperm.xlu0 %7165, %v4223_v38  }
0x1303   : > { %4235 = vperm.xlu2 %7206, %v4221_v37  }
0x1309   : > { %4250 = vperm.xlu0 %7165, %v4224_v1  }
0x130b   : > { %4260 = vperm.xlu2 %7206, %v4226_v14  }
0x1311   : > { %4265 = vperm.xlu0 %7165, %v4227_v2  }
0x1313   : > { %4700 = vrot.lane.b32.xlu2 %v8568_v5, %s10916_s17 }
0x133d   : > { %v4154_v60 = vpop.permute.xlu1 %4153  ;;  %v4152_v32 = vpop.permute.xlu2 %4151 }
0x1345   : > { %v4148_v53 = vpop.permute.xlu1 %4147  ;;  %v4146_v43 = vpop.permute.xlu2 %4145 }
0x134d   : > { %v4158_v58 = vpop.permute.xlu2 %4157  ;;  %v4142_v42 = vpop.permute.xlu1 %4141 }
0x134e   : > { %4192 = vmatpush.bf16.msrb.mxu3 %v4158_v58 }
0x1351   : > { %6707 = vmatmul.msk.bf16.vlgmr.msrb.gmra.mxu3 %vm1869_vm9, %v6706_v13 }
0x1353   : > { %v4156_v46 = vpop.permute.xlu0 %4155 }
0x1354   : > { %4171 = vmatpush.bf16.msrb.mxu2 %v4156_v46 }
0x1355   : > { %v9489_v5 = vpop.permute.xlu2 %4240  ;;  %v4121_v41 = vpop.permute.xlu1 %4120 }
0x1358   : > { %4172 = vmatpush.bf16.msrb.mxu2 %v4154_v60 }
0x135b   : > { %v4150_v27 = vpop.permute.xlu0 %4149 }
0x135c   : > { %4173 = vmatpush.bf16.msrb.mxu2 %v4152_v32 }
0x135d   : > { %v9491_v12 = vpop.permute.xlu2 %4235  ;;  %v9493_v56 = vpop.permute.xlu1 %4230 }
0x1360   : > { %4174 = vmatpush.bf16.msrb.mxu2 %v4150_v27 }
0x1363   : > { %v4144_v23 = vpop.permute.xlu0 %4143 }
0x1364   : > { %4175 = vmatpush.bf16.msrb.mxu2 %v4148_v53 }
0x1365   : > { %v9495_v51 = vpop.permute.xlu2 %4260  ;;  %v9497_v34 = vpop.permute.xlu1 %4255 }
0x1368   : > { %4176 = vmatpush.bf16.msrb.mxu2 %v4146_v43 }
0x136b   : > { %v4116_v6 = vpop.permute.xlu0 %4115 }
0x136c   : > { %4177 = vmatpush.bf16.msrb.mxu2 %v4144_v23 }
0x136d   : > { %v9505_v45 = vpop.permute.xlu2 %4700  ;;  %v4699_v63 = vpop.permute.xlu1 %4698 }
0x136e   : > { %v9509_v17 = vsel %vm643_vm4, %v4699_v63, %v9505_v45  ;;  %v9512_v59 = vsel %vm643_vm4, 0.0, %v4699_v63  ;;  %v6840_v63 = vld [vmem:[%s10693_s16 + $0xb0] sm:$0xf] }
0x136f   : > { %v7538_v25 = vpack.i.bf16 %v9509_v17, %v9512_v59  ;;  %v4744_v26 = vmul.f32 %v8061_v47, %v9512_v59  ;;  %v4745_v35 = vmul.f32 %v9509_v17, %v10917_v54  ;;  %v4735_v15 = vmul.f32 %v10918_v39, %v9512_v59 }
0x1370   : > { %4178 = vmatpush.bf16.msrb.mxu2 %v4142_v42  ;;  %v4736_v30 = vmul.f32 %v9509_v17, %v10919_v4  ;;  %v4771_v29 = vmul.f32 %v10921_v20, %v9512_v59  ;;  %v4772_v33 = vmul.f32 %v9509_v17, %v10922_v49  ;;  %v4762_v7 = vmul.f32 %v10923_v52, %v9512_v59 }
0x1371   : > { %7539 = vrot.lane.b32.xlu2 %v7538_v25, %s10920_s28  ;;  %v7528_v19 = vpack.i.bf16 %v4745_v35, %v4744_v26  ;;  %v4763_v28 = vmul.f32 %v9509_v17, %v10924_v10  ;;  %v4753_v57 = vmul.f32 %v10927_v44, %v9512_v59  ;;  %v4754_v9 = vmul.f32 %v9509_v17, %v10928_v24  ;;  %v7040_v35 = vld [vmem:[%s10693_s16 + $0xa4] sm:$0xf0] }
0x1372   : > { %v7533_v61 = vpack.i.bf16 %v4736_v30, %v4735_v15  ;;  %v7553_v11 = vpack.i.bf16 %v4772_v33, %v4771_v29  ;;  %v7017_v30 = vld [vmem:[%s10687_s10 + $0x10] sm:$0xff]  ;;  %v7034_v29 = vld [vmem:[%s10693_s16 + $0x74] sm:$0xf0] }
0x1373   : > { %4179 = vmatmul.bf16.vlgmr.msrb.gmra.mxu2 %v6702_v8  ;;  %7529 = vrot.lane.b32.xlu1 %v7528_v19, %s10895_s2  ;;  %v7548_v36 = vpack.i.bf16 %v4763_v28, %v4762_v7  ;;  %v7558_v3 = vpack.i.bf16 %v4754_v9, %v4753_v57  ;;  %v7042_v8 = vld [vmem:[%s10693_s16 + $0xb4] sm:$0xf0]  ;;  %v7033_v33 = vld [vmem:[%s10693_s16 + $0x74] sm:$0xf]  ;;  %v6766_v28 = vld [vmem:[%s10693_s16 + $0x78] sm:$0xf0] }
0x1374   : > { %7534 = vrot.lane.b32.xlu0 %v7533_v61, %s10896_s24  ;;  %v6841_v26 = vor.u32 %v7042_v8, %v6840_v63  ;;  %v7018_v19 = vld [vmem:[%s10687_s10 + $0x18] sm:$0xff]  ;;  %v6764_v61 = vld [vmem:[%s10693_s16 + $0x70] sm:$0xf]  ;;  %v6769_v57 = vor.u32 %v7033_v33, %v6766_v28  ;;  %v7031_v9 = vld [vmem:[%s10693_s16 + $0x64] sm:$0xf] }
0x1375   : > { %v6765_v7 = vor.u32 %v7034_v29, %v6764_v61  ;;  %v7023_v63 = vld [vmem:[%s10693_s16 + $0x24] sm:$0xf]  ;;  %v6792_v8 = vld [vmem:[%s10693_s16 + $0x28] sm:$0xf0]  ;;  %v6784_v29 = vld [vmem:[%s10693_s16 + $0x18] sm:$0xf0] }
0x1376   : > { %4567 = vmatpush.bf16.msra.mxu1 %v6841_v26  ;;  %4420 = vmatpush.bf16.msra.mxu3 %v6769_v57  ;;  %v6774_v33 = vld [vmem:[%s10693_s16] sm:$0xf]  ;;  %v6776_v57 = vld [vmem:[%s10693_s16 + $0x8] sm:$0xf0] }
0x1377   : > { %4406 = vmatpush.bf16.msra.mxu2 %v6765_v7  ;;  %v7020_v7 = vld [vmem:[%s10693_s16 + $0x4] sm:$0xf0] }
0x1379   : > { %7554 = vrot.lane.b32.xlu2 %v7553_v11, %s10925_s0  ;;  %v6756_v11 = vld [vmem:[%s10693_s16 + $0x60] sm:$0xf] }
0x137b   : > { %7544 = vrot.lane.b32.xlu1 %v7538_v25, %s10897_s21 }
0x137c   : > { %7549 = vrot.lane.b32.xlu0 %v7548_v36, %s10926_s5  ;;  %v7032_v36 = vld [vmem:[%s10693_s16 + $0x64] sm:$0xf0] }
0x1383   : > { %7559 = vrot.lane.b32.xlu1 %v7558_v3, %s10894_s22  ;;  %v6758_v3 = vld [vmem:[%s10693_s16 + $0x68] sm:$0xf0] }
0x1384   : > { %7564 = vrot.lane.b32.xlu0 %v7538_v25, %s10912_s20  ;;  %v6832_v25 = vld [vmem:[%s10693_s16 + $0xa0] sm:$0xf] }
0x1385   : > { %v6833_v15 = vor.u32 %v7040_v35, %v6832_v25  ;;  %v6795_v35 = vor.u32 %v7023_v63, %v6792_v8  ;;  %v7048_v8 = vld [vmem:[%s10693_s16 + $0xe4] sm:$0xf0] }
0x1387   : > { %4568 = vmatpush.bf16.msra.mxu1 %v6833_v15  ;;  %v6782_v15 = vld [vmem:[%s10693_s16 + $0x10] sm:$0xf] }
0x13d4   : > { %v4194_v22 = vpop.f32.mrf.mxu3 }
0x13dc   : > { %v4196_v53 = vpop.f32.mrf.mxu3 }
0x13e5   : > { %v9544_v16 = vpop.permute.xlu1 %7529 }
0x13e6   : > { %v10808_v40 = vunpack.i.h.bf16 %v9544_v16  ;;  %v7531_v55 = vunpack.i.l.bf16 %v9544_v16 }
0x13e8   : > { %v4886_v0 = vsel %vm764_vm15, %v7531_v55, %v10808_v40  ;;  %v6824_v55 = vld [vmem:[%s10693_s16 + $0x90] sm:$0xf] }
0x13e9   : > { %v5110_v21 = vpack.c.bf16 %v4886_v0, %v10929_v62  ;;  %v6757_v0 = vor.u32 %v7032_v36, %v6756_v11  ;;  %v7038_v62 = vld [vmem:[%s10693_s16 + $0x94] sm:$0xf0]  ;;  %v7019_v36 = vld [vmem:[%s10693_s16 + $0x4] sm:$0xf] }
0x13eb   : > { %5257 = vrot.lane.b32.xlu2 %v5110_v21, %s10930_s25  ;;  %v6761_v21 = vor.u32 %v7031_v9, %v6758_v3  ;;  %4407 = vmatpush.bf16.msra.mxu2 %v6757_v0  ;;  %v6816_v9 = vld [vmem:[%s10693_s16 + $0x80] sm:$0xf]  ;;  %v6775_v3 = vor.u32 %v7020_v7, %v6774_v33  ;;  %v6779_v0 = vor.u32 %v7019_v36, %v6776_v57  ;;  %v7037_v7 = vld [vmem:[%s10693_s16 + $0x94] sm:$0xf]  ;;  %v6866_v36 = vld [vmem:[%s10693_s16 + $0xd0] sm:$0xf] }
0x13ec   : > { %v7046_v57 = vld [vmem:[%s10693_s16 + $0xd4] sm:$0xf0] }
0x13ed   : > { %4421 = vmatpush.bf16.msra.mxu3 %v6761_v21 }
0x13f6   : > { %v4180_v38 = vpop.f32.mrf.mxu2 }
0x13f7   : > { %v4181_v37 = vadd.f32 %v4180_v38, %v4116_v6  ;;  %v6825_v6 = vor.u32 %v7038_v62, %v6824_v55  ;;  %v7030_v38 = vld [vmem:[%s10693_s16 + $0x54] sm:$0xf0]  ;;  %v7036_v55 = vld [vmem:[%s10693_s16 + $0x84] sm:$0xf0] }
0x13f8   : > { %v6817_v62 = vor.u32 %v7036_v55, %v6816_v9 }
0x13f9   : > { %v4195_v1 = vadd.f32 %v4194_v22, %v4181_v37  ;;  %4569 = vmatpush.bf16.msra.mxu1 %v6825_v6  ;;  %v6748_v22 = vld [vmem:[%s10693_s16 + $0x50] sm:$0xf]  ;;  %v7029_v37 = vld [vmem:[%s10693_s16 + $0x54] sm:$0xf] }
0x13fa   : > { %v7049_v6 = vld [vmem:[%s10693_s16 + $0xf4] sm:$0xf] }
0x13fb   : > { %v4201_v14 = vmin.f32 %v4195_v1, 0.0  ;;  %vm4199_vm1 = vcmp.gt.f32.partialorder %v4195_v1, 0.0 }
0x13fd   : > { %v4203_v60 = vmul.f32 1.442695, %v4201_v14  ;;  %v6750_v14 = vld [vmem:[%s10693_s16 + $0x58] sm:$0xf0]  ;;  %4570 = vmatpush.bf16.msra.mxu1 %v6817_v62  ;;  %v7035_v62 = vld [vmem:[%s10693_s16 + $0x84] sm:$0xf] }
0x13fe   : > { %v4182_v2 = vpop.f32.mrf.mxu2 }
0x13ff   : > { %v4183_v32 = vadd.f32 %v4182_v2, %v4121_v41  ;;  %7804 = vpow2.f32 %v4203_v60  ;;  %v7016_v41 = vld [vmem:[%s10687_s10 + $0x8] sm:$0xff]  ;;  %v6740_v2 = vld [vmem:[%s10693_s16 + $0x40] sm:$0xf] }
0x1400   : > { %v7028_v60 = vld [vmem:[%s10693_s16 + $0x44] sm:$0xf0] }
0x1401   : > { %v4197_v43 = vadd.f32 %v4196_v53, %v4183_v32  ;;  %v6753_v53 = vor.u32 %v7029_v37, %v6750_v14  ;;  %v4246_v37 = vpop.permute.xlu0 %4245  ;;  %v7047_v14 = vld [vmem:[%s10693_s16 + $0xe4] sm:$0xf] }
0x1403   : > { %v4202_v48 = vmin.f32 %v4197_v43, 0.0  ;;  %vm4200_vm14 = vcmp.gt.f32.partialorder %v4197_v43, 0.0  ;;  %4422 = vmatpush.bf16.msra.mxu3 %v6753_v53 }
0x1405   : > { %v4205_v18 = vmul.f32 1.442695, %v4202_v48  ;;  %v7805_v58 = vpop.eup %7804  ;;  %v6742_v48 = vld [vmem:[%s10693_s16 + $0x48] sm:$0xf0] }
0x1406   : > { %v6708_v42 = vadd.f32 -1.0, %v7805_v58 }
0x1407   : > { %7806 = vpow2.f32 %v4205_v18  ;;  %v6741_v18 = vor.u32 %v7028_v60, %v6740_v2 }
0x1408   : > { %v4209_v27 = vsel %vm4199_vm1, %v4195_v1, %v6708_v42  ;;  %v6749_v1 = vor.u32 %v7030_v38, %v6748_v22  ;;  %v6798_v42 = vld [vmem:[%s10693_s16 + $0x30] sm:$0xf]  ;;  %v6884_v22 = vld [vmem:[%s10693_s16 + $0xf8] sm:$0xf0] }
0x1409   : > { %v6887_v38 = vor.u32 %v7049_v6, %v6884_v22  ;;  %v6818_v6 = vld [vmem:[%s10693_s16 + $0x88] sm:$0xf0]  ;;  %v6858_v22 = vld [vmem:[%s10693_s16 + $0xc0] sm:$0xf] }
0x140a   : > { %4408 = vmatpush.bf16.msra.mxu2 %v6749_v1 }
0x140b   : > { %4670 = vmatpush.bf16.msrb.mxu1 %v6887_v38 }
0x140d   : > { %v7807_v13 = vpop.eup %7806 }
0x140e   : > { %v6709_v46 = vadd.f32 -1.0, %v7807_v13  ;;  %4409 = vmatpush.bf16.msra.mxu2 %v6741_v18  ;;  %v7026_v13 = vld [vmem:[%s10693_s16 + $0x34] sm:$0xf0]  ;;  %v6842_v18 = vld [vmem:[%s10693_s16 + $0xb8] sm:$0xf0] }
0x1410   : > { %v4210_v23 = vsel %vm4200_vm14, %v4197_v43, %v6709_v46  ;;  %v7027_v43 = vld [vmem:[%s10693_s16 + $0x44] sm:$0xf]  ;;  %v7025_v46 = vld [vmem:[%s10693_s16 + $0x34] sm:$0xf]  ;;  %vm10985_vm14 = vmmov %vm10969_vm13 }
0x1411   : > { %v4219_v31 = vpack.c.bf16 %v4210_v23, %v4209_v27  ;;  %v6745_v58 = vor.u32 %v7027_v43, %v6742_v48  ;;  %v6799_v27 = vor.u32 %v7026_v13, %v6798_v42  ;;  %v6800_v23 = vld [vmem:[%s10693_s16 + $0x38] sm:$0xf0]  ;;  %v7041_v43 = vld [vmem:[%s10693_s16 + $0xb4] sm:$0xf]  ;;  %v7050_v42 = vld [vmem:[%s10693_s16 + $0xf4] sm:$0xf0] }
0x1413   : > { %4307 = vmatpush.bf16.msrb.mxu0 %v4219_v31  ;;  %4423 = vmatpush.bf16.msra.mxu3 %v6745_v58  ;;  %v6790_v31 = vld [vmem:[%s10693_s16 + $0x20] sm:$0xf]  ;;  %v6882_v58 = vld [vmem:[%s10693_s16 + $0xf0] sm:$0xf] }
0x1414   : > { %4482 = vmatpush.bf16.msrb.mxu2 %v6799_v27  ;;  %v6845_v27 = vor.u32 %v7041_v43, %v6842_v18 }
0x1416   : > { %6726 = vmatmul.msk.bf16.vlgmr.msrb.gmra.mxu0 %vm1869_vm9, %v7015_v50  ;;  %v7024_v50 = vld [vmem:[%s10693_s16 + $0x24] sm:$0xf0] }
0x1417   : > { %v6791_v26 = vor.u32 %v7024_v50, %v6790_v31  ;;  %v7039_v31 = vld [vmem:[%s10693_s16 + $0xa4] sm:$0xf]  ;;  %v6834_v50 = vld [vmem:[%s10693_s16 + $0xa8] sm:$0xf0] }
0x1419   : > { %4483 = vmatpush.bf16.msrb.mxu2 %v6791_v26  ;;  %v7045_v26 = vld [vmem:[%s10693_s16 + $0xd4] sm:$0xf] }
0x1426   : > { %6727 = vmatmul.msk.bf16.gmra.mxu0 %vm1869_vm9, %v7016_v41  ;;  %v6803_v41 = vor.u32 %v7025_v46, %v6800_v23  ;;  %v6883_v23 = vor.u32 %v7050_v42, %v6882_v58 }
0x1428   : > { %4496 = vmatpush.bf16.msrb.mxu3 %v6803_v41  ;;  %v6874_v41 = vld [vmem:[%s10693_s16 + $0xe0] sm:$0xf] }
0x1429   : > { %v6875_v33 = vor.u32 %v7048_v8, %v6874_v41 }
0x142c   : > { %4497 = vmatpush.bf16.msrb.mxu3 %v6795_v35  ;;  %v6868_v35 = vld [vmem:[%s10693_s16 + $0xd8] sm:$0xf0] }
0x1436   : > { %6728 = vmatmul.msk.bf16.gmra.mxu0 %vm1869_vm9, %v7017_v30  ;;  %v7022_v30 = vld [vmem:[%s10693_s16 + $0x14] sm:$0xf0] }
0x1437   : > { %v6783_v61 = vor.u32 %v7022_v30, %v6782_v15  ;;  %v6871_v30 = vor.u32 %v7045_v26, %v6868_v35 }
0x1439   : > { %4484 = vmatpush.bf16.msrb.mxu2 %v6783_v61  ;;  %v6860_v61 = vld [vmem:[%s10693_s16 + $0xc8] sm:$0xf0] }
0x143d   : > { %4485 = vmatpush.bf16.msrb.mxu2 %v6775_v3  ;;  %v4251_v3 = vpop.permute.xlu0 %4250 }
0x1446   : > { %6729 = vmatmul.msk.bf16.gmra.mxu0 %vm1869_vm9, %v7018_v19  ;;  %v7021_v19 = vld [vmem:[%s10693_s16 + $0x14] sm:$0xf] }
0x1447   : > { %v6787_v11 = vor.u32 %v7021_v19, %v6784_v29  ;;  %v7043_v19 = vld [vmem:[%s10693_s16 + $0xc4] sm:$0xf]  ;;  %v6837_v29 = vor.u32 %v7039_v31, %v6834_v50 }
0x1448   : > { %v6863_v9 = vor.u32 %v7043_v19, %v6860_v61 }
0x1449   : > { %4498 = vmatpush.bf16.msrb.mxu3 %v6787_v11  ;;  %v6826_v11 = vld [vmem:[%s10693_s16 + $0x98] sm:$0xf0] }
0x144d   : > { %4499 = vmatpush.bf16.msrb.mxu3 %v6779_v0 }
0x1493   : > { %v9629_v32 = vpop.f32.mrf.mxu0 }
0x1494   : > { %v4310_v55 = vadd.f32 %v9629_v32, %v9493_v56  ;;  %v7044_v56 = vld [vmem:[%s10693_s16 + $0xc4] sm:$0xf0] }
0x1496   : > { %v4329_v38 = vpack.c.bf16 %v4310_v55, %v4310_v55 }
0x149b   : > { %v9661_v25 = vpop.f32.mrf.mxu0 }
0x14a3   : > { %v4314_v28 = vpop.f32.mrf.mxu0 }
0x14a4   : > { %v4315_v21 = vadd.f32 %v4314_v28, %v9489_v5  ;;  %v6876_v5 = vld [vmem:[%s10693_s16 + $0xe8] sm:$0xf0]  ;;  %v4312_v28 = vadd.f32 %v9661_v25, %v9491_v12  ;;  %v6829_v12 = vor.u32 %v7037_v7, %v6826_v11  ;;  %v6867_v25 = vor.u32 %v7046_v57, %v6866_v36 }
0x14a5   : > { %v6879_v53 = vor.u32 %v7047_v14, %v6876_v5  ;;  %v6821_v14 = vor.u32 %v7035_v62, %v6818_v6  ;;  %v6859_v5 = vor.u32 %v7044_v56, %v6858_v22 }
0x14a6   : > { %v4331_v2 = vpack.c.bf16 %v4315_v21, %v4315_v21  ;;  %v4330_v21 = vpack.c.bf16 %v4312_v28, %v4312_v28 }
0x14a7   : > { %4671 = vmatpush.bf16.msrb.mxu1 %v6879_v53  ;;  %v4432_v53 = vunpack.c.l.b16 %v4329_v38 }
0x14a8   : > { %v4356_v13 = vunpack.c.l.b16 %v4331_v2  ;;  %v4433_v2 = vunpack.c.l.b16 %v4330_v21 }
0x14aa   : > { %v4434_v18 = vpack.c.b16 %v4433_v2, %v4432_v53 }
0x14ab   : > { %v4316_v1 = vpop.f32.mrf.mxu0  ;;  %4672 = vmatpush.bf16.msrb.mxu1 %v6871_v30 }
0x14ac   : > { %v4317_v60 = vadd.f32 %v4316_v1, %v4246_v37 }
0x14ae   : > { %v4332_v48 = vpack.c.bf16 %v4317_v60, %v4317_v60 }
0x14af   : > { %4673 = vmatpush.bf16.msrb.mxu1 %v6863_v9 }
0x14b0   : > { %v4357_v46 = vunpack.c.l.b16 %v4332_v48 }
0x14b2   : > { %v4358_v63 = vpack.c.b16 %v4357_v46, %v4356_v13  ;;  %v4266_v13 = vpop.permute.xlu0 %4265 }
0x14b3   : > { %v4319_v15 = vpop.f32.mrf.mxu0 }
0x14b4   : > { %6770 = vmatmul.msk.bf16.vlgmr.msra.gmra.mxu2 %vm2232_vm6, %v4358_v63  ;;  %6771 = vmatmul.msk.bf16.vlgmr.msra.gmra.mxu3 %vm2232_vm6, %v4358_v63  ;;  %v4320_v0 = vadd.f32 %v4319_v15, %v4251_v3 }
0x14b5   : > { %4581 = vmatpush.bf16.msra.mxu2 %v6845_v27  ;;  %4656 = vmatpush.bf16.msra.mxu3 %v6883_v23 }
0x14b6   : > { %v4333_v37 = vpack.c.bf16 %v4320_v0, %v4320_v0 }
0x14b8   : > { %v4517_v43 = vunpack.c.l.b16 %v4333_v37 }
0x14b9   : > { %4582 = vmatpush.bf16.msra.mxu2 %v6837_v29  ;;  %4657 = vmatpush.bf16.msra.mxu3 %v6875_v33 }
0x14ba   : > { %v9784_v37 = vpop.permute.xlu0 %7534 }
0x14bb   : > { %v4321_v32 = vpop.f32.mrf.mxu0 }
0x14bc   : > { %v4322_v1 = vadd.f32 %v4321_v32, %v9497_v34 }
0x14bd   : > { %4583 = vmatpush.bf16.msra.mxu2 %v6829_v12  ;;  %4658 = vmatpush.bf16.msra.mxu3 %v6867_v25 }
0x14be   : > { %v4334_v60 = vpack.c.bf16 %v4322_v1, %v4322_v1  ;;  %v9786_v1 = vpop.permute.xlu2 %7539 }
0x14c0   : > { %v4518_v48 = vunpack.c.l.b16 %v4334_v60 }
0x14c1   : > { %4584 = vmatpush.bf16.msra.mxu2 %v6821_v14  ;;  %4659 = vmatpush.bf16.msra.mxu3 %v6859_v5  ;;  %v9790_v5 = vpop.permute.xlu1 %7544 }
0x14c2   : > { %v4519_v58 = vpack.c.b16 %v4518_v48, %v4517_v43  ;;  %v9788_v14 = vpop.permute.xlu0 %7549 }
0x14c3   : > { %v4324_v42 = vpop.f32.mrf.mxu0 }
0x14c4   : > { %6804 = vmatmul.msk.bf16.vlgmr.msrb.gmra.mxu2 %vm2232_vm6, %v4434_v18  ;;  %6805 = vmatmul.msk.bf16.vlgmr.msrb.gmra.mxu3 %vm2232_vm6, %v4434_v18  ;;  %v4325_v34 = vadd.f32 %v4324_v42, %v9495_v51  ;;  %v9802_v18 = vsel %vm643_vm4, %v9505_v45, 0.0 }
0x14c5   : > { %6846 = vmatmul.msk.bf16.vlgmr.msra.gmra.mxu1 %vm2232_vm6, %v4519_v58 }
0x14c6   : > { %v4335_v27 = vpack.c.bf16 %v4325_v34, %v4325_v34  ;;  %v9792_v2 = vpop.permute.xlu2 %7554 }
0x14c8   : > { %v4606_v50 = vunpack.c.l.b16 %v4335_v27 }
0x14c9   : > { %v9796_v53 = vpop.permute.xlu1 %7559 }
0x14ca   : > { %v9794_v60 = vpop.permute.xlu0 %7564 }
0x14cb   : > { %v4326_v46 = vpop.f32.mrf.mxu0 }
0x14cc   : > { %v4327_v23 = vadd.f32 %v4326_v46, %v4266_v13 }
0x14ce   : > { %v4336_v31 = vpack.c.bf16 %v4327_v23, %v4327_v23  ;;  %v9798_v43 = vpop.permute.xlu2 %5257 }
0x14d0   : > { %v4607_v41 = vunpack.c.l.b16 %v4336_v31 }
0x14d2   : > { %v4608_v63 = vpack.c.b16 %v4607_v41, %v4606_v50  ;;  %v10932_v50 = vld [vmem:[#allocation3_spill] sm:$0xff] }
0x14d4   : > { %6847 = vmatmul.msk.bf16.vlgmr.msra.gmra.mxu2 %vm2232_vm6, %v4519_v58  ;;  %6888 = vmatmul.msk.bf16.vlgmr.msra.gmra.mxu3 %vm2232_vm6, %v4608_v63 }
0x14d5   : > { %6889 = vmatmul.msk.bf16.vlgmr.msrb.gmra.mxu1 %vm2232_vm6, %v4608_v63  ;;  %vm10960_vm6 = vcmask 924672  }
0x14d6   : > { %vm10961_vm9 = vmmov %vm10960_vm6 }
0x14d7   : > { %vm10962_vm8 = vmmov %vm10960_vm6 }
0x14d8   : > { %vm10963_vm7 = vmmov %vm10960_vm6 }
0x14d9   : > { %vm10979_vm1 = vmmov %vm10960_vm6 }
0x1537   : > { %v4411_v8 = vpop.f32.mrf.mxu2  ;;  %v4425_v26 = vpop.f32.mrf.mxu3 }
0x153f   : > { %v4413_v35 = vpop.f32.mrf.mxu2  ;;  %v4427_v15 = vpop.f32.mrf.mxu3 }
0x1542   : > { %v4572_v30 = vpop.f32.mrf.mxu1 }
0x1547   : > { %v4487_v51 = vpop.f32.mrf.mxu2  ;;  %v4501_v19 = vpop.f32.mrf.mxu3 }
0x1548   : > { %v4488_v7 = vadd.f32 %v4487_v51, %v4411_v8  ;;  %v4502_v28 = vadd.f32 %v4501_v19, %v4425_v26  ;;  %v10933_v26 = vld [vmem:[#allocation13_spill] sm:$0xff] }
0x154a   : > { %v4574_v61 = vpop.f32.mrf.mxu1  ;;  %v4591_v36 = vadd.f32 %v4572_v30, %v4488_v7  ;;  %v10934_v30 = vld [vmem:[#allocation4_spill] sm:$0xff] }
0x154f   : > { %v4489_v29 = vpop.f32.mrf.mxu2  ;;  %v4503_v33 = vpop.f32.mrf.mxu3 }
0x1550   : > { %v4490_v0 = vadd.f32 %v4489_v29, %v4413_v35  ;;  %v4504_v25 = vadd.f32 %v4503_v33, %v4427_v15  ;;  %v4746_v35 = vmul.f32 %v10933_v26, %v9802_v18  ;;  %v4737_v15 = vmul.f32 %v10932_v50, %v9802_v18  ;;  %v10935_v33 = vld [vmem:[#allocation6_spill] sm:$0xff] }
0x1552   : > { %v4675_v11 = vpop.f32.mrf.mxu1  ;;  %v4593_v62 = vadd.f32 %v4574_v61, %v4490_v0  ;;  %v10807_v61 = vunpack.i.h.bf16 %v9786_v1 }
0x1557   : > { %v4586_v57 = vpop.f32.mrf.mxu2  ;;  %v4661_v9 = vpop.f32.mrf.mxu3 }
0x1558   : > { %v4592_v3 = vadd.f32 %v4586_v57, %v4502_v28  ;;  %v4680_v55 = vadd.f32 %v4661_v9, %v4591_v36  ;;  %v10936_v9 = vld [vmem:[#allocation10_spill] sm:$0xff] }
0x155a   : > { %v4681_v12 = vadd.f32 %v4675_v11, %v4592_v3  ;;  %4690 = vrot.lane.b32.xlu0 %v4680_v55, %s10916_s17  ;;  %v4677_v32 = vpop.f32.mrf.mxu1  ;;  %v10940_v11 = vld [vmem:[#allocation29_spill] sm:$0xff] }
0x155c   : > { %4692 = vrot.lane.b32.xlu1 %v4681_v12, %s10916_s17 }
0x155f   : > { %v4588_v21 = vpop.f32.mrf.mxu2  ;;  %v4663_v6 = vpop.f32.mrf.mxu3 }
0x1560   : > { %v4594_v22 = vadd.f32 %v4588_v21, %v4504_v25  ;;  %v4682_v56 = vadd.f32 %v4663_v6, %v4593_v62  ;;  %v7541_v21 = vunpack.i.l.bf16 %v9786_v1 }
0x1562   : > { %v4683_v38 = vadd.f32 %v4677_v32, %v4594_v22  ;;  %4694 = vrot.lane.b32.xlu2 %v4682_v56, %s10916_s17  ;;  %v10813_v56 = vunpack.i.h.bf16 %v9788_v14 }
0x1564   : > { %4696 = vrot.lane.b32.xlu0 %v4683_v38, %s10916_s17 }
0x15bc   : > { %v4695_v8 = vpop.permute.xlu2 %4694 }
0x15bd   : > { %v9868_v55 = vsel %vm643_vm4, 0.0, %v4695_v8 }
0x15be   : > { %v9887_v32 = vmul.f32 %v8061_v47, %v9868_v55  ;;  %v9891_v38 = vmul.f32 %v10927_v44, %v9868_v55 }
0x15cc   : > { %v4691_v48 = vpop.permute.xlu0 %4690 }
0x15cd   : > { %v9805_v58 = vsel %vm643_vm4, 0.0, %v4691_v48 }
0x15ce   : > { %v4693_v42 = vpop.permute.xlu1 %4692  ;;  %v7578_v34 = vpack.i.bf16 %v9805_v58, %v9802_v18  ;;  %v4738_v45 = vmul.f32 %v8061_v47, %v9805_v58  ;;  %v4729_v27 = vmul.f32 %v10918_v39, %v9805_v58 }
0x15cf   : > { %v4702_v13 = vsel %vm643_vm4, %v4691_v48, %v4693_v42  ;;  %v9811_v46 = vsel %vm643_vm4, %v4693_v42, 0.0  ;;  %v10937_v48 = vld [vmem:[#allocation43_spill] sm:$0xff] }
0x15d0   : > { %10931 = vst [vmem:[#allocation15_spill] sm:$0xff] %v9811_v46  ;;  %7579 = vrot.lane.b32.xlu1 %v7578_v34, %s10912_s20  ;;  %7574 = vrot.lane.b32.xlu2 %v7578_v34, %s10897_s21  ;;  %v9821_v23 = vpack.i.bf16 %v9811_v46, %v4702_v13  ;;  %v9824_v31 = vmul.f32 %v4702_v13, %v10919_v4 }
0x15d1   : > { %7569 = vrot.lane.b32.xlu0 %v7578_v34, %s10920_s28  ;;  %v9828_v41 = vmul.f32 %v10932_v50, %v9811_v46  ;;  %v9831_v63 = vmul.f32 %v4702_v13, %v10924_v10  ;;  %v9839_v51 = vmul.f32 %v10934_v30, %v9811_v46  ;;  %v9842_v19 = vmul.f32 %v4702_v13, %v10922_v49  ;;  %v10938_v34 = vld [vmem:[#allocation40_spill] sm:$0xff] }
0x15d2   : > { %v9849_v7 = vmul.f32 %v10935_v33, %v9811_v46  ;;  %v9852_v28 = vmul.f32 %v4702_v13, %v10917_v54  ;;  %v9858_v36 = vmul.f32 %v10933_v26, %v9811_v46  ;;  %v9861_v57 = vmul.f32 %v4702_v13, %v10928_v24 }
0x15d3   : > { %v9865_v3 = vmul.f32 %v10936_v9, %v9811_v46  ;;  %v7583_v12 = vpack.i.bf16 %v4738_v45, %v4746_v35  ;;  %v7588_v25 = vpack.i.bf16 %v4729_v27, %v4737_v15  ;;  %v9894_v42 = vmul.f32 %v4702_v13, %v10937_v48 }
0x15d4   : > { %v9898_v45 = vmul.f32 %v10938_v34, %v9805_v58  ;;  %v5036_v15 = vsel %vm818_vm12, %v7541_v21, %v10807_v61  ;;  %v7547_v21 = vunpack.i.h.bf16 %v9790_v5  ;;  %v7546_v61 = vunpack.i.l.bf16 %v9790_v5 }
0x15d5   : > { %v5134_v29 = vpack.c.bf16 %v5036_v15, %v10940_v11  ;;  %v10942_v15 = vld [vmem:[#allocation27_spill] sm:$0xff]  ;;  %v10812_v5 = vunpack.i.h.bf16 %v9792_v2 }
0x15d6   : > { %v9870_v0 = vpop.permute.xlu0 %4696  ;;  %10939 = vst [vmem:[#allocation16_spill] sm:$0xff] %v9898_v45  ;;  %v4802_v40 = vsel %vm734_vm2, %v7546_v61, %v7547_v21  ;;  %v10943_v61 = vld [vmem:[#allocation23_spill] sm:$0xff]  ;;  %v10957_v45 = vld [vmem:[#allocation26_spill] sm:$0xff] }
0x15d7   : > { %v9877_v6 = vsel %vm643_vm4, %v4695_v8, %v9870_v0 }
0x15d8   : > { %7584 = vrot.lane.b32.xlu2 %v7583_v12, %s10895_s2  ;;  %7589 = vrot.lane.b32.xlu1 %v7588_v25, %s10896_s24  ;;  %v9902_v27 = vmul.f32 %v9877_v6, %v10917_v54  ;;  %v9906_v8 = vmul.f32 %v9877_v6, %v10928_v24  ;;  %v9910_v35 = vmul.f32 %v9877_v6, %v10937_v48  ;;  %v10941_v25 = vld [vmem:[#allocation45_spill] sm:$0xff]  ;;  %v7551_v54 = vunpack.i.l.bf16 %v9788_v14 }
0x15d9   : > { %v9914_v13 = vpack.i.bf16 %v9877_v6, %v9868_v55  ;;  %v9921_v12 = vmul.f32 %v10938_v34, %v9868_v55  ;;  %v5098_v47 = vpack.c.bf16 %v4802_v40, %v10941_v25 }
0x15da   : > { %v5003_v11 = vsel %vm806_vm11, %v7551_v54, %v10813_v56  ;;  %v4755_v54 = vmul.f32 %v10936_v9, %v9802_v18  ;;  %v7536_v56 = vunpack.i.l.bf16 %v9784_v37 }
0x15db   : > { %v5128_v62 = vpack.c.bf16 %v5003_v11, %v10942_v15 }
0x15e0   : > { %5305 = vrot.lane.b32.xlu2 %v5134_v29, %s10930_s25  ;;  %v7556_v29 = vunpack.i.l.bf16 %v9792_v2 }
0x15e2   : > { %v5078_v40 = vsel %vm833_vm10, %v7556_v29, %v10812_v5  ;;  %v10946_v29 = vunpack.i.h.bf16 %v9544_v16  ;;  %v7537_v5 = vunpack.i.h.bf16 %v9784_v37  ;;  %v10951_v37 = vunpack.i.h.bf16 %v9786_v1 }
0x15e3   : > { %v5140_v25 = vpack.c.bf16 %v5078_v40, %v10943_v61  ;;  %v10947_v61 = vld [vmem:[#allocation38_spill] sm:$0xff] }
0x15e8   : > { %5233 = vrot.lane.b32.xlu2 %v5098_v47, %s10930_s25  ;;  %v4747_v47 = vmul.f32 %v10927_v44, %v9805_v58 }
0x15ea   : > { %v7613_v11 = vpack.i.bf16 %v4747_v47, %v4755_v54  ;;  %v4844_v54 = vsel %vm749_vm0, %v7536_v56, %v7537_v5 }
0x15f0   : > { %5293 = vrot.lane.b32.xlu2 %v5128_v62, %s10930_s25 }
0x15f8   : > { %5317 = vrot.lane.b32.xlu2 %v5140_v25, %s10930_s25 }
0x1600   : > { %7614 = vrot.lane.b32.xlu2 %v7613_v11, %s10894_s22  ;;  %v10948_v11 = vld [vmem:[#allocation42_spill] sm:$0xff] }
0x1601   : > { %v5104_v44 = vpack.c.bf16 %v4844_v54, %v10948_v11 }
0x162a   : > { %v9957_v15 = vpop.permute.xlu2 %7574 }
0x162b   : > { %10944 = vst [vmem:[#allocation7_spill] sm:$0xff] %v9957_v15  ;;  %v7576_v56 = vunpack.i.l.bf16 %v9957_v15 }
0x1632   : > { %v9959_v62 = vpop.permute.xlu2 %7584 }
0x1633   : > { %10945 = vst [vmem:[#allocation9_spill] sm:$0xff] %v9959_v62  ;;  %v7586_v22 = vunpack.i.l.bf16 %v9959_v62  ;;  %v10955_v62 = vld [vmem:[#allocation44_spill] sm:$0xff] }
0x1635   : > { %v4887_v40 = vsel %vm764_vm15, %v10946_v29, %v7586_v22 }
0x1636   : > { %v5111_v25 = vpack.c.bf16 %v4887_v40, %v10947_v61 }
0x1638   : > { %5259 = vrot.lane.b32.xlu0 %v5111_v25, %s10930_s25  ;;  %v10952_v25 = vld [vmem:[#allocation30_spill] sm:$0xff] }
0x163a   : > { %v9969_v47 = vpop.permute.xlu2 %5305 }
0x1640   : > { %5245 = vrot.lane.b32.xlu0 %v5104_v44, %s10930_s25 }
0x1642   : > { %v9974_v24 = vpop.permute.xlu1 %7579  ;;  %v9976_v16 = vpop.permute.xlu2 %5233 }
0x1643   : > { %10949 = vst [vmem:[#allocation5_spill] sm:$0xff] %v9974_v24  ;;  %v9978_v29 = vpop.permute.xlu0 %7569  ;;  %v10954_v24 = vld [vmem:[#allocation41_spill] sm:$0xff] }
0x1644   : > { %10950 = vst [vmem:[#allocation8_spill] sm:$0xff] %v9976_v16  ;;  %v7571_v40 = vunpack.i.l.bf16 %v9978_v29  ;;  %v4803_v16 = vsel %vm734_vm2, %v7547_v21, %v7576_v56 }
0x1646   : > { %v5037_v61 = vsel %vm818_vm12, %v10951_v37, %v7571_v40 }
0x1647   : > { %v5135_v46 = vpack.c.bf16 %v5037_v61, %v10952_v25  ;;  %v5099_v61 = vpack.c.bf16 %v4803_v16, %v10955_v62  ;;  %v10956_v25 = vld [vmem:[#allocation20_spill] sm:$0xff]  ;;  %v10959_v16 = vld [vmem:[#allocation37_spill] sm:$0xff] }
0x1649   : > { %5307 = vrot.lane.b32.xlu0 %v5135_v46, %s10930_s25 }
0x164a   : > { %v9987_v54 = vpop.permute.xlu1 %7589  ;;  %v9989_v44 = vpop.permute.xlu2 %5293 }
0x164b   : > { %10953 = vst [vmem:[#allocation39_spill] sm:$0xff] %v9989_v44  ;;  %v10821_v11 = vunpack.i.l.bf16 %v9987_v54  ;;  %v5136_v44 = vpack.c.bf16 %v7571_v40, %v10956_v25  ;;  %v4756_v40 = vmul.f32 %v10923_v52, %v9805_v58 }
0x164d   : > { %v4845_v1 = vsel %vm749_vm0, %v7537_v5, %v10821_v11  ;;  %v10958_v5 = vld [vmem:[#allocation25_spill] sm:$0xff] }
0x164e   : > { %v5105_v37 = vpack.c.bf16 %v4845_v1, %v10954_v24  ;;  %v5112_v62 = vpack.c.bf16 %v7586_v22, %v10958_v5  ;;  %v5100_v1 = vpack.c.bf16 %v7576_v56, %v10959_v16  ;;  %v10030_v22 = vsel %vm643_vm4, %v9870_v0, 0.0 }
0x164f   : > { %v4743_v56 = vmul.f32 %v10933_v26, %v10030_v22  ;;  %v4759_v0 = vmul.f32 %v10923_v52, %v9868_v55  ;;  %v4768_v16 = vmul.f32 %v10921_v20, %v9868_v55 }
0x1650   : > { %5247 = vrot.lane.b32.xlu1 %v5105_v37, %s10930_s25  ;;  %v4733_v37 = vmul.f32 %v9877_v6, %v10919_v4 }
0x1651   : > { %5235 = vrot.lane.b32.xlu0 %v5099_v61, %s10930_s25  ;;  %v4732_v61 = vmul.f32 %v10918_v39, %v9868_v55 }
0x1652   : > { %v10000_v46 = vpop.permute.xlu2 %5317 }
0x1653   : > { %v7668_v25 = vpack.i.bf16 %v4733_v37, %v4732_v61 }
0x1658   : > { %5309 = vrot.lane.b32.xlu1 %v5136_v44, %s10930_s25  ;;  %v4764_v44 = vmul.f32 %v10934_v30, %v9802_v18 }
0x165a   : > { %v10004_v15 = vpop.permute.xlu2 %7614 }
0x165b   : > { %v10822_v21 = vunpack.i.l.bf16 %v10004_v15 }
0x165d   : > { %v5124_v24 = vpack.c.bf16 %v10822_v21, %v10957_v45  ;;  %v7598_v45 = vpack.i.bf16 %v4756_v40, %v4764_v44  ;;  %v4752_v40 = vmul.f32 %v10936_v9, %v10030_v22  ;;  %v10964_v21 = vunpack.i.h.bf16 %v9788_v14  ;;  %v10965_v9 = vld [vmem:[#allocation22_spill] sm:$0xff] }
0x165e   : > { %v10967_v14 = vld [vmem:[#allocation46_spill] sm:$0xff] }
0x165f   : > { %5285 = vrot.lane.b32.xlu2 %v5124_v24, %s10930_s25  ;;  %v4760_v24 = vmul.f32 %v9877_v6, %v10924_v10 }
0x1660   : > { %5261 = vrot.lane.b32.xlu1 %v5112_v62, %s10930_s25  ;;  %v4769_v62 = vmul.f32 %v9877_v6, %v10922_v49 }
0x1661   : > { %v7673_v5 = vpack.i.bf16 %v4760_v24, %v4759_v0 }
0x1667   : > { %5237 = vrot.lane.b32.xlu2 %v5100_v1, %s10930_s25  ;;  %v7678_v1 = vpack.i.bf16 %v4769_v62, %v4768_v16 }
0x1668   : > { %7594 = vrot.lane.b32.xlu1 %v9821_v23, %s10920_s28 }
0x166f   : > { %7619 = vrot.lane.b32.xlu2 %v9821_v23, %s10912_s20 }
0x1670   : > { %7599 = vrot.lane.b32.xlu1 %v7598_v45, %s10926_s5 }
0x1677   : > { %7649 = vrot.lane.b32.xlu2 %v9914_v13, %s10920_s28 }
0x167f   : > { %7654 = vrot.lane.b32.xlu2 %v9914_v13, %s10897_s21 }
0x1687   : > { %4874 = vrot.lane.b32.xlu2 %v4743_v56, %s10895_s2 }
0x168f   : > { %7669 = vrot.lane.b32.xlu2 %v7668_v25, %s10896_s24 }
0x1697   : > { %7674 = vrot.lane.b32.xlu2 %v7673_v5, %s10926_s5 }
0x169f   : > { %7679 = vrot.lane.b32.xlu2 %v7678_v1, %s10925_s0 }
0x16a7   : > { %4949 = vrot.lane.b32.xlu2 %v4752_v40, %s10894_s22 }
0x16aa   : > { %v5260_v44 = vpop.permute.xlu0 %5259 }
0x16ab   : > { %v5337_v45 = vsel %vm10960_vm6, %v9798_v43, %v5260_v44  ;;  %vm10991_vm6 = vmmov %vm10979_vm1 }
0x16ac   : > { %5398 = vmatpush.bf16.msra.mxu0 %v5337_v45  ;;  %v7572_v45 = vunpack.i.h.bf16 %v9978_v29 }
0x16b2   : > { %v10055_v56 = vpop.permute.xlu0 %5245 }
0x16b9   : > { %v10057_v37 = vpop.permute.xlu2 %5285 }
0x16bb   : > { %v5308_v6 = vpop.permute.xlu0 %5307 }
0x16bc   : > { %v5353_v55 = vsel %vm10961_vm9, %v9969_v47, %v5308_v6  ;;  %vm10999_vm9 = vmmov %vm10969_vm13 }
0x16bd   : > { %5411 = vmatpush.bf16.msrb.mxu2 %v5353_v55 }
0x16c1   : > { %v10061_v61 = vpop.permute.xlu2 %5237 }
0x16c2   : > { %v10063_v25 = vpop.permute.xlu1 %5247 }
0x16c9   : > { %v10068_v5 = vpop.permute.xlu2 %7619 }
0x16ca   : > { %v5310_v24 = vpop.permute.xlu1 %5309 }
0x16cb   : > { %v10066_v0 = vsel %vm10962_vm8, %v5308_v6, %v5310_v24  ;;  %vm11000_vm8 = vmmov %vm10999_vm9 }
0x16d1   : > { %v10071_v16 = vpop.permute.xlu2 %7649 }
0x16d2   : > { %v5262_v43 = vpop.permute.xlu1 %5261  ;;  %v10825_v1 = vunpack.i.h.bf16 %v10071_v16  ;;  %v7651_v47 = vunpack.i.l.bf16 %v10071_v16 }
0x16d3   : > { %v5338_v62 = vsel %vm10963_vm7, %v5260_v44, %v5262_v43  ;;  %vm11001_vm7 = vmmov %vm11000_vm8 }
0x16d4   : > { %5437 = vmatpush.bf16.msra.mxu1 %v5338_v62  ;;  %v5034_v24 = vsel %vm818_vm12, %v7651_v47, %v10825_v1  ;;  %v10966_v1 = vld [vmem:[#allocation28_spill] sm:$0xff] }
0x16da   : > { %v10075_v40 = vpop.permute.xlu1 %7594 }
0x16db   : > { %v7597_v55 = vunpack.i.h.bf16 %v10075_v40  ;;  %v7596_v6 = vunpack.i.l.bf16 %v10075_v40 }
0x16dd   : > { %v5032_v44 = vsel %vm818_vm12, %v7572_v45, %v7596_v6  ;;  %v10087_v43 = vsel %vm818_vm12, %v7596_v6, %v7597_v55  ;;  %v4727_v6 = vmul.f32 %v9509_v17, %v10937_v48  ;;  %v10968_v17 = vunpack.i.l.bf16 %v10004_v15 }
0x16de   : > { %v5131_v62 = vpack.c.bf16 %v5034_v24, %v5032_v44  ;;  %v4765_v24 = vmul.f32 %v10921_v20, %v9805_v58  ;;  %v4773_v44 = vmul.f32 %v10935_v33, %v9802_v18  ;;  %v10970_v58 = vld [vmem:[#allocation33_spill] sm:$0xff] }
0x16e0   : > { %5299 = vrot.lane.b32.xlu2 %v5131_v62, %s10930_s25  ;;  %v5093_v62 = vpack.c.bf16 %v4727_v6, %v10967_v14  ;;  %v10972_v6 = vld [vmem:[#allocation34_spill] sm:$0xff]  ;;  %v10975_v14 = vpack.i.bf16 %v9849_v7, %v9842_v19 }
0x16e2   : > { %v10090_v11 = vpop.permute.xlu1 %7599 }
0x16e3   : > { %v7601_v29 = vunpack.i.l.bf16 %v10090_v11 }
0x16e5   : > { %v5004_v26 = vsel %vm806_vm11, %v10964_v21, %v7601_v29  ;;  %v5130_v47 = vpack.c.bf16 %v7601_v29, %v10965_v9  ;;  %v7603_v21 = vpack.i.bf16 %v4765_v24, %v4773_v44  ;;  %v10827_v29 = vunpack.i.h.bf16 %v9794_v60 }
0x16e6   : > { %v5129_v45 = vpack.c.bf16 %v5004_v26, %v10966_v1  ;;  %v7562_v26 = vunpack.i.h.bf16 %v9796_v53  ;;  %v10973_v24 = vpack.i.bf16 %v9828_v41, %v9824_v31  ;;  %v10974_v44 = vpack.i.bf16 %v9839_v51, %v9831_v63  ;;  %v10150_v63 = vpop.permute.xlu0 %5235 }
0x16e7   : > { %5297 = vrot.lane.b32.xlu1 %v5130_v47, %s10930_s25  ;;  %v7566_v47 = vunpack.i.l.bf16 %v9794_v60  ;;  %v10977_v31 = vpack.i.bf16 %v9906_v8, %v9891_v38  ;;  %v10978_v41 = vpack.c.bf16 %v9910_v35, %v9894_v42  ;;  %v10980_v38 = vunpack.i.h.bf16 %v9792_v2  ;;  %v10981_v8 = vld [vmem:[#allocation24_spill] sm:$0xff] }
0x16e8   : > { %5295 = vrot.lane.b32.xlu0 %v5129_v45, %s10930_s25  ;;  %v4962_v9 = vsel %vm10969_vm13, %v7562_v26, %v10968_v17  ;;  %v10983_v17 = vunpack.i.l.bf16 %v9987_v54  ;;  %vm11002_vm13 = vmmov %vm11001_vm7 }
0x16e9   : > { %v5123_v1 = vpack.c.bf16 %v4962_v9, %v10970_v58  ;;  %v4919_v45 = vsel %vm10971_vm3, %v7566_v47, %v10827_v29  ;;  %v4726_v58 = vmul.f32 %v10938_v34, %v9512_v59  ;;  %v10988_v59 = vpack.i.bf16 %v9865_v3, %v9861_v57  ;;  %v10989_v57 = vld [vmem:[#allocation16_spill] sm:$0xff] }
0x16ea   : > { %v10990_v3 = vpack.c.bf16 %v9921_v12, %v10989_v57 }
0x16ef   : > { %5223 = vrot.lane.b32.xlu1 %v5093_v62, %s10930_s25  ;;  %v10976_v62 = vpack.i.bf16 %v9902_v27, %v9887_v32 }
0x16f0   : > { %7604 = vrot.lane.b32.xlu0 %v7603_v21, %s10925_s0  ;;  %v10982_v21 = vld [vmem:[#allocation21_spill] sm:$0xff] }
0x16f1   : > { %v5106_v9 = vpack.c.bf16 %v10983_v17, %v10982_v21 }
0x16f7   : > { %7609 = vrot.lane.b32.xlu1 %v9821_v23, %s10897_s21  ;;  %v5116_v23 = vpack.c.bf16 %v4919_v45, %v10972_v6  ;;  %v7561_v45 = vunpack.i.l.bf16 %v9796_v53  ;;  %v10986_v6 = vld [vmem:[#allocation32_spill] sm:$0xff]  ;;  %v4734_v53 = vmul.f32 %v10932_v50, %v10030_v22 }
0x16f9   : > { %v4961_v2 = vsel %vm10985_vm14, %v7561_v45, %v7562_v26  ;;  %v10992_v45 = vld [vmem:[#allocation7_spill] sm:$0xff] }
0x16ff   : > { %5283 = vrot.lane.b32.xlu1 %v5123_v1, %s10930_s25  ;;  %v10984_v1 = vld [vmem:[#allocation47_spill] sm:$0xff] }
0x1700   : > { %v5092_v47 = vpack.c.bf16 %v4726_v58, %v10984_v1 }
0x1707   : > { %5269 = vrot.lane.b32.xlu1 %v5116_v23, %s10930_s25  ;;  %v5122_v23 = vpack.c.bf16 %v4961_v2, %v10986_v6  ;;  %v7577_v2 = vunpack.i.h.bf16 %v10992_v45 }
0x170f   : > { %7629 = vrot.lane.b32.xlu1 %v10973_v24, %s10896_s24  ;;  %v10987_v24 = vpack.i.bf16 %v9858_v36, %v9852_v28  ;;  %v4761_v28 = vmul.f32 %v10934_v30, %v10030_v22  ;;  %v4770_v36 = vmul.f32 %v10935_v33, %v10030_v22 }
0x1717   : > { %7634 = vrot.lane.b32.xlu1 %v10974_v44, %s10926_s5 }
0x171f   : > { %7639 = vrot.lane.b32.xlu1 %v10975_v14, %s10925_s0 }
0x1727   : > { %4907 = vrot.lane.b32.xlu1 %v10030_v22, %s10912_s20 }
0x172f   : > { %7664 = vrot.lane.b32.xlu1 %v10976_v62, %s10895_s2 }
0x1737   : > { %7684 = vrot.lane.b32.xlu1 %v10977_v31, %s10894_s22 }
0x173f   : > { %5217 = vrot.lane.b32.xlu1 %v10978_v41, %s10930_s25 }
0x1759   : > { %v5298_v51 = vpop.permute.xlu1 %5297 }
0x175a   : > { %v10152_v19 = vpop.permute.xlu0 %5295 }
0x175b   : > { %v10156_v7 = vsel %vm10979_vm1, %v10152_v19, %v5298_v51  ;;  %vm11003_vm1 = vmmov %vm10971_vm3 }
0x175c   : > { %vm11005_vm14 = vmmov %vm11003_vm1 }
0x1762   : > { %v10158_v32 = vpop.permute.xlu0 %7604 }
0x1763   : > { %v10826_v27 = vunpack.i.l.bf16 %v10158_v32 }
0x1765   : > { %v5079_v42 = vsel %vm833_vm10, %v10980_v38, %v10826_v27 }
0x1766   : > { %v5141_v35 = vpack.c.bf16 %v5079_v42, %v10981_v8  ;;  %v7655_v42 = vpop.permute.xlu2 %7654 }
0x1767   : > { %v7657_v6 = vunpack.i.h.bf16 %v7655_v42 }
0x1768   : > { %5319 = vrot.lane.b32.xlu0 %v5141_v35, %s10930_s25 }
0x176e   : > { %v10230_v21 = vpop.permute.xlu2 %4874 }
0x1770   : > { %5249 = vrot.lane.b32.xlu0 %v5106_v9, %s10930_s25 }
0x1776   : > { %v10238_v1 = vpop.permute.xlu2 %7669 }
0x1778   : > { %5221 = vrot.lane.b32.xlu0 %v5092_v47, %s10930_s25 }
0x1780   : > { %5281 = vrot.lane.b32.xlu0 %v5122_v23, %s10930_s25  ;;  %v7656_v23 = vunpack.i.l.bf16 %v7655_v42  ;;  %v10250_v42 = vpop.permute.xlu2 %7674 }
0x1788   : > { %7624 = vrot.lane.b32.xlu0 %v10987_v24, %s10895_s2 }
0x1790   : > { %7644 = vrot.lane.b32.xlu0 %v10988_v59, %s10894_s22 }
0x1798   : > { %5024 = vrot.lane.b32.xlu0 %v10030_v22, %s10920_s28 }
0x17a0   : > { %4790 = vrot.lane.b32.xlu0 %v10030_v22, %s10897_s21 }
0x17a8   : > { %7659 = vrot.lane.b32.xlu0 %v9914_v13, %s10912_s20  ;;  %v10207_v13 = vpop.permute.xlu1 %5223 }
0x17b0   : > { %4832 = vrot.lane.b32.xlu0 %v4734_v53, %s10896_s24  ;;  %v7610_v26 = vpop.permute.xlu1 %7609 }
0x17b1   : > { %v7611_v47 = vunpack.i.l.bf16 %v7610_v26  ;;  %v7612_v24 = vunpack.i.h.bf16 %v7610_v26 }
0x17b3   : > { %v4798_v59 = vsel %vm734_vm2, %v7577_v2, %v7611_v47  ;;  %v4799_v40 = vsel %vm734_vm2, %v7611_v47, %v7612_v24 }
0x17b8   : > { %4991 = vrot.lane.b32.xlu0 %v4761_v28, %s10926_s5  ;;  %v10214_v62 = vpop.permute.xlu1 %5283  ;;  %v4800_v28 = vsel %vm734_vm2, %v7656_v23, %v7657_v6 }
0x17b9   : > { %v5095_v57 = vpack.c.bf16 %v4800_v28, %v4798_v59  ;;  %v10994_v59 = vld [vmem:[#allocation9_spill] sm:$0xff] }
0x17ba   : > { %v7587_v28 = vunpack.i.h.bf16 %v10994_v59 }
0x17c0   : > { %5066 = vrot.lane.b32.xlu0 %v4770_v36, %s10925_s0  ;;  %v10218_v41 = vpop.permute.xlu1 %5269 }
0x17c8   : > { %5215 = vrot.lane.b32.xlu0 %v10990_v3, %s10930_s25  ;;  %v10224_v38 = vpop.permute.xlu1 %7629 }
0x17d0   : > { %v10228_v35 = vpop.permute.xlu1 %7634 }
0x17d8   : > { %v10234_v17 = vpop.permute.xlu1 %7639 }
0x17da   : > { %v10209_v44 = vpop.permute.xlu0 %5319 }
0x17db   : > { %v5357_v14 = vsel %vm10991_vm6, %v10000_v46, %v10209_v44  ;;  %vm11009_vm6 = vmmov %vm11003_vm1 }
0x17dc   : > { %5430 = vmatpush.bf16.msrb.mxu3 %v5357_v14 }
0x17e0   : > { %v10243_v53 = vpop.permute.xlu1 %4907 }
0x17e2   : > { %v10216_v31 = vpop.permute.xlu0 %5249 }
0x17e8   : > { %v7665_v47 = vpop.permute.xlu1 %7664 }
0x17ea   : > { %v10220_v51 = vpop.permute.xlu0 %5221 }
0x17f2   : > { %v10222_v12 = vpop.permute.xlu0 %5281 }
0x17fa   : > { %v10226_v8 = vpop.permute.xlu0 %7624 }
0x17fb   : > { %v7627_v26 = vunpack.i.h.bf16 %v10226_v8 }
0x1802   : > { %v10232_v46 = vpop.permute.xlu0 %7644 }
0x180a   : > { %v5025_v9 = vpop.permute.xlu0 %5024 }
0x180b   : > { %v5133_v58 = vpack.c.bf16 %v5025_v9, %v7597_v55 }
0x180d   : > { %5303 = vrot.lane.b32.xlu1 %v5133_v58, %s10930_s25  ;;  %v10993_v58 = vunpack.i.h.bf16 %v10071_v16  ;;  %v10265_v16 = vpop.permute.xlu2 %7679 }
0x180f   : > { %v5035_v45 = vsel %vm818_vm12, %v10993_v58, %v5025_v9  ;;  %v7602_v58 = vunpack.i.h.bf16 %v10090_v11  ;;  %v7672_v11 = vunpack.i.h.bf16 %v10238_v1 }
0x1810   : > { %v5132_v23 = vpack.c.bf16 %v5035_v45, %v10087_v43  ;;  %v7677_v45 = vunpack.i.h.bf16 %v10250_v42 }
0x1812   : > { %v4791_v36 = vpop.permute.xlu0 %4790 }
0x1813   : > { %v4801_v55 = vsel %vm734_vm2, %v7657_v6, %v4791_v36  ;;  %v5097_v3 = vpack.c.bf16 %v4791_v36, %v7612_v24  ;;  %v5109_v6 = vpack.c.bf16 %v10230_v21, %v7627_v26  ;;  %v7626_v24 = vunpack.i.l.bf16 %v10226_v8 }
0x1814   : > { %v5096_v14 = vpack.c.bf16 %v4801_v55, %v4799_v40  ;;  %v7667_v36 = vunpack.i.h.bf16 %v7665_v47  ;;  %v7632_v40 = vunpack.i.h.bf16 %v10224_v38  ;;  %v7636_v8 = vunpack.i.l.bf16 %v10228_v35 }
0x1815   : > { %5231 = vrot.lane.b32.xlu0 %v5097_v3, %s10930_s25  ;;  %5227 = vrot.lane.b32.xlu1 %v5095_v57, %s10930_s25  ;;  %v7666_v57 = vunpack.i.l.bf16 %v7665_v47  ;;  %v4882_v9 = vsel %vm764_vm15, %v7587_v28, %v7626_v24  ;;  %v7676_v47 = vunpack.i.l.bf16 %v10250_v42  ;;  %v4950_v28 = vpop.permute.xlu2 %4949  ;;  %v7631_v42 = vunpack.i.l.bf16 %v10224_v38 }
0x1816   : > { %5229 = vrot.lane.b32.xlu2 %v5096_v14, %s10930_s25  ;;  %v4999_v59 = vsel %vm806_vm11, %v7602_v58, %v7636_v8  ;;  %v7681_v58 = vunpack.i.l.bf16 %v10265_v16 }
0x1817   : > { %v4884_v55 = vsel %vm764_vm15, %v7666_v57, %v7667_v36  ;;  %v4841_v29 = vsel %vm749_vm0, %v7631_v42, %v7632_v40 }
0x1818   : > { %v5107_v43 = vpack.c.bf16 %v4884_v55, %v4882_v9  ;;  %v5001_v9 = vsel %vm806_vm11, %v7676_v47, %v7677_v45  ;;  %v7607_v47 = vunpack.i.h.bf16 %v10158_v32 }
0x1819   : > { %v5125_v27 = vpack.c.bf16 %v5001_v9, %v4999_v59  ;;  %v4883_v59 = vsel %vm764_vm15, %v7626_v24, %v7627_v26  ;;  %v7592_v26 = vunpack.i.h.bf16 %v9987_v54  ;;  %v7671_v24 = vunpack.i.l.bf16 %v10238_v1  ;;  %v10998_v54 = vld [vmem:[#allocation36_spill] sm:$0xff] }
0x181a   : > { %v10257_v2 = vpop.permute.xlu0 %7659 }
0x181d   : > { %5301 = vrot.lane.b32.xlu0 %v5132_v23, %s10930_s25  ;;  %5255 = vrot.lane.b32.xlu1 %v5109_v6, %s10930_s25  ;;  %v7647_v6 = vunpack.i.h.bf16 %v10232_v46  ;;  %v7637_v23 = vunpack.i.h.bf16 %v10228_v35  ;;  %v7682_v35 = vunpack.i.h.bf16 %v10265_v16  ;;  %v10995_v16 = vld [vmem:[#allocation5_spill] sm:$0xff] }
0x181f   : > { %v5121_v55 = vpack.c.bf16 %v4950_v28, %v7647_v6  ;;  %v5076_v38 = vsel %vm833_vm10, %v7681_v58, %v7682_v35  ;;  %v10997_v58 = vld [vmem:[#allocation18_spill] sm:$0xff] }
0x1822   : > { %v4833_v3 = vpop.permute.xlu0 %4832 }
0x1823   : > { %v5103_v14 = vpack.c.bf16 %v4833_v3, %v7632_v40  ;;  %v4843_v9 = vsel %vm749_vm0, %v7672_v11, %v4833_v3  ;;  %v7581_v3 = vunpack.i.l.bf16 %v10995_v16 }
0x1824   : > { %v5102_v48 = vpack.c.bf16 %v4843_v9, %v4841_v29  ;;  %v4842_v29 = vsel %vm749_vm0, %v7671_v24, %v7672_v11  ;;  %v7646_v9 = vunpack.i.l.bf16 %v10232_v46 }
0x1825   : > { %5243 = vrot.lane.b32.xlu2 %v5103_v14, %s10930_s25  ;;  %5251 = vrot.lane.b32.xlu1 %v5107_v43, %s10930_s25  ;;  %v7641_v43 = vunpack.i.l.bf16 %v10234_v17 }
0x182a   : > { %v4992_v57 = vpop.permute.xlu0 %4991 }
0x182b   : > { %v5127_v14 = vpack.c.bf16 %v4992_v57, %v7637_v23  ;;  %v5002_v11 = vsel %vm806_vm11, %v7677_v45, %v4992_v57  ;;  %v7622_v45 = vunpack.i.h.bf16 %v10068_v5  ;;  %v7642_v57 = vunpack.i.h.bf16 %v10234_v17 }
0x182d   : > { %5291 = vrot.lane.b32.xlu0 %v5127_v14, %s10930_s25  ;;  %5279 = vrot.lane.b32.xlu2 %v5121_v55, %s10930_s25  ;;  %v5074_v14 = vsel %vm833_vm10, %v7607_v47, %v7641_v43  ;;  %v4885_v55 = vsel %vm764_vm15, %v7667_v36, %v10230_v21  ;;  %v4840_v21 = vsel %vm749_vm0, %v7592_v26, %v7631_v42  ;;  %v10996_v36 = vld [vmem:[#allocation31_spill] sm:$0xff] }
0x182e   : > { %5287 = vrot.lane.b32.xlu1 %v5125_v27, %s10930_s25  ;;  %v5108_v27 = vpack.c.bf16 %v4885_v55, %v4883_v59  ;;  %v5137_v34 = vpack.c.bf16 %v5076_v38, %v5074_v14  ;;  %v4728_v40 = vmul.f32 %v10996_v36, %v9802_v18  ;;  %v5118_v47 = vpack.c.bf16 %v7581_v3, %v10997_v58  ;;  %v7685_v59 = vpop.permute.xlu1 %7684 }
0x182f   : > { %v7687_v1 = vunpack.i.h.bf16 %v7685_v59  ;;  %v7686_v42 = vunpack.i.l.bf16 %v7685_v59  ;;  %v4958_v55 = vsel %vm11000_vm8, %v7646_v9, %v7647_v6  ;;  %v5000_v38 = vsel %vm806_vm11, %v7636_v8, %v7637_v23  ;;  %v11006_v59 = vld [vmem:[#allocation19_spill] sm:$0xff] }
0x1830   : > { %v5094_v14 = vpack.c.bf16 %v4728_v40, %v10998_v54  ;;  %v5126_v24 = vpack.c.bf16 %v5002_v11, %v5000_v38  ;;  %v7621_v6 = vunpack.i.l.bf16 %v10068_v5  ;;  %v11004_v5 = vunpack.i.h.bf16 %v9794_v60  ;;  %v11008_v54 = vld [vmem:[#allocation35_spill] sm:$0xff]  ;;  %v5300_v11 = vpop.permute.xlu2 %5299 }
0x1831   : > { %v4959_v46 = vsel %vm11001_vm7, %v7686_v42, %v7687_v1  ;;  %vm11012_vm8 = vcmask 924672  }
0x1832   : > { %v5067_v40 = vpop.permute.xlu0 %5066  ;;  %v4920_v17 = vsel %vm11005_vm14, %v11004_v5, %v7581_v3  ;;  %vm11013_vm7 = vmmov %vm11012_vm8 }
0x1833   : > { %v5077_v23 = vsel %vm833_vm10, %v7682_v35, %v5067_v40  ;;  %v11007_v35 = vunpack.i.l.bf16 %v10158_v32  ;;  %v4725_v32 = vmul.f32 %v10996_v36, %v10030_v22 }
0x1835   : > { %5241 = vrot.lane.b32.xlu0 %v5102_v48, %s10930_s25  ;;  %5253 = vrot.lane.b32.xlu2 %v5108_v27, %s10930_s25  ;;  %v5101_v48 = vpack.c.bf16 %v4842_v29, %v4840_v21  ;;  %v4960_v27 = vsel %vm11002_vm13, %v7687_v1, %v4950_v28  ;;  %v4916_v28 = vsel %vm11003_vm1, %v7621_v6, %v7622_v45  ;;  %vm11015_vm13 = vmmov %vm11013_vm7 }
0x1836   : > { %5311 = vrot.lane.b32.xlu1 %v5137_v34, %s10930_s25  ;;  %v7617_v34 = vunpack.i.h.bf16 %v10004_v15  ;;  %v5120_v21 = vpack.c.bf16 %v4960_v27, %v4958_v55  ;;  %v7662_v15 = vunpack.i.h.bf16 %v10257_v2  ;;  %v5075_v29 = vsel %vm833_vm10, %v7641_v43, %v7642_v57  ;;  %v10358_v55 = vpop.permute.xlu1 %5217 }
0x1837   : > { %v5117_v43 = vpack.c.bf16 %v4920_v17, %v11008_v54 }
0x1838   : > { %v4957_v18 = vsel %vm10999_vm9, %v7617_v34, %v7646_v9  ;;  %v4918_v8 = vsel %vm10971_vm3, %v7662_v15, %v10243_v53  ;;  %v5142_v9 = vpack.c.bf16 %v11007_v35, %v11006_v59  ;;  %v5139_v34 = vpack.c.bf16 %v5067_v40, %v7642_v57  ;;  %vm11010_vm9 = vmmov %vm11003_vm1 }
0x1839   : > { %v5119_v26 = vpack.c.bf16 %v4959_v46, %v4957_v18  ;;  %v5114_v58 = vpack.c.bf16 %v4918_v8, %v4916_v28  ;;  %v11014_v8 = vld [vmem:[#allocation39_spill] sm:$0xff]  ;;  %vm11016_vm3 = vmmov %vm11013_vm7 }
0x183a   : > { %v10360_v38 = vpop.permute.xlu0 %5215  ;;  %v5334_v28 = vsel %vm11016_vm3, %v10063_v25, %v10216_v31  ;;  %vm11017_vm1 = vmmov %vm11016_vm3  ;;  %v5144_v31 = vld [vmem:[%s10688_s11 + $0x8] sm:$0xf] }
0x183b   : > { %vm11018_vm14 = vmmov %vm11017_vm1 }
0x183c   : > { %vm11025_vm3 = vmmov %vm11017_vm1 }
0x183d   : > { %5273 = vrot.lane.b32.xlu0 %v5118_v47, %s10930_s25  ;;  %5239 = vrot.lane.b32.xlu2 %v5101_v48, %s10930_s25  ;;  %v5138_v47 = vpack.c.bf16 %v5077_v23, %v5075_v29  ;;  %v5115_v48 = vpack.c.bf16 %v10243_v53, %v7622_v45  ;;  %v7582_v53 = vunpack.i.h.bf16 %v10995_v16  ;;  %v5145_v16 = vld [vmem:[%s10691_s14 + $0x150] sm:$0xff]  ;;  %v5349_v23 = vsel %vm11015_vm13, %v11014_v8, %v10152_v19  ;;  %vm11023_vm13 = vmmov %vm11017_vm1 }
0x183e   : > { %5225 = vrot.lane.b32.xlu1 %v5094_v14, %s10930_s25  ;;  %v7661_v14 = vunpack.i.l.bf16 %v10257_v2  ;;  %v11011_v2 = vld [vmem:[#allocation15_spill] sm:$0xff] }
0x183f   : > { %v4915_v3 = vsel %vm11010_vm9, %v7582_v53, %v7621_v6  ;;  %v4722_v42 = vmul.f32 %v10996_v36, %v11011_v2  ;;  %vm11020_vm9 = vmmov %vm11017_vm1 }
0x1840   : > { %v4917_v60 = vsel %vm11009_vm6, %v7661_v14, %v7662_v15  ;;  %vm11019_vm6 = vmmov %vm11017_vm1  ;;  %v5345_v35 = vsel %vm11020_vm9, %v10222_v12, %v10214_v62  ;;  %v11024_v12 = vld [vmem:[#allocation8_spill] sm:$0xff] }
0x1841   : > { %v5113_v1 = vpack.c.bf16 %v4917_v60, %v4915_v3  ;;  %v5091_v18 = vpack.c.bf16 %v4725_v32, %v4722_v42  ;;  %v5329_v60 = vsel %vm11025_vm3, %v11024_v12, %v10150_v63  ;;  %v5330_v3 = vsel %vm11017_vm1, %v10150_v63, %v10061_v61  ;;  %vm11028_vm9 = vmmov %vm11017_vm1  ;;  %v5143_v61 = vld [vmem:[%s10688_s11] sm:$0xff] }
0x1842   : > { %vm11032_vm3 = vmmov %vm11017_vm1 }
0x1845   : > { %5275 = vrot.lane.b32.xlu0 %v5119_v26, %s10930_s25  ;;  %5289 = vrot.lane.b32.xlu2 %v5126_v24, %s10930_s25 }
0x1846   : > { %5277 = vrot.lane.b32.xlu1 %v5120_v21, %s10930_s25 }
0x184d   : > { %5265 = vrot.lane.b32.xlu0 %v5114_v58, %s10930_s25  ;;  %5313 = vrot.lane.b32.xlu2 %v5138_v47, %s10930_s25 }
0x184e   : > { %5267 = vrot.lane.b32.xlu1 %v5115_v48, %s10930_s25  ;;  %v5333_v48 = vsel %vm11018_vm14, %v10055_v56, %v10063_v25  ;;  %vm11026_vm14 = vmmov %vm11017_vm1 }
0x1855   : > { %5321 = vrot.lane.b32.xlu0 %v5142_v9, %s10930_s25  ;;  %5271 = vrot.lane.b32.xlu2 %v5117_v43, %s10930_s25  ;;  %v5155_v9 = vunpack.c.l.b16 %v5144_v31 }
0x1856   : > { %5315 = vrot.lane.b32.xlu1 %v5139_v34, %s10930_s25 }
0x1857   : > { %v5158_v53 = vpack.c.b16 %v5155_v9, %v5155_v9 }
0x185d   : > { %5263 = vrot.lane.b32.xlu2 %v5113_v1, %s10930_s25 }
0x1865   : > { %5219 = vrot.lane.b32.xlu2 %v5091_v18, %s10930_s25 }
0x186d   : > { %5148 = vperm.xlu2 %7206, %v5145_v16  }
0x1870   : > { %v5230_v46 = vpop.permute.xlu2 %5229 }
0x187f   : > { %v5304_v27 = vpop.permute.xlu1 %5303  ;;  %v5244_v26 = vpop.permute.xlu2 %5243 }
0x1887   : > { %v5232_v22 = vpop.permute.xlu0 %5231  ;;  %v10362_v24 = vpop.permute.xlu2 %5279 }
0x1888   : > { %v5228_v21 = vpop.permute.xlu1 %5227  ;;  %v5328_v18 = vsel %vm11028_vm9, %v5230_v46, %v5232_v22  ;;  %vm11035_vm9 = vmmov %vm11017_vm1 }
0x188f   : > { %v5302_v15 = vpop.permute.xlu0 %5301  ;;  %v5254_v40 = vpop.permute.xlu2 %5253 }
0x1890   : > { %v5256_v45 = vpop.permute.xlu1 %5255  ;;  %v5351_v6 = vsel %vm11012_vm8, %v5300_v11, %v5302_v15  ;;  %vm11021_vm8 = vmmov %vm11017_vm1  ;;  %v5352_v1 = vsel %vm11026_vm14, %v5302_v15, %v5304_v27  ;;  %v5153_v11 = vunpack.c.l.b16 %v5143_v61 }
0x1891   : > { %5412 = vmatpush.bf16.msrb.mxu2 %v5351_v6  ;;  %v5336_v57 = vsel %vm11013_vm7, %v5254_v40, %v5256_v45  ;;  %vm11022_vm7 = vmmov %vm11017_vm1 }
0x1892   : > { %5438 = vmatpush.bf16.msra.mxu1 %v5336_v57  ;;  %vm11033_vm14 = vmmov %vm11017_vm1 }
0x1895   : > { %5413 = vmatpush.bf16.msrb.mxu2 %v5349_v23 }
0x1896   : > { %5439 = vmatpush.bf16.msra.mxu1 %v5334_v28 }
0x1897   : > { %v5240_v29 = vpop.permute.xlu2 %5239 }
0x1898   : > { %v5252_v58 = vpop.permute.xlu1 %5251 }
0x1899   : > { %v5335_v47 = vsel %vm11017_vm1, %v5252_v58, %v5254_v40  ;;  %v5154_v40 = vunpack.c.h.b16 %v5143_v61 }
0x189a   : > { %5399 = vmatpush.bf16.msra.mxu0 %v5335_v47 }
0x189e   : > { %5400 = vmatpush.bf16.msra.mxu0 %v5333_v48 }
0x189f   : > { %v5292_v5 = vpop.permute.xlu0 %5291  ;;  %v5290_v17 = vpop.permute.xlu2 %5289 }
0x18a0   : > { %v5288_v59 = vpop.permute.xlu1 %5287 }
0x18a1   : > { %v5347_v19 = vsel %vm11019_vm6, %v5288_v59, %v5290_v17  ;;  %vm11027_vm6 = vmmov %vm11017_vm1 }
0x18a2   : > { %5414 = vmatpush.bf16.msrb.mxu2 %v5347_v19 }
0x18a6   : > { %5415 = vmatpush.bf16.msrb.mxu2 %v5345_v35 }
0x18a7   : > { %v5242_v54 = vpop.permute.xlu0 %5241  ;;  %v10383_v43 = vpop.permute.xlu2 %5313 }
0x18a8   : > { %v5312_v56 = vpop.permute.xlu1 %5311  ;;  %v5331_v25 = vsel %vm11021_vm8, %v5240_v29, %v5242_v54  ;;  %v5332_v14 = vsel %vm11022_vm7, %v5242_v54, %v5244_v26  ;;  %vm11029_vm8 = vmmov %vm11017_vm1 }
0x18a9   : > { %5401 = vmatpush.bf16.msra.mxu0 %v5331_v25  ;;  %v5355_v34 = vsel %vm11023_vm13, %v5312_v56, %v10383_v43  ;;  %5440 = vmatpush.bf16.msra.mxu1 %v5332_v14  ;;  %v5325_v63 = vsel %vm11029_vm8, %v10220_v51, %v10207_v13  ;;  %vm11030_vm7 = vmmov %vm11017_vm1 }
0x18aa   : > { %5431 = vmatpush.bf16.msrb.mxu3 %v5355_v34  ;;  %vm11031_vm13 = vmmov %vm11017_vm1 }
0x18ab   : > { %vm11036_vm8 = vmmov %vm11017_vm1 }
0x18ad   : > { %5402 = vmatpush.bf16.msra.mxu0 %v5329_v60  ;;  %5441 = vmatpush.bf16.msra.mxu1 %v5330_v3 }
0x18ae   : > { %5450 = vmatpush.bf16.msra.mxu3 %v10066_v0  ;;  %v5327_v0 = vsel %vm11027_vm6, %v5228_v21, %v5230_v46  ;;  %v5348_v46 = vsel %vm11031_vm13, %v5290_v17, %v5292_v5  ;;  %v5156_v21 = vpack.c.b16 %v5153_v11, %v5153_v11  ;;  %vm11034_vm6 = vmmov %vm11017_vm1 }
0x18af   : > { %6890 = vmatmul.msk.bf16.vlgmr.msrb.gmra.mxu3 %vm643_vm4, %v5158_v53  ;;  %v5274_v32 = vpop.permute.xlu0 %5273  ;;  %v5272_v2 = vpop.permute.xlu2 %5271  ;;  %vm11038_vm13 = vmmov %vm11017_vm1 }
0x18b0   : > { %v5226_v42 = vpop.permute.xlu1 %5225  ;;  %v5341_v15 = vsel %vm11034_vm6, %v10218_v41, %v5272_v2 }
0x18b1   : > { %5403 = vmatpush.bf16.msra.mxu0 %v5327_v0  ;;  %5442 = vmatpush.bf16.msra.mxu1 %v5328_v18  ;;  %v5326_v16 = vsel %vm11030_vm7, %v10207_v13, %v5226_v42  ;;  %v5346_v13 = vsel %vm11033_vm14, %v10214_v62, %v10057_v37  ;;  %vm11037_vm7 = vmmov %vm11017_vm1  ;;  %v5157_v37 = vpack.c.b16 %v5154_v40, %v5154_v40 }
0x18b2   : > { %5451 = vmatpush.bf16.msra.mxu3 %v5352_v1  ;;  %v5342_v62 = vsel %vm11038_vm13, %v5272_v2, %v5274_v32  ;;  %vm11040_vm14 = vmmov %vm11017_vm1  ;;  %vm11049_vm13 = vcmask 900096  }
0x18b5   : > { %5404 = vmatpush.bf16.msra.mxu0 %v5325_v63  ;;  %5443 = vmatpush.bf16.msra.mxu1 %v5326_v16 }
0x18b6   : > { %5452 = vmatpush.bf16.msra.mxu3 %v10156_v7  ;;  %v5323_v7 = vsel %vm11032_vm3, %v10360_v38, %v10358_v55  ;;  %vm11039_vm3 = vmmov %vm11017_vm1 }
0x18b7   : > { %v5276_v27 = vpop.permute.xlu0 %5275  ;;  %v5264_v26 = vpop.permute.xlu2 %5263 }
0x18b8   : > { %v5278_v22 = vpop.permute.xlu1 %5277 }
0x18b9   : > { %5405 = vmatpush.bf16.msra.mxu0 %v5323_v7  ;;  %v5343_v51 = vsel %vm11017_vm1, %v5276_v27, %v5278_v22  ;;  %v5344_v45 = vsel %vm11035_vm9, %v5278_v22, %v10362_v24 }
0x18ba   : > { %5453 = vmatpush.bf16.msra.mxu3 %v5348_v46  ;;  %5416 = vmatpush.bf16.msrb.mxu2 %v5343_v51 }
0x18bc   : > { %5406 = vmatmul.bf16.vlgmr.msra.gmra.mxu0 %v5156_v21 }
0x18be   : > { %5454 = vmatpush.bf16.msra.mxu3 %v5346_v13  ;;  %5417 = vmatpush.bf16.msrb.mxu2 %v5341_v15 }
0x18bf   : > { %v5266_v38 = vpop.permute.xlu0 %5265  ;;  %v5220_v6 = vpop.permute.xlu2 %5219 }
0x18c0   : > { %v5268_v57 = vpop.permute.xlu1 %5267  ;;  %v5339_v8 = vsel %vm11036_vm8, %v5264_v26, %v5266_v38  ;;  %v5324_v23 = vsel %vm11037_vm7, %v10358_v55, %v5220_v6  ;;  %v11042_v6 = vld [vmem:[#allocation11_spill] sm:$0xff]  ;;  %vm11047_vm8 = vcmask 908288  }
0x18c1   : > { %5444 = vmatpush.bf16.msra.mxu1 %v5324_v23  ;;  %v5340_v41 = vsel %vm11039_vm3, %v5266_v38, %v5268_v57  ;;  %vm11048_vm7 = vmmov %vm11047_vm8 }
0x18c2   : > { %5455 = vmatpush.bf16.msra.mxu3 %v5344_v45  ;;  %5418 = vmatpush.bf16.msrb.mxu2 %v5339_v8  ;;  %v11041_v45 = vld [vmem:[#allocation12_spill] sm:$0xff]  ;;  %vm11050_vm3 = vmmov %vm11049_vm13 }
0x18c4   : > { %5445 = vmatmul.bf16.vlgmr.msra.gmra.mxu1 %v5156_v21 }
0x18c5   : > { %5419 = vmatmul.bf16.vlgmr.msrb.gmra.mxu2 %v5157_v37 }
0x18c6   : > { %5456 = vmatpush.bf16.msra.mxu3 %v5342_v62 }
0x18c7   : > { %v5322_v24 = vpop.permute.xlu0 %5321  ;;  %v5149_v59 = vpop.permute.xlu2 %5148 }
0x18c8   : > { %v5358_v28 = vsel %vm11017_vm1, %v10209_v44, %v5322_v24  ;;  %v5316_v29 = vpop.permute.xlu1 %5315 }
0x18c9   : > { %5469 = vmatpush.bf16.msrb.mxu0 %v5358_v28  ;;  %v5356_v55 = vsel %vm11040_vm14, %v10383_v43, %v5316_v29  ;;  %v11043_v28 = vld [vmem:[#allocation10_spill] sm:$0xff]  ;;  %vm11053_vm14 = vmmov %vm11017_vm1 }
0x18ca   : > { %5457 = vmatpush.bf16.msra.mxu3 %v5340_v41 }
0x18cd   : > { %5458 = vmatmul.bf16.vlgmr.msra.gmra.mxu3 %v5157_v37  ;;  %5470 = vmatpush.bf16.msrb.mxu0 %v5356_v55 }
0x18d0   : > { %6891 = vmatmul.msk.bf16.vlgmr.msrb.gmra.mxu0 %vm643_vm4, %v5158_v53 }
0x1932   : > { %v5433_v58 = vpop.f32.mrf.mxu3 }
0x1939   : > { %v5407_v47 = vpop.f32.mrf.mxu0 }
0x193a   : > { %v5435_v48 = vpop.f32.mrf.mxu3  ;;  %v5408_v19 = vadd.f32 %v5407_v47, %v5149_v59 }
0x193b   : > { %v11045_v48 = vld [vmem:[#allocation14_spill] sm:$0xff] }
0x1941   : > { %v5446_v5 = vpop.f32.mrf.mxu1  ;;  %v5409_v17 = vpop.f32.mrf.mxu0 }
0x1942   : > { %v5447_v54 = vadd.f32 %v5446_v5, %v5149_v59  ;;  %v11046_v59 = vld [vmem:[#allocation13_spill] sm:$0xff] }
0x1948   : > { %v5420_v31 = vpop.f32.mrf.mxu2 }
0x1949   : > { %v5421_v35 = vadd.f32 %v5420_v31, %v5408_v19  ;;  %v5448_v9 = vpop.f32.mrf.mxu1 }
0x194b   : > { %v5434_v44 = vadd.f32 %v5433_v58, %v5421_v35  ;;  %v11044_v58 = vld [vmem:[#allocation17_spill] sm:$0xff] }
0x194d   : > { %v5478_v56 = vmin.f32 %v5434_v44, 0.0  ;;  %v5472_v14 = vpop.f32.mrf.mxu0  ;;  %vm5476_vm6 = vcmp.gt.f32.partialorder %v5434_v44, 0.0 }
0x194f   : > { %v5480_v43 = vmul.f32 1.442695, %v5478_v56 }
0x1950   : > { %v5459_v25 = vpop.f32.mrf.mxu3  ;;  %v5422_v60 = vpop.f32.mrf.mxu2 }
0x1951   : > { %v5460_v34 = vadd.f32 %v5459_v25, %v5447_v54  ;;  %7808 = vpow2.f32 %v5480_v43 }
0x1953   : > { %v5473_v12 = vadd.f32 %v5472_v14, %v5460_v34 }
0x1955   : > { %v5479_v53 = vmin.f32 %v5473_v12, 0.0  ;;  %v5474_v32 = vpop.f32.mrf.mxu0  ;;  %vm5477_vm9 = vcmp.gt.f32.partialorder %v5473_v12, 0.0 }
0x1957   : > { %v5482_v3 = vmul.f32 1.442695, %v5479_v53  ;;  %v7809_v2 = vpop.eup %7808 }
0x1958   : > { %v5461_v1 = vpop.f32.mrf.mxu3  ;;  %v6892_v42 = vadd.f32 -1.0, %v7809_v2 }
0x1959   : > { %7810 = vpow2.f32 %v5482_v3 }
0x195a   : > { %v5486_v0 = vsel %vm5476_vm6, %v5434_v44, %v6892_v42  ;;  %vm11054_vm6 = vmmov %vm11017_vm1 }
0x195b   : > { %5490 = vrot.lane.b32.xlu0 %v5486_v0, %s10916_s17 }
0x195f   : > { %v7811_v18 = vpop.eup %7810 }
0x1960   : > { %v6893_v61 = vadd.f32 -1.0, %v7811_v18 }
0x1962   : > { %v5487_v63 = vsel %vm5477_vm9, %v5473_v12, %v6893_v61  ;;  %vm11055_vm9 = vmmov %vm11017_vm1 }
0x1963   : > { %5492 = vrot.lane.b32.xlu1 %v5487_v63, %s10916_s17 }
0x19cd   : > { %v5491_v16 = vpop.permute.xlu0 %5490 }
0x19ce   : > { %v10434_v46 = vsel %vm643_vm4, 0.0, %v5491_v16 }
0x19cf   : > { %v5512_v21 = vmul.f32 %v10923_v52, %v10434_v46  ;;  %v5515_v15 = vmul.f32 %v10921_v20, %v10434_v46  ;;  %v5509_v57 = vmul.f32 %v11042_v6, %v10434_v46  ;;  %v5503_v24 = vmul.f32 %v10918_v39, %v10434_v46 }
0x19d0   : > { %v5506_v5 = vmul.f32 %v11045_v48, %v10434_v46 }
0x19d5   : > { %v5493_v11 = vpop.permute.xlu1 %5492 }
0x19d6   : > { %v10437_v27 = vsel %vm643_vm4, %v5491_v16, %v5493_v11  ;;  %v10440_v26 = vsel %vm643_vm4, %v5493_v11, 0.0 }
0x19d7   : > { %5602 = vrot.lane.b32.xlu1 %v10440_v26, %s10920_s28  ;;  %v7693_v22 = vpack.i.bf16 %v10437_v27, %v10434_v46  ;;  %v5513_v7 = vmul.f32 %v10437_v27, %v10924_v10  ;;  %v5516_v51 = vmul.f32 %v10437_v27, %v10922_v49  ;;  %v5510_v38 = vmul.f32 %v10437_v27, %v11041_v45 }
0x19d8   : > { %v5517_v23 = vmul.f32 %v10935_v33, %v10440_v26  ;;  %v5514_v37 = vmul.f32 %v10934_v30, %v10440_v26  ;;  %v5504_v62 = vmul.f32 %v10437_v27, %v10919_v4  ;;  %v5505_v41 = vmul.f32 %v10932_v50, %v10440_v26 }
0x19d9   : > { %7694 = vrot.lane.b32.xlu2 %v7693_v22, %s10912_s20  ;;  %7689 = vrot.lane.b32.xlu0 %v7693_v22, %s10920_s28  ;;  %v7703_v13 = vpack.i.bf16 %v5513_v7, %v5512_v21  ;;  %v7698_v40 = vpack.i.bf16 %v5516_v51, %v5515_v15  ;;  %v7708_v8 = vpack.i.bf16 %v5510_v38, %v5509_v57 }
0x19da   : > { %v5511_v29 = vmul.f32 %v11043_v28, %v10440_v26  ;;  %v7713_v55 = vpack.i.bf16 %v5504_v62, %v5503_v24  ;;  %v5507_v47 = vmul.f32 %v10437_v27, %v11044_v58  ;;  %v5508_v19 = vmul.f32 %v11046_v59, %v10440_v26 }
0x19dc   : > { %v7718_v17 = vpack.i.bf16 %v5507_v47, %v5506_v5 }
0x19df   : > { %7704 = vrot.lane.b32.xlu1 %v7703_v13, %s10926_s5 }
0x19e1   : > { %5563 = vrot.lane.b32.xlu0 %v10440_v26, %s10912_s20  ;;  %7699 = vrot.lane.b32.xlu2 %v7698_v40, %s10925_s0 }
0x19e7   : > { %7709 = vrot.lane.b32.xlu1 %v7708_v8, %s10894_s22 }
0x19e9   : > { %5616 = vrot.lane.b32.xlu0 %v5517_v23, %s10925_s0  ;;  %5591 = vrot.lane.b32.xlu2 %v5514_v37, %s10926_s5 }
0x19ef   : > { %5538 = vrot.lane.b32.xlu1 %v5505_v41, %s10896_s24 }
0x19f1   : > { %5577 = vrot.lane.b32.xlu2 %v5511_v29, %s10894_s22  ;;  %7714 = vrot.lane.b32.xlu0 %v7713_v55, %s10896_s24 }
0x19f7   : > { %7724 = vrot.lane.b32.xlu1 %v7693_v22, %s10897_s21 }
0x19f9   : > { %7719 = vrot.lane.b32.xlu2 %v7718_v17, %s10895_s2  ;;  %5552 = vrot.lane.b32.xlu0 %v5508_v19, %s10895_s2 }
0x1a01   : > { %5524 = vrot.lane.b32.xlu2 %v10440_v26, %s10897_s21 }
0x1a33   : > { %v7695_v31 = vpop.permute.xlu2 %7694 }
0x1a34   : > { %v7697_v16 = vunpack.i.h.bf16 %v7695_v31  ;;  %v7696_v11 = vunpack.i.l.bf16 %v7695_v31 }
0x1a36   : > { %v5565_v51 = vsel %vm11047_vm8, %v7696_v11, %v7697_v16  ;;  %vm11056_vm8 = vmmov %vm11017_vm1 }
0x1a3b   : > { %v7700_v35 = vpop.permute.xlu2 %7699 }
0x1a3c   : > { %v7702_v9 = vunpack.i.h.bf16 %v7700_v35  ;;  %v7701_v44 = vunpack.i.l.bf16 %v7700_v35 }
0x1a3e   : > { %v5618_v54 = vsel %vm833_vm10, %v7701_v44, %v7702_v9 }
0x1a3f   : > { %v5635_v56 = vpack.c.bf16 %v5618_v54, %v5618_v54 }
0x1a41   : > { %5684 = vrot.lane.b32.xlu0 %v5635_v56, %s10930_s25 }
0x1a43   : > { %v5592_v14 = vpop.permute.xlu2 %5591 }
0x1a49   : > { %v5603_v25 = vpop.permute.xlu1 %5602 }
0x1a4b   : > { %v7690_v34 = vpop.permute.xlu0 %7689  ;;  %v5578_v18 = vpop.permute.xlu2 %5577 }
0x1a4c   : > { %v7692_v43 = vunpack.i.h.bf16 %v7690_v34  ;;  %v7691_v12 = vunpack.i.l.bf16 %v7690_v34  ;;  %v5634_v34 = vpack.c.bf16 %v5603_v25, %v5592_v14 }
0x1a4e   : > { %v5605_v32 = vsel %vm818_vm12, %v7692_v43, %v5603_v25  ;;  %v5604_v2 = vsel %vm818_vm12, %v7691_v12, %v7692_v43 }
0x1a51   : > { %v7705_v60 = vpop.permute.xlu1 %7704 }
0x1a52   : > { %v7707_v53 = vunpack.i.h.bf16 %v7705_v60  ;;  %v7706_v3 = vunpack.i.l.bf16 %v7705_v60 }
0x1a53   : > { %v5564_v1 = vpop.permute.xlu0 %5563  ;;  %v7720_v37 = vpop.permute.xlu2 %7719 }
0x1a54   : > { %v5594_v42 = vsel %vm806_vm11, %v7707_v53, %v5592_v14  ;;  %v5593_v0 = vsel %vm806_vm11, %v7706_v3, %v7707_v53  ;;  %v5566_v15 = vsel %vm11048_vm7, %v7697_v16, %v5564_v1  ;;  %v7722_v24 = vunpack.i.h.bf16 %v7720_v37  ;;  %v11051_v53 = vld [vmem:[#allocation40_spill] sm:$0xff]  ;;  %v11052_v14 = vld [vmem:[#allocation43_spill] sm:$0xff]  ;;  %vm11057_vm7 = vmmov %vm11017_vm1 }
0x1a55   : > { %v5633_v61 = vpack.c.bf16 %v5605_v32, %v5594_v42  ;;  %v5632_v63 = vpack.c.bf16 %v5604_v2, %v5593_v0  ;;  %v7721_v29 = vunpack.i.l.bf16 %v7720_v37  ;;  %v5500_v3 = vmul.f32 %v11051_v53, %v10434_v46 }
0x1a56   : > { %v5501_v0 = vmul.f32 %v10437_v27, %v11052_v14 }
0x1a57   : > { %5678 = vrot.lane.b32.xlu2 %v5632_v63, %s10930_s25  ;;  %5680 = vrot.lane.b32.xlu0 %v5633_v61, %s10930_s25  ;;  %v5554_v19 = vsel %vm764_vm15, %v7721_v29, %v7722_v24  ;;  %v5631_v61 = vpack.c.bf16 %v5578_v18, %v5564_v1  ;;  %v5502_v63 = vmul.f32 %v10996_v36, %v10440_v26 }
0x1a59   : > { %v7710_v22 = vpop.permute.xlu1 %7709 }
0x1a5a   : > { %v7712_v7 = vunpack.i.h.bf16 %v7710_v22  ;;  %v7711_v21 = vunpack.i.l.bf16 %v7710_v22  ;;  %v5639_v22 = vld [vmem:[%s10691_s14 + $0x158] sm:$0xff] }
0x1a5b   : > { %v5617_v13 = vpop.permute.xlu0 %5616  ;;  %v5525_v42 = vpop.permute.xlu2 %5524 }
0x1a5c   : > { %v5580_v40 = vsel %vm11049_vm13, %v7712_v7, %v5578_v18  ;;  %v5579_v38 = vsel %vm11050_vm3, %v7711_v21, %v7712_v7  ;;  %v5637_v57 = vpack.c.bf16 %v5617_v13, %v5617_v13  ;;  %v5619_v62 = vsel %vm833_vm10, %v7702_v9, %v5617_v13  ;;  %vm11058_vm13 = vmmov %vm11017_vm1 }
0x1a5d   : > { %v5630_v8 = vpack.c.bf16 %v5580_v40, %v5566_v15  ;;  %v5629_v23 = vpack.c.bf16 %v5579_v38, %v5565_v51  ;;  %v5636_v47 = vpack.c.bf16 %v5619_v62, %v5619_v62  ;;  %v5625_v46 = vpack.c.bf16 %v5525_v42, %v5502_v63  ;;  %vm11059_vm3 = vmmov %vm11017_vm1 }
0x1a5e   : > { %5688 = vrot.lane.b32.xlu1 %v5637_v57, %s10930_s25 }
0x1a5f   : > { %5672 = vrot.lane.b32.xlu2 %v5629_v23, %s10930_s25  ;;  %5674 = vrot.lane.b32.xlu0 %v5630_v8, %s10930_s25 }
0x1a61   : > { %v5539_v41 = vpop.permute.xlu1 %5538 }
0x1a63   : > { %v7715_v55 = vpop.permute.xlu0 %7714 }
0x1a64   : > { %v7717_v5 = vunpack.i.h.bf16 %v7715_v55  ;;  %v7716_v17 = vunpack.i.l.bf16 %v7715_v55 }
0x1a66   : > { %v5540_v31 = vsel %vm749_vm0, %v7716_v17, %v7717_v5  ;;  %5686 = vrot.lane.b32.xlu1 %v5636_v47, %s10930_s25  ;;  %v5541_v12 = vsel %vm749_vm0, %v7717_v5, %v5539_v41 }
0x1a67   : > { %v5626_v35 = vpack.c.bf16 %v5554_v19, %v5540_v31  ;;  %v5638_v19 = vld [vmem:[%s10689_s12] sm:$0xf] }
0x1a69   : > { %v7725_v44 = vpop.permute.xlu1 %7724  ;;  %5666 = vrot.lane.b32.xlu2 %v5626_v35, %s10930_s25 }
0x1a6a   : > { %v7727_v54 = vunpack.i.h.bf16 %v7725_v44  ;;  %v7726_v56 = vunpack.i.l.bf16 %v7725_v44 }
0x1a6b   : > { %v5553_v9 = vpop.permute.xlu0 %5552 }
0x1a6c   : > { %v5526_v43 = vsel %vm734_vm2, %v7726_v56, %v7727_v54  ;;  %v5555_v60 = vsel %vm764_vm15, %v7722_v24, %v5553_v9  ;;  %v5527_v25 = vsel %vm734_vm2, %v7727_v54, %v5525_v42  ;;  %v5628_v11 = vpack.c.bf16 %v5553_v9, %v5539_v41 }
0x1a6d   : > { %v5627_v32 = vpack.c.bf16 %v5555_v60, %v5541_v12  ;;  %v5623_v2 = vpack.c.bf16 %v5526_v43, %v5500_v3  ;;  %v5624_v16 = vpack.c.bf16 %v5527_v25, %v5501_v0 }
0x1a6e   : > { %5682 = vrot.lane.b32.xlu1 %v5634_v34, %s10930_s25 }
0x1a6f   : > { %5668 = vrot.lane.b32.xlu0 %v5627_v32, %s10930_s25 }
0x1a71   : > { %5660 = vrot.lane.b32.xlu2 %v5623_v2, %s10930_s25 }
0x1a76   : > { %5676 = vrot.lane.b32.xlu1 %v5631_v61, %s10930_s25 }
0x1a77   : > { %5662 = vrot.lane.b32.xlu0 %v5624_v16, %s10930_s25 }
0x1a79   : > { %5664 = vrot.lane.b32.xlu2 %v5625_v46, %s10930_s25 }
0x1a7e   : > { %5670 = vrot.lane.b32.xlu1 %v5628_v11, %s10930_s25 }
0x1a7f   : > { %5642 = vperm.xlu0 %7165, %v5639_v22  }
0x1ab1   : > { %v5679_v1 = vpop.permute.xlu2 %5678 }
0x1ab3   : > { %v5685_v27 = vpop.permute.xlu0 %5684 }
0x1ab9   : > { %v5673_v7 = vpop.permute.xlu2 %5672 }
0x1ac3   : > { %v5667_v8 = vpop.permute.xlu2 %5666 }
0x1ac9   : > { %v5681_v18 = vpop.permute.xlu0 %5680 }
0x1aca   : > { %v5696_v57 = vsel %vm11054_vm6, %v5679_v1, %v5681_v18  ;;  %vm11062_vm6 = vmmov %vm11059_vm3 }
0x1acb   : > { %v5661_v55 = vpop.permute.xlu2 %5660 }
0x1ad0   : > { %v5689_v26 = vpop.permute.xlu1 %5688 }
0x1ad1   : > { %v5675_v51 = vpop.permute.xlu0 %5674 }
0x1ad2   : > { %v5694_v41 = vsel %vm11056_vm8, %v5673_v7, %v5675_v51 }
0x1ad3   : > { %v5665_v44 = vpop.permute.xlu2 %5664 }
0x1ad8   : > { %v5687_v21 = vpop.permute.xlu1 %5686 }
0x1ad9   : > { %v5698_v13 = vsel %vm11017_vm1, %v5685_v27, %v5687_v21  ;;  %v5699_v15 = vsel %vm11053_vm14, %v5687_v21, %v5689_v26  ;;  %vm11060_vm1 = vcmask 588800   ;;  %vm11061_vm14 = vmmov %vm11059_vm3 }
0x1ada   : > { %v5712_v40 = vsel %vm929_vm5, %v5698_v13, 0  ;;  %v5715_v38 = vsel %vm929_vm5, %v5699_v15, 0 }
0x1adb   : > { %5720 = vmatpush.bf16.msra.mxu2 %v5712_v40  ;;  %5733 = vmatpush.bf16.msra.mxu0 %v5715_v38 }
0x1adf   : > { %5721 = vmatpush.bf16.msra.mxu2 %v5696_v57 }
0x1ae0   : > { %v5683_v23 = vpop.permute.xlu1 %5682 }
0x1ae1   : > { %v5669_v37 = vpop.permute.xlu0 %5668  ;;  %v5697_v62 = vsel %vm11055_vm9, %v5681_v18, %v5683_v23  ;;  %vm11063_vm9 = vmmov %vm11060_vm1 }
0x1ae2   : > { %5734 = vmatpush.bf16.msra.mxu0 %v5697_v62  ;;  %v5692_v24 = vsel %vm11057_vm7, %v5667_v8, %v5669_v37 }
0x1ae3   : > { %5722 = vmatpush.bf16.msra.mxu2 %v5694_v41 }
0x1ae7   : > { %5723 = vmatpush.bf16.msra.mxu2 %v5692_v24 }
0x1ae8   : > { %v5677_v29 = vpop.permute.xlu1 %5676 }
0x1ae9   : > { %v5663_v47 = vpop.permute.xlu0 %5662  ;;  %v5695_v5 = vsel %vm11058_vm13, %v5675_v51, %v5677_v29 }
0x1aea   : > { %5735 = vmatpush.bf16.msra.mxu0 %v5695_v5  ;;  %v5690_v17 = vsel %vm11059_vm3, %v5661_v55, %v5663_v47  ;;  %v5691_v54 = vsel %vm11062_vm6, %v5663_v47, %v5665_v44 }
0x1aeb   : > { %5724 = vmatpush.bf16.msra.mxu2 %v5690_v17 }
0x1aee   : > { %6894 = vmatmul.msk.bf16.vlgmr.msra.gmra.mxu2 %vm11060_vm1, %v5638_v19 }
0x1af0   : > { %v5671_v31 = vpop.permute.xlu1 %5670 }
0x1af1   : > { %v5693_v35 = vsel %vm11061_vm14, %v5669_v37, %v5671_v31  ;;  %v5643_v56 = vpop.permute.xlu0 %5642 }
0x1af2   : > { %5736 = vmatpush.bf16.msra.mxu0 %v5693_v35 }
0x1af6   : > { %5737 = vmatpush.bf16.msra.mxu0 %v5691_v54 }
0x1af9   : > { %6895 = vmatmul.msk.bf16.vlgmr.msra.gmra.mxu0 %vm11063_vm9, %v5638_v19 }
0x1b71   : > { %v5726_v9 = vpop.f32.mrf.mxu2 }
0x1b72   : > { %v5727_v34 = vadd.f32 %v5726_v9, %v5643_v56 }
0x1b74   : > { %v5745_v43 = vmin.f32 %v5727_v34, 0.0  ;;  %vm5743_vm8 = vcmp.gt.f32.partialorder %v5727_v34, 0.0 }
0x1b76   : > { %v5747_v12 = vmul.f32 1.442695, %v5745_v43  ;;  %v5739_v60 = vpop.f32.mrf.mxu0 }
0x1b77   : > { %v5740_v3 = vadd.f32 %v5739_v60, %v5643_v56 }
0x1b78   : > { %7812 = vpow2.f32 %v5747_v12 }
0x1b79   : > { %v5746_v32 = vmin.f32 %v5740_v3, 0.0  ;;  %v5728_v2 = vpop.f32.mrf.mxu2  ;;  %vm5744_vm7 = vcmp.gt.f32.partialorder %v5740_v3, 0.0 }
0x1b7b   : > { %v5749_v42 = vmul.f32 1.442695, %v5746_v32 }
0x1b7d   : > { %7814 = vpow2.f32 %v5749_v42 }
0x1b7e   : > { %v7813_v25 = vpop.eup %7812  ;;  %v5741_v0 = vpop.f32.mrf.mxu0 }
0x1b7f   : > { %v6896_v61 = vadd.f32 -1.0, %v7813_v25 }
0x1b81   : > { %v5753_v63 = vsel %vm5743_vm8, %v5727_v34, %v6896_v61 }
0x1b82   : > { %5757 = vrot.lane.b32.xlu1 %v5753_v63, %s10916_s17 }
0x1b83   : > { %v7815_v16 = vpop.eup %7814 }
0x1b84   : > { %v6897_v46 = vadd.f32 -1.0, %v7815_v16 }
0x1b86   : > { %v5754_v11 = vsel %vm5744_vm7, %v5740_v3, %v6897_v46  ;;  %vm11078_vm7 = vcmask 588800  }
0x1b87   : > { %5759 = vrot.lane.b32.xlu2 %v5754_v11, %s10916_s17 }
0x1be1   : > { %v5760_v22 = vpop.permute.xlu2 %5759 }
0x1be2   : > { %v10553_v27 = vsel %vm643_vm4, %v5760_v22, 0.0 }
0x1be3   : > { %v5784_v21 = vmul.f32 %v10935_v33, %v10553_v27  ;;  %v5778_v15 = vmul.f32 %v11043_v28, %v10553_v27  ;;  %v5781_v38 = vmul.f32 %v10934_v30, %v10553_v27  ;;  %v5772_v57 = vmul.f32 %v10932_v50, %v10553_v27 }
0x1be4   : > { %v5775_v50 = vmul.f32 %v11046_v59, %v10553_v27 }
0x1bf4   : > { %v5758_v1 = vpop.permute.xlu1 %5757 }
0x1bf5   : > { %v10556_v18 = vsel %vm643_vm4, %v5758_v1, %v5760_v22  ;;  %v10572_v40 = vsel %vm643_vm4, 0.0, %v5758_v1  ;;  %vm11064_vm4 = vcmask 908288  }
0x1bf6   : > { %v7733_v26 = vpack.i.bf16 %v10553_v27, %v10556_v18  ;;  %v5783_v7 = vmul.f32 %v10556_v18, %v10922_v49  ;;  %v5777_v13 = vmul.f32 %v10556_v18, %v11041_v45  ;;  %v5782_v33 = vmul.f32 %v10921_v20, %v10572_v40 }
0x1bf7   : > { %v5780_v45 = vmul.f32 %v10556_v18, %v10924_v10  ;;  %v5771_v28 = vmul.f32 %v10556_v18, %v10919_v4  ;;  %v5779_v20 = vmul.f32 %v10923_v52, %v10572_v40  ;;  %v5774_v4 = vmul.f32 %v10556_v18, %v11044_v58 }
0x1bf8   : > { %7734 = vrot.lane.b32.xlu1 %v7733_v26, %s10912_s20  ;;  %7729 = vrot.lane.b32.xlu2 %v7733_v26, %s10920_s28  ;;  %v7738_v51 = vpack.i.bf16 %v5784_v21, %v5783_v7  ;;  %v7748_v49 = vpack.i.bf16 %v5778_v15, %v5777_v13  ;;  %v5776_v10 = vmul.f32 %v11042_v6, %v10572_v40 }
0x1bf9   : > { %v7743_v8 = vpack.i.bf16 %v5781_v38, %v5780_v45  ;;  %v7753_v23 = vpack.i.bf16 %v5772_v57, %v5771_v28  ;;  %v7758_v30 = vpack.i.bf16 %v5775_v50, %v5774_v4  ;;  %v5770_v52 = vmul.f32 %v10918_v39, %v10572_v40 }
0x1bfa   : > { %7739 = vrot.lane.b32.xlu0 %v7738_v51, %s10925_s0  ;;  %v5773_v58 = vmul.f32 %v11045_v48, %v10572_v40 }
0x1c00   : > { %5865 = vrot.lane.b32.xlu1 %v10572_v40, %s10920_s28  ;;  %7749 = vrot.lane.b32.xlu2 %v7748_v49, %s10894_s22 }
0x1c02   : > { %5879 = vrot.lane.b32.xlu0 %v5782_v33, %s10925_s0  ;;  %s11080_s0 = sld [smem:[#allocation58_spill]] }
0x1c08   : > { %7744 = vrot.lane.b32.xlu1 %v7743_v8, %s10926_s5  ;;  %7754 = vrot.lane.b32.xlu2 %v7753_v23, %s10896_s24 }
0x1c0a   : > { %5854 = vrot.lane.b32.xlu0 %v5779_v20, %s10926_s5 }
0x1c10   : > { %5826 = vrot.lane.b32.xlu1 %v10572_v40, %s10912_s20  ;;  %5840 = vrot.lane.b32.xlu2 %v5776_v10, %s10894_s22  ;;  %s6903_s20 = sshll.u32 %s11083_s30, 3 }
0x1c11   : > { %s602_s5 = scalar_lea.vmem %s11080_s0, %s6903_s20 }
0x1c12   : > { %7759 = vrot.lane.b32.xlu0 %v7758_v30, %s10895_s2 }
0x1c18   : > { %5801 = vrot.lane.b32.xlu1 %v5770_v52, %s10896_s24  ;;  %5815 = vrot.lane.b32.xlu2 %v5773_v58, %s10895_s2  ;;  %v5768_v58 = vmul.f32 %v10556_v18, %v11052_v14  ;;  %v5906_v14 = vld [vmem:[%s10691_s14 + $0x160] sm:$0x7] }
0x1c1a   : > { %7764 = vrot.lane.b32.xlu0 %v7733_v26, %s10897_s21 }
0x1c22   : > { %5787 = vrot.lane.b32.xlu0 %v10572_v40, %s10897_s21 }
0x1c52   : > { %v7730_v6 = vpop.permute.xlu2 %7729 }
0x1c53   : > { %v7732_v5 = vunpack.i.h.bf16 %v7730_v6  ;;  %v7731_v17 = vunpack.i.l.bf16 %v7730_v6 }
0x1c55   : > { %v5872_v54 = vsel %vm818_vm12, %v7731_v17, %v7732_v5 }
0x1c5a   : > { %v7750_v41 = vpop.permute.xlu2 %7749 }
0x1c5b   : > { %v7752_v42 = vunpack.i.h.bf16 %v7750_v41  ;;  %v7751_v25 = vunpack.i.l.bf16 %v7750_v41 }
0x1c62   : > { %v7755_v19 = vpop.permute.xlu2 %7754 }
0x1c63   : > { %v7757_v15 = vunpack.i.h.bf16 %v7755_v19  ;;  %v7756_v49 = vunpack.i.l.bf16 %v7755_v19 }
0x1c65   : > { %v5808_v57 = vsel %vm749_vm0, %v7756_v49, %v7757_v15 }
0x1c6a   : > { %v7735_v59 = vpop.permute.xlu1 %7734  ;;  %v5841_v16 = vpop.permute.xlu2 %5840 }
0x1c6b   : > { %v7737_v32 = vunpack.i.h.bf16 %v7735_v59  ;;  %v7736_v2 = vunpack.i.l.bf16 %v7735_v59 }
0x1c6c   : > { %v7740_v37 = vpop.permute.xlu0 %7739 }
0x1c6d   : > { %v7742_v62 = vunpack.i.h.bf16 %v7740_v37  ;;  %v7741_v29 = vunpack.i.l.bf16 %v7740_v37  ;;  %v5833_v63 = vsel %vm11064_vm4, %v7736_v2, %v7737_v32  ;;  %v5898_v8 = vpack.c.bf16 %v7752_v42, %v7737_v32 }
0x1c6f   : > { %v5904_v24 = vpack.c.bf16 %v7742_v62, %v7742_v62  ;;  %v5886_v0 = vsel %vm833_vm10, %v7741_v29, %v7742_v62  ;;  %v5769_v62 = vmul.f32 %v10996_v36, %v10553_v27 }
0x1c70   : > { %v5903_v1 = vpack.c.bf16 %v5886_v0, %v5886_v0 }
0x1c71   : > { %5955 = vrot.lane.b32.xlu2 %v5904_v24, %s10930_s25  ;;  %v5767_v24 = vmul.f32 %v11051_v53, %v10572_v40 }
0x1c72   : > { %v5866_v39 = vpop.permute.xlu1 %5865  ;;  %v5816_v23 = vpop.permute.xlu2 %5815 }
0x1c73   : > { %v5871_v9 = vsel %vm818_vm12, %v5866_v39, %v7731_v17  ;;  %vm11065_vm12 = vmmov %vm11064_vm4 }
0x1c74   : > { %v5880_v48 = vpop.permute.xlu0 %5879  ;;  %vm11079_vm4 = vmmov %vm11078_vm7 }
0x1c75   : > { %v5885_v55 = vsel %vm833_vm10, %v5880_v48, %v7741_v29  ;;  %vm11068_vm10 = vmmov %vm11059_vm3 }
0x1c76   : > { %v5902_v47 = vpack.c.bf16 %v5885_v55, %v5885_v55 }
0x1c79   : > { %5951 = vrot.lane.b32.xlu2 %v5902_v47, %s10930_s25 }
0x1c7a   : > { %v7745_v31 = vpop.permute.xlu1 %7744 }
0x1c7b   : > { %v7747_v35 = vunpack.i.h.bf16 %v7745_v31  ;;  %v7746_v44 = vunpack.i.l.bf16 %v7745_v31 }
0x1c7c   : > { %v5855_v56 = vpop.permute.xlu0 %5854 }
0x1c7d   : > { %v5901_v34 = vpack.c.bf16 %v7732_v5, %v7747_v35  ;;  %v5861_v43 = vsel %vm806_vm11, %v7746_v44, %v7747_v35  ;;  %v5860_v12 = vsel %vm806_vm11, %v5855_v56, %v7746_v44  ;;  %vm11066_vm11 = vcmask 900096  }
0x1c7e   : > { %v5900_v60 = vpack.c.bf16 %v5872_v54, %v5861_v43  ;;  %v5899_v3 = vpack.c.bf16 %v5871_v9, %v5860_v12  ;;  %v5847_v22 = vsel %vm11066_vm11, %v7751_v25, %v7752_v42  ;;  %vm11067_vm13 = vmmov %vm11066_vm11 }
0x1c7f   : > { %5949 = vrot.lane.b32.xlu1 %v5901_v34, %s10930_s25  ;;  %v5897_v26 = vpack.c.bf16 %v5847_v22, %v5833_v63  ;;  %v5846_v7 = vsel %vm11067_vm13, %v5841_v16, %v7751_v25 }
0x1c80   : > { %5947 = vrot.lane.b32.xlu0 %v5900_v60, %s10930_s25 }
0x1c81   : > { %5945 = vrot.lane.b32.xlu2 %v5899_v3, %s10930_s25 }
0x1c82   : > { %v5827_v61 = vpop.permute.xlu1 %5826 }
0x1c83   : > { %v5832_v46 = vsel %vm11065_vm12, %v5827_v61, %v7736_v2  ;;  %v5905_v61 = vld [vmem:[%s10690_s13] sm:$0x3] }
0x1c84   : > { %v7760_v11 = vpop.permute.xlu0 %7759  ;;  %v5896_v21 = vpack.c.bf16 %v5846_v7, %v5832_v46 }
0x1c85   : > { %v7762_v51 = vunpack.i.h.bf16 %v7760_v11  ;;  %v7761_v13 = vunpack.i.l.bf16 %v7760_v11 }
0x1c87   : > { %5953 = vrot.lane.b32.xlu1 %v5903_v1, %s10930_s25  ;;  %v5822_v45 = vsel %vm764_vm15, %v7761_v13, %v7762_v51  ;;  %v5821_v4 = vsel %vm764_vm15, %v5816_v23, %v7761_v13  ;;  %v5895_v6 = vpack.c.bf16 %v7762_v51, %v7757_v15  ;;  %vm11069_vm15 = vmmov %vm11059_vm3 }
0x1c88   : > { %5941 = vrot.lane.b32.xlu0 %v5897_v26, %s10930_s25  ;;  %v5894_v20 = vpack.c.bf16 %v5822_v45, %v5808_v57 }
0x1c89   : > { %5939 = vrot.lane.b32.xlu2 %v5896_v21, %s10930_s25 }
0x1c8a   : > { %v5802_v33 = vpop.permute.xlu1 %5801 }
0x1c8b   : > { %v5807_v28 = vsel %vm749_vm0, %v5802_v33, %v7756_v49  ;;  %vm11070_vm0 = vmmov %vm11059_vm3 }
0x1c8c   : > { %v7765_v38 = vpop.permute.xlu0 %7764  ;;  %v5893_v10 = vpack.c.bf16 %v5821_v4, %v5807_v28  ;;  %vm11072_vm3 = vmmov %vm11070_vm0 }
0x1c8d   : > { %v7767_v50 = vunpack.i.h.bf16 %v7765_v38  ;;  %v7766_v30 = vunpack.i.l.bf16 %v7765_v38  ;;  %vm11073_vm1 = vmmov %vm11070_vm0 }
0x1c8e   : > { %vm11074_vm14 = vmmov %vm11070_vm0 }
0x1c8f   : > { %5943 = vrot.lane.b32.xlu1 %v5898_v8, %s10930_s25  ;;  %v5794_v52 = vsel %vm734_vm2, %v7766_v30, %v7767_v50  ;;  %v5892_v39 = vpack.c.bf16 %v7767_v50, %v5769_v62  ;;  %vm11075_vm6 = vmmov %vm11070_vm0 }
0x1c90   : > { %5935 = vrot.lane.b32.xlu0 %v5894_v20, %s10930_s25  ;;  %v5891_v59 = vpack.c.bf16 %v5794_v52, %v5768_v58  ;;  %vm11076_vm9 = vmmov %vm11070_vm0 }
0x1c91   : > { %5933 = vrot.lane.b32.xlu2 %v5893_v10, %s10930_s25  ;;  %vm11077_vm8 = vmmov %vm11070_vm0 }
0x1c94   : > { %v5788_v37 = vpop.permute.xlu0 %5787 }
0x1c95   : > { %v5793_v41 = vsel %vm734_vm2, %v5788_v37, %v7766_v30  ;;  %vm11071_vm2 = vmmov %vm11070_vm0 }
0x1c96   : > { %v5890_v29 = vpack.c.bf16 %v5793_v41, %v5767_v24 }
0x1c97   : > { %5937 = vrot.lane.b32.xlu1 %v5895_v6, %s10930_s25 }
0x1c98   : > { %5929 = vrot.lane.b32.xlu0 %v5891_v59, %s10930_s25 }
0x1c9f   : > { %5931 = vrot.lane.b32.xlu1 %v5892_v39, %s10930_s25 }
0x1ca0   : > { %5927 = vrot.lane.b32.xlu0 %v5890_v29, %s10930_s25 }
0x1ca7   : > { %5909 = vperm.xlu1 %7287, %v5906_v14  }
0x1ccb   : > { %v5956_v18 = vpop.permute.xlu2 %5955 }
0x1cd3   : > { %v5952_v48 = vpop.permute.xlu2 %5951 }
0x1cdb   : > { %v5946_v36 = vpop.permute.xlu2 %5945 }
0x1ce3   : > { %v5940_v31 = vpop.permute.xlu2 %5939 }
0x1ceb   : > { %v5934_v43 = vpop.permute.xlu2 %5933 }
0x1cf1   : > { %v5950_v55 = vpop.permute.xlu1 %5949 }
0x1cf2   : > { %v5948_v27 = vpop.permute.xlu0 %5947 }
0x1cf3   : > { %v5963_v35 = vsel %vm11070_vm0, %v5946_v36, %v5948_v27  ;;  %v5964_v44 = vsel %vm11071_vm2, %v5948_v27, %v5950_v55 }
0x1cf9   : > { %v5954_v47 = vpop.permute.xlu1 %5953 }
0x1cfa   : > { %v5965_v5 = vsel %vm11068_vm10, %v5952_v48, %v5954_v47  ;;  %v5966_v53 = vsel %vm11069_vm15, %v5954_v47, %v5956_v18  ;;  %v5942_v40 = vpop.permute.xlu0 %5941 }
0x1cfb   : > { %v5979_v17 = vsel %vm929_vm5, %v5965_v5, 0  ;;  %v5982_v19 = vsel %vm929_vm5, %v5966_v53, 0  ;;  %v5961_v34 = vsel %vm11073_vm1, %v5940_v31, %v5942_v40 }
0x1cfc   : > { %5987 = vmatpush.bf16.msrb.mxu1 %v5979_v17  ;;  %6000 = vmatpush.bf16.msrb.mxu3 %v5982_v19 }
0x1d00   : > { %5988 = vmatpush.bf16.msrb.mxu1 %v5963_v35  ;;  %6001 = vmatpush.bf16.msrb.mxu3 %v5964_v44 }
0x1d01   : > { %v5944_v54 = vpop.permute.xlu1 %5943 }
0x1d02   : > { %v5936_v56 = vpop.permute.xlu0 %5935  ;;  %v5962_v9 = vsel %vm11072_vm3, %v5942_v40, %v5944_v54 }
0x1d03   : > { %v5959_v12 = vsel %vm11074_vm14, %v5934_v43, %v5936_v56 }
0x1d04   : > { %5989 = vmatpush.bf16.msrb.mxu1 %v5961_v34  ;;  %6002 = vmatpush.bf16.msrb.mxu3 %v5962_v9 }
0x1d08   : > { %5990 = vmatpush.bf16.msrb.mxu1 %v5959_v12 }
0x1d09   : > { %v5938_v60 = vpop.permute.xlu1 %5937 }
0x1d0a   : > { %v5930_v3 = vpop.permute.xlu0 %5929  ;;  %v5960_v32 = vsel %vm11075_vm6, %v5936_v56, %v5938_v60 }
0x1d0b   : > { %6003 = vmatpush.bf16.msrb.mxu3 %v5960_v32 }
0x1d11   : > { %v5932_v2 = vpop.permute.xlu1 %5931 }
0x1d12   : > { %v5928_v42 = vpop.permute.xlu0 %5927  ;;  %v5958_v25 = vsel %vm11076_vm9, %v5930_v3, %v5932_v2 }
0x1d13   : > { %6004 = vmatpush.bf16.msrb.mxu3 %v5958_v25  ;;  %v5957_v0 = vsel %vm11077_vm8, %v5928_v42, %v5930_v3 }
0x1d14   : > { %5991 = vmatpush.bf16.msrb.mxu1 %v5957_v0 }
0x1d16   : > { %6899 = vmatmul.msk.bf16.vlgmr.msrb.gmra.mxu3 %vm11078_vm7, %v5905_v61 }
0x1d17   : > { %6898 = vmatmul.msk.bf16.vlgmr.msrb.gmra.mxu1 %vm11079_vm4, %v5905_v61 }
0x1d19   : > { %v5910_v16 = vpop.permute.xlu1 %5909 }
0x1d94   : > { %v5993_v63 = vpop.f32.mrf.mxu1 }
0x1d95   : > { %v5994_v22 = vadd.f32 %v5993_v63, %v5910_v16 }
0x1d99   : > { %v6006_v46 = vpop.f32.mrf.mxu3 }
0x1d9a   : > { %v6007_v11 = vadd.f32 %v6006_v46, %v5910_v16 }
0x1d9c   : > { %v6012_v1 = vrot.slane %v6007_v11, 4  ;;  %v5995_v26 = vpop.f32.mrf.mxu1 }
0x1d9e   : > { %v6013_v7 = vsel %vm929_vm5, %v5994_v22, %v6012_v1 }
0x1d9f   : > { %6015 = vst [vmem:[%s602_s5] sm:$0x77] %v6013_v7 }
0x1da1   : > { %v6008_v21 = vpop.f32.mrf.mxu3 }
0x1da2 PF: > { %s11081_s25 = sld [smem:[#allocation2_spill]] }
0x1da8   : > { %s29_s0 = sadd.s32 1, %s11081_s25  }
0x1da9   : > { %p26_p4 = scmp.ge.s32.totalorder %s29_s0, 4  }
0x1dab   :  { %28 = sbr.rel (!%p26_p4) target bundleno = 12 (0xc), region = 138 }

</bundles_post_ra>
